<compile_context>
chip_gen: v7x
topology: tpu7x:2x2x1
jax: 0.10.0
libtpu: 0.0.40
codegen_flags: <defaults>
</compile_context>

<pallas_src>
import functools

import jax
import jax.numpy as jnp
from jax.experimental import pallas as pl
from jax.experimental.pallas import tpu as pltpu

T = 64              # sequence length
C_IN = 7            # input sensor channels
C_IN_PAD = 8        # sublane/lane friendly padded input channels
C_HID = 64          # hidden channels of every TCN layer
K = 3               # conv kernel size
DILATIONS = (1, 2, 4, 8)
PAD1 = (K - 1) * DILATIONS[0]        # 2: causal left pad of layer 1 (applied to x)
PAD_S = (K - 1) * max(DILATIONS)     # 16: causal left-pad rows of the hidden scratch
LAST = 8            # timesteps evaluated by layer 4 (only T-1 is consumed by the head)
LANES = 128         # lane-dense output width
MAX_TB = 128        # largest batch tile (footprint ~8 MiB, fits default scoped VMEM on all gens)


def _choose_tb(batch):
    """Batch tile: as large as possible (<= MAX_TB) while keeping >= 2 grid steps."""
    half = -(-batch // 2)            # ceil(batch / 2) -> at least 2 grid steps (v7x megacore)
    tb = -(-half // 8) * 8           # round up to a sublane multiple
    return max(8, min(MAX_TB, tb))


def tcn_kernel(TB, x_ref, w1_ref, b1_ref, w2_ref, b2_ref, w3_ref, b3_ref,
               w4_ref, b4_ref, fcw_ref, fcb_ref, out_ref, pad_ref):
    # Zero the causal left-pad rows of the scratch.  Layer bodies only ever write rows
    # [PAD_S:], so shifted tap slices read zeros for t < shift.  This is deliberately done
    # every grid step: guarding with pl.when(program_id == 0) is unsafe when the "parallel"
    # axis is sharded across TensorCores (each core owns a private scratch and the second
    # core never sees program_id 0).  The store is only (TB, 16, 64) bf16 -- noise next to
    # the layer matmuls.
    pad_ref[:, :PAD_S, :] = jnp.zeros((TB, PAD_S, C_HID), jnp.bfloat16)

    # ---- layer 1: taps straight from the (already causally padded) f32 input block.
    acc = None
    for k in range(K):
        tap = x_ref[:, k:k + T, :].reshape(TB * T, C_IN_PAD).astype(jnp.bfloat16)
        part = jnp.dot(tap, w1_ref[k], preferred_element_type=jnp.float32)
        acc = part if acc is None else acc + part
    h = jnp.maximum(acc + b1_ref[...], 0.0)                            # (TB*T, 64) f32
    pad_ref[:, PAD_S:, :] = h.astype(jnp.bfloat16).reshape(TB, T, C_HID)
    # TODO(synk): nn.Dropout(0.3) between layers is identity at inference; no mask applied.

    # ---- layers 2 and 3: read taps from / write output back into the bf16 scratch.
    for w_ref, b_ref, d in ((w2_ref, b2_ref, DILATIONS[1]),
                            (w3_ref, b3_ref, DILATIONS[2])):
        acc = None
        for k in range(K):
            start = PAD_S - (K - 1 - k) * d                            # even for d in {2, 4}
            tap = pad_ref[:, start:start + T, :].reshape(TB * T, C_HID)
            part = jnp.dot(tap, w_ref[k], preferred_element_type=jnp.float32)
            acc = part if acc is None else acc + part
        h = jnp.maximum(acc + b_ref[...], 0.0)
        pad_ref[:, PAD_S:, :] = h.astype(jnp.bfloat16).reshape(TB, T, C_HID)

    # ---- layer 4: only the last LAST timesteps are needed (FC head reads t = T-1 only).
    acc = None
    for k in range(K):
        start = PAD_S + (T - LAST) - (K - 1 - k) * DILATIONS[3]        # 56, 64, 72 (aligned)
        tap = pad_ref[:, start:start + LAST, :].reshape(TB * LAST, C_HID)
        part = jnp.dot(tap, w4_ref[k], preferred_element_type=jnp.float32)
        acc = part if acc is None else acc + part
    last = acc.reshape(TB, LAST, C_HID)[:, LAST - 1, :]                # (TB, 64) f32
    h4 = jnp.maximum(last + b4_ref[...], 0.0)

    # ---- FC head, lane-dense (fc weight tiled 64 -> 128) so the store is an unmasked block.
    y = jnp.dot(h4.astype(jnp.bfloat16), fcw_ref[...],
                preferred_element_type=jnp.float32)                    # (TB, 128)
    out_ref[...] = y + fcb_ref[...]


def tcn_forward(x_nct, params):
    """x_nct: (B, C_IN, T) float32 (PyTorch NCW layout). Returns (B,) float32 logits."""
    (w1, b1, w2, b2, w3, b3, w4, b4, fcw, fcb) = params
    B = x_nct.shape[0]
    TB = _choose_tb(B)
    B_pad = pl.cdiv(B, TB) * TB

    # (B, C, T) -> (B, T, C); channel pad 7 -> 8, causal left pad of 2 rows for layer 1
    # (so the layer-1 taps are plain slices of the input block), batch pad to TB multiple.
    x = jnp.transpose(x_nct, (0, 2, 1))
    x = jnp.pad(x, ((0, B_pad - B), (PAD1, 0), (0, C_IN_PAD - C_IN)))

    # Per-tap weight layout (K, Cin, Cout), bf16 MXU inputs; biases stay f32.
    w1p = jnp.pad(w1, ((0, 0), (0, C_IN_PAD - C_IN), (0, 0))).astype(jnp.bfloat16)
    w2p = w2.astype(jnp.bfloat16)
    w3p = w3.astype(jnp.bfloat16)
    w4p = w4.astype(jnp.bfloat16)
    fcw_wide = jnp.tile(fcw, (1, LANES)).astype(jnp.bfloat16)          # (64, 128)
    fcb_wide = jnp.tile(fcb, (1, LANES))                               # (1, 128) f32

    def full_spec(a):
        nd = a.ndim
        return pl.BlockSpec(a.shape, lambda b: (0,) * nd)

    out = pl.pallas_call(
        functools.partial(tcn_kernel, TB),
        out_shape=jax.ShapeDtypeStruct((B_pad, LANES), jnp.float32),
        grid_spec=pltpu.PrefetchScalarGridSpec(
            num_scalar_prefetch=0,
            grid=(B_pad // TB,),
            in_specs=[
                pl.BlockSpec((TB, T + PAD1, C_IN_PAD), lambda b: (b, 0, 0)),
                full_spec(w1p), full_spec(b1),
                full_spec(w2p), full_spec(b2),
                full_spec(w3p), full_spec(b3),
                full_spec(w4p), full_spec(b4),
                full_spec(fcw_wide), full_spec(fcb_wide),
            ],
            out_specs=pl.BlockSpec((TB, LANES), lambda b: (b, 0)),
            # bf16 causal-pad scratch; persists across grid steps.  Rows [:PAD_S] are only
            # ever written by the per-step zeroing in the kernel (documented invariant).
            # TODO(synk): on v5e benchmark f32 scratch vs bf16 (no bf16 VPU on that part).
            scratch_shapes=[pltpu.VMEM((TB, T + PAD_S, C_HID), jnp.bfloat16)],
        ),
        compiler_params=pltpu.CompilerParams(
            dimension_semantics=("parallel",)),
    )(x, w1p, b1, w2p, b2, w3p, b3, w4p, b4, fcw_wide, fcb_wide)
    return out[:B, 0]


def ref_forward(x_nct, params):
    """Pure-JAX reference using the same bf16-activation / f32-accumulate math."""
    (w1, b1, w2, b2, w3, b3, w4, b4, fcw, fcb) = params
    h = jnp.transpose(x_nct, (0, 2, 1)).astype(jnp.bfloat16)           # (B, T, 7)
    for (w, b), d in zip(((w1, b1), (w2, b2), (w3, b3), (w4, b4)), DILATIONS):
        wb = w.astype(jnp.bfloat16)
        acc = None
        for k in range(K):
            shift = (K - 1 - k) * d
            tap = jnp.pad(h, ((0, 0), (shift, 0), (0, 0)))[:, :T, :]
            part = jnp.einsum('btc,cd->btd', tap, wb[k],
                              preferred_element_type=jnp.float32)
            acc = part if acc is None else acc + part
        h = jnp.maximum(acc + b, 0.0).astype(jnp.bfloat16)
    last = h[:, -1, :]                                                  # (B, 64) bf16
    y = jnp.dot(last, fcw.astype(jnp.bfloat16),
                preferred_element_type=jnp.float32) + fcb
    return y[:, 0]


if __name__ == "__main__":
    key = jax.random.PRNGKey(0)
    ks = jax.random.split(key, 11)

    def init(k, shape, fan_in):
        bound = 1.0 / (fan_in ** 0.5)
        return jax.random.uniform(k, shape, jnp.float32, -bound, bound)

    # Conv1d weights stored as (K, Cin, Cout) = PyTorch (Cout, Cin, K) transposed.
    w1 = init(ks[0], (K, C_IN, C_HID), C_IN * K)
    b1 = init(ks[1], (1, C_HID), C_IN * K)
    w2 = init(ks[2], (K, C_HID, C_HID), C_HID * K)
    b2 = init(ks[3], (1, C_HID), C_HID * K)
    w3 = init(ks[4], (K, C_HID, C_HID), C_HID * K)
    b3 = init(ks[5], (1, C_HID), C_HID * K)
    w4 = init(ks[6], (K, C_HID, C_HID), C_HID * K)
    b4 = init(ks[7], (1, C_HID), C_HID * K)
    # Linear(64, 1): weight stored transposed as (64, 1), bias as (1, 1).
    fcw = init(ks[8], (C_HID, 1), C_HID)
    fcb = init(ks[9], (1, 1), C_HID)
    params = (w1, b1, w2, b2, w3, b3, w4, b4, fcw, fcb)

    B = 32                                           # -> TB=16, grid=2 (even split on v7x)
    x = jax.random.normal(ks[10], (B, C_IN, T), jnp.float32)            # PyTorch NCW input

    out = jax.block_until_ready(jax.jit(tcn_forward)(x, params))
    ref = ref_forward(x, params)
    assert out.shape == (B,), out.shape
    assert jnp.allclose(out, ref, atol=5e-3, rtol=5e-3), (out, ref)
    print("KERNEL_OK")
</pallas_src>

<mosaic_0001>
module attributes {stable_mosaic.version = 11 : i64} {
  func.func @tcn_kernel(%arg0: i32, %arg1: memref<16x66x8xf32, #tpu.memory_space<vmem>>, %arg2: memref<3x8x64xbf16, #tpu.memory_space<vmem>>, %arg3: memref<1x64xf32, #tpu.memory_space<vmem>>, %arg4: memref<3x64x64xbf16, #tpu.memory_space<vmem>>, %arg5: memref<1x64xf32, #tpu.memory_space<vmem>>, %arg6: memref<3x64x64xbf16, #tpu.memory_space<vmem>>, %arg7: memref<1x64xf32, #tpu.memory_space<vmem>>, %arg8: memref<3x64x64xbf16, #tpu.memory_space<vmem>>, %arg9: memref<1x64xf32, #tpu.memory_space<vmem>>, %arg10: memref<64x128xbf16, #tpu.memory_space<vmem>>, %arg11: memref<1x128xf32, #tpu.memory_space<vmem>>, %arg12: memref<16x128xf32, #tpu.memory_space<vmem>>, %arg13: memref<16x80x64xbf16, #tpu.memory_space<vmem>>) attributes {dimension_semantics = [#tpu.dimension_semantics<parallel>], iteration_bounds = array<i64: 2>, scalar_prefetch = 0 : i64, scratch_operands = 1 : i64, tpu.core_type = #tpu.core_type<tc>, window_params = [{transform_indices = @transform_0, window_bounds = array<i64: 16, 66, 8>}, {pipeline_mode = #tpu.pipeline_mode<synchronous>, transform_indices = @transform_1, window_bounds = array<i64: 3, 8, 64>}, {pipeline_mode = #tpu.pipeline_mode<synchronous>, transform_indices = @transform_2, window_bounds = array<i64: 1, 64>}, {pipeline_mode = #tpu.pipeline_mode<synchronous>, transform_indices = @transform_3, window_bounds = array<i64: 3, 64, 64>}, {pipeline_mode = #tpu.pipeline_mode<synchronous>, transform_indices = @transform_4, window_bounds = array<i64: 1, 64>}, {pipeline_mode = #tpu.pipeline_mode<synchronous>, transform_indices = @transform_5, window_bounds = array<i64: 3, 64, 64>}, {pipeline_mode = #tpu.pipeline_mode<synchronous>, transform_indices = @transform_6, window_bounds = array<i64: 1, 64>}, {pipeline_mode = #tpu.pipeline_mode<synchronous>, transform_indices = @transform_7, window_bounds = array<i64: 3, 64, 64>}, {pipeline_mode = #tpu.pipeline_mode<synchronous>, transform_indices = @transform_8, window_bounds = array<i64: 1, 64>}, {pipeline_mode = #tpu.pipeline_mode<synchronous>, transform_indices = @transform_9, window_bounds = array<i64: 64, 128>}, {pipeline_mode = #tpu.pipeline_mode<synchronous>, transform_indices = @transform_10, window_bounds = array<i64: 1, 128>}, {transform_indices = @transform_11, window_bounds = array<i64: 16, 128>}]} {
    %cst = arith.constant 0.000000e+00 : bf16
    %0 = vector.broadcast %cst : bf16 to vector<16x16x64xbf16>
    %c0 = arith.constant 0 : index
    %c0_0 = arith.constant 0 : index
    %c0_1 = arith.constant 0 : index
    %1 = vector.load %arg13[%c0, %c0_0, %c0_1] : memref<16x80x64xbf16, #tpu.memory_space<vmem>>, vector<16x16x64xbf16>
    tpu.vector_store %arg13[%c0, %c0_0, %c0_1], %0 {strides = array<i32>} : memref<16x80x64xbf16, #tpu.memory_space<vmem>>, vector<16x16x64xbf16>,
    %c0_2 = arith.constant 0 : index
    %c0_3 = arith.constant 0 : index
    %c0_4 = arith.constant 0 : index
    %2 = vector.load %arg1[%c0_2, %c0_3, %c0_4] : memref<16x66x8xf32, #tpu.memory_space<vmem>>, vector<16x64x8xf32>
    %3 = vector.shape_cast %2 : vector<16x64x8xf32> to vector<1024x8xf32>
    %4 = arith.truncf %3 : vector<1024x8xf32> to vector<1024x8xbf16>
    %c0_5 = arith.constant 0 : index
    %c0_6 = arith.constant 0 : index
    %c0_7 = arith.constant 0 : index
    %5 = vector.load %arg2[%c0_5, %c0_6, %c0_7] : memref<3x8x64xbf16, #tpu.memory_space<vmem>>, vector<1x8x64xbf16>
    %6 = vector.shape_cast %5 : vector<1x8x64xbf16> to vector<8x64xbf16>
    %cst_8 = arith.constant dense<0.000000e+00> : vector<1024x64xf32>
    %7 = tpu.matmul %4, %6, %cst_8 {dimension_numbers = #tpu.dot_dimension_numbers<[1], [0], [0], [1], [0, 0, 1, 1], [], []>} : vector<1024x8xbf16>, vector<8x64xbf16>, vector<1024x64xf32> -> vector<1024x64xf32>
    %c0_9 = arith.constant 0 : index
    %c1 = arith.constant 1 : index
    %c0_10 = arith.constant 0 : index
    %8 = vector.load %arg1[%c0_9, %c1, %c0_10] : memref<16x66x8xf32, #tpu.memory_space<vmem>>, vector<16x64x8xf32>
    %9 = vector.shape_cast %8 : vector<16x64x8xf32> to vector<1024x8xf32>
    %10 = arith.truncf %9 : vector<1024x8xf32> to vector<1024x8xbf16>
    %c1_11 = arith.constant 1 : index
    %c0_12 = arith.constant 0 : index
    %c0_13 = arith.constant 0 : index
    %11 = vector.load %arg2[%c1_11, %c0_12, %c0_13] : memref<3x8x64xbf16, #tpu.memory_space<vmem>>, vector<1x8x64xbf16>
    %12 = vector.shape_cast %11 : vector<1x8x64xbf16> to vector<8x64xbf16>
    %cst_14 = arith.constant dense<0.000000e+00> : vector<1024x64xf32>
    %13 = tpu.matmul %10, %12, %cst_14 {dimension_numbers = #tpu.dot_dimension_numbers<[1], [0], [0], [1], [0, 0, 1, 1], [], []>} : vector<1024x8xbf16>, vector<8x64xbf16>, vector<1024x64xf32> -> vector<1024x64xf32>
    %14 = arith.addf %7, %13 : vector<1024x64xf32>
    %c0_15 = arith.constant 0 : index
    %c2 = arith.constant 2 : index
    %c0_16 = arith.constant 0 : index
    %15 = vector.load %arg1[%c0_15, %c2, %c0_16] : memref<16x66x8xf32, #tpu.memory_space<vmem>>, vector<16x64x8xf32>
    %16 = vector.shape_cast %15 : vector<16x64x8xf32> to vector<1024x8xf32>
    %17 = arith.truncf %16 : vector<1024x8xf32> to vector<1024x8xbf16>
    %c2_17 = arith.constant 2 : index
    %c0_18 = arith.constant 0 : index
    %c0_19 = arith.constant 0 : index
    %18 = vector.load %arg2[%c2_17, %c0_18, %c0_19] : memref<3x8x64xbf16, #tpu.memory_space<vmem>>, vector<1x8x64xbf16>
    %19 = vector.shape_cast %18 : vector<1x8x64xbf16> to vector<8x64xbf16>
    %cst_20 = arith.constant dense<0.000000e+00> : vector<1024x64xf32>
    %20 = tpu.matmul %17, %19, %cst_20 {dimension_numbers = #tpu.dot_dimension_numbers<[1], [0], [0], [1], [0, 0, 1, 1], [], []>} : vector<1024x8xbf16>, vector<8x64xbf16>, vector<1024x64xf32> -> vector<1024x64xf32>
    %21 = arith.addf %14, %20 : vector<1024x64xf32>
    %c0_21 = arith.constant 0 : index
    %c0_22 = arith.constant 0 : index
    %22 = vector.load %arg3[%c0_21, %c0_22] : memref<1x64xf32, #tpu.memory_space<vmem>>, vector<1x64xf32>
    %23 = vector.broadcast %22 : vector<1x64xf32> to vector<1024x64xf32>
    %24 = arith.addf %21, %23 : vector<1024x64xf32>
    %cst_23 = arith.constant 0.000000e+00 : f32
    %25 = vector.broadcast %cst_23 : f32 to vector<1024x64xf32>
    %26 = arith.maximumf %24, %25 : vector<1024x64xf32>
    %27 = arith.truncf %26 : vector<1024x64xf32> to vector<1024x64xbf16>
    %28 = vector.shape_cast %27 : vector<1024x64xbf16> to vector<16x64x64xbf16>
    %c0_24 = arith.constant 0 : index
    %c16 = arith.constant 16 : index
    %c0_25 = arith.constant 0 : index
    %29 = vector.load %arg13[%c0_24, %c16, %c0_25] : memref<16x80x64xbf16, #tpu.memory_space<vmem>>, vector<16x64x64xbf16>
    tpu.vector_store %arg13[%c0_24, %c16, %c0_25], %28 {strides = array<i32>} : memref<16x80x64xbf16, #tpu.memory_space<vmem>>, vector<16x64x64xbf16>,
    %c0_26 = arith.constant 0 : index
    %c12 = arith.constant 12 : index
    %c0_27 = arith.constant 0 : index
    %30 = vector.load %arg13[%c0_26, %c12, %c0_27] : memref<16x80x64xbf16, #tpu.memory_space<vmem>>, vector<16x64x64xbf16>
    %31 = vector.shape_cast %30 : vector<16x64x64xbf16> to vector<1024x64xbf16>
    %c0_28 = arith.constant 0 : index
    %c0_29 = arith.constant 0 : index
    %c0_30 = arith.constant 0 : index
    %32 = vector.load %arg4[%c0_28, %c0_29, %c0_30] : memref<3x64x64xbf16, #tpu.memory_space<vmem>>, vector<1x64x64xbf16>
    %33 = vector.shape_cast %32 : vector<1x64x64xbf16> to vector<64x64xbf16>
    %cst_31 = arith.constant dense<0.000000e+00> : vector<1024x64xf32>
    %34 = tpu.matmul %31, %33, %cst_31 {dimension_numbers = #tpu.dot_dimension_numbers<[1], [0], [0], [1], [0, 0, 1, 1], [], []>} : vector<1024x64xbf16>, vector<64x64xbf16>, vector<1024x64xf32> -> vector<1024x64xf32>
    %c0_32 = arith.constant 0 : index
    %c14 = arith.constant 14 : index
    %c0_33 = arith.constant 0 : index
    %35 = vector.load %arg13[%c0_32, %c14, %c0_33] : memref<16x80x64xbf16, #tpu.memory_space<vmem>>, vector<16x64x64xbf16>
    %36 = vector.shape_cast %35 : vector<16x64x64xbf16> to vector<1024x64xbf16>
    %c1_34 = arith.constant 1 : index
    %c0_35 = arith.constant 0 : index
    %c0_36 = arith.constant 0 : index
    %37 = vector.load %arg4[%c1_34, %c0_35, %c0_36] : memref<3x64x64xbf16, #tpu.memory_space<vmem>>, vector<1x64x64xbf16>
    %38 = vector.shape_cast %37 : vector<1x64x64xbf16> to vector<64x64xbf16>
    %cst_37 = arith.constant dense<0.000000e+00> : vector<1024x64xf32>
    %39 = tpu.matmul %36, %38, %cst_37 {dimension_numbers = #tpu.dot_dimension_numbers<[1], [0], [0], [1], [0, 0, 1, 1], [], []>} : vector<1024x64xbf16>, vector<64x64xbf16>, vector<1024x64xf32> -> vector<1024x64xf32>
    %40 = arith.addf %34, %39 : vector<1024x64xf32>
    %c0_38 = arith.constant 0 : index
    %c16_39 = arith.constant 16 : index
    %c0_40 = arith.constant 0 : index
    %41 = vector.load %arg13[%c0_38, %c16_39, %c0_40] : memref<16x80x64xbf16, #tpu.memory_space<vmem>>, vector<16x64x64xbf16>
    %42 = vector.shape_cast %41 : vector<16x64x64xbf16> to vector<1024x64xbf16>
    %c2_41 = arith.constant 2 : index
    %c0_42 = arith.constant 0 : index
    %c0_43 = arith.constant 0 : index
    %43 = vector.load %arg4[%c2_41, %c0_42, %c0_43] : memref<3x64x64xbf16, #tpu.memory_space<vmem>>, vector<1x64x64xbf16>
    %44 = vector.shape_cast %43 : vector<1x64x64xbf16> to vector<64x64xbf16>
    %cst_44 = arith.constant dense<0.000000e+00> : vector<1024x64xf32>
    %45 = tpu.matmul %42, %44, %cst_44 {dimension_numbers = #tpu.dot_dimension_numbers<[1], [0], [0], [1], [0, 0, 1, 1], [], []>} : vector<1024x64xbf16>, vector<64x64xbf16>, vector<1024x64xf32> -> vector<1024x64xf32>
    %46 = arith.addf %40, %45 : vector<1024x64xf32>
    %c0_45 = arith.constant 0 : index
    %c0_46 = arith.constant 0 : index
    %47 = vector.load %arg5[%c0_45, %c0_46] : memref<1x64xf32, #tpu.memory_space<vmem>>, vector<1x64xf32>
    %48 = vector.broadcast %47 : vector<1x64xf32> to vector<1024x64xf32>
    %49 = arith.addf %46, %48 : vector<1024x64xf32>
    %cst_47 = arith.constant 0.000000e+00 : f32
    %50 = vector.broadcast %cst_47 : f32 to vector<1024x64xf32>
    %51 = arith.maximumf %49, %50 : vector<1024x64xf32>
    %52 = arith.truncf %51 : vector<1024x64xf32> to vector<1024x64xbf16>
    %53 = vector.shape_cast %52 : vector<1024x64xbf16> to vector<16x64x64xbf16>
    %c0_48 = arith.constant 0 : index
    %c16_49 = arith.constant 16 : index
    %c0_50 = arith.constant 0 : index
    %54 = vector.load %arg13[%c0_48, %c16_49, %c0_50] : memref<16x80x64xbf16, #tpu.memory_space<vmem>>, vector<16x64x64xbf16>
    tpu.vector_store %arg13[%c0_48, %c16_49, %c0_50], %53 {strides = array<i32>} : memref<16x80x64xbf16, #tpu.memory_space<vmem>>, vector<16x64x64xbf16>,
    %c0_51 = arith.constant 0 : index
    %c8 = arith.constant 8 : index
    %c0_52 = arith.constant 0 : index
    %55 = vector.load %arg13[%c0_51, %c8, %c0_52] : memref<16x80x64xbf16, #tpu.memory_space<vmem>>, vector<16x64x64xbf16>
    %56 = vector.shape_cast %55 : vector<16x64x64xbf16> to vector<1024x64xbf16>
    %c0_53 = arith.constant 0 : index
    %c0_54 = arith.constant 0 : index
    %c0_55 = arith.constant 0 : index
    %57 = vector.load %arg6[%c0_53, %c0_54, %c0_55] : memref<3x64x64xbf16, #tpu.memory_space<vmem>>, vector<1x64x64xbf16>
    %58 = vector.shape_cast %57 : vector<1x64x64xbf16> to vector<64x64xbf16>
    %cst_56 = arith.constant dense<0.000000e+00> : vector<1024x64xf32>
    %59 = tpu.matmul %56, %58, %cst_56 {dimension_numbers = #tpu.dot_dimension_numbers<[1], [0], [0], [1], [0, 0, 1, 1], [], []>} : vector<1024x64xbf16>, vector<64x64xbf16>, vector<1024x64xf32> -> vector<1024x64xf32>
    %c0_57 = arith.constant 0 : index
    %c12_58 = arith.constant 12 : index
    %c0_59 = arith.constant 0 : index
    %60 = vector.load %arg13[%c0_57, %c12_58, %c0_59] : memref<16x80x64xbf16, #tpu.memory_space<vmem>>, vector<16x64x64xbf16>
    %61 = vector.shape_cast %60 : vector<16x64x64xbf16> to vector<1024x64xbf16>
    %c1_60 = arith.constant 1 : index
    %c0_61 = arith.constant 0 : index
    %c0_62 = arith.constant 0 : index
    %62 = vector.load %arg6[%c1_60, %c0_61, %c0_62] : memref<3x64x64xbf16, #tpu.memory_space<vmem>>, vector<1x64x64xbf16>
    %63 = vector.shape_cast %62 : vector<1x64x64xbf16> to vector<64x64xbf16>
    %cst_63 = arith.constant dense<0.000000e+00> : vector<1024x64xf32>
    %64 = tpu.matmul %61, %63, %cst_63 {dimension_numbers = #tpu.dot_dimension_numbers<[1], [0], [0], [1], [0, 0, 1, 1], [], []>} : vector<1024x64xbf16>, vector<64x64xbf16>, vector<1024x64xf32> -> vector<1024x64xf32>
    %65 = arith.addf %59, %64 : vector<1024x64xf32>
    %c0_64 = arith.constant 0 : index
    %c16_65 = arith.constant 16 : index
    %c0_66 = arith.constant 0 : index
    %66 = vector.load %arg13[%c0_64, %c16_65, %c0_66] : memref<16x80x64xbf16, #tpu.memory_space<vmem>>, vector<16x64x64xbf16>
    %67 = vector.shape_cast %66 : vector<16x64x64xbf16> to vector<1024x64xbf16>
    %c2_67 = arith.constant 2 : index
    %c0_68 = arith.constant 0 : index
    %c0_69 = arith.constant 0 : index
    %68 = vector.load %arg6[%c2_67, %c0_68, %c0_69] : memref<3x64x64xbf16, #tpu.memory_space<vmem>>, vector<1x64x64xbf16>
    %69 = vector.shape_cast %68 : vector<1x64x64xbf16> to vector<64x64xbf16>
    %cst_70 = arith.constant dense<0.000000e+00> : vector<1024x64xf32>
    %70 = tpu.matmul %67, %69, %cst_70 {dimension_numbers = #tpu.dot_dimension_numbers<[1], [0], [0], [1], [0, 0, 1, 1], [], []>} : vector<1024x64xbf16>, vector<64x64xbf16>, vector<1024x64xf32> -> vector<1024x64xf32>
    %71 = arith.addf %65, %70 : vector<1024x64xf32>
    %c0_71 = arith.constant 0 : index
    %c0_72 = arith.constant 0 : index
    %72 = vector.load %arg7[%c0_71, %c0_72] : memref<1x64xf32, #tpu.memory_space<vmem>>, vector<1x64xf32>
    %73 = vector.broadcast %72 : vector<1x64xf32> to vector<1024x64xf32>
    %74 = arith.addf %71, %73 : vector<1024x64xf32>
    %cst_73 = arith.constant 0.000000e+00 : f32
    %75 = vector.broadcast %cst_73 : f32 to vector<1024x64xf32>
    %76 = arith.maximumf %74, %75 : vector<1024x64xf32>
    %77 = arith.truncf %76 : vector<1024x64xf32> to vector<1024x64xbf16>
    %78 = vector.shape_cast %77 : vector<1024x64xbf16> to vector<16x64x64xbf16>
    %c0_74 = arith.constant 0 : index
    %c16_75 = arith.constant 16 : index
    %c0_76 = arith.constant 0 : index
    %79 = vector.load %arg13[%c0_74, %c16_75, %c0_76] : memref<16x80x64xbf16, #tpu.memory_space<vmem>>, vector<16x64x64xbf16>
    tpu.vector_store %arg13[%c0_74, %c16_75, %c0_76], %78 {strides = array<i32>} : memref<16x80x64xbf16, #tpu.memory_space<vmem>>, vector<16x64x64xbf16>,
    %c0_77 = arith.constant 0 : index
    %c56 = arith.constant 56 : index
    %c0_78 = arith.constant 0 : index
    %80 = vector.load %arg13[%c0_77, %c56, %c0_78] : memref<16x80x64xbf16, #tpu.memory_space<vmem>>, vector<16x8x64xbf16>
    %81 = vector.shape_cast %80 : vector<16x8x64xbf16> to vector<128x64xbf16>
    %c0_79 = arith.constant 0 : index
    %c0_80 = arith.constant 0 : index
    %c0_81 = arith.constant 0 : index
    %82 = vector.load %arg8[%c0_79, %c0_80, %c0_81] : memref<3x64x64xbf16, #tpu.memory_space<vmem>>, vector<1x64x64xbf16>
    %83 = vector.shape_cast %82 : vector<1x64x64xbf16> to vector<64x64xbf16>
    %cst_82 = arith.constant dense<0.000000e+00> : vector<128x64xf32>
    %84 = tpu.matmul %81, %83, %cst_82 {dimension_numbers = #tpu.dot_dimension_numbers<[1], [0], [0], [1], [0, 0, 1, 1], [], []>} : vector<128x64xbf16>, vector<64x64xbf16>, vector<128x64xf32> -> vector<128x64xf32>
    %c0_83 = arith.constant 0 : index
    %c64 = arith.constant 64 : index
    %c0_84 = arith.constant 0 : index
    %85 = vector.load %arg13[%c0_83, %c64, %c0_84] : memref<16x80x64xbf16, #tpu.memory_space<vmem>>, vector<16x8x64xbf16>
    %86 = vector.shape_cast %85 : vector<16x8x64xbf16> to vector<128x64xbf16>
    %c1_85 = arith.constant 1 : index
    %c0_86 = arith.constant 0 : index
    %c0_87 = arith.constant 0 : index
    %87 = vector.load %arg8[%c1_85, %c0_86, %c0_87] : memref<3x64x64xbf16, #tpu.memory_space<vmem>>, vector<1x64x64xbf16>
    %88 = vector.shape_cast %87 : vector<1x64x64xbf16> to vector<64x64xbf16>
    %cst_88 = arith.constant dense<0.000000e+00> : vector<128x64xf32>
    %89 = tpu.matmul %86, %88, %cst_88 {dimension_numbers = #tpu.dot_dimension_numbers<[1], [0], [0], [1], [0, 0, 1, 1], [], []>} : vector<128x64xbf16>, vector<64x64xbf16>, vector<128x64xf32> -> vector<128x64xf32>
    %90 = arith.addf %84, %89 : vector<128x64xf32>
    %c0_89 = arith.constant 0 : index
    %c72 = arith.constant 72 : index
    %c0_90 = arith.constant 0 : index
    %91 = vector.load %arg13[%c0_89, %c72, %c0_90] : memref<16x80x64xbf16, #tpu.memory_space<vmem>>, vector<16x8x64xbf16>
    %92 = vector.shape_cast %91 : vector<16x8x64xbf16> to vector<128x64xbf16>
    %c2_91 = arith.constant 2 : index
    %c0_92 = arith.constant 0 : index
    %c0_93 = arith.constant 0 : index
    %93 = vector.load %arg8[%c2_91, %c0_92, %c0_93] : memref<3x64x64xbf16, #tpu.memory_space<vmem>>, vector<1x64x64xbf16>
    %94 = vector.shape_cast %93 : vector<1x64x64xbf16> to vector<64x64xbf16>
    %cst_94 = arith.constant dense<0.000000e+00> : vector<128x64xf32>
    %95 = tpu.matmul %92, %94, %cst_94 {dimension_numbers = #tpu.dot_dimension_numbers<[1], [0], [0], [1], [0, 0, 1, 1], [], []>} : vector<128x64xbf16>, vector<64x64xbf16>, vector<128x64xf32> -> vector<128x64xf32>
    %96 = arith.addf %90, %95 : vector<128x64xf32>
    %97 = vector.shape_cast %96 : vector<128x64xf32> to vector<16x8x64xf32>
    %98 = vector.extract_strided_slice %97 {offsets = [0, 7, 0], sizes = [16, 1, 64], strides = [1, 1, 1]} : vector<16x8x64xf32> to vector<16x1x64xf32>
    %99 = vector.shape_cast %98 : vector<16x1x64xf32> to vector<16x64xf32>
    %c0_95 = arith.constant 0 : index
    %c0_96 = arith.constant 0 : index
    %100 = vector.load %arg9[%c0_95, %c0_96] : memref<1x64xf32, #tpu.memory_space<vmem>>, vector<1x64xf32>
    %101 = vector.broadcast %100 : vector<1x64xf32> to vector<16x64xf32>
    %102 = arith.addf %99, %101 : vector<16x64xf32>
    %cst_97 = arith.constant 0.000000e+00 : f32
    %103 = vector.broadcast %cst_97 : f32 to vector<16x64xf32>
    %104 = arith.maximumf %102, %103 : vector<16x64xf32>
    %105 = arith.truncf %104 : vector<16x64xf32> to vector<16x64xbf16>
    %c0_98 = arith.constant 0 : index
    %c0_99 = arith.constant 0 : index
    %106 = vector.load %arg10[%c0_98, %c0_99] : memref<64x128xbf16, #tpu.memory_space<vmem>>, vector<64x128xbf16>
    %cst_100 = arith.constant dense<0.000000e+00> : vector<16x128xf32>
    %107 = tpu.matmul %105, %106, %cst_100 {dimension_numbers = #tpu.dot_dimension_numbers<[1], [0], [0], [1], [0, 0, 1, 1], [], []>} : vector<16x64xbf16>, vector<64x128xbf16>, vector<16x128xf32> -> vector<16x128xf32>
    %c0_101 = arith.constant 0 : index
    %c0_102 = arith.constant 0 : index
    %108 = vector.load %arg11[%c0_101, %c0_102] : memref<1x128xf32, #tpu.memory_space<vmem>>, vector<1x128xf32>
    %109 = vector.broadcast %108 : vector<1x128xf32> to vector<16x128xf32>
    %110 = arith.addf %107, %109 : vector<16x128xf32>
    %c0_103 = arith.constant 0 : index
    %c0_104 = arith.constant 0 : index
    %111 = vector.load %arg12[%c0_103, %c0_104] : memref<16x128xf32, #tpu.memory_space<vmem>>, vector<16x128xf32>
    tpu.vector_store %arg12[%c0_103, %c0_104], %110 {strides = array<i32>} : memref<16x128xf32, #tpu.memory_space<vmem>>, vector<16x128xf32>,
    return
  }
  func.func @transform_0(%arg0: i32) -> (i32, i32, i32) {
    %c0_i32 = arith.constant 0 : i32
    %c0_i32_0 = arith.constant 0 : i32
    %c0_i32_1 = arith.constant 0 : i32
    return %arg0, %c0_i32, %c0_i32_0 : i32, i32, i32
  }
  func.func @transform_1(%arg0: i32) -> (i32, i32, i32) {
    %c0_i32 = arith.constant 0 : i32
    %c0_i32_0 = arith.constant 0 : i32
    %c0_i32_1 = arith.constant 0 : i32
    %c0_i32_2 = arith.constant 0 : i32
    return %c0_i32, %c0_i32_0, %c0_i32_1 : i32, i32, i32
  }
  func.func @transform_2(%arg0: i32) -> (i32, i32) {
    %c0_i32 = arith.constant 0 : i32
    %c0_i32_0 = arith.constant 0 : i32
    %c0_i32_1 = arith.constant 0 : i32
    return %c0_i32, %c0_i32_0 : i32, i32
  }
  func.func @transform_3(%arg0: i32) -> (i32, i32, i32) {
    %c0_i32 = arith.constant 0 : i32
    %c0_i32_0 = arith.constant 0 : i32
    %c0_i32_1 = arith.constant 0 : i32
    %c0_i32_2 = arith.constant 0 : i32
    return %c0_i32, %c0_i32_0, %c0_i32_1 : i32, i32, i32
  }
  func.func @transform_4(%arg0: i32) -> (i32, i32) {
    %c0_i32 = arith.constant 0 : i32
    %c0_i32_0 = arith.constant 0 : i32
    %c0_i32_1 = arith.constant 0 : i32
    return %c0_i32, %c0_i32_0 : i32, i32
  }
  func.func @transform_5(%arg0: i32) -> (i32, i32, i32) {
    %c0_i32 = arith.constant 0 : i32
    %c0_i32_0 = arith.constant 0 : i32
    %c0_i32_1 = arith.constant 0 : i32
    %c0_i32_2 = arith.constant 0 : i32
    return %c0_i32, %c0_i32_0, %c0_i32_1 : i32, i32, i32
  }
  func.func @transform_6(%arg0: i32) -> (i32, i32) {
    %c0_i32 = arith.constant 0 : i32
    %c0_i32_0 = arith.constant 0 : i32
    %c0_i32_1 = arith.constant 0 : i32
    return %c0_i32, %c0_i32_0 : i32, i32
  }
  func.func @transform_7(%arg0: i32) -> (i32, i32, i32) {
    %c0_i32 = arith.constant 0 : i32
    %c0_i32_0 = arith.constant 0 : i32
    %c0_i32_1 = arith.constant 0 : i32
    %c0_i32_2 = arith.constant 0 : i32
    return %c0_i32, %c0_i32_0, %c0_i32_1 : i32, i32, i32
  }
  func.func @transform_8(%arg0: i32) -> (i32, i32) {
    %c0_i32 = arith.constant 0 : i32
    %c0_i32_0 = arith.constant 0 : i32
    %c0_i32_1 = arith.constant 0 : i32
    return %c0_i32, %c0_i32_0 : i32, i32
  }
  func.func @transform_9(%arg0: i32) -> (i32, i32) {
    %c0_i32 = arith.constant 0 : i32
    %c0_i32_0 = arith.constant 0 : i32
    %c0_i32_1 = arith.constant 0 : i32
    return %c0_i32, %c0_i32_0 : i32, i32
  }
  func.func @transform_10(%arg0: i32) -> (i32, i32) {
    %c0_i32 = arith.constant 0 : i32
    %c0_i32_0 = arith.constant 0 : i32
    %c0_i32_1 = arith.constant 0 : i32
    return %c0_i32, %c0_i32_0 : i32, i32
  }
  func.func @transform_11(%arg0: i32) -> (i32, i32) {
    %c0_i32 = arith.constant 0 : i32
    %c0_i32_0 = arith.constant 0 : i32
    return %arg0, %c0_i32 : i32, i32
  }
}

</mosaic_0001>

<bundles_post_ra>
// kernel: tcn_forward.1
= control target key start
LH: loop header
LB: loop body
LE: loop exit
PB: predicated region body
PF: predicated region fallthrough
CT: control target
= control target key end

     0   :  { %s15049_s17 = smov 0   ;;  %s17925_s0 = inlined_call_operand.vmem [shape: f32[32,66,8], index: 0, kind: input, shape index: {}]   ;;  %s17926_s1 = inlined_call_operand.vmem [shape: bf16[3,8,64], index: 1, kind: input, shape index: {}]   ;;  %s17927_s2 = inlined_call_operand.vmem [shape: f32[1,64], index: 2, kind: input, shape index: {}]   ;;  %s17928_s3 = inlined_call_operand.vmem [shape: bf16[3,64,64], index: 3, kind: input, shape index: {}]   ;;  %s17929_s4 = inlined_call_operand.vmem [shape: f32[1,64], index: 4, kind: input, shape index: {}]   ;;  %s17930_s5 = inlined_call_operand.vmem [shape: bf16[3,64,64], index: 5, kind: input, shape index: {}]   ;;  %s17931_s6 = inlined_call_operand.vmem [shape: f32[1,64], index: 6, kind: input, shape index: {}]   ;;  %s17932_s7 = inlined_call_operand.vmem [shape: bf16[3,64,64], index: 7, kind: input, shape index: {}]   ;;  %s17933_s8 = inlined_call_operand.vmem [shape: f32[1,64], index: 8, kind: input, shape index: {}]   ;;  %s17934_s9 = inlined_call_operand.vmem [shape: bf16[64,128], index: 9, kind: input, shape index: {}]   ;;  %s17935_s10 = inlined_call_operand.vmem [shape: f32[1,128], index: 10, kind: input, shape index: {}]   ;;  %s17936_s11 = inlined_call_operand.vmem [shape: f32[32,128], index: 11, kind: output, shape index: {}]  }
   0x1 LB: > { %s11357_s18 = sadd.s32 4294967295, %s14984_s17   ;;  %p11361_p0 = scmp.ge.s32.totalorder %s14984_s17, 1  ;;  %s14984_s17 = sphi %s15049_s17, %s21_s17  }
   0x2   : > { %p339_p1 = scmp.lt.s32.totalorder %s14984_s17, 3 }
   0x4   : > { %p340_p2 = pnand %p11361_p0, %p339_p1 }
   0x6   : > { %343 = sbr.rel (%p340_p2) target bundleno = 2687 (0xa7f), region = 64 }
   0xd   : > { %v603_v0 = vld [vmem:[%s17926_s1] sm:$0xf]  ;;  %vm991_vm0 = vcmask 1043456   ;;  %s11362_s21 = sshll.u32 %s11357_s18, 4  ;;  %v11495_v2 = vld [vmem:[%s17926_s1 + $0x8] sm:$0xf] }
   0xe   : > { %14825 = vmatprep.subr.msk.bf16.mxu0 %vm991_vm0, %v603_v0  ;;  %v1733_v1 = vsel %vm991_vm0, %v603_v0, 0  ;;  %p381_p3 = scmp.lt.s32.totalorder %s11362_s21, 31  ;;  %v11366_v3 = vld [vmem:[%s17926_s1 + $0x4] sm:$0xf]  ;;  %vm798_vm1 = vcmask 64512   ;;  %v2667_v13 = vsel %vm991_vm0, %v11495_v2, 0 }
   0xf   : > { %12863 = vmatpush3.bf16.msra.mxu0 %v1733_v1  ;;  %14824 = vmatprep.subr.msk.bf16.mxu1 %vm991_vm0, %v11366_v3  ;;  %v993_v4 = vsel %vm991_vm0, %v11366_v3, 0  ;;  %vm394_vm2 = vcmask 523264   ;;  %vm4110_vm3 = vcmask 1040384   ;;  %vm3893_vm4 = vcmask 1041408   ;;  %s11364_s22 = sshll.u32 %s11357_s18, 1 }
  0x10   : > { %s18032_s21 = smov (!%p381_p3, %s11362_s21), 31  ;;  %14827 = vmatprep.subr.msk.bf16.mxu0 %vm991_vm0, %v11495_v2  ;;  %12733 = vmatpush3.bf16.msra.mxu1 %v993_v4  ;;  %vm14988_vm5 = vmmov 0   ;;  %vm11197_vm6 = vcmask 1041409   ;;  %vm11200_vm7 = vcmask 1042434   ;;  %vm11203_vm8 = vcmask 1043459   ;;  %p388_p4 = scmp.lt.s32.totalorder %s11364_s22, 3 }
  0x11   : > { %14826 = vmatprep.subr.msk.bf16.mxu1 %vm991_vm0, %v603_v0  ;;  %s14828_s26 = smul.u32 72, %s18032_s21  ;;  %vm11206_vm9 = vcmask 1044484   ;;  %vm11209_vm10 = vcmask 1045509   ;;  %vm11212_vm11 = vcmask 1046534   ;;  %vm11214_vm12 = vcmask 1047559  }
  0x12   : > { %s18034_s22 = smov (!%p388_p4, %s11364_s22), 3 }
  0x13   : > { %s15077_s29 = scalar_lea.vmem %s17925_s0, %s14828_s26  ;;  %s11365_s23 = sshll.u32 %s18034_s22, 3 }
  0x14   : > { %v411_v5 = vld [vmem:[%s15077_s29] sm:$0xff]  ;;  %v412_v6 = vld [vmem:[%s15077_s29 + $0x8] sm:$0xff]  ;;  %v413_v7 = vld [vmem:[%s15077_s29 + $0x10] sm:$0xff]  ;;  %s391_s28 = scalar_lea.vmem %s17936_s11, %s11365_s23 }
  0x15   : > { %v539_v8 = vpack.c.bf16 %v412_v6, %v411_v5  ;;  %v414_v9 = vld [vmem:[%s15077_s29 + $0x18] sm:$0xff]  ;;  %v415_v10 = vld [vmem:[%s15077_s29 + $0x20] sm:$0xff]  ;;  %v416_v11 = vld [vmem:[%s15077_s29 + $0x28] sm:$0xff] }
  0x16   : > { %v540_v12 = vpack.c.bf16 %v414_v9, %v413_v7  ;;  %v541_v14 = vpack.c.bf16 %v416_v11, %v415_v10  ;;  %v604_v15 = vld [vmem:[%s15077_s29 + $0x1] sm:$0xff]  ;;  %v605_v16 = vld [vmem:[%s15077_s29 + $0x9] sm:$0xff]  ;;  %v606_v19 = vld [vmem:[%s15077_s29 + $0x11] sm:$0xff] }
  0x17   : > { %12864 = vmatprep.mubr.msk.bf16.mxu0 %vm798_vm1, %v539_v8  ;;  %v417_v17 = vld [vmem:[%s15077_s29 + $0x30] sm:$0xff]  ;;  %v732_v18 = vpack.c.bf16 %v605_v16, %v604_v15  ;;  %v607_v20 = vld [vmem:[%s15077_s29 + $0x19] sm:$0xff]  ;;  %v608_v23 = vld [vmem:[%s15077_s29 + $0x21] sm:$0xff] }
  0x18   : > { %12865 = vmatmul.mubr.msk.bf16.vlgmr.msra.gmra.mrb[0].mxu0 %vm798_vm1, %v540_v12  ;;  %v418_v21 = vld [vmem:[%s15077_s29 + $0x38] sm:$0xff]  ;;  %v733_v22 = vpack.c.bf16 %v607_v20, %v606_v19  ;;  %v609_v24 = vld [vmem:[%s15077_s29 + $0x29] sm:$0xff]  ;;  %v422_v37 = vld [vmem:[%s15077_s29 + $0x60] sm:$0xff] }
  0x19   : > { %12993 = vmatpush3.bf16.msra.mxu0 %v2667_v13  ;;  %12868 = vmatprep.mubr.msk.bf16.mxu0 %vm798_vm1, %v541_v14  ;;  %v419_v25 = vld [vmem:[%s15077_s29 + $0x48] sm:$0xff]  ;;  %v420_v26 = vld [vmem:[%s15077_s29 + $0x50] sm:$0xff]  ;;  %v734_v27 = vpack.c.bf16 %v609_v24, %v608_v23  ;;  %v542_v28 = vpack.c.bf16 %v418_v21, %v417_v17  ;;  %v611_v30 = vld [vmem:[%s15077_s29 + $0x39] sm:$0xff] }
  0x1a   : > { %12734 = vmatprep.mubr.msk.bf16.mxu1 %vm798_vm1, %v732_v18  ;;  %v610_v29 = vld [vmem:[%s15077_s29 + $0x31] sm:$0xff]  ;;  %v543_v31 = vpack.c.bf16 %v420_v26, %v419_v25  ;;  %v612_v32 = vld [vmem:[%s15077_s29 + $0x49] sm:$0xff]  ;;  %v614_v41 = vld [vmem:[%s15077_s29 + $0x59] sm:$0xff] }
  0x1b   : > { %12735 = vmatmul.mubr.msk.bf16.vlgmr.msra.gmra.mrb[0].mxu1 %vm798_vm1, %v733_v22  ;;  %v613_v33 = vld [vmem:[%s15077_s29 + $0x51] sm:$0xff]  ;;  %v735_v34 = vpack.c.bf16 %v611_v30, %v610_v29  ;;  %v423_v38 = vld [vmem:[%s15077_s29 + $0x68] sm:$0xff]  ;;  %v426_v49 = vld [vmem:[%s15077_s29 + $0x80] sm:$0xff] }
  0x1c   : > { %12738 = vmatprep.mubr.msk.bf16.mxu1 %vm798_vm1, %v734_v27  ;;  %14023 = vmatpush3.bf16.msra.mxu1 %v1733_v1  ;;  %v736_v35 = vpack.c.bf16 %v613_v33, %v612_v32  ;;  %v421_v36 = vld [vmem:[%s15077_s29 + $0x58] sm:$0xff]  ;;  %v424_v39 = vld [vmem:[%s15077_s29 + $0x70] sm:$0xff]  ;;  %v615_v42 = vld [vmem:[%s15077_s29 + $0x61] sm:$0xff] }
  0x1d   : > { %v544_v40 = vpack.c.bf16 %v422_v37, %v421_v36  ;;  %v545_v43 = vpack.c.bf16 %v424_v39, %v423_v38  ;;  %v616_v44 = vld [vmem:[%s15077_s29 + $0x69] sm:$0xff]  ;;  %v617_v45 = vld [vmem:[%s15077_s29 + $0x71] sm:$0xff]  ;;  %v737_v46 = vpack.c.bf16 %v615_v42, %v614_v41  ;;  %v618_v53 = vld [vmem:[%s15077_s29 + $0x79] sm:$0xff] }
  0x1e   : > { %v738_v47 = vpack.c.bf16 %v617_v45, %v616_v44  ;;  %v425_v48 = vld [vmem:[%s15077_s29 + $0x78] sm:$0xff]  ;;  %v427_v50 = vld [vmem:[%s15077_s29 + $0x90] sm:$0xff]  ;;  %v619_v54 = vld [vmem:[%s15077_s29 + $0x81] sm:$0xff] }
  0x1f   : > { %v428_v51 = vld [vmem:[%s15077_s29 + $0x98] sm:$0xff]  ;;  %v546_v52 = vpack.c.bf16 %v426_v49, %v425_v48  ;;  %v739_v58 = vpack.c.bf16 %v619_v54, %v618_v53  ;;  %v429_v60 = vld [vmem:[%s15077_s29 + $0xa0] sm:$0xff]  ;;  %v430_v61 = vld [vmem:[%s15077_s29 + $0xa8] sm:$0xff] }
  0x20   : > { %12869 = vmatmul.mubr.msk.bf16.gmra.mrb[4].mxu0 %vm798_vm1, %v542_v28  ;;  %v547_v55 = vpack.c.bf16 %v428_v51, %v427_v50  ;;  %v620_v56 = vld [vmem:[%s15077_s29 + $0x91] sm:$0xff]  ;;  %v621_v57 = vld [vmem:[%s15077_s29 + $0x99] sm:$0xff]  ;;  %v548_v0 = vpack.c.bf16 %v430_v61, %v429_v60  ;;  %v622_v1 = vld [vmem:[%s15077_s29 + $0xa1] sm:$0xff] }
  0x21   : > { %12872 = vmatprep.mubr.msk.bf16.mxu0 %vm798_vm1, %v543_v31  ;;  %v740_v59 = vpack.c.bf16 %v621_v57, %v620_v56  ;;  %v431_v62 = vld [vmem:[%s15077_s29 + $0xb0] sm:$0xff]  ;;  %v432_v63 = vld [vmem:[%s15077_s29 + $0xb8] sm:$0xff]  ;;  %v433_v8 = vld [vmem:[%s15077_s29 + $0xc0] sm:$0xff] }
  0x22   : > { %v623_v2 = vld [vmem:[%s15077_s29 + $0xa9] sm:$0xff]  ;;  %v549_v3 = vpack.c.bf16 %v432_v63, %v431_v62  ;;  %v624_v4 = vld [vmem:[%s15077_s29 + $0xb1] sm:$0xff]  ;;  %v625_v5 = vld [vmem:[%s15077_s29 + $0xb9] sm:$0xff] }
  0x23   : > { %12739 = vmatmul.mubr.msk.bf16.gmra.mrb[4].mxu1 %vm798_vm1, %v735_v34  ;;  %v741_v6 = vpack.c.bf16 %v623_v2, %v622_v1  ;;  %v742_v7 = vpack.c.bf16 %v625_v5, %v624_v4  ;;  %v434_v9 = vld [vmem:[%s15077_s29 + $0xc8] sm:$0xff]  ;;  %v435_v10 = vld [vmem:[%s15077_s29 + $0xd8] sm:$0xff]  ;;  %v436_v11 = vld [vmem:[%s15077_s29 + $0xe0] sm:$0xff] }
  0x24   : > { %12742 = vmatprep.mubr.msk.bf16.mxu1 %vm798_vm1, %v736_v35  ;;  %v550_v12 = vpack.c.bf16 %v434_v9, %v433_v8  ;;  %v626_v13 = vld [vmem:[%s15077_s29 + $0xc1] sm:$0xff]  ;;  %v627_v14 = vld [vmem:[%s15077_s29 + $0xc9] sm:$0xff]  ;;  %v551_v15 = vpack.c.bf16 %v436_v11, %v435_v10  ;;  %v628_v16 = vld [vmem:[%s15077_s29 + $0xd9] sm:$0xff] }
  0x25   : > { %v629_v17 = vld [vmem:[%s15077_s29 + $0xe1] sm:$0xff]  ;;  %v743_v18 = vpack.c.bf16 %v627_v14, %v626_v13  ;;  %v438_v21 = vld [vmem:[%s15077_s29 + $0xf0] sm:$0xff]  ;;  %v439_v22 = vld [vmem:[%s15077_s29 + $0xf8] sm:$0xff] }
  0x26   : > { %v744_v19 = vpack.c.bf16 %v629_v17, %v628_v16  ;;  %v437_v20 = vld [vmem:[%s15077_s29 + $0xe8] sm:$0xff]  ;;  %v440_v23 = vld [vmem:[%s15077_s29 + $0x100] sm:$0xff]  ;;  %v631_v26 = vld [vmem:[%s15077_s29 + $0xf1] sm:$0xff] }
  0x27   : > { %v552_v24 = vpack.c.bf16 %v438_v21, %v437_v20  ;;  %v630_v25 = vld [vmem:[%s15077_s29 + $0xe9] sm:$0xff]  ;;  %v553_v27 = vpack.c.bf16 %v440_v23, %v439_v22  ;;  %v632_v28 = vld [vmem:[%s15077_s29 + $0xf9] sm:$0xff]  ;;  %v633_v29 = vld [vmem:[%s15077_s29 + $0x101] sm:$0xff] }
  0x28   : > { %12873 = vmatmul.mubr.msk.bf16.gmra.mrb[8].mxu0 %vm798_vm1, %v544_v40  ;;  %v745_v30 = vpack.c.bf16 %v631_v26, %v630_v25  ;;  %v746_v31 = vpack.c.bf16 %v633_v29, %v632_v28  ;;  %v441_v32 = vld [vmem:[%s15077_s29 + $0x108] sm:$0xff]  ;;  %v442_v33 = vld [vmem:[%s15077_s29 + $0x110] sm:$0xff]  ;;  %v443_v34 = vld [vmem:[%s15077_s29 + $0x120] sm:$0xff] }
  0x29   : > { %12876 = vmatprep.mubr.msk.bf16.mxu0 %vm798_vm1, %v545_v43  ;;  %v444_v35 = vld [vmem:[%s15077_s29 + $0x128] sm:$0xff]  ;;  %v554_v36 = vpack.c.bf16 %v442_v33, %v441_v32  ;;  %v635_v38 = vld [vmem:[%s15077_s29 + $0x111] sm:$0xff]  ;;  %v639_v49 = vld [vmem:[%s15077_s29 + $0x139] sm:$0xff] }
  0x2a   : > { %v634_v37 = vld [vmem:[%s15077_s29 + $0x109] sm:$0xff]  ;;  %v555_v39 = vpack.c.bf16 %v444_v35, %v443_v34  ;;  %v636_v40 = vld [vmem:[%s15077_s29 + $0x121] sm:$0xff]  ;;  %v446_v45 = vld [vmem:[%s15077_s29 + $0x138] sm:$0xff] }
  0x2b   : > { %12743 = vmatmul.mubr.msk.bf16.gmra.mrb[8].mxu1 %vm798_vm1, %v737_v46  ;;  %v637_v41 = vld [vmem:[%s15077_s29 + $0x129] sm:$0xff]  ;;  %v747_v42 = vpack.c.bf16 %v635_v38, %v634_v37  ;;  %v447_v46 = vld [vmem:[%s15077_s29 + $0x140] sm:$0xff]  ;;  %v638_v48 = vld [vmem:[%s15077_s29 + $0x131] sm:$0xff] }
  0x2c   : > { %12746 = vmatprep.mubr.msk.bf16.mxu1 %vm798_vm1, %v738_v47  ;;  %v748_v43 = vpack.c.bf16 %v637_v41, %v636_v40  ;;  %v445_v44 = vld [vmem:[%s15077_s29 + $0x130] sm:$0xff]  ;;  %v448_v47 = vld [vmem:[%s15077_s29 + $0x148] sm:$0xff]  ;;  %v749_v54 = vpack.c.bf16 %v639_v49, %v638_v48  ;;  %v450_v57 = vld [vmem:[%s15077_s29 + $0x158] sm:$0xff] }
  0x2d   : > { %v640_v50 = vld [vmem:[%s15077_s29 + $0x141] sm:$0xff]  ;;  %v641_v51 = vld [vmem:[%s15077_s29 + $0x149] sm:$0xff]  ;;  %v557_v53 = vpack.c.bf16 %v448_v47, %v447_v46  ;;  %v642_v60 = vld [vmem:[%s15077_s29 + $0x151] sm:$0xff] }
  0x2e   : > { %v750_v56 = vpack.c.bf16 %v641_v51, %v640_v50  ;;  %v643_v61 = vld [vmem:[%s15077_s29 + $0x159] sm:$0xff]  ;;  %v644_v62 = vld [vmem:[%s15077_s29 + $0x169] sm:$0xff]  ;;  %v645_v63 = vld [vmem:[%s15077_s29 + $0x171] sm:$0xff] }
  0x2f   : > { %v751_v2 = vpack.c.bf16 %v643_v61, %v642_v60  ;;  %v752_v4 = vpack.c.bf16 %v645_v63, %v644_v62  ;;  %v454_v5 = vld [vmem:[%s15077_s29 + $0x180] sm:$0xff]  ;;  %v648_v10 = vld [vmem:[%s15077_s29 + $0x189] sm:$0xff]  ;;  %v649_v11 = vld [vmem:[%s15077_s29 + $0x191] sm:$0xff] }
  0x30   : > { %12877 = vmatmul.mubr.msk.bf16.gmra.mrb[12].mxu0 %vm798_vm1, %v546_v52  ;;  %v556_v52 = vpack.c.bf16 %v446_v45, %v445_v44  ;;  %v646_v8 = vld [vmem:[%s15077_s29 + $0x179] sm:$0xff]  ;;  %v647_v9 = vld [vmem:[%s15077_s29 + $0x181] sm:$0xff]  ;;  %v754_v16 = vpack.c.bf16 %v649_v11, %v648_v10  ;;  %v652_v22 = vld [vmem:[%s15077_s29 + $0x1b1] sm:$0xff] }
  0x31   : > { %12880 = vmatprep.mubr.msk.bf16.mxu0 %vm798_vm1, %v547_v55  ;;  %v449_v55 = vld [vmem:[%s15077_s29 + $0x150] sm:$0xff]  ;;  %v753_v14 = vpack.c.bf16 %v647_v9, %v646_v8  ;;  %v458_v17 = vld [vmem:[%s15077_s29 + $0x1a0] sm:$0xff]  ;;  %v462_v29 = vld [vmem:[%s15077_s29 + $0x1c8] sm:$0xff] }
  0x32   : > { %v650_v20 = vld [vmem:[%s15077_s29 + $0x199] sm:$0xff]  ;;  %v651_v21 = vld [vmem:[%s15077_s29 + $0x1a1] sm:$0xff]  ;;  %v655_v34 = vld [vmem:[%s15077_s29 + $0x1c9] sm:$0xff] }
  0x33   : > { %12747 = vmatmul.mubr.msk.bf16.gmra.mrb[12].mxu1 %vm798_vm1, %v739_v58  ;;  %v451_v58 = vld [vmem:[%s15077_s29 + $0x168] sm:$0xff]  ;;  %v653_v23 = vld [vmem:[%s15077_s29 + $0x1b9] sm:$0xff]  ;;  %v755_v26 = vpack.c.bf16 %v651_v21, %v650_v20 }
  0x34   : > { %12750 = vmatprep.mubr.msk.bf16.mxu1 %vm798_vm1, %v740_v59  ;;  %v452_v59 = vld [vmem:[%s15077_s29 + $0x170] sm:$0xff]  ;;  %v461_v28 = vld [vmem:[%s15077_s29 + $0x1c0] sm:$0xff]  ;;  %v466_v41 = vld [vmem:[%s15077_s29 + $0x1e8] sm:$0xff] }
  0x35   : > { %v559_v1 = vpack.c.bf16 %v452_v59, %v451_v58  ;;  %v564_v32 = vpack.c.bf16 %v462_v29, %v461_v28  ;;  %v654_v33 = vld [vmem:[%s15077_s29 + $0x1c1] sm:$0xff]  ;;  %v657_v37 = vld [vmem:[%s15077_s29 + $0x1d9] sm:$0xff]  ;;  %v659_v46 = vld [vmem:[%s15077_s29 + $0x1e9] sm:$0xff] }
  0x36   : > { %v757_v38 = vpack.c.bf16 %v655_v34, %v654_v33  ;;  %v465_v40 = vld [vmem:[%s15077_s29 + $0x1e0] sm:$0xff]  ;;  %v663_v58 = vld [vmem:[%s15077_s29 + $0x211] sm:$0xff]  ;;  %v669_v9 = vld [vmem:[%s15077_s29 + $0x249] sm:$0xff] }
  0x37   : > { %v566_v44 = vpack.c.bf16 %v466_v41, %v465_v40  ;;  %v658_v45 = vld [vmem:[%s15077_s29 + $0x1e1] sm:$0xff]  ;;  %v660_v48 = vld [vmem:[%s15077_s29 + $0x1f9] sm:$0xff]  ;;  %v673_v21 = vld [vmem:[%s15077_s29 + $0x269] sm:$0xff] }
  0x38   : > { %12881 = vmatmul.mubr.msk.bf16.gmra.mrb[16].mxu0 %vm798_vm1, %v548_v0  ;;  %v558_v0 = vpack.c.bf16 %v450_v57, %v449_v55  ;;  %v661_v49 = vld [vmem:[%s15077_s29 + $0x201] sm:$0xff]  ;;  %v759_v50 = vpack.c.bf16 %v659_v46, %v658_v45  ;;  %v662_v57 = vld [vmem:[%s15077_s29 + $0x209] sm:$0xff]  ;;  %v664_v60 = vld [vmem:[%s15077_s29 + $0x219] sm:$0xff] }
  0x39   : > { %12884 = vmatprep.mubr.msk.bf16.mxu0 %vm798_vm1, %v549_v3  ;;  %v453_v3 = vld [vmem:[%s15077_s29 + $0x178] sm:$0xff]  ;;  %v760_v51 = vpack.c.bf16 %v661_v49, %v660_v48  ;;  %v472_v55 = vld [vmem:[%s15077_s29 + $0x220] sm:$0xff]  ;;  %v761_v62 = vpack.c.bf16 %v663_v58, %v662_v57 }
  0x3a   : > { %v665_v61 = vld [vmem:[%s15077_s29 + $0x221] sm:$0xff]  ;;  %v674_v29 = vld [vmem:[%s15077_s29 + $0x271] sm:$0xff]  ;;  %v678_v41 = vld [vmem:[%s15077_s29 + $0x299] sm:$0xff] }
  0x3b   : > { %12751 = vmatmul.mubr.msk.bf16.gmra.mrb[16].mxu1 %vm798_vm1, %v741_v6  ;;  %v455_v6 = vld [vmem:[%s15077_s29 + $0x188] sm:$0xff]  ;;  %v762_v63 = vpack.c.bf16 %v665_v61, %v664_v60  ;;  %v677_v33 = vld [vmem:[%s15077_s29 + $0x291] sm:$0xff]  ;;  %v490_v49 = vld [vmem:[%s15077_s29 + $0x2c0] sm:$0xff] }
  0x3c   : > { %12754 = vmatprep.mubr.msk.bf16.mxu1 %vm798_vm1, %v742_v7  ;;  %v456_v7 = vld [vmem:[%s15077_s29 + $0x190] sm:$0xff]  ;;  %v668_v8 = vld [vmem:[%s15077_s29 + $0x241] sm:$0xff]  ;;  %v489_v48 = vld [vmem:[%s15077_s29 + $0x2b8] sm:$0xff] }
  0x3d   : > { %v561_v13 = vpack.c.bf16 %v456_v7, %v455_v6  ;;  %v667_v6 = vld [vmem:[%s15077_s29 + $0x231] sm:$0xff]  ;;  %v764_v11 = vpack.c.bf16 %v669_v9, %v668_v8  ;;  %v672_v20 = vld [vmem:[%s15077_s29 + $0x261] sm:$0xff]  ;;  %v685_v57 = vld [vmem:[%s15077_s29 + $0x2d9] sm:$0xff] }
  0x3e   : > { %v681_v45 = vld [vmem:[%s15077_s29 + $0x2b1] sm:$0xff]  ;;  %v493_v60 = vld [vmem:[%s15077_s29 + $0x2e0] sm:$0xff]  ;;  %v494_v61 = vld [vmem:[%s15077_s29 + $0x2e8] sm:$0xff] }
  0x3f   : > { %v497_v8 = vld [vmem:[%s15077_s29 + $0x300] sm:$0xff]  ;;  %v498_v9 = vld [vmem:[%s15077_s29 + $0x308] sm:$0xff] }
  0x40   : > { %12885 = vmatmul.mubr.msk.bf16.gmra.mrb[20].mxu0 %vm798_vm1, %v550_v12  ;;  %v560_v12 = vpack.c.bf16 %v454_v5, %v453_v3  ;;  %v476_v3 = vld [vmem:[%s15077_s29 + $0x248] sm:$0xff] }
  0x41   : > { %12888 = vmatprep.mubr.msk.bf16.mxu0 %vm798_vm1, %v551_v15  ;;  %v457_v15 = vld [vmem:[%s15077_s29 + $0x198] sm:$0xff]  ;;  %v666_v5 = vld [vmem:[%s15077_s29 + $0x229] sm:$0xff] }
  0x42   : > { %v763_v10 = vpack.c.bf16 %v667_v6, %v666_v5  ;;  %v689_v5 = vld [vmem:[%s15077_s29 + $0x2f9] sm:$0xff] }
  0x43   : > { %12755 = vmatmul.mubr.msk.bf16.gmra.mrb[20].mxu1 %vm798_vm1, %v743_v18  ;;  %v459_v18 = vld [vmem:[%s15077_s29 + $0x1b0] sm:$0xff] }
  0x44   : > { %12758 = vmatprep.mubr.msk.bf16.mxu1 %vm798_vm1, %v744_v19  ;;  %v460_v19 = vld [vmem:[%s15077_s29 + $0x1b8] sm:$0xff] }
  0x45   : > { %v563_v25 = vpack.c.bf16 %v460_v19, %v459_v18  ;;  %v671_v18 = vld [vmem:[%s15077_s29 + $0x259] sm:$0xff] }
  0x48   : > { %12889 = vmatmul.mubr.msk.bf16.gmra.mrb[24].mxu0 %vm798_vm1, %v552_v24  ;;  %v562_v24 = vpack.c.bf16 %v458_v17, %v457_v15  ;;  %v480_v15 = vld [vmem:[%s15077_s29 + $0x268] sm:$0xff]  ;;  %v670_v17 = vld [vmem:[%s15077_s29 + $0x251] sm:$0xff] }
  0x49   : > { %12892 = vmatprep.mubr.msk.bf16.mxu0 %vm798_vm1, %v553_v27  ;;  %v756_v27 = vpack.c.bf16 %v653_v23, %v652_v22  ;;  %v765_v22 = vpack.c.bf16 %v671_v18, %v670_v17  ;;  %v766_v23 = vpack.c.bf16 %v673_v21, %v672_v20  ;;  %v693_v17 = vld [vmem:[%s15077_s29 + $0x321] sm:$0xff]  ;;  %v502_v21 = vld [vmem:[%s15077_s29 + $0x330] sm:$0xff] }
  0x4a   : > { %v501_v20 = vld [vmem:[%s15077_s29 + $0x328] sm:$0xff] }
  0x4b   : > { %12759 = vmatmul.mubr.msk.bf16.gmra.mrb[24].mxu1 %vm798_vm1, %v745_v30  ;;  %v463_v30 = vld [vmem:[%s15077_s29 + $0x1d0] sm:$0xff] }
  0x4c   : > { %12762 = vmatprep.mubr.msk.bf16.mxu1 %vm798_vm1, %v746_v31  ;;  %v464_v31 = vld [vmem:[%s15077_s29 + $0x1d8] sm:$0xff] }
  0x4d   : > { %v565_v35 = vpack.c.bf16 %v464_v31, %v463_v30  ;;  %v675_v30 = vld [vmem:[%s15077_s29 + $0x279] sm:$0xff] }
  0x4e   : > { %v767_v34 = vpack.c.bf16 %v675_v30, %v674_v29  ;;  %v697_v29 = vld [vmem:[%s15077_s29 + $0x341] sm:$0xff] }
  0x50   : > { %12893 = vmatmul.mubr.msk.bf16.gmra.mrb[28].mxu0 %vm798_vm1, %v554_v36  ;;  %v656_v36 = vld [vmem:[%s15077_s29 + $0x1d1] sm:$0xff] }
  0x51   : > { %12896 = vmatprep.mubr.msk.bf16.mxu0 %vm798_vm1, %v555_v39  ;;  %v758_v39 = vpack.c.bf16 %v657_v37, %v656_v36  ;;  %v485_v36 = vld [vmem:[%s15077_s29 + $0x298] sm:$0xff]  ;;  %v486_v37 = vld [vmem:[%s15077_s29 + $0x2a0] sm:$0xff] }
  0x52   : > { %v576_v40 = vpack.c.bf16 %v486_v37, %v485_v36  ;;  %v698_v37 = vld [vmem:[%s15077_s29 + $0x349] sm:$0xff] }
  0x53   : > { %12763 = vmatmul.mubr.msk.bf16.gmra.mrb[28].mxu1 %vm798_vm1, %v747_v42  ;;  %v467_v42 = vld [vmem:[%s15077_s29 + $0x1f8] sm:$0xff] }
  0x54   : > { %12766 = vmatprep.mubr.msk.bf16.mxu1 %vm798_vm1, %v748_v43  ;;  %v468_v43 = vld [vmem:[%s15077_s29 + $0x200] sm:$0xff] }
  0x55   : > { %v567_v47 = vpack.c.bf16 %v468_v43, %v467_v42  ;;  %v679_v42 = vld [vmem:[%s15077_s29 + $0x2a1] sm:$0xff] }
  0x56   : > { %v769_v46 = vpack.c.bf16 %v679_v42, %v678_v41  ;;  %v701_v41 = vld [vmem:[%s15077_s29 + $0x369] sm:$0xff] }
  0x58   : > { %12897 = vmatmul.mubr.msk.bf16.gmra.mrb[32].mxu0 %vm798_vm1, %v556_v52  ;;  %v469_v52 = vld [vmem:[%s15077_s29 + $0x208] sm:$0xff] }
  0x59   : > { %12900 = vmatprep.mubr.msk.bf16.mxu0 %vm798_vm1, %v557_v53  ;;  %v470_v53 = vld [vmem:[%s15077_s29 + $0x210] sm:$0xff] }
  0x5b   : > { %12767 = vmatmul.mubr.msk.bf16.gmra.mrb[32].mxu1 %vm798_vm1, %v749_v54  ;;  %v471_v54 = vld [vmem:[%s15077_s29 + $0x218] sm:$0xff] }
  0x5c   : > { %12770 = vmatprep.mubr.msk.bf16.mxu1 %vm798_vm1, %v750_v56  ;;  %v568_v56 = vpack.c.bf16 %v470_v53, %v469_v52  ;;  %v569_v59 = vpack.c.bf16 %v472_v55, %v471_v54  ;;  %v578_v52 = vpack.c.bf16 %v490_v49, %v489_v48  ;;  %v682_v53 = vld [vmem:[%s15077_s29 + $0x2b9] sm:$0xff]  ;;  %v683_v54 = vld [vmem:[%s15077_s29 + $0x2c1] sm:$0xff]  ;;  %v702_v49 = vld [vmem:[%s15077_s29 + $0x371] sm:$0xff] }
  0x5d   : > { %v771_v58 = vpack.c.bf16 %v683_v54, %v682_v53  ;;  %v705_v53 = vld [vmem:[%s15077_s29 + $0x389] sm:$0xff] }
  0x60   : > { %12901 = vmatmul.mubr.msk.bf16.gmra.mrb[36].mxu0 %vm798_vm1, %v558_v0  ;;  %v473_v0 = vld [vmem:[%s15077_s29 + $0x228] sm:$0xff] }
  0x61   : > { %12904 = vmatprep.mubr.msk.bf16.mxu0 %vm798_vm1, %v559_v1  ;;  %v474_v1 = vld [vmem:[%s15077_s29 + $0x230] sm:$0xff] }
  0x63   : > { %12771 = vmatmul.mubr.msk.bf16.gmra.mrb[36].mxu1 %vm798_vm1, %v751_v2  ;;  %v475_v2 = vld [vmem:[%s15077_s29 + $0x240] sm:$0xff] }
  0x64   : > { %12774 = vmatprep.mubr.msk.bf16.mxu1 %vm798_vm1, %v752_v4  ;;  %v570_v4 = vpack.c.bf16 %v474_v1, %v473_v0  ;;  %v571_v7 = vpack.c.bf16 %v476_v3, %v475_v2  ;;  %v580_v0 = vpack.c.bf16 %v494_v61, %v493_v60  ;;  %v686_v1 = vld [vmem:[%s15077_s29 + $0x2e1] sm:$0xff]  ;;  %v687_v2 = vld [vmem:[%s15077_s29 + $0x2e9] sm:$0xff]  ;;  %v706_v61 = vld [vmem:[%s15077_s29 + $0x391] sm:$0xff] }
  0x65   : > { %v773_v6 = vpack.c.bf16 %v687_v2, %v686_v1  ;;  %v709_v1 = vld [vmem:[%s15077_s29 + $0x3b1] sm:$0xff] }
  0x68   : > { %12905 = vmatmul.mubr.msk.bf16.gmra.mrb[40].mxu0 %vm798_vm1, %v560_v12  ;;  %v477_v12 = vld [vmem:[%s15077_s29 + $0x250] sm:$0xff] }
  0x69   : > { %12908 = vmatprep.mubr.msk.bf16.mxu0 %vm798_vm1, %v561_v13  ;;  %v478_v13 = vld [vmem:[%s15077_s29 + $0x258] sm:$0xff] }
  0x6b   : > { %12775 = vmatmul.mubr.msk.bf16.gmra.mrb[40].mxu1 %vm798_vm1, %v753_v14  ;;  %v479_v14 = vld [vmem:[%s15077_s29 + $0x260] sm:$0xff] }
  0x6c   : > { %12778 = vmatprep.mubr.msk.bf16.mxu1 %vm798_vm1, %v754_v16  ;;  %v572_v16 = vpack.c.bf16 %v478_v13, %v477_v12  ;;  %v573_v19 = vpack.c.bf16 %v480_v15, %v479_v14  ;;  %v582_v12 = vpack.c.bf16 %v498_v9, %v497_v8  ;;  %v690_v13 = vld [vmem:[%s15077_s29 + $0x301] sm:$0xff]  ;;  %v691_v14 = vld [vmem:[%s15077_s29 + $0x309] sm:$0xff]  ;;  %v710_v9 = vld [vmem:[%s15077_s29 + $0x3b9] sm:$0xff] }
  0x6d   : > { %v775_v18 = vpack.c.bf16 %v691_v14, %v690_v13  ;;  %v713_v13 = vld [vmem:[%s15077_s29 + $0x3d1] sm:$0xff] }
  0x70   : > { %12909 = vmatmul.mubr.msk.bf16.gmra.mrb[44].mxu0 %vm798_vm1, %v562_v24  ;;  %v481_v24 = vld [vmem:[%s15077_s29 + $0x270] sm:$0xff] }
  0x71   : > { %12912 = vmatprep.mubr.msk.bf16.mxu0 %vm798_vm1, %v563_v25  ;;  %v482_v25 = vld [vmem:[%s15077_s29 + $0x278] sm:$0xff] }
  0x72   : > { %v574_v28 = vpack.c.bf16 %v482_v25, %v481_v24  ;;  %v584_v24 = vpack.c.bf16 %v502_v21, %v501_v20  ;;  %v694_v25 = vld [vmem:[%s15077_s29 + $0x329] sm:$0xff]  ;;  %v714_v21 = vld [vmem:[%s15077_s29 + $0x3d9] sm:$0xff] }
  0x73   : > { %12779 = vmatmul.mubr.msk.bf16.gmra.mrb[44].mxu1 %vm798_vm1, %v755_v26  ;;  %v483_v26 = vld [vmem:[%s15077_s29 + $0x288] sm:$0xff] }
  0x74   : > { %12782 = vmatprep.mubr.msk.bf16.mxu1 %vm798_vm1, %v756_v27  ;;  %v484_v27 = vld [vmem:[%s15077_s29 + $0x290] sm:$0xff] }
  0x75   : > { %v575_v31 = vpack.c.bf16 %v484_v27, %v483_v26  ;;  %v695_v26 = vld [vmem:[%s15077_s29 + $0x331] sm:$0xff] }
  0x76   : > { %v777_v30 = vpack.c.bf16 %v695_v26, %v694_v25  ;;  %v717_v25 = vld [vmem:[%s15077_s29 + $0x3f9] sm:$0xff] }
  0x78   : > { %12913 = vmatmul.mubr.msk.bf16.gmra.mrb[48].mxu0 %vm798_vm1, %v564_v32  ;;  %v676_v32 = vld [vmem:[%s15077_s29 + $0x289] sm:$0xff] }
  0x79   : > { %12916 = vmatprep.mubr.msk.bf16.mxu0 %vm798_vm1, %v565_v35  ;;  %v768_v35 = vpack.c.bf16 %v677_v33, %v676_v32  ;;  %v2282_v32 = vld [vmem:[%s15077_s29 + $0x12] sm:$0xff]  ;;  %v2283_v33 = vld [vmem:[%s15077_s29 + $0x1a] sm:$0xff] }
  0x7a   : > { %v2409_v36 = vpack.c.bf16 %v2283_v33, %v2282_v32  ;;  %v2302_v32 = vld [vmem:[%s15077_s29 + $0xc2] sm:$0xff]  ;;  %v2303_v33 = vld [vmem:[%s15077_s29 + $0xca] sm:$0xff] }
  0x7b   : > { %12783 = vmatmul.mubr.msk.bf16.gmra.mrb[48].mxu1 %vm798_vm1, %v757_v38  ;;  %v487_v38 = vld [vmem:[%s15077_s29 + $0x2a8] sm:$0xff] }
  0x7c   : > { %12786 = vmatprep.mubr.msk.bf16.mxu1 %vm798_vm1, %v758_v39  ;;  %v488_v39 = vld [vmem:[%s15077_s29 + $0x2b0] sm:$0xff] }
  0x7d   : > { %v577_v43 = vpack.c.bf16 %v488_v39, %v487_v38  ;;  %v699_v38 = vld [vmem:[%s15077_s29 + $0x351] sm:$0xff] }
  0x7e   : > { %v779_v42 = vpack.c.bf16 %v699_v38, %v698_v37  ;;  %v2419_v37 = vpack.c.bf16 %v2303_v33, %v2302_v32  ;;  %v718_v38 = vld [vmem:[%s15077_s29 + $0x401] sm:$0xff] }
  0x80   : > { %12917 = vmatmul.mubr.msk.bf16.gmra.mrb[52].mxu0 %vm798_vm1, %v566_v44  ;;  %v680_v44 = vld [vmem:[%s15077_s29 + $0x2a9] sm:$0xff] }
  0x81   : > { %12920 = vmatprep.mubr.msk.bf16.mxu0 %vm798_vm1, %v567_v47  ;;  %v770_v47 = vpack.c.bf16 %v681_v45, %v680_v44  ;;  %v2286_v44 = vld [vmem:[%s15077_s29 + $0x32] sm:$0xff]  ;;  %v2287_v45 = vld [vmem:[%s15077_s29 + $0x3a] sm:$0xff] }
  0x82   : > { %v2411_v48 = vpack.c.bf16 %v2287_v45, %v2286_v44 }
  0x83   : > { %12787 = vmatmul.mubr.msk.bf16.gmra.mrb[52].mxu1 %vm798_vm1, %v759_v50  ;;  %v491_v50 = vld [vmem:[%s15077_s29 + $0x2d0] sm:$0xff] }
  0x84   : > { %12790 = vmatprep.mubr.msk.bf16.mxu1 %vm798_vm1, %v760_v51  ;;  %v492_v51 = vld [vmem:[%s15077_s29 + $0x2d8] sm:$0xff] }
  0x85   : > { %v579_v55 = vpack.c.bf16 %v492_v51, %v491_v50  ;;  %v703_v50 = vld [vmem:[%s15077_s29 + $0x379] sm:$0xff] }
  0x86   : > { %v781_v54 = vpack.c.bf16 %v703_v50, %v702_v49  ;;  %v2307_v49 = vld [vmem:[%s15077_s29 + $0xf2] sm:$0xff] }
  0x88   : > { %12921 = vmatmul.mubr.msk.bf16.gmra.mrb[56].mxu0 %vm798_vm1, %v568_v56  ;;  %v684_v56 = vld [vmem:[%s15077_s29 + $0x2d1] sm:$0xff] }
  0x89   : > { %12924 = vmatprep.mubr.msk.bf16.mxu0 %vm798_vm1, %v569_v59  ;;  %v772_v59 = vpack.c.bf16 %v685_v57, %v684_v56  ;;  %v2290_v56 = vld [vmem:[%s15077_s29 + $0x5a] sm:$0xff]  ;;  %v2291_v57 = vld [vmem:[%s15077_s29 + $0x62] sm:$0xff] }
  0x8a   : > { %v2413_v60 = vpack.c.bf16 %v2291_v57, %v2290_v56  ;;  %v724_v57 = vld [vmem:[%s15077_s29 + $0x439] sm:$0xff] }
  0x8b   : > { %12791 = vmatmul.mubr.msk.bf16.gmra.mrb[56].mxu1 %vm798_vm1, %v761_v62  ;;  %v495_v62 = vld [vmem:[%s15077_s29 + $0x2f0] sm:$0xff] }
  0x8c   : > { %12794 = vmatprep.mubr.msk.bf16.mxu1 %vm798_vm1, %v762_v63  ;;  %v496_v63 = vld [vmem:[%s15077_s29 + $0x2f8] sm:$0xff] }
  0x8d   : > { %v581_v3 = vpack.c.bf16 %v496_v63, %v495_v62  ;;  %v707_v62 = vld [vmem:[%s15077_s29 + $0x399] sm:$0xff] }
  0x8e   : > { %v783_v2 = vpack.c.bf16 %v707_v62, %v706_v61 }
  0x90   : > { %12925 = vmatmul.mubr.msk.bf16.gmra.mrb[60].mxu0 %vm798_vm1, %v570_v4  ;;  %v688_v4 = vld [vmem:[%s15077_s29 + $0x2f1] sm:$0xff] }
  0x91   : > { %12928 = vmatprep.mubr.msk.bf16.mxu0 %vm798_vm1, %v571_v7  ;;  %v774_v7 = vpack.c.bf16 %v689_v5, %v688_v4  ;;  %v2294_v4 = vld [vmem:[%s15077_s29 + $0x7a] sm:$0xff]  ;;  %v2295_v5 = vld [vmem:[%s15077_s29 + $0x82] sm:$0xff] }
  0x92   : > { %v2415_v8 = vpack.c.bf16 %v2295_v5, %v2294_v4  ;;  %v2313_v4 = vld [vmem:[%s15077_s29 + $0x12a] sm:$0xff] }
  0x93   : > { %12795 = vmatmul.mubr.msk.bf16.gmra.mrb[60].mxu1 %vm798_vm1, %v763_v10  ;;  %v499_v10 = vld [vmem:[%s15077_s29 + $0x318] sm:$0xff] }
  0x94   : > { %12798 = vmatprep.mubr.msk.bf16.mxu1 %vm798_vm1, %v764_v11  ;;  %v500_v11 = vld [vmem:[%s15077_s29 + $0x320] sm:$0xff] }
  0x95   : > { %v583_v15 = vpack.c.bf16 %v500_v11, %v499_v10  ;;  %v711_v10 = vld [vmem:[%s15077_s29 + $0x3c1] sm:$0xff] }
  0x96   : > { %v785_v14 = vpack.c.bf16 %v711_v10, %v710_v9  ;;  %v728_v9 = vld [vmem:[%s15077_s29 + $0x459] sm:$0xff]  ;;  %v729_v10 = vld [vmem:[%s15077_s29 + $0x461] sm:$0xff] }
  0x98   : > { %12929 = vmatmul.mubr.msk.bf16.gmra.mrb[64].mxu0 %vm798_vm1, %v572_v16  ;;  %v692_v16 = vld [vmem:[%s15077_s29 + $0x319] sm:$0xff] }
  0x99   : > { %12932 = vmatprep.mubr.msk.bf16.mxu0 %vm798_vm1, %v573_v19  ;;  %v776_v19 = vpack.c.bf16 %v693_v17, %v692_v16  ;;  %v2298_v16 = vld [vmem:[%s15077_s29 + $0xa2] sm:$0xff]  ;;  %v2299_v17 = vld [vmem:[%s15077_s29 + $0xaa] sm:$0xff] }
  0x9a   : > { %v2417_v20 = vpack.c.bf16 %v2299_v17, %v2298_v16  ;;  %v2314_v16 = vld [vmem:[%s15077_s29 + $0x132] sm:$0xff]  ;;  %v2315_v17 = vld [vmem:[%s15077_s29 + $0x13a] sm:$0xff] }
  0x9b   : > { %12799 = vmatmul.mubr.msk.bf16.gmra.mrb[64].mxu1 %vm798_vm1, %v765_v22  ;;  %v2280_v22 = vld [vmem:[%s15077_s29 + $0x2] sm:$0xff] }
  0x9c   : > { %12802 = vmatprep.mubr.msk.bf16.mxu1 %vm798_vm1, %v766_v23  ;;  %v2281_v23 = vld [vmem:[%s15077_s29 + $0xa] sm:$0xff] }
  0x9d   : > { %v2408_v27 = vpack.c.bf16 %v2281_v23, %v2280_v22  ;;  %v715_v22 = vld [vmem:[%s15077_s29 + $0x3e1] sm:$0xff] }
  0xa0   : > { %12933 = vmatmul.mubr.msk.bf16.gmra.mrb[68].mxu0 %vm798_vm1, %v574_v28  ;;  %v696_v28 = vld [vmem:[%s15077_s29 + $0x339] sm:$0xff] }
  0xa1   : > { %12936 = vmatprep.mubr.msk.bf16.mxu0 %vm798_vm1, %v575_v31  ;;  %v778_v31 = vpack.c.bf16 %v697_v29, %v696_v28 }
  0xa3   : > { %12803 = vmatmul.mubr.msk.bf16.gmra.mrb[68].mxu1 %vm798_vm1, %v767_v34  ;;  %v2284_v34 = vld [vmem:[%s15077_s29 + $0x22] sm:$0xff] }
  0xa4   : > { %12806 = vmatprep.mubr.msk.bf16.mxu1 %vm798_vm1, %v768_v35  ;;  %v2285_v35 = vld [vmem:[%s15077_s29 + $0x2a] sm:$0xff] }
  0xa5   : > { %v2410_v39 = vpack.c.bf16 %v2285_v35, %v2284_v34  ;;  %v2304_v35 = vld [vmem:[%s15077_s29 + $0xda] sm:$0xff] }
  0xa8   : > { %12937 = vmatmul.mubr.msk.bf16.gmra.mrb[72].mxu0 %vm798_vm1, %v576_v40  ;;  %v700_v40 = vld [vmem:[%s15077_s29 + $0x361] sm:$0xff] }
  0xa9   : > { %12940 = vmatprep.mubr.msk.bf16.mxu0 %vm798_vm1, %v577_v43  ;;  %v780_v43 = vpack.c.bf16 %v701_v41, %v700_v40  ;;  %v720_v41 = vld [vmem:[%s15077_s29 + $0x411] sm:$0xff] }
  0xab   : > { %12807 = vmatmul.mubr.msk.bf16.gmra.mrb[72].mxu1 %vm798_vm1, %v769_v46  ;;  %v2288_v46 = vld [vmem:[%s15077_s29 + $0x4a] sm:$0xff] }
  0xac   : > { %12810 = vmatprep.mubr.msk.bf16.mxu1 %vm798_vm1, %v770_v47  ;;  %v2289_v47 = vld [vmem:[%s15077_s29 + $0x52] sm:$0xff] }
  0xad   : > { %v2412_v51 = vpack.c.bf16 %v2289_v47, %v2288_v46 }
  0xb0   : > { %12941 = vmatmul.mubr.msk.bf16.gmra.mrb[76].mxu0 %vm798_vm1, %v578_v52  ;;  %v704_v52 = vld [vmem:[%s15077_s29 + $0x381] sm:$0xff] }
  0xb1   : > { %12944 = vmatprep.mubr.msk.bf16.mxu0 %vm798_vm1, %v579_v55  ;;  %v782_v55 = vpack.c.bf16 %v705_v53, %v704_v52  ;;  %v2309_v52 = vld [vmem:[%s15077_s29 + $0x102] sm:$0xff] }
  0xb3   : > { %12811 = vmatmul.mubr.msk.bf16.gmra.mrb[76].mxu1 %vm798_vm1, %v771_v58  ;;  %v2292_v58 = vld [vmem:[%s15077_s29 + $0x6a] sm:$0xff] }
  0xb4   : > { %12814 = vmatprep.mubr.msk.bf16.mxu1 %vm798_vm1, %v772_v59  ;;  %v2293_v59 = vld [vmem:[%s15077_s29 + $0x72] sm:$0xff] }
  0xb5   : > { %v2414_v63 = vpack.c.bf16 %v2293_v59, %v2292_v58  ;;  %v725_v58 = vld [vmem:[%s15077_s29 + $0x441] sm:$0xff] }
  0xb6   : > { %v792_v62 = vpack.c.bf16 %v725_v58, %v724_v57  ;;  %v2322_v57 = vld [vmem:[%s15077_s29 + $0x17a] sm:$0xff]  ;;  %v2323_v58 = vld [vmem:[%s15077_s29 + $0x182] sm:$0xff] }
  0xb8   : > { %12945 = vmatmul.mubr.msk.bf16.gmra.mrb[80].mxu0 %vm798_vm1, %v580_v0  ;;  %v708_v0 = vld [vmem:[%s15077_s29 + $0x3a9] sm:$0xff] }
  0xb9   : > { %12948 = vmatprep.mubr.msk.bf16.mxu0 %vm798_vm1, %v581_v3  ;;  %v784_v3 = vpack.c.bf16 %v709_v1, %v708_v0  ;;  %v2310_v0 = vld [vmem:[%s15077_s29 + $0x10a] sm:$0xff]  ;;  %v2311_v1 = vld [vmem:[%s15077_s29 + $0x112] sm:$0xff] }
  0xba   : > { %v2423_v5 = vpack.c.bf16 %v2311_v1, %v2310_v0  ;;  %v2324_v0 = vld [vmem:[%s15077_s29 + $0x18a] sm:$0xff]  ;;  %v2325_v1 = vld [vmem:[%s15077_s29 + $0x192] sm:$0xff] }
  0xbb   : > { %12815 = vmatmul.mubr.msk.bf16.gmra.mrb[80].mxu1 %vm798_vm1, %v773_v6  ;;  %v2296_v6 = vld [vmem:[%s15077_s29 + $0x92] sm:$0xff] }
  0xbc   : > { %12818 = vmatprep.mubr.msk.bf16.mxu1 %vm798_vm1, %v774_v7  ;;  %v2297_v7 = vld [vmem:[%s15077_s29 + $0x9a] sm:$0xff] }
  0xbd   : > { %v2416_v11 = vpack.c.bf16 %v2297_v7, %v2296_v6  ;;  %v726_v6 = vld [vmem:[%s15077_s29 + $0x449] sm:$0xff]  ;;  %v727_v7 = vld [vmem:[%s15077_s29 + $0x451] sm:$0xff] }
  0xc0   : > { %12949 = vmatmul.mubr.msk.bf16.gmra.mrb[84].mxu0 %vm798_vm1, %v582_v12  ;;  %v712_v12 = vld [vmem:[%s15077_s29 + $0x3c9] sm:$0xff] }
  0xc1   : > { %12952 = vmatprep.mubr.msk.bf16.mxu0 %vm798_vm1, %v583_v15  ;;  %v786_v15 = vpack.c.bf16 %v713_v13, %v712_v12  ;;  %v793_v12 = vpack.c.bf16 %v727_v7, %v726_v6  ;;  %v2430_v6 = vpack.c.bf16 %v2325_v1, %v2324_v0  ;;  %v511_v7 = vld [vmem:[%s15077_s29 + $0x380] sm:$0xff]  ;;  %v520_v0 = vld [vmem:[%s15077_s29 + $0x3d0] sm:$0xff] }
  0xc3   : > { %12819 = vmatmul.mubr.msk.bf16.gmra.mrb[84].mxu1 %vm798_vm1, %v775_v18  ;;  %v2300_v18 = vld [vmem:[%s15077_s29 + $0xb2] sm:$0xff] }
  0xc4   : > { %12822 = vmatprep.mubr.msk.bf16.mxu1 %vm798_vm1, %v776_v19  ;;  %v2301_v19 = vld [vmem:[%s15077_s29 + $0xba] sm:$0xff] }
  0xc5   : > { %v2418_v23 = vpack.c.bf16 %v2301_v19, %v2300_v18  ;;  %v2316_v19 = vld [vmem:[%s15077_s29 + $0x142] sm:$0xff] }
  0xc8   : > { %12953 = vmatmul.mubr.msk.bf16.gmra.mrb[88].mxu0 %vm798_vm1, %v584_v24  ;;  %v716_v24 = vld [vmem:[%s15077_s29 + $0x3f1] sm:$0xff] }
  0xc9   : > { %12994 = vmatprep.mubr.msk.bf16.mxu0 %vm798_vm1, %v2408_v27  ;;  %v787_v27 = vpack.c.bf16 %v715_v22, %v714_v21  ;;  %v788_v29 = vpack.c.bf16 %v717_v25, %v716_v24  ;;  %v2425_v21 = vpack.c.bf16 %v2315_v17, %v2314_v16  ;;  %v730_v22 = vld [vmem:[%s15077_s29 + $0x469] sm:$0xff]  ;;  %v503_v25 = vld [vmem:[%s15077_s29 + $0x338] sm:$0xff] }
  0xca   : > { %v2326_v17 = vld [vmem:[%s15077_s29 + $0x19a] sm:$0xff] }
  0xcb   : > { %12823 = vmatmul.mubr.msk.bf16.gmra.mrb[88].mxu1 %vm798_vm1, %v777_v30 }
  0xcc   : > { %12826 = vmatprep.mubr.msk.bf16.mxu1 %vm798_vm1, %v778_v31  ;;  %v15428_v31 = vld [vmem:[%s17928_s3 + $0x20] sm:$0xff]  }
  0xcd   : > { %13122 = vmatprep.subr.bf16.mxu1 %v15428_v31 }
  0xd0   : > { %12995 = vmatmul.mubr.msk.bf16.vlgmr.msra.gmra.mrb[0].mxu0 %vm798_vm1, %v2409_v36  ;;  %v2305_v36 = vld [vmem:[%s15077_s29 + $0xe2] sm:$0xff] }
  0xd1   : > { %12998 = vmatprep.mubr.msk.bf16.mxu0 %vm798_vm1, %v2410_v39  ;;  %v719_v39 = vld [vmem:[%s15077_s29 + $0x409] sm:$0xff]  ;;  %v2420_v40 = vpack.c.bf16 %v2305_v36, %v2304_v35 }
  0xd2   : > { %v789_v44 = vpack.c.bf16 %v719_v39, %v718_v38  ;;  %v2319_v38 = vld [vmem:[%s15077_s29 + $0x15a] sm:$0xff] }
  0xd3   : > { %12827 = vmatmul.mubr.msk.bf16.gmra.mrb[92].mxu1 %vm798_vm1, %v779_v42  ;;  %v721_v42 = vld [vmem:[%s15077_s29 + $0x419] sm:$0xff] }
  0xd4   : > { %12830 = vmatprep.mubr.msk.bf16.mxu1 %vm798_vm1, %v780_v43  ;;  %v790_v46 = vpack.c.bf16 %v721_v42, %v720_v41  ;;  %v2321_v41 = vld [vmem:[%s15077_s29 + $0x172] sm:$0xff] }
  0xd8   : > { %12999 = vmatmul.mubr.msk.bf16.gmra.mrb[4].mxu0 %vm798_vm1, %v2411_v48  ;;  %v2306_v48 = vld [vmem:[%s15077_s29 + $0xea] sm:$0xff] }
  0xd9   : > { %13002 = vmatprep.mubr.msk.bf16.mxu0 %vm798_vm1, %v2412_v51  ;;  %v2308_v51 = vld [vmem:[%s15077_s29 + $0xfa] sm:$0xff]  ;;  %v2421_v53 = vpack.c.bf16 %v2307_v49, %v2306_v48 }
  0xda   : > { %v2422_v56 = vpack.c.bf16 %v2309_v52, %v2308_v51  ;;  %v507_v49 = vld [vmem:[%s15077_s29 + $0x360] sm:$0xff]  ;;  %v508_v51 = vld [vmem:[%s15077_s29 + $0x368] sm:$0xff] }
  0xdb   : > { %12831 = vmatmul.mubr.msk.bf16.gmra.mrb[96].mxu1 %vm798_vm1, %v781_v54  ;;  %v722_v54 = vld [vmem:[%s15077_s29 + $0x421] sm:$0xff] }
  0xdc   : > { %12834 = vmatprep.mubr.msk.bf16.mxu1 %vm798_vm1, %v782_v55  ;;  %v723_v55 = vld [vmem:[%s15077_s29 + $0x429] sm:$0xff] }
  0xe0   : > { %13003 = vmatmul.mubr.msk.bf16.gmra.mrb[8].mxu0 %vm798_vm1, %v2413_v60  ;;  %v791_v60 = vpack.c.bf16 %v723_v55, %v722_v54  ;;  %v587_v55 = vpack.c.bf16 %v508_v51, %v507_v49  ;;  %v2332_v49 = vld [vmem:[%s15077_s29 + $0x1d2] sm:$0xff]  ;;  %v2333_v51 = vld [vmem:[%s15077_s29 + $0x1da] sm:$0xff] }
  0xe1   : > { %13006 = vmatprep.mubr.msk.bf16.mxu0 %vm798_vm1, %v2414_v63 }
  0xe3   : > { %12835 = vmatmul.mubr.msk.bf16.gmra.mrb[100].mxu1 %vm798_vm1, %v783_v2 }
  0xe4   : > { %12838 = vmatprep.mubr.msk.bf16.mxu1 %vm798_vm1, %v784_v3  ;;  %v2312_v3 = vld [vmem:[%s15077_s29 + $0x122] sm:$0xff] }
  0xe8   : > { %13007 = vmatmul.mubr.msk.bf16.gmra.mrb[12].mxu0 %vm798_vm1, %v2415_v8  ;;  %v2424_v8 = vpack.c.bf16 %v2313_v4, %v2312_v3  ;;  %v2429_v3 = vpack.c.bf16 %v2323_v58, %v2322_v57  ;;  %v509_v4 = vld [vmem:[%s15077_s29 + $0x370] sm:$0xff]  ;;  %v518_v57 = vld [vmem:[%s15077_s29 + $0x3c0] sm:$0xff]  ;;  %v2434_v58 = vpack.c.bf16 %v2333_v51, %v2332_v49 }
  0xe9   : > { %13010 = vmatprep.mubr.msk.bf16.mxu0 %vm798_vm1, %v2416_v11  ;;  %v2339_v49 = vld [vmem:[%s15077_s29 + $0x212] sm:$0xff] }
  0xeb   : > { %12839 = vmatmul.mubr.msk.bf16.gmra.mrb[104].mxu1 %vm798_vm1, %v785_v14  ;;  %v794_v14 = vpack.c.bf16 %v729_v10, %v728_v9  ;;  %v14842_v9 = vld [vmem:[%s17928_s3 + $0x30] sm:$0xff]  }
  0xec   : > { %12842 = vmatprep.mubr.msk.bf16.mxu1 %vm798_vm1, %v786_v15 }
  0xee   : > { %v15418_v26 = vpop.f32.mrb[0].mxu1 }
  0xef   : > { %v15420_v28 = vpop.f32.mrb[1].mxu1 }
  0xf0   : > { %13011 = vmatmul.mubr.msk.bf16.gmra.mrb[16].mxu0 %vm798_vm1, %v2417_v20  ;;  %v15423_v30 = vpop.f32.mrb[2].mxu1  ;;  %v2317_v20 = vld [vmem:[%s15077_s29 + $0x14a] sm:$0xff] }
  0xf1   : > { %13014 = vmatprep.mubr.msk.bf16.mxu0 %vm798_vm1, %v2418_v23  ;;  %v15433_v34 = vpop.f32.mrb[3].mxu1  ;;  %v731_v23 = vld [vmem:[%s15077_s29 + $0x471] sm:$0xff]  ;;  %v2426_v24 = vpack.c.bf16 %v2317_v20, %v2316_v19  ;;  %v2327_v19 = vld [vmem:[%s15077_s29 + $0x1a2] sm:$0xff] }
  0xf2   : > { %v795_v32 = vpack.c.bf16 %v731_v23, %v730_v22  ;;  %v2329_v22 = vld [vmem:[%s15077_s29 + $0x1ba] sm:$0xff]  ;;  %v2431_v23 = vpack.c.bf16 %v2327_v19, %v2326_v17  ;;  %v2337_v19 = vld [vmem:[%s15077_s29 + $0x202] sm:$0xff] }
  0xf3   : > { %12843 = vmatmul.mubr.msk.bf16.gmra.mrb[108].mxu1 %vm798_vm1, %v787_v27  ;;  %v504_v27 = vld [vmem:[%s15077_s29 + $0x340] sm:$0xff] }
  0xf4   : > { %12846 = vmatprep.mubr.msk.bf16.mxu1 %vm798_vm1, %v788_v29  ;;  %v585_v35 = vpack.c.bf16 %v504_v27, %v503_v25  ;;  %v514_v25 = vld [vmem:[%s15077_s29 + $0x398] sm:$0xff] }
  0xf5   : > { %v2336_v17 = vld [vmem:[%s15077_s29 + $0x1fa] sm:$0xff] }
  0xf6   : > { %v15444_v43 = vpop.f32.mrb[4].mxu1 }
  0xf7   : > { %v15446_v45 = vpop.f32.mrb[5].mxu1 }
  0xf8   : > { %13015 = vmatmul.mubr.msk.bf16.gmra.mrb[20].mxu0 %vm798_vm1, %v2419_v37  ;;  %v15449_v47 = vpop.f32.mrb[6].mxu1  ;;  %v2318_v37 = vld [vmem:[%s15077_s29 + $0x152] sm:$0xff] }
  0xf9   : > { %13018 = vmatprep.mubr.msk.bf16.mxu0 %vm798_vm1, %v2420_v40  ;;  %v15454_v50 = vpop.f32.mrb[7].mxu1  ;;  %v2320_v40 = vld [vmem:[%s15077_s29 + $0x16a] sm:$0xff]  ;;  %v2427_v42 = vpack.c.bf16 %v2319_v38, %v2318_v37 }
  0xfa   : > { %v2428_v48 = vpack.c.bf16 %v2321_v41, %v2320_v40 }
  0xfb   : > { %12847 = vmatmul.mubr.msk.bf16.gmra.mrb[112].mxu1 %vm798_vm1, %v789_v44  ;;  %v505_v44 = vld [vmem:[%s15077_s29 + $0x348] sm:$0xff] }
  0xfc   : > { %12850 = vmatprep.mubr.msk.bf16.mxu1 %vm798_vm1, %v790_v46  ;;  %v506_v46 = vld [vmem:[%s15077_s29 + $0x350] sm:$0xff] }
  0xfe   : > { %v15464_v59 = vpop.f32.mrb[8].mxu1 }
  0xff   : > { %v15466_v61 = vpop.f32.mrb[9].mxu1 }
 0x100   : > { %13019 = vmatmul.mubr.msk.bf16.gmra.mrb[24].mxu0 %vm798_vm1, %v2421_v53  ;;  %v15469_v63 = vpop.f32.mrb[10].mxu1  ;;  %v586_v53 = vpack.c.bf16 %v506_v46, %v505_v44  ;;  %v2330_v44 = vld [vmem:[%s15077_s29 + $0x1c2] sm:$0xff]  ;;  %v2331_v46 = vld [vmem:[%s15077_s29 + $0x1ca] sm:$0xff] }
 0x101   : > { %13022 = vmatprep.mubr.msk.bf16.mxu0 %vm798_vm1, %v2422_v56  ;;  %v15474_v2 = vpop.f32.mrb[11].mxu1 }
 0x103   : > { %12851 = vmatmul.mubr.msk.bf16.gmra.mrb[116].mxu1 %vm798_vm1, %v791_v60 }
 0x104   : > { %12854 = vmatprep.mubr.msk.bf16.mxu1 %vm798_vm1, %v792_v62  ;;  %v14841_v62 = vld [vmem:[%s17928_s3 + $0x28] sm:$0xff]  }
 0x106   : > { %v15484_v11 = vpop.f32.mrb[12].mxu1 }
 0x107   : > { %v15486_v13 = vpop.f32.mrb[13].mxu1 }
 0x108   : > { %13023 = vmatmul.mubr.msk.bf16.gmra.mrb[28].mxu0 %vm798_vm1, %v2423_v5  ;;  %v15489_v15 = vpop.f32.mrb[14].mxu1  ;;  %v510_v5 = vld [vmem:[%s15077_s29 + $0x378] sm:$0xff] }
 0x109   : > { %13026 = vmatprep.mubr.msk.bf16.mxu0 %vm798_vm1, %v2424_v8  ;;  %v15494_v18 = vpop.f32.mrb[15].mxu1  ;;  %v512_v8 = vld [vmem:[%s15077_s29 + $0x388] sm:$0xff] }
 0x10b   : > { %12855 = vmatmul.mubr.msk.bf16.gmra.mrb[120].mxu1 %vm798_vm1, %v793_v12  ;;  %v588_v12 = vpack.c.bf16 %v510_v5, %v509_v4  ;;  %v14843_v5 = vld [vmem:[%s17928_s3 + $0x38] sm:$0xff]  }
 0x10c   : > { %12858 = vmatprep.mubr.msk.bf16.mxu1 %vm798_vm1, %v794_v14 }
 0x10e   : > { %v15504_v29 = vpop.f32.mrb[16].mxu1 }
 0x10f   : > { %v15506_v33 = vpop.f32.mrb[17].mxu1 }
 0x110   : > { %13027 = vmatmul.mubr.msk.bf16.gmra.mrb[32].mxu0 %vm798_vm1, %v2425_v21  ;;  %v15509_v36 = vpop.f32.mrb[18].mxu1  ;;  %v2328_v21 = vld [vmem:[%s15077_s29 + $0x1b2] sm:$0xff] }
 0x111   : > { %13030 = vmatprep.mubr.msk.bf16.mxu0 %vm798_vm1, %v2426_v24  ;;  %v15514_v39 = vpop.f32.mrb[19].mxu1  ;;  %v513_v24 = vld [vmem:[%s15077_s29 + $0x390] sm:$0xff]  ;;  %v2432_v27 = vpack.c.bf16 %v2329_v22, %v2328_v21  ;;  %v521_v22 = vld [vmem:[%s15077_s29 + $0x3d8] sm:$0xff] }
 0x112   : > { %v590_v38 = vpack.c.bf16 %v514_v25, %v513_v24  ;;  %v2436_v24 = vpack.c.bf16 %v2337_v19, %v2336_v17  ;;  %v523_v25 = vld [vmem:[%s15077_s29 + $0x3f0] sm:$0xff] }
 0x113   : > { %12859 = vmatmul.mubr.msk.bf16.gmra.mrb[124].mxu1 %vm798_vm1, %v795_v32  ;;  %v515_v32 = vld [vmem:[%s15077_s29 + $0x3a8] sm:$0xff] }
 0x114   : > { %12956 = vmatprep.mubr.msk.bf16.mxu1 %vm798_vm1, %v585_v35  ;;  %v516_v35 = vld [vmem:[%s15077_s29 + $0x3b0] sm:$0xff] }
 0x115   : > { %v591_v41 = vpack.c.bf16 %v516_v35, %v515_v32 }
 0x116   : > { %v15524_v52 = vpop.f32.mrb[20].mxu1 }
 0x117   : > { %v15526_v54 = vpop.f32.mrb[21].mxu1 }
 0x118   : > { %13031 = vmatmul.mubr.msk.bf16.gmra.mrb[36].mxu0 %vm798_vm1, %v2427_v42  ;;  %v15529_v56 = vpop.f32.mrb[22].mxu1 }
 0x119   : > { %13034 = vmatprep.mubr.msk.bf16.mxu0 %vm798_vm1, %v2428_v48  ;;  %v15534_v60 = vpop.f32.mrb[23].mxu1 }
 0x11b   : > { %12957 = vmatmul.mubr.msk.bf16.vlgmr.msra.gmra.mrb[92].mxu1 %vm798_vm1, %v586_v53  ;;  %v2433_v53 = vpack.c.bf16 %v2331_v46, %v2330_v44  ;;  %v2338_v46 = vld [vmem:[%s15077_s29 + $0x20a] sm:$0xff] }
 0x11c   : > { %12960 = vmatprep.mubr.msk.bf16.mxu1 %vm798_vm1, %v587_v55  ;;  %13123 = vmatpush3.bf16.msra.mxu1 %v15428_v31  ;;  %v589_v31 = vpack.c.bf16 %v512_v8, %v511_v7  ;;  %v517_v55 = vld [vmem:[%s15077_s29 + $0x3b8] sm:$0xff] }
 0x11d   : > { %13124 = vmatprep.subr.bf16.mxu1 %v14841_v62 }
 0x11e   : > { %v15551_v10 = vpop.f32.mrb[24].mxu1 }
 0x11f   : > { %v15553_v14 = vpop.f32.mrb[25].mxu1 }
 0x120   : > { %13035 = vmatmul.mubr.msk.bf16.gmra.mrb[40].mxu0 %vm798_vm1, %v2429_v3  ;;  %v15556_v16 = vpop.f32.mrb[26].mxu1  ;;  %13125 = vmatpush3.bf16.msra.mxu1 %v14841_v62  ;;  %v519_v62 = vld [vmem:[%s15077_s29 + $0x3c8] sm:$0xff]  ;;  %v592_v3 = vpack.c.bf16 %v518_v57, %v517_v55  ;;  %v2437_v57 = vpack.c.bf16 %v2339_v49, %v2338_v46  ;;  %v531_v49 = vld [vmem:[%s15077_s29 + $0x438] sm:$0xff] }
 0x121   : > { %13038 = vmatprep.mubr.msk.bf16.mxu0 %vm798_vm1, %v2430_v6  ;;  %v15561_v20 = vpop.f32.mrb[27].mxu1  ;;  %13126 = vmatprep.subr.bf16.mxu1 %v14842_v9  ;;  %v14986_v6 = vmov 0   ;;  %v593_v7 = vpack.c.bf16 %v520_v0, %v519_v62  ;;  %v2341_v55 = vld [vmem:[%s15077_s29 + $0x222] sm:$0xff] }
 0x122   : > { %395 = vst.msk [vmem:[#allocation2] sm:$0xff] %vm394_vm2, %v14986_v6  ;;  %396 = vst.msk [vmem:[#allocation2 + $0x28] sm:$0xff] %vm394_vm2, %v14986_v6  ;;  %v526_v62 = vld [vmem:[%s15077_s29 + $0x408] sm:$0xff] }
 0x123   : > { %12961 = vmatmul.mubr.msk.bf16.gmra.mrb[96].mxu1 %vm798_vm1, %v588_v12  ;;  %397 = vst.msk [vmem:[#allocation2 + $0x50] sm:$0xff] %vm394_vm2, %v14986_v6  ;;  %398 = vst.msk [vmem:[#allocation2 + $0x78] sm:$0xff] %vm394_vm2, %v14986_v6  ;;  %v2335_v12 = vld [vmem:[%s15077_s29 + $0x1ea] sm:$0xff] }
 0x124   : > { %12964 = vmatprep.mubr.msk.bf16.mxu1 %vm798_vm1, %v589_v31  ;;  %13127 = vmatpush3.bf16.msra.mxu1 %v14842_v9  ;;  %399 = vst.msk [vmem:[#allocation2 + $0xa0] sm:$0xff] %vm394_vm2, %v14986_v6  ;;  %400 = vst.msk [vmem:[#allocation2 + $0xc8] sm:$0xff] %vm394_vm2, %v14986_v6  ;;  %v2334_v9 = vld [vmem:[%s15077_s29 + $0x1e2] sm:$0xff] }
 0x125   : > { %401 = vst.msk [vmem:[#allocation2 + $0xf0] sm:$0xff] %vm394_vm2, %v14986_v6  ;;  %402 = vst.msk [vmem:[#allocation2 + $0x118] sm:$0xff] %vm394_vm2, %v14986_v6  ;;  %13128 = vmatprep.subr.bf16.mxu1 %v14843_v5  ;;  %v2435_v21 = vpack.c.bf16 %v2335_v12, %v2334_v9  ;;  %v15657_v12 = vld [vmem:[%s17928_s3] sm:$0xff]  }
 0x126   : > { %v15571_v37 = vpop.f32.mrb[28].mxu1  ;;  %403 = vst.msk [vmem:[#allocation2 + $0x140] sm:$0xff] %vm394_vm2, %v14986_v6  ;;  %404 = vst.msk [vmem:[#allocation2 + $0x168] sm:$0xff] %vm394_vm2, %v14986_v6 }
 0x127   : > { %v15573_v40 = vpop.f32.mrb[29].mxu1  ;;  %405 = vst.msk [vmem:[#allocation2 + $0x190] sm:$0xff] %vm394_vm2, %v14986_v6  ;;  %406 = vst.msk [vmem:[#allocation2 + $0x1b8] sm:$0xff] %vm394_vm2, %v14986_v6 }
 0x128   : > { %13039 = vmatmul.mubr.msk.bf16.gmra.mrb[44].mxu0 %vm798_vm1, %v2431_v23  ;;  %v15576_v42 = vpop.f32.mrb[30].mxu1  ;;  %407 = vst.msk [vmem:[#allocation2 + $0x1e0] sm:$0xff] %vm394_vm2, %v14986_v6  ;;  %408 = vst.msk [vmem:[#allocation2 + $0x208] sm:$0xff] %vm394_vm2, %v14986_v6  ;;  %13129 = vmatpush3.bf16.msra.mxu1 %v14843_v5  ;;  %v522_v23 = vld [vmem:[%s15077_s29 + $0x3e0] sm:$0xff]  ;;  %v528_v5 = vld [vmem:[%s15077_s29 + $0x418] sm:$0xff] }
 0x129   : > { %13042 = vmatprep.mubr.msk.bf16.mxu0 %vm798_vm1, %v2432_v27  ;;  %v15581_v48 = vpop.f32.mrb[31].mxu1  ;;  %409 = vst.msk [vmem:[#allocation2 + $0x230] sm:$0xff] %vm394_vm2, %v14986_v6  ;;  %410 = vst.msk [vmem:[#allocation2 + $0x258] sm:$0xff] %vm394_vm2, %v14986_v6  ;;  %v524_v27 = vld [vmem:[%s15077_s29 + $0x3f8] sm:$0xff]  ;;  %v594_v35 = vpack.c.bf16 %v522_v23, %v521_v22  ;;  %13258 = vmatprep.subr.bf16.mxu1 %v15657_v12 }
 0x12a   : > { %v2343_v22 = vld [vmem:[%s15077_s29 + $0x232] sm:$0xff] }
 0x12b   : > { %12965 = vmatmul.mubr.msk.bf16.gmra.mrb[100].mxu1 %vm798_vm1, %v590_v38 }
 0x12c   : > { %12968 = vmatprep.mubr.msk.bf16.mxu1 %vm798_vm1, %v591_v41  ;;  %v595_v41 = vpack.c.bf16 %v524_v27, %v523_v25  ;;  %v2345_v25 = vld [vmem:[%s15077_s29 + $0x24a] sm:$0xff] }
 0x12e   : > { %v15591_v1 = vpop.f32.mrb[32].mxu1 }
 0x12f   : > { %v15593_v4 = vpop.f32.mrb[33].mxu1 }
 0x130   : > { %13043 = vmatmul.mubr.msk.bf16.gmra.mrb[48].mxu0 %vm798_vm1, %v2433_v53  ;;  %v15615_v8 = vpop.f32.mrb[34].mxu1  ;;  %v2340_v53 = vld [vmem:[%s15077_s29 + $0x21a] sm:$0xff] }
 0x131   : > { %13046 = vmatprep.mubr.msk.bf16.mxu0 %vm798_vm1, %v2434_v58  ;;  %v15620_v31 = vpop.f32.mrb[35].mxu1  ;;  %v525_v58 = vld [vmem:[%s15077_s29 + $0x400] sm:$0xff]  ;;  %v2438_v0 = vpack.c.bf16 %v2341_v55, %v2340_v53 }
 0x132   : > { %v532_v53 = vld [vmem:[%s15077_s29 + $0x440] sm:$0xff] }
 0x133   : > { %12969 = vmatmul.mubr.msk.bf16.gmra.mrb[104].mxu1 %vm798_vm1, %v592_v3  ;;  %v527_v3 = vld [vmem:[%s15077_s29 + $0x410] sm:$0xff] }
 0x134   : > { %12972 = vmatprep.mubr.msk.bf16.mxu1 %vm798_vm1, %v593_v7  ;;  %v596_v7 = vpack.c.bf16 %v526_v62, %v525_v58  ;;  %v597_v17 = vpack.c.bf16 %v528_v5, %v527_v3  ;;  %v599_v62 = vpack.c.bf16 %v532_v53, %v531_v49  ;;  %v2346_v3 = vld [vmem:[%s15077_s29 + $0x252] sm:$0xff]  ;;  %v2347_v5 = vld [vmem:[%s15077_s29 + $0x25a] sm:$0xff] }
 0x136   : > { %v15630_v32 = vpop.f32.mrb[36].mxu1 }
 0x137   : > { %v15632_v38 = vpop.f32.mrb[37].mxu1 }
 0x138   : > { %13047 = vmatmul.mubr.msk.bf16.gmra.mrb[52].mxu0 %vm798_vm1, %v2435_v21  ;;  %v15635_v44 = vpop.f32.mrb[38].mxu1  ;;  %v2342_v21 = vld [vmem:[%s15077_s29 + $0x22a] sm:$0xff] }
 0x139   : > { %13050 = vmatprep.mubr.msk.bf16.mxu0 %vm798_vm1, %v2436_v24  ;;  %v15640_v51 = vpop.f32.mrb[39].mxu1  ;;  %v2344_v24 = vld [vmem:[%s15077_s29 + $0x242] sm:$0xff]  ;;  %v2439_v27 = vpack.c.bf16 %v2343_v22, %v2342_v21  ;;  %v2349_v21 = vld [vmem:[%s15077_s29 + $0x26a] sm:$0xff]  ;;  %v2441_v22 = vpack.c.bf16 %v2347_v5, %v2346_v3  ;;  %v2351_v5 = vld [vmem:[%s15077_s29 + $0x27a] sm:$0xff] }
 0x13a   : > { %v2440_v46 = vpack.c.bf16 %v2345_v25, %v2344_v24  ;;  %v533_v24 = vld [vmem:[%s15077_s29 + $0x448] sm:$0xff]  ;;  %v534_v25 = vld [vmem:[%s15077_s29 + $0x450] sm:$0xff] }
 0x13b   : > { %12973 = vmatmul.mubr.msk.bf16.gmra.mrb[108].mxu1 %vm798_vm1, %v594_v35  ;;  %v529_v35 = vld [vmem:[%s15077_s29 + $0x420] sm:$0xff]  ;;  %v600_v49 = vpack.c.bf16 %v534_v25, %v533_v24  ;;  %v538_v25 = vld [vmem:[%s15077_s29 + $0x470] sm:$0xff] }
 0x13c   : > { %12976 = vmatprep.mubr.msk.bf16.mxu1 %vm798_vm1, %v595_v41  ;;  %v530_v41 = vld [vmem:[%s15077_s29 + $0x428] sm:$0xff] }
 0x13e   : > { %v15650_v6 = vpop.f32.mrb[40].mxu1 }
 0x13f   : > { %v15652_v9 = vpop.f32.mrb[41].mxu1 }
 0x140   : > { %13051 = vmatmul.mubr.msk.bf16.gmra.mrb[56].mxu0 %vm798_vm1, %v2437_v57  ;;  %v15660_v19 = vpop.f32.mrb[42].mxu1  ;;  %v598_v57 = vpack.c.bf16 %v530_v41, %v529_v35  ;;  %v535_v35 = vld [vmem:[%s15077_s29 + $0x458] sm:$0xff]  ;;  %v536_v41 = vld [vmem:[%s15077_s29 + $0x460] sm:$0xff] }
 0x141   : > { %13054 = vmatprep.mubr.msk.bf16.mxu0 %vm798_vm1, %v2438_v0  ;;  %v15665_v23 = vpop.f32.mrb[43].mxu1 }
 0x143   : > { %12977 = vmatmul.mubr.msk.bf16.gmra.mrb[112].mxu1 %vm798_vm1, %v596_v7 }
 0x144   : > { %12980 = vmatprep.mubr.msk.bf16.mxu1 %vm798_vm1, %v597_v17  ;;  %v2348_v17 = vld [vmem:[%s15077_s29 + $0x262] sm:$0xff] }
 0x146   : > { %v15676_v55 = vpop.f32.mrb[44].mxu1 }
 0x147   : > { %v15678_v58 = vpop.f32.mrb[45].mxu1 }
 0x148   : > { %17937 = vst [vmem:[#allocation3_spill] sm:$0xff] %v15678_v58  ;;  %13055 = vmatmul.mubr.msk.bf16.gmra.mrb[60].mxu0 %vm798_vm1, %v2439_v27  ;;  %v15681_v0 = vpop.f32.mrb[46].mxu1  ;;  %v2442_v27 = vpack.c.bf16 %v2349_v21, %v2348_v17  ;;  %v2352_v21 = vld [vmem:[%s15077_s29 + $0x28a] sm:$0xff] }
 0x149   : > { %17938 = vst [vmem:[#allocation4_spill] sm:$0xff] %v15681_v0  ;;  %13058 = vmatprep.mubr.msk.bf16.mxu0 %vm798_vm1, %v2440_v46  ;;  %v15686_v7 = vpop.f32.mrb[47].mxu1 }
 0x14a   : > { %17939 = vst [vmem:[#allocation5_spill] sm:$0xff] %v15686_v7  ;;  %v2353_v7 = vld [vmem:[%s15077_s29 + $0x292] sm:$0xff] }
 0x14b   : > { %12981 = vmatmul.mubr.msk.bf16.gmra.mrb[116].mxu1 %vm798_vm1, %v598_v57  ;;  %v601_v57 = vpack.c.bf16 %v536_v41, %v535_v35  ;;  %v2444_v35 = vpack.c.bf16 %v2353_v7, %v2352_v21  ;;  %v2356_v7 = vld [vmem:[%s15077_s29 + $0x2aa] sm:$0xff] }
 0x14c   : > { %12984 = vmatprep.mubr.msk.bf16.mxu1 %vm798_vm1, %v599_v62  ;;  %v2350_v62 = vld [vmem:[%s15077_s29 + $0x272] sm:$0xff] }
 0x14d   : > { %v2443_v24 = vpack.c.bf16 %v2351_v5, %v2350_v62  ;;  %v2355_v62 = vld [vmem:[%s15077_s29 + $0x2a2] sm:$0xff]  ;;  %v2357_v5 = vld [vmem:[%s15077_s29 + $0x2b2] sm:$0xff] }
 0x14e   : > { %v15696_v46 = vpop.f32.mrb[48].mxu1 }
 0x14f   : > { %17940 = vst [vmem:[#allocation6_spill] sm:$0xff] %v15696_v46  ;;  %v15698_v53 = vpop.f32.mrb[49].mxu1 }
 0x150   : > { %17941 = vst [vmem:[#allocation7_spill] sm:$0xff] %v15698_v53  ;;  %13059 = vmatmul.mubr.msk.bf16.gmra.mrb[64].mxu0 %vm798_vm1, %v2441_v22  ;;  %v15701_v3 = vpop.f32.mrb[50].mxu1  ;;  %v537_v22 = vld [vmem:[%s15077_s29 + $0x468] sm:$0xff] }
 0x151   : > { %17942 = vst [vmem:[#allocation8_spill] sm:$0xff] %v15701_v3  ;;  %13062 = vmatprep.mubr.msk.bf16.mxu0 %vm798_vm1, %v2442_v27  ;;  %v15706_v17 = vpop.f32.mrb[51].mxu1  ;;  %v602_v27 = vpack.c.bf16 %v538_v25, %v537_v22  ;;  %v2446_v22 = vpack.c.bf16 %v2357_v5, %v2356_v7 }
 0x152   : > { %17943 = vst [vmem:[#allocation9_spill] sm:$0xff] %v15706_v17 }
 0x153   : > { %12985 = vmatmul.mubr.msk.bf16.gmra.mrb[120].mxu1 %vm798_vm1, %v600_v49  ;;  %v2354_v49 = vld [vmem:[%s15077_s29 + $0x29a] sm:$0xff] }
 0x154   : > { %12988 = vmatprep.mubr.msk.bf16.mxu1 %vm798_vm1, %v601_v57  ;;  %v2445_v21 = vpack.c.bf16 %v2355_v62, %v2354_v49  ;;  %v2361_v49 = vld [vmem:[%s15077_s29 + $0x2da] sm:$0xff] }
 0x156   : > { %v15714_v41 = vpop.f32.mrb[52].mxu1 }
 0x157   : > { %17944 = vst [vmem:[#allocation10_spill] sm:$0xff] %v15714_v41  ;;  %v15716_v3 = vpop.f32.mrb[53].mxu1  ;;  %v2392_v41 = vld [vmem:[%s15077_s29 + $0x3f2] sm:$0xff] }
 0x158   : > { %17945 = vst [vmem:[#allocation11_spill] sm:$0xff] %v15716_v3  ;;  %13063 = vmatmul.mubr.msk.bf16.gmra.mrb[68].mxu0 %vm798_vm1, %v2443_v24  ;;  %v15719_v17 = vpop.f32.mrb[54].mxu1 }
 0x159   : > { %17946 = vst [vmem:[#allocation12_spill] sm:$0xff] %v15719_v17  ;;  %13066 = vmatprep.mubr.msk.bf16.mxu0 %vm798_vm1, %v2444_v35  ;;  %v15724_v57 = vpop.f32.mrb[55].mxu1  ;;  %v2359_v17 = vld [vmem:[%s15077_s29 + $0x2c2] sm:$0xff] }
 0x15a   : > { %17947 = vst [vmem:[#allocation13_spill] sm:$0xff] %v15724_v57  ;;  %v2358_v57 = vld [vmem:[%s15077_s29 + $0x2ba] sm:$0xff] }
 0x15b   : > { %12989 = vmatmul.mubr.msk.bf16.gmra.mrb[124].mxu1 %vm798_vm1, %v602_v27  ;;  %v2360_v27 = vld [vmem:[%s15077_s29 + $0x2d2] sm:$0xff]  ;;  %v2447_v62 = vpack.c.bf16 %v2359_v17, %v2358_v57  ;;  %v2365_v57 = vld [vmem:[%s15077_s29 + $0x2fa] sm:$0xff] }
 0x15c   : > { %v2448_v7 = vpack.c.bf16 %v2361_v49, %v2360_v27  ;;  %v2364_v17 = vld [vmem:[%s15077_s29 + $0x2f2] sm:$0xff] }
 0x15d   : > { %v2450_v49 = vpack.c.bf16 %v2365_v57, %v2364_v17 }
 0x15e   : > { %v15729_v25 = vpop.f32.mrb[56].mxu1 }
 0x15f   : > { %17948 = vst [vmem:[#allocation14_spill] sm:$0xff] %v15729_v25  ;;  %v15731_v24 = vpop.f32.mrb[57].mxu1 }
 0x160   : > { %17949 = vst [vmem:[#allocation15_spill] sm:$0xff] %v15731_v24  ;;  %13067 = vmatmul.mubr.msk.bf16.gmra.mrb[72].mxu0 %vm798_vm1, %v2445_v21  ;;  %v15734_v35 = vpop.f32.mrb[58].mxu1 }
 0x161   : > { %17950 = vst [vmem:[#allocation16_spill] sm:$0xff] %v15734_v35  ;;  %13070 = vmatprep.mubr.msk.bf16.mxu0 %vm798_vm1, %v2446_v22  ;;  %v15739_v3 = vpop.f32.mrb[59].mxu1  ;;  %v2362_v22 = vld [vmem:[%s15077_s29 + $0x2e2] sm:$0xff] }
 0x162   : > { %17951 = vst [vmem:[#allocation17_spill] sm:$0xff] %v15739_v3  ;;  %v2363_v3 = vld [vmem:[%s15077_s29 + $0x2ea] sm:$0xff] }
 0x163   : > { %v2449_v27 = vpack.c.bf16 %v2363_v3, %v2362_v22  ;;  %v2368_v3 = vld [vmem:[%s15077_s29 + $0x31a] sm:$0xff]  ;;  %v2369_v22 = vld [vmem:[%s15077_s29 + $0x322] sm:$0xff] }
 0x164   : > { %v2452_v57 = vpack.c.bf16 %v2369_v22, %v2368_v3 }
 0x166   : > { %v15743_v5 = vpop.f32.mrb[60].mxu1 }
 0x167   : > { %17952 = vst [vmem:[#allocation18_spill] sm:$0xff] %v15743_v5  ;;  %v15745_v24 = vpop.f32.mrb[61].mxu1 }
 0x168   : > { %17953 = vst [vmem:[#allocation19_spill] sm:$0xff] %v15745_v24  ;;  %13071 = vmatmul.mubr.msk.bf16.gmra.mrb[76].mxu0 %vm798_vm1, %v2447_v62  ;;  %v15748_v21 = vpop.f32.mrb[62].mxu1 }
 0x169   : > { %17954 = vst [vmem:[#allocation20_spill] sm:$0xff] %v15748_v21  ;;  %13074 = vmatprep.mubr.msk.bf16.mxu0 %vm798_vm1, %v2448_v7  ;;  %v15753_v35 = vpop.f32.mrb[63].mxu1  ;;  %v2366_v7 = vld [vmem:[%s15077_s29 + $0x302] sm:$0xff] }
 0x16a   : > { %17955 = vst [vmem:[#allocation21_spill] sm:$0xff] %v15753_v35  ;;  %v2367_v35 = vld [vmem:[%s15077_s29 + $0x30a] sm:$0xff] }
 0x16b   : > { %v2451_v17 = vpack.c.bf16 %v2367_v35, %v2366_v7  ;;  %v2372_v35 = vld [vmem:[%s15077_s29 + $0x33a] sm:$0xff]  ;;  %v2373_v7 = vld [vmem:[%s15077_s29 + $0x342] sm:$0xff] }
 0x16c   : > { %v2454_v22 = vpack.c.bf16 %v2373_v7, %v2372_v35 }
 0x16e   : > { %v15757_v5 = vpop.f32.mrb[64].mxu1 }
 0x16f   : > { %17956 = vst [vmem:[#allocation22_spill] sm:$0xff] %v15757_v5  ;;  %v15759_v24 = vpop.f32.mrb[65].mxu1 }
 0x170   : > { %17957 = vst [vmem:[#allocation23_spill] sm:$0xff] %v15759_v24  ;;  %13075 = vmatmul.mubr.msk.bf16.gmra.mrb[80].mxu0 %vm798_vm1, %v2449_v27  ;;  %v15762_v62 = vpop.f32.mrb[66].mxu1 }
 0x171   : > { %17958 = vst [vmem:[#allocation24_spill] sm:$0xff] %v15762_v62  ;;  %13078 = vmatprep.mubr.msk.bf16.mxu0 %vm798_vm1, %v2450_v49  ;;  %v15767_v21 = vpop.f32.mrb[67].mxu1  ;;  %v2370_v49 = vld [vmem:[%s15077_s29 + $0x32a] sm:$0xff] }
 0x172   : > { %17959 = vst [vmem:[#allocation25_spill] sm:$0xff] %v15767_v21  ;;  %v2371_v21 = vld [vmem:[%s15077_s29 + $0x332] sm:$0xff] }
 0x173   : > { %v2453_v3 = vpack.c.bf16 %v2371_v21, %v2370_v49  ;;  %v2376_v21 = vld [vmem:[%s15077_s29 + $0x362] sm:$0xff]  ;;  %v2377_v49 = vld [vmem:[%s15077_s29 + $0x36a] sm:$0xff] }
 0x174   : > { %v2456_v7 = vpack.c.bf16 %v2377_v49, %v2376_v21 }
 0x176   : > { %v15771_v5 = vpop.f32.mrb[68].mxu1 }
 0x177   : > { %17960 = vst [vmem:[#allocation26_spill] sm:$0xff] %v15771_v5  ;;  %v15773_v24 = vpop.f32.mrb[69].mxu1 }
 0x178   : > { %17961 = vst [vmem:[#allocation27_spill] sm:$0xff] %v15773_v24  ;;  %13079 = vmatmul.mubr.msk.bf16.gmra.mrb[84].mxu0 %vm798_vm1, %v2451_v17  ;;  %v15776_v27 = vpop.f32.mrb[70].mxu1 }
 0x179   : > { %17962 = vst [vmem:[#allocation28_spill] sm:$0xff] %v15776_v27  ;;  %13082 = vmatprep.mubr.msk.bf16.mxu0 %vm798_vm1, %v2452_v57  ;;  %v15781_v62 = vpop.f32.mrb[71].mxu1  ;;  %v2374_v57 = vld [vmem:[%s15077_s29 + $0x34a] sm:$0xff] }
 0x17a   : > { %17963 = vst [vmem:[#allocation29_spill] sm:$0xff] %v15781_v62  ;;  %v2375_v62 = vld [vmem:[%s15077_s29 + $0x352] sm:$0xff] }
 0x17b   : > { %v2455_v35 = vpack.c.bf16 %v2375_v62, %v2374_v57  ;;  %v2380_v62 = vld [vmem:[%s15077_s29 + $0x382] sm:$0xff]  ;;  %v2381_v57 = vld [vmem:[%s15077_s29 + $0x38a] sm:$0xff] }
 0x17c   : > { %v2458_v49 = vpack.c.bf16 %v2381_v57, %v2380_v62 }
 0x17e   : > { %v15785_v5 = vpop.f32.mrb[72].mxu1 }
 0x17f   : > { %17964 = vst [vmem:[#allocation30_spill] sm:$0xff] %v15785_v5  ;;  %v15787_v24 = vpop.f32.mrb[73].mxu1 }
 0x180   : > { %17965 = vst [vmem:[#allocation31_spill] sm:$0xff] %v15787_v24  ;;  %13083 = vmatmul.mubr.msk.bf16.gmra.mrb[88].mxu0 %vm798_vm1, %v2453_v3  ;;  %v15790_v17 = vpop.f32.mrb[74].mxu1 }
 0x181   : > { %17966 = vst [vmem:[#allocation32_spill] sm:$0xff] %v15790_v17  ;;  %13086 = vmatprep.mubr.msk.bf16.mxu0 %vm798_vm1, %v2454_v22  ;;  %v15795_v27 = vpop.f32.mrb[75].mxu1  ;;  %v2378_v22 = vld [vmem:[%s15077_s29 + $0x372] sm:$0xff] }
 0x182   : > { %17967 = vst [vmem:[#allocation33_spill] sm:$0xff] %v15795_v27  ;;  %v2379_v27 = vld [vmem:[%s15077_s29 + $0x37a] sm:$0xff] }
 0x183   : > { %v2457_v21 = vpack.c.bf16 %v2379_v27, %v2378_v22  ;;  %v2384_v27 = vld [vmem:[%s15077_s29 + $0x3aa] sm:$0xff]  ;;  %v2385_v22 = vld [vmem:[%s15077_s29 + $0x3b2] sm:$0xff] }
 0x184   : > { %v2460_v57 = vpack.c.bf16 %v2385_v22, %v2384_v27 }
 0x186   : > { %v15799_v5 = vpop.f32.mrb[76].mxu1 }
 0x187   : > { %17968 = vst [vmem:[#allocation34_spill] sm:$0xff] %v15799_v5  ;;  %v15801_v24 = vpop.f32.mrb[77].mxu1 }
 0x188   : > { %17969 = vst [vmem:[#allocation35_spill] sm:$0xff] %v15801_v24  ;;  %13087 = vmatmul.mubr.msk.bf16.gmra.mrb[92].mxu0 %vm798_vm1, %v2455_v35  ;;  %v15804_v3 = vpop.f32.mrb[78].mxu1 }
 0x189   : > { %17970 = vst [vmem:[#allocation36_spill] sm:$0xff] %v15804_v3  ;;  %13090 = vmatprep.mubr.msk.bf16.mxu0 %vm798_vm1, %v2456_v7  ;;  %v15809_v17 = vpop.f32.mrb[79].mxu1  ;;  %v2382_v7 = vld [vmem:[%s15077_s29 + $0x392] sm:$0xff] }
 0x18a   : > { %17971 = vst [vmem:[#allocation37_spill] sm:$0xff] %v15809_v17  ;;  %v2383_v17 = vld [vmem:[%s15077_s29 + $0x39a] sm:$0xff] }
 0x18b   : > { %v2459_v62 = vpack.c.bf16 %v2383_v17, %v2382_v7  ;;  %v2388_v17 = vld [vmem:[%s15077_s29 + $0x3ca] sm:$0xff]  ;;  %v2389_v7 = vld [vmem:[%s15077_s29 + $0x3d2] sm:$0xff] }
 0x18c   : > { %v2462_v22 = vpack.c.bf16 %v2389_v7, %v2388_v17 }
 0x18e   : > { %v15813_v5 = vpop.f32.mrb[80].mxu1 }
 0x18f   : > { %17972 = vst [vmem:[#allocation38_spill] sm:$0xff] %v15813_v5  ;;  %v15815_v24 = vpop.f32.mrb[81].mxu1 }
 0x190   : > { %17973 = vst [vmem:[#allocation39_spill] sm:$0xff] %v15815_v24  ;;  %13091 = vmatmul.mubr.msk.bf16.gmra.mrb[96].mxu0 %vm798_vm1, %v2457_v21  ;;  %v15818_v35 = vpop.f32.mrb[82].mxu1 }
 0x191   : > { %17974 = vst [vmem:[#allocation40_spill] sm:$0xff] %v15818_v35  ;;  %13094 = vmatprep.mubr.msk.bf16.mxu0 %vm798_vm1, %v2458_v49  ;;  %v15823_v3 = vpop.f32.mrb[83].mxu1  ;;  %v2386_v49 = vld [vmem:[%s15077_s29 + $0x3ba] sm:$0xff] }
 0x192   : > { %17975 = vst [vmem:[#allocation41_spill] sm:$0xff] %v15823_v3  ;;  %v2387_v3 = vld [vmem:[%s15077_s29 + $0x3c2] sm:$0xff] }
 0x193   : > { %v2461_v27 = vpack.c.bf16 %v2387_v3, %v2386_v49  ;;  %v15858_v3 = vld [vmem:[%s17927_s2] ss:$0 sm:$0xff] }
 0x196   : > { %v15827_v5 = vpop.f32.mrb[84].mxu1 }
 0x197   : > { %17976 = vst [vmem:[#allocation42_spill] sm:$0xff] %v15827_v5  ;;  %v15829_v24 = vpop.f32.mrb[85].mxu1 }
 0x198   : > { %17977 = vst [vmem:[#allocation43_spill] sm:$0xff] %v15829_v24  ;;  %13095 = vmatmul.mubr.msk.bf16.gmra.mrb[100].mxu0 %vm798_vm1, %v2459_v62  ;;  %v15832_v21 = vpop.f32.mrb[86].mxu1 }
 0x199   : > { %17978 = vst [vmem:[#allocation44_spill] sm:$0xff] %v15832_v21  ;;  %13098 = vmatprep.mubr.msk.bf16.mxu0 %vm798_vm1, %v2460_v57  ;;  %v15837_v35 = vpop.f32.mrb[87].mxu1  ;;  %v2390_v57 = vld [vmem:[%s15077_s29 + $0x3da] sm:$0xff]  ;;  %v2391_v21 = vld [vmem:[%s15077_s29 + $0x3e2] sm:$0xff] }
 0x19a   : > { %17979 = vst [vmem:[#allocation45_spill] sm:$0xff] %v15837_v35  ;;  %v2393_v35 = vld [vmem:[%s15077_s29 + $0x3fa] sm:$0xff]  ;;  %v2463_v7 = vpack.c.bf16 %v2391_v21, %v2390_v57  ;;  %v2395_v21 = vld [vmem:[%s15077_s29 + $0x40a] sm:$0xff]  ;;  %v2396_v57 = vld [vmem:[%s15077_s29 + $0x412] sm:$0xff] }
 0x19e   : > { %v15841_v5 = vpop.f32.mrb[88].mxu1 }
 0x19f   : > { %17980 = vst [vmem:[#allocation46_spill] sm:$0xff] %v15841_v5  ;;  %v15843_v24 = vpop.f32.mrb[89].mxu1 }
 0x1a0   : > { %17981 = vst [vmem:[#allocation47_spill] sm:$0xff] %v15843_v24  ;;  %13099 = vmatmul.mubr.msk.bf16.gmra.mrb[104].mxu0 %vm798_vm1, %v2461_v27  ;;  %v15846_v62 = vpop.f32.mrb[90].mxu1 }
 0x1a1   : > { %17982 = vst [vmem:[#allocation48_spill] sm:$0xff] %v15846_v62  ;;  %13102 = vmatprep.mubr.msk.bf16.mxu0 %vm798_vm1, %v2462_v22  ;;  %v15851_v25 = vpop.f32.mrb[91].mxu1 }
 0x1a2   : > { %17983 = vst [vmem:[#allocation49_spill] sm:$0xff] %v15851_v25  ;;  %v2464_v25 = vpack.c.bf16 %v2393_v35, %v2392_v41 }
 0x1a3   : > { %v12996_v53 = vpop.f32.mrb[0].mxu0 }
 0x1a4   : > { %v14024_v49 = vadd.f32 %v12996_v53, %v15418_v26  ;;  %v2703_v17 = vpop.f32.mrb[1].mxu0 }
 0x1a5   : > { %v14025_v27 = vadd.f32 %v2703_v17, %v15420_v28  ;;  %v12997_v22 = vpop.f32.mrb[2].mxu0  ;;  %v2394_v28 = vld [vmem:[%s15077_s29 + $0x402] sm:$0xff] }
 0x1a6   : > { %v3351_v62 = vadd.f32 %v14024_v49, %v15858_v3  ;;  %v14026_v24 = vadd.f32 %v12997_v22, %v15423_v30  ;;  %v2706_v5 = vpop.f32.mrb[3].mxu0  ;;  %v2397_v49 = vld [vmem:[%s15077_s29 + $0x41a] sm:$0xff] }
 0x1a7   : > { %v3349_v46 = vadd.f32 %v14025_v27, %v15858_v3  ;;  %v14027_v0 = vadd.f32 %v2706_v5, %v15433_v34  ;;  %v2466_v58 = vpack.c.bf16 %v2397_v49, %v2396_v57  ;;  %v2400_v49 = vld [vmem:[%s15077_s29 + $0x43a] sm:$0xff] }
 0x1a8   : > { %v3352_v26 = vadd.f32 %v14026_v24, %v15858_v3  ;;  %13103 = vmatmul.mubr.msk.bf16.gmra.mrb[108].mxu0 %vm798_vm1, %v2463_v7  ;;  %v3479_v41 = vmax.f32 %v3351_v62, 0.0  ;;  %v2465_v24 = vpack.c.bf16 %v2395_v21, %v2394_v28  ;;  %v2398_v21 = vld [vmem:[%s15077_s29 + $0x422] sm:$0xff] }
 0x1a9   : > { %v3350_v53 = vadd.f32 %v14027_v0, %v15858_v3  ;;  %13106 = vmatprep.mubr.msk.bf16.mxu0 %vm798_vm1, %v2464_v25  ;;  %v3477_v30 = vmax.f32 %v3349_v46, 0.0 }
 0x1aa   : > { %v3480_v35 = vmax.f32 %v3352_v26, 0.0 }
 0x1ab   : > { %v3478_v17 = vmax.f32 %v3350_v53, 0.0  ;;  %v13000_v22 = vpop.f32.mrb[4].mxu0 }
 0x1ac   : > { %v3606_v27 = vpack.c.bf16 %v3480_v35, %v3479_v41  ;;  %v14028_v34 = vadd.f32 %v13000_v22, %v15444_v43  ;;  %v2719_v5 = vpop.f32.mrb[5].mxu0  ;;  %v2399_v41 = vld [vmem:[%s15077_s29 + $0x42a] sm:$0xff] }
 0x1ad   : > { %v3605_v7 = vpack.c.bf16 %v3478_v17, %v3477_v30  ;;  %v14029_v0 = vadd.f32 %v2719_v5, %v15446_v45  ;;  %v13001_v25 = vpop.f32.mrb[6].mxu0  ;;  %v2401_v30 = vld [vmem:[%s15077_s29 + $0x442] sm:$0xff] }
 0x1ae   : > { %3670 = vst.msk [vmem:[#allocation2 + $0x10] sm:$0xff] %vm394_vm2, %v3606_v27  ;;  %v3355_v62 = vadd.f32 %v14028_v34, %v15858_v3  ;;  %v14030_v46 = vadd.f32 %v13001_v25, %v15449_v47  ;;  %v2722_v26 = vpop.f32.mrb[7].mxu0  ;;  %v4046_v47 = vld [vmem:[#allocation2] sm:$0x80] }
 0x1af   : > { %3669 = vst.msk [vmem:[#allocation2 + $0x8] sm:$0xff] %vm394_vm2, %v3605_v7  ;;  %v3353_v43 = vadd.f32 %v14029_v0, %v15858_v3  ;;  %v14031_v53 = vadd.f32 %v2722_v26, %v15454_v50  ;;  %v2467_v7 = vpack.c.bf16 %v2399_v41, %v2398_v21  ;;  %v2468_v26 = vpack.c.bf16 %v2401_v30, %v2400_v49  ;;  %v2403_v49 = vld [vmem:[%s15077_s29 + $0x452] sm:$0xff]  ;;  %v14845_v30 = vld [vmem:[%s17928_s3 + $0x8] sm:$0xff]  }
 0x1b0   : > { %v3356_v28 = vadd.f32 %v14030_v46, %v15858_v3  ;;  %13107 = vmatmul.mubr.msk.bf16.gmra.mrb[112].mxu0 %vm798_vm1, %v2465_v24  ;;  %v3483_v35 = vmax.f32 %v3355_v62, 0.0 }
 0x1b1   : > { %v3354_v45 = vadd.f32 %v14031_v53, %v15858_v3  ;;  %13110 = vmatprep.mubr.msk.bf16.mxu0 %vm798_vm1, %v2466_v58  ;;  %v3481_v17 = vmax.f32 %v3353_v43, 0.0  ;;  %v4111_v58 = vrot.slane %v4046_v47, 7  ;;  %v2402_v47 = vld [vmem:[%s15077_s29 + $0x44a] sm:$0xff] }
 0x1b2   : > { %v3484_v57 = vmax.f32 %v3356_v28, 0.0 }
 0x1b3   : > { %v3482_v22 = vmax.f32 %v3354_v45, 0.0  ;;  %v13004_v27 = vpop.f32.mrb[8].mxu0 }
 0x1b4   : > { %v3608_v34 = vpack.c.bf16 %v3484_v57, %v3483_v35  ;;  %v14032_v50 = vadd.f32 %v13004_v27, %v15464_v59  ;;  %v2735_v5 = vpop.f32.mrb[9].mxu0  ;;  %v2405_v27 = vld [vmem:[%s15077_s29 + $0x462] sm:$0xff] }
 0x1b5   : > { %v3607_v24 = vpack.c.bf16 %v3482_v22, %v3481_v17  ;;  %v14033_v0 = vadd.f32 %v2735_v5, %v15466_v61  ;;  %v13005_v25 = vpop.f32.mrb[10].mxu0  ;;  %v3735_v46 = vld [vmem:[#allocation2 + $0x10] sm:$0xff]  ;;  %v2404_v22 = vld [vmem:[%s15077_s29 + $0x45a] sm:$0xff] }
 0x1b6   : > { %3672 = vst.msk [vmem:[#allocation2 + $0x20] sm:$0xff] %vm394_vm2, %v3608_v34  ;;  %v3359_v62 = vadd.f32 %v14032_v50, %v15858_v3  ;;  %v14034_v43 = vadd.f32 %v13005_v25, %v15469_v63  ;;  %v2738_v53 = vpop.f32.mrb[11].mxu0  ;;  %v3734_v28 = vld [vmem:[#allocation2 + $0x8] sm:$0xff]  ;;  %v4114_v59 = vrot.slane %v3735_v46, 7  ;;  %v2469_v25 = vpack.c.bf16 %v2403_v49, %v2402_v47 }
 0x1b7   : > { %3671 = vst.msk [vmem:[#allocation2 + $0x18] sm:$0xff] %vm394_vm2, %v3607_v24  ;;  %v3357_v61 = vadd.f32 %v14033_v0, %v15858_v3  ;;  %v14035_v45 = vadd.f32 %v2738_v53, %v15474_v2  ;;  %v4112_v21 = vrot.slane %v3734_v28, 7  ;;  %v2406_v47 = vld [vmem:[%s15077_s29 + $0x46a] sm:$0xff] }
 0x1b8   : > { %v3360_v41 = vadd.f32 %v14034_v43, %v15858_v3  ;;  %13111 = vmatmul.mubr.msk.bf16.gmra.mrb[116].mxu0 %vm798_vm1, %v2467_v7  ;;  %v3487_v2 = vmax.f32 %v3359_v62, 0.0  ;;  %v2470_v43 = vpack.c.bf16 %v2405_v27, %v2404_v22 }
 0x1b9   : > { %v3358_v63 = vadd.f32 %v14035_v45, %v15858_v3  ;;  %v4113_v35 = vsel %vm4110_vm3, %v4111_v58, %v4112_v21  ;;  %v4115_v57 = vsel %vm4110_vm3, %v4112_v21, %v4114_v59  ;;  %13114 = vmatprep.mubr.msk.bf16.mxu0 %vm798_vm1, %v2468_v26  ;;  %v3485_v34 = vmax.f32 %v3357_v61, 0.0 }
 0x1ba   : > { %v3488_v17 = vmax.f32 %v3360_v41, 0.0  ;;  %13130 = vmatprep.mubr.msk.bf16.mxu1 %vm394_vm2, %v4113_v35  ;;  %v14846_v41 = vld [vmem:[%s17928_s3 + $0x10] sm:$0xff]  }
 0x1bb   : > { %v3486_v50 = vmax.f32 %v3358_v63, 0.0  ;;  %v13008_v5 = vpop.f32.mrb[12].mxu0  ;;  %13131 = vmatmul.mubr.msk.bf16.vlgmr.msra.gmra.mrb[128].mxu1 %vm394_vm2, %v4115_v57 }
 0x1bc   : > { %v3610_v7 = vpack.c.bf16 %v3488_v17, %v3487_v2  ;;  %v14036_v24 = vadd.f32 %v13008_v5, %v15484_v11  ;;  %13259 = vmatpush3.bf16.msra.mxu1 %v15657_v12  ;;  %v2751_v0 = vpop.f32.mrb[13].mxu0  ;;  %v4048_v17 = vld [vmem:[#allocation2 + $0x28] sm:$0x80] }
 0x1bd   : > { %v3609_v58 = vpack.c.bf16 %v3486_v50, %v3485_v34  ;;  %v14037_v46 = vadd.f32 %v2751_v0, %v15486_v13  ;;  %v13009_v26 = vpop.f32.mrb[14].mxu0  ;;  %v4047_v62 = vld [vmem:[#allocation2 + $0x20] sm:$0x7f]  ;;  %13260 = vmatprep.subr.bf16.mxu1 %v14845_v30 }
 0x1be   : > { %3674 = vst.msk [vmem:[#allocation2 + $0x38] sm:$0xff] %vm394_vm2, %v3610_v7  ;;  %v3363_v53 = vadd.f32 %v14036_v24, %v15858_v3  ;;  %v14038_v28 = vadd.f32 %v13009_v26, %v15489_v15  ;;  %v2754_v61 = vpop.f32.mrb[15].mxu0  ;;  %v3736_v11 = vld [vmem:[#allocation2 + $0x18] sm:$0xff]  ;;  %v4118_v12 = vrot.slane %v4047_v62, 7 }
 0x1bf   : > { %3673 = vst.msk [vmem:[#allocation2 + $0x30] sm:$0xff] %vm394_vm2, %v3609_v58  ;;  %v3361_v45 = vadd.f32 %v14037_v46, %v15858_v3  ;;  %v14039_v13 = vadd.f32 %v2754_v61, %v15494_v18  ;;  %v4116_v21 = vrot.slane %v3736_v11, 7  ;;  %v2407_v18 = vld [vmem:[%s15077_s29 + $0x472] sm:$0xff] }
 0x1c0   : > { %v3364_v63 = vadd.f32 %v14038_v28, %v15858_v3  ;;  %13115 = vmatmul.mubr.msk.bf16.gmra.mrb[120].mxu0 %vm798_vm1, %v2469_v25  ;;  %13261 = vmatpush3.bf16.msra.mxu1 %v14845_v30  ;;  %v3491_v49 = vmax.f32 %v3363_v53, 0.0  ;;  %v2471_v5 = vpack.c.bf16 %v2407_v18, %v2406_v47  ;;  %v4120_v25 = vrot.slane %v4048_v17, 7 }
 0x1c1   : > { %v3362_v15 = vadd.f32 %v14039_v13, %v15858_v3  ;;  %v4117_v35 = vsel %vm4110_vm3, %v4114_v59, %v4116_v21  ;;  %v4119_v57 = vsel %vm4110_vm3, %v4116_v21, %v4118_v12  ;;  %13118 = vmatprep.mubr.msk.bf16.mxu0 %vm798_vm1, %v2470_v43  ;;  %13262 = vmatprep.subr.bf16.mxu1 %v14846_v41  ;;  %v3489_v22 = vmax.f32 %v3361_v45, 0.0 }
 0x1c2   : > { %v3492_v2 = vmax.f32 %v3364_v63, 0.0  ;;  %13134 = vmatprep.mubr.msk.bf16.mxu1 %vm394_vm2, %v4117_v35 }
 0x1c3   : > { %v3490_v27 = vmax.f32 %v3362_v15, 0.0  ;;  %v13012_v34 = vpop.f32.mrb[16].mxu0  ;;  %13135 = vmatmul.mubr.msk.bf16.gmra.mrb[132].mxu1 %vm394_vm2, %v4119_v57 }
 0x1c4   : > { %v3612_v30 = vpack.c.bf16 %v3492_v2, %v3491_v49  ;;  %v14040_v59 = vadd.f32 %v13012_v34, %v15504_v29  ;;  %v2767_v50 = vpop.f32.mrb[17].mxu0  ;;  %13263 = vmatpush3.bf16.msra.mxu1 %v14846_v41 }
 0x1c5   : > { %v3611_v7 = vpack.c.bf16 %v3490_v27, %v3489_v22  ;;  %v14041_v24 = vadd.f32 %v2767_v50, %v15506_v33  ;;  %v13013_v0 = vpop.f32.mrb[18].mxu0  ;;  %v3740_v58 = vld [vmem:[#allocation2 + $0x38] sm:$0xff] }
 0x1c6   : > { %3676 = vst.msk [vmem:[#allocation2 + $0x48] sm:$0xff] %vm394_vm2, %v3612_v30  ;;  %v3367_v46 = vadd.f32 %v14040_v59, %v15858_v3  ;;  %v14042_v26 = vadd.f32 %v13013_v0, %v15509_v36  ;;  %v2770_v62 = vpop.f32.mrb[19].mxu0  ;;  %v3739_v43 = vld [vmem:[#allocation2 + $0x30] sm:$0xff]  ;;  %v4123_v53 = vrot.slane %v3740_v58, 7 }
 0x1c7   : > { %3675 = vst.msk [vmem:[#allocation2 + $0x40] sm:$0xff] %vm394_vm2, %v3611_v7  ;;  %v3365_v29 = vadd.f32 %v14041_v24, %v15858_v3  ;;  %v14043_v28 = vadd.f32 %v2770_v62, %v15514_v39  ;;  %v4121_v61 = vrot.slane %v3739_v43, 7  ;;  %v4050_v0 = vld [vmem:[#allocation2 + $0x50] sm:$0x80] }
 0x1c8   : > { %v3368_v33 = vadd.f32 %v14042_v26, %v15858_v3  ;;  %13119 = vmatmul.mubr.msk.bf16.gmra.mrb[124].mxu0 %vm798_vm1, %v2471_v5  ;;  %v3495_v45 = vmax.f32 %v3367_v46, 0.0 }
 0x1c9   : > { %v3366_v11 = vadd.f32 %v14043_v28, %v15858_v3  ;;  %v4122_v12 = vsel %vm4110_vm3, %v4120_v25, %v4121_v61  ;;  %v4124_v36 = vsel %vm4110_vm3, %v4121_v61, %v4123_v53  ;;  %v3493_v21 = vmax.f32 %v3365_v29, 0.0 }
 0x1ca   : > { %v3496_v13 = vmax.f32 %v3368_v33, 0.0  ;;  %13138 = vmatprep.mubr.msk.bf16.mxu1 %vm394_vm2, %v4122_v12  ;;  %v4129_v28 = vrot.slane %v4050_v0, 7 }
 0x1cb   : > { %v3494_v41 = vmax.f32 %v3366_v11, 0.0  ;;  %v13016_v63 = vpop.f32.mrb[20].mxu0  ;;  %13139 = vmatmul.mubr.msk.bf16.gmra.mrb[136].mxu1 %vm394_vm2, %v4124_v36 }
 0x1cc   : > { %v3614_v39 = vpack.c.bf16 %v3496_v13, %v3495_v45  ;;  %v14044_v15 = vadd.f32 %v13016_v63, %v15524_v52  ;;  %v2783_v35 = vpop.f32.mrb[21].mxu0 }
 0x1cd   : > { %v3613_v57 = vpack.c.bf16 %v3494_v41, %v3493_v21  ;;  %v14045_v47 = vadd.f32 %v2783_v35, %v15526_v54  ;;  %v13017_v18 = vpop.f32.mrb[22].mxu0  ;;  %v4049_v49 = vld [vmem:[#allocation2 + $0x48] sm:$0x7f] }
 0x1ce   : > { %3678 = vst.msk [vmem:[#allocation2 + $0x60] sm:$0xff] %vm394_vm2, %v3614_v39  ;;  %v3371_v2 = vadd.f32 %v14044_v15, %v15858_v3  ;;  %v14046_v17 = vadd.f32 %v13017_v18, %v15529_v56  ;;  %v2786_v22 = vpop.f32.mrb[23].mxu0  ;;  %v3741_v27 = vld [vmem:[#allocation2 + $0x40] sm:$0xff]  ;;  %v4127_v34 = vrot.slane %v4049_v49, 7 }
 0x1cf   : > { %3677 = vst.msk [vmem:[#allocation2 + $0x58] sm:$0xff] %vm394_vm2, %v3613_v57  ;;  %v3369_v30 = vadd.f32 %v14045_v47, %v15858_v3  ;;  %v14047_v52 = vadd.f32 %v2786_v22, %v15534_v60  ;;  %v4125_v59 = vrot.slane %v3741_v27, 7 }
 0x1d0   : > { %v3372_v54 = vadd.f32 %v14046_v17, %v15858_v3  ;;  %v3499_v24 = vmax.f32 %v3371_v2, 0.0 }
 0x1d1   : > { %v3370_v50 = vadd.f32 %v14047_v52, %v15858_v3  ;;  %v4126_v5 = vsel %vm4110_vm3, %v4123_v53, %v4125_v59  ;;  %v4128_v7 = vsel %vm4110_vm3, %v4125_v59, %v4127_v34  ;;  %v3497_v25 = vmax.f32 %v3369_v30, 0.0 }
 0x1d2   : > { %v3500_v56 = vmax.f32 %v3372_v54, 0.0  ;;  %13142 = vmatprep.mubr.msk.bf16.mxu1 %vm394_vm2, %v4126_v5 }
 0x1d3   : > { %v3498_v58 = vmax.f32 %v3370_v50, 0.0  ;;  %v13020_v46 = vpop.f32.mrb[24].mxu0  ;;  %13143 = vmatmul.mubr.msk.bf16.gmra.mrb[140].mxu1 %vm394_vm2, %v4128_v7 }
 0x1d4   : > { %v3616_v60 = vpack.c.bf16 %v3500_v56, %v3499_v24  ;;  %v14048_v26 = vadd.f32 %v13020_v46, %v15551_v10  ;;  %v2799_v62 = vpop.f32.mrb[25].mxu0 }
 0x1d5   : > { %v3615_v43 = vpack.c.bf16 %v3498_v58, %v3497_v25  ;;  %v14049_v29 = vadd.f32 %v2799_v62, %v15553_v14  ;;  %v13021_v53 = vpop.f32.mrb[26].mxu0  ;;  %v3745_v61 = vld [vmem:[#allocation2 + $0x60] sm:$0xff]  ;;  %v4052_v25 = vld [vmem:[#allocation2 + $0x78] sm:$0x80] }
 0x1d6   : > { %3680 = vst.msk [vmem:[#allocation2 + $0x70] sm:$0xff] %vm394_vm2, %v3616_v60  ;;  %v3375_v33 = vadd.f32 %v14048_v26, %v15858_v3  ;;  %v14050_v11 = vadd.f32 %v13021_v53, %v15556_v16  ;;  %v2802_v12 = vpop.f32.mrb[27].mxu0  ;;  %v3744_v36 = vld [vmem:[#allocation2 + $0x58] sm:$0xff]  ;;  %v4132_v45 = vrot.slane %v3745_v61, 7 }
 0x1d7   : > { %3679 = vst.msk [vmem:[#allocation2 + $0x68] sm:$0xff] %vm394_vm2, %v3615_v43  ;;  %v3373_v10 = vadd.f32 %v14049_v29, %v15858_v3  ;;  %v14051_v13 = vadd.f32 %v2802_v12, %v15561_v20  ;;  %v4130_v21 = vrot.slane %v3744_v36, 7 }
 0x1d8   : > { %v3376_v14 = vadd.f32 %v14050_v11, %v15858_v3  ;;  %v3503_v15 = vmax.f32 %v3375_v33, 0.0 }
 0x1d9   : > { %v3374_v41 = vadd.f32 %v14051_v13, %v15858_v3  ;;  %v4131_v63 = vsel %vm4110_vm3, %v4129_v28, %v4130_v21  ;;  %v4133_v39 = vsel %vm4110_vm3, %v4130_v21, %v4132_v45  ;;  %v3501_v35 = vmax.f32 %v3373_v10, 0.0 }
 0x1da   : > { %v3504_v16 = vmax.f32 %v3376_v14, 0.0  ;;  %13146 = vmatprep.mubr.msk.bf16.mxu1 %vm394_vm2, %v4131_v63  ;;  %v4138_v28 = vrot.slane %v4052_v25, 7 }
 0x1db   : > { %v3502_v57 = vmax.f32 %v3374_v41, 0.0  ;;  %v13024_v47 = vpop.f32.mrb[28].mxu0  ;;  %13147 = vmatmul.mubr.msk.bf16.gmra.mrb[144].mxu1 %vm394_vm2, %v4133_v39 }
 0x1dc   : > { %v3618_v18 = vpack.c.bf16 %v3504_v16, %v3503_v15  ;;  %v14052_v20 = vadd.f32 %v13024_v47, %v15571_v37  ;;  %v2815_v49 = vpop.f32.mrb[29].mxu0 }
 0x1dd   : > { %v3617_v2 = vpack.c.bf16 %v3502_v57, %v3501_v35  ;;  %v14053_v17 = vadd.f32 %v2815_v49, %v15573_v40  ;;  %v13025_v22 = vpop.f32.mrb[30].mxu0  ;;  %v4051_v27 = vld [vmem:[#allocation2 + $0x70] sm:$0x7f] }
 0x1de   : > { %3682 = vst.msk [vmem:[#allocation2 + $0x88] sm:$0xff] %vm394_vm2, %v3618_v18  ;;  %v3379_v34 = vadd.f32 %v14052_v20, %v15858_v3  ;;  %v14054_v30 = vadd.f32 %v13025_v22, %v15576_v42  ;;  %v2818_v52 = vpop.f32.mrb[31].mxu0  ;;  %v3746_v59 = vld [vmem:[#allocation2 + $0x68] sm:$0xff]  ;;  %v4136_v54 = vrot.slane %v4051_v27, 7 }
 0x1df   : > { %3681 = vst.msk [vmem:[#allocation2 + $0x80] sm:$0xff] %vm394_vm2, %v3617_v2  ;;  %v3377_v50 = vadd.f32 %v14053_v17, %v15858_v3  ;;  %v14055_v37 = vadd.f32 %v2818_v52, %v15581_v48  ;;  %v4134_v5 = vrot.slane %v3746_v59, 7 }
 0x1e0   : > { %v3380_v40 = vadd.f32 %v14054_v30, %v15858_v3  ;;  %v3507_v0 = vmax.f32 %v3379_v34, 0.0 }
 0x1e1   : > { %v3378_v7 = vadd.f32 %v14055_v37, %v15858_v3  ;;  %v4135_v24 = vsel %vm4110_vm3, %v4132_v45, %v4134_v5  ;;  %v4137_v56 = vsel %vm4110_vm3, %v4134_v5, %v4136_v54  ;;  %v3505_v58 = vmax.f32 %v3377_v50, 0.0 }
 0x1e2   : > { %v3508_v42 = vmax.f32 %v3380_v40, 0.0  ;;  %13150 = vmatprep.mubr.msk.bf16.mxu1 %vm394_vm2, %v4135_v24 }
 0x1e3   : > { %v3506_v46 = vmax.f32 %v3378_v7, 0.0  ;;  %v13028_v60 = vpop.f32.mrb[32].mxu0  ;;  %13151 = vmatmul.mubr.msk.bf16.gmra.mrb[148].mxu1 %vm394_vm2, %v4137_v56 }
 0x1e4   : > { %v3620_v48 = vpack.c.bf16 %v3508_v42, %v3507_v0  ;;  %v14056_v26 = vadd.f32 %v13028_v60, %v15591_v1  ;;  %v2831_v62 = vpop.f32.mrb[33].mxu0 }
 0x1e5   : > { %v3619_v43 = vpack.c.bf16 %v3506_v46, %v3505_v58  ;;  %v14057_v29 = vadd.f32 %v2831_v62, %v15593_v4  ;;  %v13029_v53 = vpop.f32.mrb[34].mxu0  ;;  %v3750_v61 = vld [vmem:[#allocation2 + $0x88] sm:$0xff] }
 0x1e6   : > { %3684 = vst.msk [vmem:[#allocation2 + $0x98] sm:$0xff] %vm394_vm2, %v3620_v48  ;;  %v3383_v33 = vadd.f32 %v14056_v26, %v15858_v3  ;;  %v14058_v11 = vadd.f32 %v13029_v53, %v15615_v8  ;;  %v2834_v12 = vpop.f32.mrb[35].mxu0  ;;  %v3749_v36 = vld [vmem:[#allocation2 + $0x80] sm:$0xff]  ;;  %v4141_v45 = vrot.slane %v3750_v61, 7 }
 0x1e7   : > { %3683 = vst.msk [vmem:[#allocation2 + $0x90] sm:$0xff] %vm394_vm2, %v3619_v43  ;;  %v3381_v1 = vadd.f32 %v14057_v29, %v15858_v3  ;;  %v14059_v10 = vadd.f32 %v2834_v12, %v15620_v31  ;;  %v4139_v13 = vrot.slane %v3749_v36, 7 }
 0x1e8   : > { %v3384_v4 = vadd.f32 %v14058_v11, %v15858_v3  ;;  %v3511_v63 = vmax.f32 %v3383_v33, 0.0 }
 0x1e9   : > { %v3382_v21 = vadd.f32 %v14059_v10, %v15858_v3  ;;  %v4140_v14 = vsel %vm4110_vm3, %v4138_v28, %v4139_v13  ;;  %v4142_v41 = vsel %vm4110_vm3, %v4139_v13, %v4141_v45  ;;  %v3509_v39 = vmax.f32 %v3381_v1, 0.0 }
 0x1ea   : > { %v3512_v8 = vmax.f32 %v3384_v4, 0.0  ;;  %13154 = vmatprep.mubr.msk.bf16.mxu1 %vm394_vm2, %v4140_v14 }
 0x1eb   : > { %v3510_v15 = vmax.f32 %v3382_v21, 0.0  ;;  %v13032_v16 = vpop.f32.mrb[36].mxu0  ;;  %13155 = vmatmul.mubr.msk.bf16.gmra.mrb[152].mxu1 %vm394_vm2, %v4142_v41 }
 0x1ec   : > { %v3622_v35 = vpack.c.bf16 %v3512_v8, %v3511_v63  ;;  %v14060_v31 = vadd.f32 %v13032_v16, %v15630_v32  ;;  %v2847_v57 = vpop.f32.mrb[37].mxu0 }
 0x1ed   : > { %v3621_v47 = vpack.c.bf16 %v3510_v15, %v3509_v39  ;;  %v14061_v18 = vadd.f32 %v2847_v57, %v15632_v38  ;;  %v13033_v20 = vpop.f32.mrb[38].mxu0  ;;  %v4053_v49 = vld [vmem:[#allocation2 + $0x98] sm:$0x7f] }
 0x1ee   : > { %3686 = vst.msk [vmem:[#allocation2 + $0xb0] sm:$0xff] %vm394_vm2, %v3622_v35  ;;  %v3387_v2 = vadd.f32 %v14060_v31, %v15858_v3  ;;  %v14062_v17 = vadd.f32 %v13033_v20, %v15635_v44  ;;  %v2850_v22 = vpop.f32.mrb[39].mxu0  ;;  %v3751_v27 = vld [vmem:[#allocation2 + $0x90] sm:$0xff]  ;;  %v4145_v34 = vrot.slane %v4053_v49, 7  ;;  %v16011_v30 = vpop.f32.mrb[92].mxu1  ;;  %v17984_v35 = vld [vmem:[#allocation3_spill] sm:$0xff] }
 0x1ef   : > { %3685 = vst.msk [vmem:[#allocation2 + $0xa8] sm:$0xff] %vm394_vm2, %v3621_v47  ;;  %v3385_v32 = vadd.f32 %v14061_v18, %v15858_v3  ;;  %v14063_v52 = vadd.f32 %v2850_v22, %v15640_v51  ;;  %v4143_v38 = vrot.slane %v3751_v27, 7  ;;  %v16016_v59 = vpop.f32.mrb[93].mxu1  ;;  %v4054_v51 = vld [vmem:[#allocation2 + $0xa0] sm:$0x80]  ;;  %v17985_v20 = vld [vmem:[#allocation4_spill] sm:$0xff] }
 0x1f0   : > { %v3388_v54 = vadd.f32 %v14062_v17, %v15858_v3  ;;  %v16019_v50 = vpop.f32.mrb[94].mxu1  ;;  %v3515_v7 = vmax.f32 %v3387_v2, 0.0  ;;  %v4147_v62 = vrot.slane %v4054_v51, 7 }
 0x1f1   : > { %v3386_v44 = vadd.f32 %v14063_v52, %v15858_v3  ;;  %v4144_v37 = vsel %vm4110_vm3, %v4141_v45, %v4143_v38  ;;  %v4146_v5 = vsel %vm4110_vm3, %v4143_v38, %v4145_v34  ;;  %v16024_v40 = vpop.f32.mrb[95].mxu1  ;;  %v3513_v56 = vmax.f32 %v3385_v32, 0.0  ;;  %v17986_v34 = vld [vmem:[#allocation5_spill] sm:$0xff] }
 0x1f2   : > { %v3516_v24 = vmax.f32 %v3388_v54, 0.0  ;;  %13158 = vmatprep.mubr.msk.bf16.mxu1 %vm394_vm2, %v4144_v37  ;;  %v14847_v54 = vld [vmem:[%s17928_s3 + $0x18] sm:$0xff]  }
 0x1f3   : > { %v3514_v0 = vmax.f32 %v3386_v44, 0.0  ;;  %v13036_v42 = vpop.f32.mrb[40].mxu0  ;;  %13159 = vmatmul.mubr.msk.bf16.gmra.mrb[156].mxu1 %vm394_vm2, %v4146_v5  ;;  %13264 = vmatprep.subr.bf16.mxu1 %v14847_v54 }
 0x1f4   : > { %v3624_v25 = vpack.c.bf16 %v3516_v24, %v3515_v7  ;;  %v14064_v58 = vadd.f32 %v13036_v42, %v15650_v6  ;;  %v2863_v46 = vpop.f32.mrb[41].mxu0  ;;  %v4056_v42 = vld [vmem:[#allocation2 + $0xc8] sm:$0x80]  ;;  %13265 = vmatpush3.bf16.msra.mxu1 %v14847_v54 }
 0x1f5   : > { %v3623_v60 = vpack.c.bf16 %v3514_v0, %v3513_v56  ;;  %v14065_v48 = vadd.f32 %v2863_v46, %v15652_v9  ;;  %v13037_v26 = vpop.f32.mrb[42].mxu0  ;;  %v3755_v43 = vld [vmem:[#allocation2 + $0xb0] sm:$0xff] }
 0x1f6   : > { %3688 = vst.msk [vmem:[#allocation2 + $0xc0] sm:$0xff] %vm394_vm2, %v3624_v25  ;;  %v3391_v29 = vadd.f32 %v14064_v58, %v15858_v3  ;;  %v14066_v53 = vadd.f32 %v13037_v26, %v15660_v19  ;;  %v2866_v28 = vpop.f32.mrb[43].mxu0  ;;  %v3754_v61 = vld [vmem:[#allocation2 + $0xa8] sm:$0xff]  ;;  %v4150_v33 = vrot.slane %v3755_v43, 7  ;;  %v16033_v11 = vpop.f32.mrb[96].mxu1 }
 0x1f7   : > { %3687 = vst.msk [vmem:[#allocation2 + $0xb8] sm:$0xff] %vm394_vm2, %v3623_v60  ;;  %v3389_v6 = vadd.f32 %v14065_v48, %v15858_v3  ;;  %v14067_v9 = vadd.f32 %v2866_v28, %v15665_v23  ;;  %v4148_v12 = vrot.slane %v3754_v61, 7  ;;  %v16038_v36 = vpop.f32.mrb[97].mxu1  ;;  %v17987_v48 = vld [vmem:[#allocation6_spill] sm:$0xff]  ;;  %v4156_v61 = vrot.slane %v4056_v42, 7 }
 0x1f8   : > { %v3392_v45 = vadd.f32 %v14066_v53, %v15858_v3  ;;  %v16041_v1 = vpop.f32.mrb[98].mxu1  ;;  %v3519_v21 = vmax.f32 %v3391_v29, 0.0  ;;  %v17988_v29 = vld [vmem:[#allocation7_spill] sm:$0xff] }
 0x1f9   : > { %v3390_v19 = vadd.f32 %v14067_v9, %v15858_v3  ;;  %v4149_v10 = vsel %vm4110_vm3, %v4147_v62, %v4148_v12  ;;  %v4151_v13 = vsel %vm4110_vm3, %v4148_v12, %v4150_v33  ;;  %v16046_v4 = vpop.f32.mrb[99].mxu1  ;;  %v3517_v23 = vmax.f32 %v3389_v6, 0.0  ;;  %v17989_v9 = vld [vmem:[#allocation8_spill] sm:$0xff] }
 0x1fa   : > { %v3520_v14 = vmax.f32 %v3392_v45, 0.0  ;;  %13162 = vmatprep.mubr.msk.bf16.mxu1 %vm394_vm2, %v4149_v10 }
 0x1fb   : > { %v3518_v41 = vmax.f32 %v3390_v19, 0.0  ;;  %v13040_v63 = vpop.f32.mrb[44].mxu0  ;;  %13163 = vmatmul.mubr.msk.bf16.gmra.mrb[160].mxu1 %vm394_vm2, %v4151_v13 }
 0x1fc   : > { %v3626_v8 = vpack.c.bf16 %v3520_v14, %v3519_v21  ;;  %v14068_v39 = vadd.f32 %v13040_v63, %v15676_v55  ;;  %v2879_v15 = vpop.f32.mrb[45].mxu0  ;;  %v17990_v14 = vld [vmem:[#allocation9_spill] sm:$0xff] }
 0x1fd   : > { %v3625_v16 = vpack.c.bf16 %v3518_v41, %v3517_v23  ;;  %v14069_v31 = vadd.f32 %v2879_v15, %v17984_v35  ;;  %v13041_v57 = vpop.f32.mrb[46].mxu0  ;;  %v4055_v47 = vld [vmem:[#allocation2 + $0xc0] sm:$0x7f] }
 0x1fe   : > { %3690 = vst.msk [vmem:[#allocation2 + $0xd8] sm:$0xff] %vm394_vm2, %v3626_v8  ;;  %v3395_v18 = vadd.f32 %v14068_v39, %v15858_v3  ;;  %v14070_v49 = vadd.f32 %v13041_v57, %v17985_v20  ;;  %v2882_v2 = vpop.f32.mrb[47].mxu0  ;;  %v3756_v17 = vld [vmem:[#allocation2 + $0xb8] sm:$0xff]  ;;  %v4154_v22 = vrot.slane %v4055_v47, 7  ;;  %v16055_v27 = vpop.f32.mrb[100].mxu1 }
 0x1ff   : > { %3689 = vst.msk [vmem:[#allocation2 + $0xd0] sm:$0xff] %vm394_vm2, %v3625_v16  ;;  %v3393_v55 = vadd.f32 %v14069_v31, %v15858_v3  ;;  %v14071_v32 = vadd.f32 %v2882_v2, %v17986_v34  ;;  %v4152_v52 = vrot.slane %v3756_v17, 7  ;;  %v16060_v38 = vpop.f32.mrb[101].mxu1  ;;  %v17991_v17 = vld [vmem:[#allocation10_spill] sm:$0xff] }
 0x200   : > { %v3396_v44 = vadd.f32 %v14070_v49, %v15858_v3  ;;  %v16066_v37 = vpop.f32.mrb[102].mxu1  ;;  %v3523_v56 = vmax.f32 %v3395_v18, 0.0 }
 0x201   : > { %v3394_v5 = vadd.f32 %v14071_v32, %v15858_v3  ;;  %v4153_v7 = vsel %vm4110_vm3, %v4150_v33, %v4152_v52  ;;  %v4155_v24 = vsel %vm4110_vm3, %v4152_v52, %v4154_v22  ;;  %v16071_v51 = vpop.f32.mrb[103].mxu1  ;;  %v3521_v25 = vmax.f32 %v3393_v55, 0.0  ;;  %v17992_v32 = vld [vmem:[#allocation11_spill] sm:$0xff] }
 0x202   : > { %v3524_v0 = vmax.f32 %v3396_v44, 0.0  ;;  %13166 = vmatprep.mubr.msk.bf16.mxu1 %vm394_vm2, %v4153_v7  ;;  %v17993_v7 = vld [vmem:[#allocation12_spill] sm:$0xff] }
 0x203   : > { %v3522_v58 = vmax.f32 %v3394_v5, 0.0  ;;  %v13044_v46 = vpop.f32.mrb[48].mxu0  ;;  %13167 = vmatmul.mubr.msk.bf16.gmra.mrb[164].mxu1 %vm394_vm2, %v4155_v24 }
 0x204   : > { %v3628_v60 = vpack.c.bf16 %v3524_v0, %v3523_v56  ;;  %v14072_v26 = vadd.f32 %v13044_v46, %v17987_v48  ;;  %v2895_v62 = vpop.f32.mrb[49].mxu0  ;;  %v17994_v46 = vld [vmem:[#allocation13_spill] sm:$0xff] }
 0x205   : > { %v3627_v43 = vpack.c.bf16 %v3522_v58, %v3521_v25  ;;  %v14073_v53 = vadd.f32 %v2895_v62, %v17988_v29  ;;  %v13045_v28 = vpop.f32.mrb[50].mxu0  ;;  %v3760_v33 = vld [vmem:[#allocation2 + $0xd8] sm:$0xff] }
 0x206   : > { %3692 = vst.msk [vmem:[#allocation2 + $0xe8] sm:$0xff] %vm394_vm2, %v3628_v60  ;;  %v3399_v6 = vadd.f32 %v14072_v26, %v15858_v3  ;;  %v14074_v12 = vadd.f32 %v13045_v28, %v17989_v9  ;;  %v2898_v45 = vpop.f32.mrb[51].mxu0  ;;  %v3759_v19 = vld [vmem:[#allocation2 + $0xd0] sm:$0xff]  ;;  %v4159_v10 = vrot.slane %v3760_v33, 7  ;;  %v16080_v13 = vpop.f32.mrb[104].mxu1 }
 0x207   : > { %3691 = vst.msk [vmem:[#allocation2 + $0xe0] sm:$0xff] %vm394_vm2, %v3627_v43  ;;  %v3397_v21 = vadd.f32 %v14073_v53, %v15858_v3  ;;  %v14075_v23 = vadd.f32 %v2898_v45, %v17990_v14  ;;  %v4157_v41 = vrot.slane %v3759_v19, 7  ;;  %v16085_v63 = vpop.f32.mrb[105].mxu1  ;;  %v4058_v9 = vld [vmem:[#allocation2 + $0xf0] sm:$0x80]  ;;  %v17995_v14 = vld [vmem:[#allocation14_spill] sm:$0xff] }
 0x208   : > { %v3400_v8 = vadd.f32 %v14074_v12, %v15858_v3  ;;  %v16088_v39 = vpop.f32.mrb[106].mxu1  ;;  %v3527_v57 = vmax.f32 %v3399_v6, 0.0 }
 0x209   : > { %v3398_v15 = vadd.f32 %v14075_v23, %v15858_v3  ;;  %v4158_v16 = vsel %vm4110_vm3, %v4156_v61, %v4157_v41  ;;  %v4160_v35 = vsel %vm4110_vm3, %v4157_v41, %v4159_v10  ;;  %v16093_v31 = vpop.f32.mrb[107].mxu1  ;;  %v3525_v18 = vmax.f32 %v3397_v21, 0.0 }
 0x20a   : > { %v3528_v47 = vmax.f32 %v3400_v8, 0.0  ;;  %13170 = vmatprep.mubr.msk.bf16.mxu1 %vm394_vm2, %v4158_v16 }
 0x20b   : > { %v3526_v20 = vmax.f32 %v3398_v15, 0.0  ;;  %v13048_v49 = vpop.f32.mrb[52].mxu0  ;;  %13171 = vmatmul.mubr.msk.bf16.gmra.mrb[168].mxu1 %vm394_vm2, %v4160_v35  ;;  %v4165_v35 = vrot.slane %v4058_v9, 7 }
 0x20c   : > { %v3630_v2 = vpack.c.bf16 %v3528_v47, %v3527_v57  ;;  %v14076_v22 = vadd.f32 %v13048_v49, %v17991_v17  ;;  %v2911_v55 = vpop.f32.mrb[53].mxu0 }
 0x20d   : > { %v3629_v34 = vpack.c.bf16 %v3526_v20, %v3525_v18  ;;  %v14077_v52 = vadd.f32 %v2911_v55, %v17992_v32  ;;  %v13049_v54 = vpop.f32.mrb[54].mxu0  ;;  %v4057_v44 = vld [vmem:[#allocation2 + $0xe8] sm:$0x7f] }
 0x20e   : > { %3694 = vst.msk [vmem:[#allocation2 + $0x100] sm:$0xff] %vm394_vm2, %v3630_v2  ;;  %v3403_v5 = vadd.f32 %v14076_v22, %v15858_v3  ;;  %v14078_v24 = vadd.f32 %v13049_v54, %v17993_v7  ;;  %v2914_v56 = vpop.f32.mrb[55].mxu0  ;;  %v3761_v0 = vld [vmem:[#allocation2 + $0xe0] sm:$0xff]  ;;  %v4163_v42 = vrot.slane %v4057_v44, 7  ;;  %v16102_v25 = vpop.f32.mrb[108].mxu1  ;;  %v17997_v18 = vld [vmem:[#allocation16_spill] sm:$0xff] }
 0x20f   : > { %3693 = vst.msk [vmem:[#allocation2 + $0xf8] sm:$0xff] %vm394_vm2, %v3629_v34  ;;  %v3401_v58 = vadd.f32 %v14077_v52, %v15858_v3  ;;  %v14079_v60 = vadd.f32 %v2914_v56, %v17994_v46  ;;  %v4161_v48 = vrot.slane %v3761_v0, 7  ;;  %v16107_v26 = vpop.f32.mrb[109].mxu1  ;;  %v17998_v34 = vld [vmem:[#allocation17_spill] sm:$0xff] }
 0x210   : > { %v3404_v62 = vadd.f32 %v14078_v24, %v15858_v3  ;;  %v16110_v43 = vpop.f32.mrb[110].mxu1  ;;  %v3531_v33 = vmax.f32 %v3403_v5, 0.0 }
 0x211   : > { %v3402_v29 = vadd.f32 %v14079_v60, %v15858_v3  ;;  %v4162_v53 = vsel %vm4110_vm3, %v4159_v10, %v4161_v48  ;;  %v4164_v28 = vsel %vm4110_vm3, %v4161_v48, %v4163_v42  ;;  %v16115_v61 = vpop.f32.mrb[111].mxu1  ;;  %v3529_v12 = vmax.f32 %v3401_v58, 0.0  ;;  %v17996_v10 = vld [vmem:[#allocation15_spill] sm:$0xff] }
 0x212   : > { %v3532_v6 = vmax.f32 %v3404_v62, 0.0  ;;  %13174 = vmatprep.mubr.msk.bf16.mxu1 %vm394_vm2, %v4162_v53 }
 0x213   : > { %v3530_v45 = vmax.f32 %v3402_v29, 0.0  ;;  %v13052_v19 = vpop.f32.mrb[56].mxu0  ;;  %13175 = vmatmul.mubr.msk.bf16.gmra.mrb[172].mxu1 %vm394_vm2, %v4164_v28  ;;  %v17999_v29 = vld [vmem:[#allocation18_spill] sm:$0xff] }
 0x214   : > { %v3632_v21 = vpack.c.bf16 %v3532_v6, %v3531_v33  ;;  %v14080_v23 = vadd.f32 %v13052_v19, %v17995_v14  ;;  %v2927_v41 = vpop.f32.mrb[57].mxu0  ;;  %v18000_v6 = vld [vmem:[#allocation19_spill] sm:$0xff] }
 0x215   : > { %v3631_v8 = vpack.c.bf16 %v3530_v45, %v3529_v12  ;;  %v14081_v15 = vadd.f32 %v2927_v41, %v17996_v10  ;;  %v13053_v16 = vpop.f32.mrb[58].mxu0  ;;  %v3765_v57 = vld [vmem:[#allocation2 + $0x100] sm:$0xff] }
 0x216   : > { %3696 = vst.msk [vmem:[#allocation2 + $0x110] sm:$0xff] %vm394_vm2, %v3632_v21  ;;  %v3407_v47 = vadd.f32 %v14080_v23, %v15858_v3  ;;  %v14082_v20 = vadd.f32 %v13053_v16, %v17997_v18  ;;  %v2930_v49 = vpop.f32.mrb[59].mxu0  ;;  %v3764_v2 = vld [vmem:[#allocation2 + $0xf8] sm:$0xff]  ;;  %v4168_v17 = vrot.slane %v3765_v57, 7  ;;  %v16124_v22 = vpop.f32.mrb[112].mxu1  ;;  %v18001_v21 = vld [vmem:[#allocation20_spill] sm:$0xff] }
 0x217   : > { %3695 = vst.msk [vmem:[#allocation2 + $0x108] sm:$0xff] %vm394_vm2, %v3631_v8  ;;  %v3405_v55 = vadd.f32 %v14081_v15, %v15858_v3  ;;  %v14083_v32 = vadd.f32 %v2930_v49, %v17998_v34  ;;  %v4166_v52 = vrot.slane %v3764_v2, 7  ;;  %v16129_v54 = vpop.f32.mrb[113].mxu1  ;;  %v18002_v16 = vld [vmem:[#allocation21_spill] sm:$0xff] }
 0x218   : > { %v3408_v44 = vadd.f32 %v14082_v20, %v15858_v3  ;;  %v16132_v5 = vpop.f32.mrb[114].mxu1  ;;  %v3535_v42 = vmax.f32 %v3407_v47, 0.0 }
 0x219   : > { %v3406_v7 = vadd.f32 %v14083_v32, %v15858_v3  ;;  %v4167_v24 = vsel %vm4110_vm3, %v4165_v35, %v4166_v52  ;;  %v4169_v56 = vsel %vm4110_vm3, %v4166_v52, %v4168_v17  ;;  %v16137_v0 = vpop.f32.mrb[115].mxu1  ;;  %v3533_v46 = vmax.f32 %v3405_v55, 0.0 }
 0x21a   : > { %v3536_v58 = vmax.f32 %v3408_v44, 0.0  ;;  %13178 = vmatprep.mubr.msk.bf16.mxu1 %vm394_vm2, %v4167_v24  ;;  %v4060_v44 = vld [vmem:[#allocation2 + $0x118] sm:$0x80] }
 0x21b   : > { %v3534_v60 = vmax.f32 %v3406_v7, 0.0  ;;  %v13056_v48 = vpop.f32.mrb[60].mxu0  ;;  %13179 = vmatmul.mubr.msk.bf16.gmra.mrb[176].mxu1 %vm394_vm2, %v4169_v56 }
 0x21c   : > { %v3634_v62 = vpack.c.bf16 %v3536_v58, %v3535_v42  ;;  %v14084_v53 = vadd.f32 %v13056_v48, %v17999_v29  ;;  %v2943_v28 = vpop.f32.mrb[61].mxu0  ;;  %v18003_v58 = vld [vmem:[#allocation22_spill] sm:$0xff]  ;;  %v4174_v29 = vrot.slane %v4060_v44, 7 }
 0x21d   : > { %v3633_v33 = vpack.c.bf16 %v3534_v60, %v3533_v46  ;;  %v14085_v9 = vadd.f32 %v2943_v28, %v18000_v6  ;;  %v13057_v12 = vpop.f32.mrb[62].mxu0  ;;  %v4059_v45 = vld [vmem:[#allocation2 + $0x110] sm:$0x7f]  ;;  %v16169_v28 = vld [vmem:[%s17927_s2] ss:$0 sm:$0xff]  ;;  %v18005_v6 = vld [vmem:[#allocation24_spill] sm:$0xff] }
 0x21e   : > { %3698 = vst.msk [vmem:[#allocation2 + $0x128] sm:$0xff] %vm394_vm2, %v3634_v62  ;;  %v3411_v19 = vadd.f32 %v14084_v53, %v15858_v3  ;;  %v14086_v14 = vadd.f32 %v13057_v12, %v18001_v21  ;;  %v2946_v23 = vpop.f32.mrb[63].mxu0  ;;  %v3766_v41 = vld [vmem:[#allocation2 + $0x108] sm:$0xff]  ;;  %v4172_v8 = vrot.slane %v4059_v45, 7  ;;  %v16146_v10 = vpop.f32.mrb[116].mxu1 }
 0x21f   : > { %3697 = vst.msk [vmem:[#allocation2 + $0x120] sm:$0xff] %vm394_vm2, %v3633_v33  ;;  %v3409_v15 = vadd.f32 %v14085_v9, %v15858_v3  ;;  %v14087_v35 = vadd.f32 %v2946_v23, %v18002_v16  ;;  %v4170_v57 = vrot.slane %v3766_v41, 7  ;;  %v16151_v47 = vpop.f32.mrb[117].mxu1  ;;  %v18006_v23 = vld [vmem:[#allocation25_spill] sm:$0xff] }
 0x220   : > { %v3412_v18 = vadd.f32 %v14086_v14, %v15858_v3  ;;  %v16154_v20 = vpop.f32.mrb[118].mxu1  ;;  %v3539_v32 = vmax.f32 %v3411_v19, 0.0 }
 0x221   : > { %v3410_v49 = vadd.f32 %v14087_v35, %v15858_v3  ;;  %v4171_v2 = vsel %vm4110_vm3, %v4168_v17, %v4170_v57  ;;  %v4173_v55 = vsel %vm4110_vm3, %v4170_v57, %v4172_v8  ;;  %v16159_v34 = vpop.f32.mrb[119].mxu1  ;;  %v3537_v7 = vmax.f32 %v3409_v15, 0.0  ;;  %v18004_v17 = vld [vmem:[#allocation23_spill] sm:$0xff] }
 0x222   : > { %v3540_v52 = vmax.f32 %v3412_v18, 0.0  ;;  %13182 = vmatprep.mubr.msk.bf16.mxu1 %vm394_vm2, %v4171_v2 }
 0x223   : > { %v3538_v24 = vmax.f32 %v3410_v49, 0.0  ;;  %v13060_v56 = vpop.f32.mrb[64].mxu0  ;;  %13183 = vmatmul.mubr.msk.bf16.gmra.mrb[180].mxu1 %vm394_vm2, %v4173_v55 }
 0x224   : > { %v3636_v42 = vpack.c.bf16 %v3540_v52, %v3539_v32  ;;  %v14088_v46 = vadd.f32 %v13060_v56, %v18003_v58  ;;  %v2959_v3 = vpop.f32.mrb[65].mxu0  ;;  %v18007_v56 = vld [vmem:[#allocation26_spill] sm:$0xff] }
 0x225   : > { %v3635_v60 = vpack.c.bf16 %v3538_v24, %v3537_v7  ;;  %v14089_v48 = vadd.f32 %v2959_v3, %v18004_v17  ;;  %v13061_v62 = vpop.f32.mrb[66].mxu0  ;;  %v3770_v53 = vld [vmem:[#allocation2 + $0x128] sm:$0xff]  ;;  %v18008_v3 = vld [vmem:[#allocation27_spill] sm:$0xff] }
 0x226   : > { %3700 = vst.msk [vmem:[#allocation2 + $0x138] sm:$0xff] %vm394_vm2, %v3636_v42  ;;  %v3415_v33 = vadd.f32 %v16169_v28, %v14088_v46  ;;  %v14090_v9 = vadd.f32 %v13061_v62, %v18005_v6  ;;  %v2962_v12 = vpop.f32.mrb[67].mxu0  ;;  %v3769_v45 = vld [vmem:[#allocation2 + $0x120] sm:$0xff]  ;;  %v4177_v19 = vrot.slane %v3770_v53, 7  ;;  %v16173_v21 = vpop.f32.mrb[120].mxu1 }
 0x227   : > { %3699 = vst.msk [vmem:[#allocation2 + $0x130] sm:$0xff] %vm394_vm2, %v3635_v60  ;;  %v3413_v14 = vadd.f32 %v16169_v28, %v14089_v48  ;;  %v14091_v41 = vadd.f32 %v2962_v12, %v18006_v23  ;;  %v4175_v8 = vrot.slane %v3769_v45, 7  ;;  %v16178_v15 = vpop.f32.mrb[121].mxu1 }
 0x228   : > { %v3416_v16 = vadd.f32 %v16169_v28, %v14090_v9  ;;  %v16181_v35 = vpop.f32.mrb[122].mxu1  ;;  %v3543_v55 = vmax.f32 %v3415_v33, 0.0 }
 0x229   : > { %v3414_v57 = vadd.f32 %v16169_v28, %v14091_v41  ;;  %v4176_v18 = vsel %vm4110_vm3, %v4174_v29, %v4175_v8  ;;  %v4178_v49 = vsel %vm4110_vm3, %v4175_v8, %v4177_v19  ;;  %v16186_v2 = vpop.f32.mrb[123].mxu1  ;;  %v3541_v52 = vmax.f32 %v3413_v14, 0.0  ;;  %v18009_v29 = vld [vmem:[#allocation28_spill] sm:$0xff]  ;;  %v18010_v14 = vld [vmem:[#allocation29_spill] sm:$0xff] }
 0x22a   : > { %v3544_v32 = vmax.f32 %v3416_v16, 0.0  ;;  %13186 = vmatprep.mubr.msk.bf16.mxu1 %vm394_vm2, %v4176_v18 }
 0x22b   : > { %v3542_v44 = vmax.f32 %v3414_v57, 0.0  ;;  %v13064_v7 = vpop.f32.mrb[68].mxu0  ;;  %13187 = vmatmul.mubr.msk.bf16.gmra.mrb[184].mxu1 %vm394_vm2, %v4178_v49 }
 0x22c   : > { %v3638_v24 = vpack.c.bf16 %v3544_v32, %v3543_v55  ;;  %v14092_v42 = vadd.f32 %v13064_v7, %v18007_v56  ;;  %v2975_v58 = vpop.f32.mrb[69].mxu0  ;;  %v4062_v7 = vld [vmem:[#allocation2 + $0x140] sm:$0x80] }
 0x22d   : > { %v3637_v46 = vpack.c.bf16 %v3542_v44, %v3541_v52  ;;  %v14093_v60 = vadd.f32 %v2975_v58, %v18008_v3  ;;  %v13065_v17 = vpop.f32.mrb[70].mxu0  ;;  %v4061_v48 = vld [vmem:[#allocation2 + $0x138] sm:$0x7f] }
 0x22e   : > { %3702 = vst.msk [vmem:[#allocation2 + $0x150] sm:$0xff] %vm394_vm2, %v3638_v24  ;;  %v3419_v62 = vadd.f32 %v16169_v28, %v14092_v42  ;;  %v14094_v53 = vadd.f32 %v13065_v17, %v18009_v29  ;;  %v2978_v33 = vpop.f32.mrb[71].mxu0  ;;  %v3771_v6 = vld [vmem:[#allocation2 + $0x130] sm:$0xff]  ;;  %v4181_v9 = vrot.slane %v4061_v48, 7  ;;  %v16195_v12 = vpop.f32.mrb[124].mxu1  ;;  %v18012_v48 = vld [vmem:[#allocation31_spill] sm:$0xff] }
 0x22f   : > { %3701 = vst.msk [vmem:[#allocation2 + $0x148] sm:$0xff] %vm394_vm2, %v3637_v46  ;;  %v3417_v45 = vadd.f32 %v16169_v28, %v14093_v60  ;;  %v14095_v23 = vadd.f32 %v2978_v33, %v18010_v14  ;;  %v4179_v41 = vrot.slane %v3771_v6, 7  ;;  %v16200_v8 = vpop.f32.mrb[125].mxu1  ;;  %v18011_v46 = vld [vmem:[#allocation30_spill] sm:$0xff] }
 0x230   : > { %v3420_v16 = vadd.f32 %v16169_v28, %v14094_v53  ;;  %v16203_v57 = vpop.f32.mrb[126].mxu1  ;;  %v3547_v52 = vmax.f32 %v3419_v62, 0.0  ;;  %v4183_v53 = vrot.slane %v4062_v7, 7 }
 0x231   : > { %v3418_v18 = vadd.f32 %v16169_v28, %v14095_v23  ;;  %v4180_v49 = vsel %vm4110_vm3, %v4177_v19, %v4179_v41  ;;  %v4182_v55 = vsel %vm4110_vm3, %v4179_v41, %v4181_v9  ;;  %v16208_v32 = vpop.f32.mrb[127].mxu1  ;;  %v3545_v24 = vmax.f32 %v3417_v45, 0.0  ;;  %v16216_v19 = vld [vmem:[%s17928_s3 + $0x40] sm:$0xff]   ;;  %v18013_v9 = vld [vmem:[#allocation32_spill] sm:$0xff] }
 0x232   : > { %v3548_v44 = vmax.f32 %v3420_v16, 0.0  ;;  %13190 = vmatprep.mubr.msk.bf16.mxu1 %vm394_vm2, %v4180_v49  ;;  %13394 = vmatprep.subr.bf16.mxu1 %v16216_v19 }
 0x233   : > { %v3546_v56 = vmax.f32 %v3418_v18, 0.0  ;;  %v13068_v42 = vpop.f32.mrb[72].mxu0  ;;  %13191 = vmatmul.mubr.msk.bf16.gmra.mrb[188].mxu1 %vm394_vm2, %v4182_v55  ;;  %v18014_v18 = vld [vmem:[#allocation33_spill] sm:$0xff] }
 0x234   : > { %v3640_v58 = vpack.c.bf16 %v3548_v44, %v3547_v52  ;;  %v14096_v3 = vadd.f32 %v13068_v42, %v18011_v46  ;;  %v2991_v60 = vpop.f32.mrb[73].mxu0 }
 0x235   : > { %v3639_v17 = vpack.c.bf16 %v3546_v56, %v3545_v24  ;;  %v14097_v62 = vadd.f32 %v2991_v60, %v18012_v48  ;;  %v13069_v29 = vpop.f32.mrb[74].mxu0  ;;  %v3775_v33 = vld [vmem:[#allocation2 + $0x150] sm:$0xff] }
 0x236   : > { %3704 = vst.msk [vmem:[#allocation2 + $0x160] sm:$0xff] %vm394_vm2, %v3640_v58  ;;  %v3423_v6 = vadd.f32 %v16169_v28, %v14096_v3  ;;  %v14098_v45 = vadd.f32 %v13069_v29, %v18013_v9  ;;  %v2994_v14 = vpop.f32.mrb[75].mxu0  ;;  %v3774_v23 = vld [vmem:[#allocation2 + $0x148] sm:$0xff]  ;;  %v4186_v41 = vrot.slane %v3775_v33, 7  ;;  %v18016_v33 = vld [vmem:[#allocation35_spill] sm:$0xff] }
 0x237   : > { %3703 = vst.msk [vmem:[#allocation2 + $0x158] sm:$0xff] %vm394_vm2, %v3639_v17  ;;  %v3421_v16 = vadd.f32 %v16169_v28, %v14097_v62  ;;  %v14099_v49 = vadd.f32 %v2994_v14, %v18014_v18  ;;  %v4184_v55 = vrot.slane %v3774_v23, 7  ;;  %v18015_v17 = vld [vmem:[#allocation34_spill] sm:$0xff]  ;;  %v18017_v14 = vld [vmem:[#allocation36_spill] sm:$0xff] }
 0x238   : > { %v3424_v52 = vadd.f32 %v16169_v28, %v14098_v45  ;;  %v3551_v56 = vmax.f32 %v3423_v6, 0.0 }
 0x239   : > { %v3422_v44 = vadd.f32 %v16169_v28, %v14099_v49  ;;  %v4185_v7 = vsel %vm4110_vm3, %v4183_v53, %v4184_v55  ;;  %v4187_v24 = vsel %vm4110_vm3, %v4184_v55, %v4186_v41  ;;  %v3549_v58 = vmax.f32 %v3421_v16, 0.0 }
 0x23a   : > { %v3552_v42 = vmax.f32 %v3424_v52, 0.0  ;;  %13194 = vmatprep.mubr.msk.bf16.mxu1 %vm394_vm2, %v4185_v7  ;;  %v18018_v52 = vld [vmem:[#allocation37_spill] sm:$0xff] }
 0x23b   : > { %v3550_v46 = vmax.f32 %v3422_v44, 0.0  ;;  %v13072_v3 = vpop.f32.mrb[76].mxu0  ;;  %13195 = vmatmul.mubr.msk.bf16.gmra.mrb[192].mxu1 %vm394_vm2, %v4187_v24 }
 0x23c   : > { %v3642_v60 = vpack.c.bf16 %v3552_v42, %v3551_v56  ;;  %v14100_v48 = vadd.f32 %v13072_v3, %v18015_v17  ;;  %v3007_v62 = vpop.f32.mrb[77].mxu0 }
 0x23d   : > { %v3641_v29 = vpack.c.bf16 %v3550_v46, %v3549_v58  ;;  %v14101_v9 = vadd.f32 %v3007_v62, %v18016_v33  ;;  %v13073_v45 = vpop.f32.mrb[78].mxu0  ;;  %v4063_v53 = vld [vmem:[#allocation2 + $0x160] sm:$0x7f]  ;;  %v18019_v33 = vld [vmem:[#allocation38_spill] sm:$0xff] }
 0x23e   : > { %3706 = vst.msk [vmem:[#allocation2 + $0x178] sm:$0xff] %vm394_vm2, %v3642_v60  ;;  %v3427_v6 = vadd.f32 %v16169_v28, %v14100_v48  ;;  %v14102_v23 = vadd.f32 %v13073_v45, %v18017_v14  ;;  %v3010_v16 = vpop.f32.mrb[79].mxu0  ;;  %v3776_v18 = vld [vmem:[#allocation2 + $0x158] sm:$0xff]  ;;  %v4190_v49 = vrot.slane %v4063_v53, 7  ;;  %v4064_v60 = vld [vmem:[#allocation2 + $0x168] sm:$0x80] }
 0x23f   : > { %3705 = vst.msk [vmem:[#allocation2 + $0x170] sm:$0xff] %vm394_vm2, %v3641_v29  ;;  %v3425_v55 = vadd.f32 %v16169_v28, %v14101_v9  ;;  %v14103_v44 = vadd.f32 %v3010_v16, %v18018_v52  ;;  %v4188_v7 = vrot.slane %v3776_v18, 7  ;;  %v18020_v14 = vld [vmem:[#allocation39_spill] sm:$0xff]  ;;  %v4192_v16 = vrot.slane %v4064_v60, 7 }
 0x240   : > { %v3428_v24 = vadd.f32 %v16169_v28, %v14102_v23  ;;  %v3555_v46 = vmax.f32 %v3427_v6, 0.0 }
 0x241   : > { %v3426_v56 = vadd.f32 %v16169_v28, %v14103_v44  ;;  %v4189_v42 = vsel %vm4110_vm3, %v4186_v41, %v4188_v7  ;;  %v4191_v58 = vsel %vm4110_vm3, %v4188_v7, %v4190_v49  ;;  %v3553_v17 = vmax.f32 %v3425_v55, 0.0  ;;  %v18021_v49 = vld [vmem:[#allocation40_spill] sm:$0xff] }
 0x242   : > { %v3556_v3 = vmax.f32 %v3428_v24, 0.0  ;;  %13198 = vmatprep.mubr.msk.bf16.mxu1 %vm394_vm2, %v4189_v42 }
 0x243   : > { %v3554_v48 = vmax.f32 %v3426_v56, 0.0  ;;  %v13076_v62 = vpop.f32.mrb[80].mxu0  ;;  %13199 = vmatmul.mubr.msk.bf16.gmra.mrb[196].mxu1 %vm394_vm2, %v4191_v58  ;;  %v18022_v56 = vld [vmem:[#allocation41_spill] sm:$0xff] }
 0x244   : > { %v3644_v29 = vpack.c.bf16 %v3556_v3, %v3555_v46  ;;  %v14104_v9 = vadd.f32 %v13076_v62, %v18019_v33  ;;  %v3023_v45 = vpop.f32.mrb[81].mxu0 }
 0x245   : > { %v3643_v53 = vpack.c.bf16 %v3554_v48, %v3553_v17  ;;  %v14105_v23 = vadd.f32 %v3023_v45, %v18020_v14  ;;  %v13077_v41 = vpop.f32.mrb[82].mxu0  ;;  %v3780_v18 = vld [vmem:[#allocation2 + $0x178] sm:$0xff] }
 0x246   : > { %3708 = vst.msk [vmem:[#allocation2 + $0x188] sm:$0xff] %vm394_vm2, %v3644_v29  ;;  %v3431_v6 = vadd.f32 %v16169_v28, %v14104_v9  ;;  %v14106_v55 = vadd.f32 %v13077_v41, %v18021_v49  ;;  %v3026_v52 = vpop.f32.mrb[83].mxu0  ;;  %v16251_v44 = vld [vmem:[#allocation2 + $0x170] sm:$0xff]  ;;  %v4195_v7 = vrot.slane %v3780_v18, 7  ;;  %v18024_v18 = vld [vmem:[#allocation43_spill] sm:$0xff] }
 0x247   : > { %3707 = vst.msk [vmem:[#allocation2 + $0x180] sm:$0xff] %vm394_vm2, %v3643_v53  ;;  %v3429_v24 = vadd.f32 %v16169_v28, %v14105_v23  ;;  %v14107_v42 = vadd.f32 %v3026_v52, %v18022_v56  ;;  %v4193_v58 = vrot.slane %v16251_v44, 7  ;;  %v18023_v53 = vld [vmem:[#allocation42_spill] sm:$0xff]  ;;  %v18025_v52 = vld [vmem:[#allocation44_spill] sm:$0xff] }
 0x248   : > { %v3432_v46 = vadd.f32 %v16169_v28, %v14106_v55  ;;  %v3559_v48 = vmax.f32 %v3431_v6, 0.0 }
 0x249   : > { %v3430_v3 = vadd.f32 %v16169_v28, %v14107_v42  ;;  %v4194_v60 = vsel %vm4110_vm3, %v4192_v16, %v4193_v58  ;;  %v4196_v17 = vsel %vm4110_vm3, %v4193_v58, %v4195_v7  ;;  %v3557_v29 = vmax.f32 %v3429_v24, 0.0 }
 0x24a   : > { %v3560_v62 = vmax.f32 %v3432_v46, 0.0  ;;  %13202 = vmatprep.mubr.msk.bf16.mxu1 %vm394_vm2, %v4194_v60 }
 0x24b   : > { %v3558_v33 = vmax.f32 %v3430_v3, 0.0  ;;  %v13080_v9 = vpop.f32.mrb[84].mxu0  ;;  %13203 = vmatmul.mubr.msk.bf16.gmra.mrb[200].mxu1 %vm394_vm2, %v4196_v17  ;;  %v18026_v3 = vld [vmem:[#allocation45_spill] sm:$0xff] }
 0x24c   : > { %v3646_v45 = vpack.c.bf16 %v3560_v62, %v3559_v48  ;;  %v14108_v14 = vadd.f32 %v13080_v9, %v18023_v53  ;;  %v3039_v23 = vpop.f32.mrb[85].mxu0  ;;  %v4066_v53 = vld [vmem:[#allocation2 + $0x190] sm:$0x80] }
 0x24d   : > { %v3645_v41 = vpack.c.bf16 %v3558_v33, %v3557_v29  ;;  %v14109_v49 = vadd.f32 %v3039_v23, %v18024_v18  ;;  %v13081_v55 = vpop.f32.mrb[86].mxu0  ;;  %v4065_v16 = vld [vmem:[#allocation2 + $0x188] sm:$0x7f] }
 0x24e   : > { %3710 = vst.msk [vmem:[#allocation2 + $0x1a0] sm:$0xff] %vm394_vm2, %v3646_v45  ;;  %v3435_v6 = vadd.f32 %v16169_v28, %v14108_v14  ;;  %v14110_v56 = vadd.f32 %v13081_v55, %v18025_v52  ;;  %v3042_v24 = vpop.f32.mrb[87].mxu0  ;;  %v16268_v42 = vld [vmem:[#allocation2 + $0x180] sm:$0xff]  ;;  %v4199_v58 = vrot.slane %v4065_v16, 7 }
 0x24f   : > { %3709 = vst.msk [vmem:[#allocation2 + $0x198] sm:$0xff] %vm394_vm2, %v3645_v41  ;;  %v3433_v46 = vadd.f32 %v16169_v28, %v14109_v49  ;;  %v14111_v60 = vadd.f32 %v3042_v24, %v18026_v3  ;;  %v4197_v17 = vrot.slane %v16268_v42, 7  ;;  %v18027_v49 = vld [vmem:[#allocation46_spill] sm:$0xff]  ;;  %v4201_v3 = vrot.slane %v4066_v53, 7 }
 0x250   : > { %v3436_v48 = vadd.f32 %v16169_v28, %v14110_v56  ;;  %v3563_v9 = vmax.f32 %v3435_v6, 0.0  ;;  %v18028_v56 = vld [vmem:[#allocation47_spill] sm:$0xff] }
 0x251   : > { %v3434_v62 = vadd.f32 %v16169_v28, %v14111_v60  ;;  %v4198_v29 = vsel %vm4110_vm3, %v4195_v7, %v4197_v17  ;;  %v4200_v33 = vsel %vm4110_vm3, %v4197_v17, %v4199_v58  ;;  %v3561_v14 = vmax.f32 %v3433_v46, 0.0  ;;  %v18029_v46 = vld [vmem:[#allocation48_spill] sm:$0xff] }
 0x252   : > { %v3564_v45 = vmax.f32 %v3436_v48, 0.0  ;;  %13206 = vmatprep.mubr.msk.bf16.mxu1 %vm394_vm2, %v4198_v29 }
 0x253   : > { %v3562_v23 = vmax.f32 %v3434_v62, 0.0  ;;  %v13084_v41 = vpop.f32.mrb[88].mxu0  ;;  %13207 = vmatmul.mubr.msk.bf16.gmra.mrb[204].mxu1 %vm394_vm2, %v4200_v33  ;;  %v18030_v33 = vld [vmem:[#allocation49_spill] sm:$0xff] }
 0x254   : > { %v3648_v18 = vpack.c.bf16 %v3564_v45, %v3563_v9  ;;  %v14112_v55 = vadd.f32 %v13084_v41, %v18027_v49  ;;  %v3055_v16 = vpop.f32.mrb[89].mxu0 }
 0x255   : > { %v3647_v52 = vpack.c.bf16 %v3562_v23, %v3561_v14  ;;  %v14113_v24 = vadd.f32 %v3055_v16, %v18028_v56  ;;  %v13085_v7 = vpop.f32.mrb[90].mxu0  ;;  %v16282_v58 = vld [vmem:[#allocation2 + $0x1a0] sm:$0xff] }
 0x256   : > { %3712 = vst.msk [vmem:[#allocation2 + $0x1b0] sm:$0xff] %vm394_vm2, %v3648_v18  ;;  %v3439_v6 = vadd.f32 %v16169_v28, %v14112_v55  ;;  %v14114_v60 = vadd.f32 %v13085_v7, %v18029_v46  ;;  %v3058_v17 = vpop.f32.mrb[91].mxu0  ;;  %v16287_v48 = vld [vmem:[#allocation2 + $0x198] sm:$0xff]  ;;  %v4204_v62 = vrot.slane %v16282_v58, 7 }
 0x257   : > { %3711 = vst.msk [vmem:[#allocation2 + $0x1a8] sm:$0xff] %vm394_vm2, %v3647_v52  ;;  %v3437_v29 = vadd.f32 %v16169_v28, %v14113_v24  ;;  %v14115_v9 = vadd.f32 %v3058_v17, %v18030_v33  ;;  %v4202_v45 = vrot.slane %v16287_v48, 7 }
 0x258   : > { %v3440_v53 = vadd.f32 %v16169_v28, %v14114_v60  ;;  %v3567_v18 = vmax.f32 %v3439_v6, 0.0 }
 0x259   : > { %v3438_v14 = vadd.f32 %v16169_v28, %v14115_v9  ;;  %v4203_v23 = vsel %vm4110_vm3, %v4201_v3, %v4202_v45  ;;  %v4205_v41 = vsel %vm4110_vm3, %v4202_v45, %v4204_v62  ;;  %v3565_v55 = vmax.f32 %v3437_v29, 0.0 }
 0x25a   : > { %v3568_v49 = vmax.f32 %v3440_v53, 0.0  ;;  %13210 = vmatprep.mubr.msk.bf16.mxu1 %vm394_vm2, %v4203_v23 }
 0x25b   : > { %v3566_v16 = vmax.f32 %v3438_v14, 0.0  ;;  %v13088_v52 = vpop.f32.mrb[92].mxu0  ;;  %13211 = vmatmul.mubr.msk.bf16.gmra.mrb[208].mxu1 %vm394_vm2, %v4205_v41 }
 0x25c   : > { %v3650_v56 = vpack.c.bf16 %v3568_v49, %v3567_v18  ;;  %v14116_v24 = vadd.f32 %v13088_v52, %v16011_v30  ;;  %v3071_v7 = vpop.f32.mrb[93].mxu0 }
 0x25d   : > { %v3649_v46 = vpack.c.bf16 %v3566_v16, %v3565_v55  ;;  %v14117_v60 = vadd.f32 %v3071_v7, %v16016_v59  ;;  %v13089_v17 = vpop.f32.mrb[94].mxu0  ;;  %v4067_v3 = vld [vmem:[#allocation2 + $0x1b0] sm:$0x7f]  ;;  %v4068_v55 = vld [vmem:[#allocation2 + $0x1b8] sm:$0x80] }
 0x25e   : > { %3714 = vst.msk [vmem:[#allocation2 + $0x1c8] sm:$0xff] %vm394_vm2, %v3650_v56  ;;  %v3443_v6 = vadd.f32 %v16169_v28, %v14116_v24  ;;  %v14118_v33 = vadd.f32 %v13089_v17, %v16019_v50  ;;  %v3074_v29 = vpop.f32.mrb[95].mxu0  ;;  %v16305_v9 = vld [vmem:[#allocation2 + $0x1a8] sm:$0xff]  ;;  %v4208_v45 = vrot.slane %v4067_v3, 7  ;;  %v4210_v17 = vrot.slane %v4068_v55, 7 }
 0x25f   : > { %3713 = vst.msk [vmem:[#allocation2 + $0x1c0] sm:$0xff] %vm394_vm2, %v3649_v46  ;;  %v3441_v30 = vadd.f32 %v16169_v28, %v14117_v60  ;;  %v14119_v53 = vadd.f32 %v3074_v29, %v16024_v40  ;;  %v4206_v59 = vrot.slane %v16305_v9, 7 }
 0x260   : > { %v3444_v14 = vadd.f32 %v16169_v28, %v14118_v33  ;;  %v3571_v18 = vmax.f32 %v3443_v6, 0.0 }
 0x261   : > { %v3442_v23 = vadd.f32 %v16169_v28, %v14119_v53  ;;  %v4207_v41 = vsel %vm4110_vm3, %v4204_v62, %v4206_v59  ;;  %v4209_v50 = vsel %vm4110_vm3, %v4206_v59, %v4208_v45  ;;  %v3569_v16 = vmax.f32 %v3441_v30, 0.0 }
 0x262   : > { %v3572_v49 = vmax.f32 %v3444_v14, 0.0  ;;  %13214 = vmatprep.mubr.msk.bf16.mxu1 %vm394_vm2, %v4207_v41 }
 0x263   : > { %v3570_v52 = vmax.f32 %v3442_v23, 0.0  ;;  %v13092_v56 = vpop.f32.mrb[96].mxu0  ;;  %13215 = vmatmul.mubr.msk.bf16.gmra.mrb[212].mxu1 %vm394_vm2, %v4209_v50 }
 0x264   : > { %v3652_v40 = vpack.c.bf16 %v3572_v49, %v3571_v18  ;;  %v14120_v24 = vadd.f32 %v13092_v56, %v16033_v11  ;;  %v3087_v7 = vpop.f32.mrb[97].mxu0 }
 0x265   : > { %v3651_v46 = vpack.c.bf16 %v3570_v52, %v3569_v16  ;;  %v14121_v60 = vadd.f32 %v3087_v7, %v16038_v36  ;;  %v13093_v62 = vpop.f32.mrb[98].mxu0  ;;  %v16319_v3 = vld [vmem:[#allocation2 + $0x1c8] sm:$0xff] }
 0x266   : > { %3716 = vst.msk [vmem:[#allocation2 + $0x1d8] sm:$0xff] %vm394_vm2, %v3652_v40  ;;  %v3447_v6 = vadd.f32 %v16169_v28, %v14120_v24  ;;  %v14122_v33 = vadd.f32 %v13093_v62, %v16041_v1  ;;  %v3090_v29 = vpop.f32.mrb[99].mxu0  ;;  %v16324_v45 = vld [vmem:[#allocation2 + $0x1c0] sm:$0xff]  ;;  %v4213_v30 = vrot.slane %v16319_v3, 7 }
 0x267   : > { %3715 = vst.msk [vmem:[#allocation2 + $0x1d0] sm:$0xff] %vm394_vm2, %v3651_v46  ;;  %v3445_v11 = vadd.f32 %v16169_v28, %v14121_v60  ;;  %v14123_v36 = vadd.f32 %v3090_v29, %v16046_v4  ;;  %v4211_v53 = vrot.slane %v16324_v45, 7 }
 0x268   : > { %v3448_v59 = vadd.f32 %v16169_v28, %v14122_v33  ;;  %v3575_v41 = vmax.f32 %v3447_v6, 0.0 }
 0x269   : > { %v3446_v14 = vadd.f32 %v16169_v28, %v14123_v36  ;;  %v4212_v23 = vsel %vm4110_vm3, %v4210_v17, %v4211_v53  ;;  %v4214_v1 = vsel %vm4110_vm3, %v4211_v53, %v4213_v30  ;;  %v3573_v18 = vmax.f32 %v3445_v11, 0.0 }
 0x26a   : > { %v3576_v50 = vmax.f32 %v3448_v59, 0.0  ;;  %13218 = vmatprep.mubr.msk.bf16.mxu1 %vm394_vm2, %v4212_v23 }
 0x26b   : > { %v3574_v49 = vmax.f32 %v3446_v14, 0.0  ;;  %v13096_v55 = vpop.f32.mrb[100].mxu0  ;;  %13219 = vmatmul.mubr.msk.bf16.gmra.mrb[216].mxu1 %vm394_vm2, %v4214_v1  ;;  %v4070_v14 = vld [vmem:[#allocation2 + $0x1e0] sm:$0x80] }
 0x26c   : > { %v3654_v4 = vpack.c.bf16 %v3576_v50, %v3575_v41  ;;  %v14124_v16 = vadd.f32 %v13096_v55, %v16055_v27  ;;  %v3103_v52 = vpop.f32.mrb[101].mxu0 }
 0x26d   : > { %v3653_v56 = vpack.c.bf16 %v3574_v49, %v3573_v18  ;;  %v14125_v40 = vadd.f32 %v3103_v52, %v16060_v38  ;;  %v13097_v24 = vpop.f32.mrb[102].mxu0  ;;  %v4069_v7 = vld [vmem:[#allocation2 + $0x1d8] sm:$0x7f] }
 0x26e   : > { %3718 = vst.msk [vmem:[#allocation2 + $0x1f0] sm:$0xff] %vm394_vm2, %v3654_v4  ;;  %v3451_v46 = vadd.f32 %v16169_v28, %v14124_v16  ;;  %v14126_v60 = vadd.f32 %v13097_v24, %v16066_v37  ;;  %v3106_v62 = vpop.f32.mrb[103].mxu0  ;;  %v16342_v17 = vld [vmem:[#allocation2 + $0x1d0] sm:$0xff]  ;;  %v4217_v6 = vrot.slane %v4069_v7, 7  ;;  %v4219_v4 = vrot.slane %v4070_v14, 7 }
 0x26f   : > { %3717 = vst.msk [vmem:[#allocation2 + $0x1e8] sm:$0xff] %vm394_vm2, %v3653_v56  ;;  %v3449_v27 = vadd.f32 %v16169_v28, %v14125_v40  ;;  %v14127_v33 = vadd.f32 %v3106_v62, %v16071_v51  ;;  %v4215_v38 = vrot.slane %v16342_v17, 7 }
 0x270   : > { %v3452_v29 = vadd.f32 %v16169_v28, %v14126_v60  ;;  %v3579_v53 = vmax.f32 %v3451_v46, 0.0 }
 0x271   : > { %v3450_v11 = vadd.f32 %v16169_v28, %v14127_v33  ;;  %v4216_v36 = vsel %vm4110_vm3, %v4213_v30, %v4215_v38  ;;  %v4218_v37 = vsel %vm4110_vm3, %v4215_v38, %v4217_v6  ;;  %v3577_v23 = vmax.f32 %v3449_v27, 0.0 }
 0x272   : > { %v3580_v59 = vmax.f32 %v3452_v29, 0.0  ;;  %13222 = vmatprep.mubr.msk.bf16.mxu1 %vm394_vm2, %v4216_v36 }
 0x273   : > { %v3578_v1 = vmax.f32 %v3450_v11, 0.0  ;;  %v13100_v41 = vpop.f32.mrb[104].mxu0  ;;  %13223 = vmatmul.mubr.msk.bf16.gmra.mrb[220].mxu1 %vm394_vm2, %v4218_v37 }
 0x274   : > { %v3656_v51 = vpack.c.bf16 %v3580_v59, %v3579_v53  ;;  %v14128_v50 = vadd.f32 %v13100_v41, %v16080_v13  ;;  %v3119_v18 = vpop.f32.mrb[105].mxu0 }
 0x275   : > { %v3655_v49 = vpack.c.bf16 %v3578_v1, %v3577_v23  ;;  %v14129_v55 = vadd.f32 %v3119_v18, %v16085_v63  ;;  %v13101_v30 = vpop.f32.mrb[106].mxu0  ;;  %v16356_v16 = vld [vmem:[#allocation2 + $0x1f0] sm:$0xff] }
 0x276   : > { %3720 = vst.msk [vmem:[#allocation2 + $0x200] sm:$0xff] %vm394_vm2, %v3656_v51  ;;  %v3455_v52 = vadd.f32 %v16169_v28, %v14128_v50  ;;  %v14130_v56 = vadd.f32 %v13101_v30, %v16088_v39  ;;  %v3122_v40 = vpop.f32.mrb[107].mxu0  ;;  %v16361_v24 = vld [vmem:[#allocation2 + $0x1e8] sm:$0xff]  ;;  %v4222_v7 = vrot.slane %v16356_v16, 7 }
 0x277   : > { %3719 = vst.msk [vmem:[#allocation2 + $0x1f8] sm:$0xff] %vm394_vm2, %v3655_v49  ;;  %v3453_v13 = vadd.f32 %v16169_v28, %v14129_v55  ;;  %v14131_v63 = vadd.f32 %v3122_v40, %v16093_v31  ;;  %v4220_v46 = vrot.slane %v16361_v24, 7  ;;  %v4072_v40 = vld [vmem:[#allocation2 + $0x208] sm:$0x80] }
 0x278   : > { %v3456_v60 = vadd.f32 %v16169_v28, %v14130_v56  ;;  %v3583_v27 = vmax.f32 %v3455_v52, 0.0 }
 0x279   : > { %v3454_v62 = vadd.f32 %v16169_v28, %v14131_v63  ;;  %v4221_v6 = vsel %vm4110_vm3, %v4219_v4, %v4220_v46  ;;  %v4223_v39 = vsel %vm4110_vm3, %v4220_v46, %v4222_v7  ;;  %v3581_v38 = vmax.f32 %v3453_v13, 0.0 }
 0x27a   : > { %v3584_v33 = vmax.f32 %v3456_v60, 0.0  ;;  %13226 = vmatprep.mubr.msk.bf16.mxu1 %vm394_vm2, %v4221_v6 }
 0x27b   : > { %v3582_v29 = vmax.f32 %v3454_v62, 0.0  ;;  %v13104_v11 = vpop.f32.mrb[108].mxu0  ;;  %13227 = vmatmul.mubr.msk.bf16.gmra.mrb[224].mxu1 %vm394_vm2, %v4223_v39 }
 0x27c   : > { %v3658_v31 = vpack.c.bf16 %v3584_v33, %v3583_v27  ;;  %v14132_v36 = vadd.f32 %v13104_v11, %v16102_v25  ;;  %v3135_v37 = vpop.f32.mrb[109].mxu0  ;;  %v4228_v27 = vrot.slane %v4072_v40, 7 }
 0x27d   : > { %v3657_v53 = vpack.c.bf16 %v3582_v29, %v3581_v38  ;;  %v14133_v59 = vadd.f32 %v3135_v37, %v16107_v26  ;;  %v13105_v14 = vpop.f32.mrb[110].mxu0  ;;  %v4071_v23 = vld [vmem:[#allocation2 + $0x200] sm:$0x7f] }
 0x27e   : > { %3722 = vst.msk [vmem:[#allocation2 + $0x218] sm:$0xff] %vm394_vm2, %v3658_v31  ;;  %v3459_v1 = vadd.f32 %v16169_v28, %v14132_v36  ;;  %v14134_v41 = vadd.f32 %v13105_v14, %v16110_v43  ;;  %v3138_v51 = vpop.f32.mrb[111].mxu0  ;;  %v16379_v50 = vld [vmem:[#allocation2 + $0x1f8] sm:$0xff]  ;;  %v4226_v18 = vrot.slane %v4071_v23, 7 }
 0x27f   : > { %3721 = vst.msk [vmem:[#allocation2 + $0x210] sm:$0xff] %vm394_vm2, %v3657_v53  ;;  %v3457_v25 = vadd.f32 %v16169_v28, %v14133_v59  ;;  %v14135_v49 = vadd.f32 %v3138_v51, %v16115_v61  ;;  %v4224_v26 = vrot.slane %v16379_v50, 7 }
 0x280   : > { %v3460_v55 = vadd.f32 %v16169_v28, %v14134_v41  ;;  %v3587_v52 = vmax.f32 %v3459_v1, 0.0 }
 0x281   : > { %v3458_v30 = vadd.f32 %v16169_v28, %v14135_v49  ;;  %v4225_v4 = vsel %vm4110_vm3, %v4222_v7, %v4224_v26  ;;  %v4227_v43 = vsel %vm4110_vm3, %v4224_v26, %v4226_v18  ;;  %v3585_v13 = vmax.f32 %v3457_v25, 0.0 }
 0x282   : > { %v3588_v56 = vmax.f32 %v3460_v55, 0.0  ;;  %13230 = vmatprep.mubr.msk.bf16.mxu1 %vm394_vm2, %v4225_v4 }
 0x283   : > { %v3586_v63 = vmax.f32 %v3458_v30, 0.0  ;;  %v13108_v46 = vpop.f32.mrb[112].mxu0  ;;  %13231 = vmatmul.mubr.msk.bf16.gmra.mrb[228].mxu1 %vm394_vm2, %v4227_v43 }
 0x284   : > { %v3660_v61 = vpack.c.bf16 %v3588_v56, %v3587_v52  ;;  %v14136_v60 = vadd.f32 %v13108_v46, %v16124_v22  ;;  %v3151_v62 = vpop.f32.mrb[113].mxu0 }
 0x285   : > { %v3659_v6 = vpack.c.bf16 %v3586_v63, %v3585_v13  ;;  %v14137_v39 = vadd.f32 %v3151_v62, %v16129_v54  ;;  %v13109_v7 = vpop.f32.mrb[114].mxu0  ;;  %v16393_v33 = vld [vmem:[#allocation2 + $0x218] sm:$0xff] }
 0x286   : > { %3724 = vst.msk [vmem:[#allocation2 + $0x228] sm:$0xff] %vm394_vm2, %v3660_v61  ;;  %v3463_v38 = vadd.f32 %v16169_v28, %v14136_v60  ;;  %v14138_v29 = vadd.f32 %v13109_v7, %v16132_v5  ;;  %v3154_v11 = vpop.f32.mrb[115].mxu0  ;;  %v16398_v31 = vld [vmem:[#allocation2 + $0x210] sm:$0xff]  ;;  %v4231_v36 = vrot.slane %v16393_v33, 7 }
 0x287   : > { %3723 = vst.msk [vmem:[#allocation2 + $0x220] sm:$0xff] %vm394_vm2, %v3659_v6  ;;  %v3461_v22 = vadd.f32 %v16169_v28, %v14137_v39  ;;  %v14139_v54 = vadd.f32 %v3154_v11, %v16137_v0  ;;  %v4229_v37 = vrot.slane %v16398_v31, 7  ;;  %v4074_v39 = vld [vmem:[#allocation2 + $0x230] sm:$0x80] }
 0x288   : > { %v3464_v53 = vadd.f32 %v16169_v28, %v14138_v29  ;;  %v3591_v23 = vmax.f32 %v3463_v38, 0.0 }
 0x289   : > { %v3462_v59 = vadd.f32 %v16169_v28, %v14139_v54  ;;  %v4230_v14 = vsel %vm4110_vm3, %v4228_v27, %v4229_v37  ;;  %v4232_v5 = vsel %vm4110_vm3, %v4229_v37, %v4231_v36  ;;  %v3589_v41 = vmax.f32 %v3461_v22, 0.0 }
 0x28a   : > { %v3592_v1 = vmax.f32 %v3464_v53, 0.0  ;;  %13234 = vmatprep.mubr.msk.bf16.mxu1 %vm394_vm2, %v4230_v14  ;;  %v4237_v37 = vrot.slane %v4074_v39, 7 }
 0x28b   : > { %v3590_v51 = vmax.f32 %v3462_v59, 0.0  ;;  %v13112_v18 = vpop.f32.mrb[116].mxu0  ;;  %13235 = vmatmul.mubr.msk.bf16.gmra.mrb[232].mxu1 %vm394_vm2, %v4232_v5 }
 0x28c   : > { %v3662_v0 = vpack.c.bf16 %v3592_v1, %v3591_v23  ;;  %v14140_v25 = vadd.f32 %v13112_v18, %v16146_v10  ;;  %v3167_v49 = vpop.f32.mrb[117].mxu0 }
 0x28d   : > { %v3661_v26 = vpack.c.bf16 %v3590_v51, %v3589_v41  ;;  %v14141_v55 = vadd.f32 %v3167_v49, %v16151_v47  ;;  %v13113_v30 = vpop.f32.mrb[118].mxu0  ;;  %v4073_v4 = vld [vmem:[#allocation2 + $0x228] sm:$0x7f] }
 0x28e   : > { %3726 = vst.msk [vmem:[#allocation2 + $0x240] sm:$0xff] %vm394_vm2, %v3662_v0  ;;  %v3467_v43 = vadd.f32 %v16169_v28, %v14140_v25  ;;  %v14142_v52 = vadd.f32 %v13113_v30, %v16154_v20  ;;  %v3170_v56 = vpop.f32.mrb[119].mxu0  ;;  %v16416_v40 = vld [vmem:[#allocation2 + $0x220] sm:$0xff]  ;;  %v4235_v13 = vrot.slane %v4073_v4, 7 }
 0x28f   : > { %3725 = vst.msk [vmem:[#allocation2 + $0x238] sm:$0xff] %vm394_vm2, %v3661_v26  ;;  %v3465_v10 = vadd.f32 %v16169_v28, %v14141_v55  ;;  %v14143_v63 = vadd.f32 %v3170_v56, %v16159_v34  ;;  %v4233_v47 = vrot.slane %v16416_v40, 7 }
 0x290   : > { %v3468_v46 = vadd.f32 %v16169_v28, %v14142_v52  ;;  %v3595_v62 = vmax.f32 %v3467_v43, 0.0 }
 0x291   : > { %v3466_v61 = vadd.f32 %v16169_v28, %v14143_v63  ;;  %v4234_v60 = vsel %vm4110_vm3, %v4231_v36, %v4233_v47  ;;  %v4236_v20 = vsel %vm4110_vm3, %v4233_v47, %v4235_v13  ;;  %v3593_v7 = vmax.f32 %v3465_v10, 0.0 }
 0x292   : > { %v3596_v6 = vmax.f32 %v3468_v46, 0.0  ;;  %13238 = vmatprep.mubr.msk.bf16.mxu1 %vm394_vm2, %v4234_v60 }
 0x293   : > { %v3594_v27 = vmax.f32 %v3466_v61, 0.0  ;;  %v13116_v38 = vpop.f32.mrb[120].mxu0  ;;  %13239 = vmatmul.mubr.msk.bf16.gmra.mrb[236].mxu1 %vm394_vm2, %v4236_v20 }
 0x294   : > { %v3664_v34 = vpack.c.bf16 %v3596_v6, %v3595_v62  ;;  %v14144_v29 = vadd.f32 %v13116_v38, %v16173_v21  ;;  %v3183_v11 = vpop.f32.mrb[121].mxu0  ;;  %v4076_v38 = vld [vmem:[#allocation2 + $0x258] sm:$0x80] }
 0x295   : > { %v3663_v22 = vpack.c.bf16 %v3594_v27, %v3593_v7  ;;  %v14145_v54 = vadd.f32 %v3183_v11, %v16178_v15  ;;  %v13117_v36 = vpop.f32.mrb[122].mxu0  ;;  %v16430_v53 = vld [vmem:[#allocation2 + $0x240] sm:$0xff] }
 0x296   : > { %3728 = vst.msk [vmem:[#allocation2 + $0x250] sm:$0xff] %vm394_vm2, %v3664_v34  ;;  %v3471_v59 = vadd.f32 %v16169_v28, %v14144_v29  ;;  %v14146_v14 = vadd.f32 %v13117_v36, %v16181_v35  ;;  %v3186_v5 = vpop.f32.mrb[123].mxu0  ;;  %v16435_v23 = vld [vmem:[#allocation2 + $0x238] sm:$0xff]  ;;  %v4240_v1 = vrot.slane %v16430_v53, 7 }
 0x297   : > { %3727 = vst.msk [vmem:[#allocation2 + $0x248] sm:$0xff] %vm394_vm2, %v3663_v22  ;;  %v3469_v21 = vadd.f32 %v16169_v28, %v14145_v54  ;;  %v14147_v15 = vadd.f32 %v3186_v5, %v16186_v2  ;;  %v4238_v41 = vrot.slane %v16435_v23, 7  ;;  %v4246_v22 = vrot.slane %v4076_v38, 7  ;;  %v3733_v5 = vld [vmem:[#allocation2] sm:$0xc0] }
 0x298   : > { %v3472_v51 = vadd.f32 %v16169_v28, %v14146_v14  ;;  %v3599_v25 = vmax.f32 %v3471_v59, 0.0 }
 0x299   : > { %v3470_v18 = vadd.f32 %v16169_v28, %v14147_v15  ;;  %v4239_v0 = vsel %vm4110_vm3, %v4237_v37, %v4238_v41  ;;  %v4241_v35 = vsel %vm4110_vm3, %v4238_v41, %v4240_v1  ;;  %v3597_v26 = vmax.f32 %v3469_v21, 0.0 }
 0x29a   : > { %v3600_v49 = vmax.f32 %v3472_v51, 0.0  ;;  %13242 = vmatprep.mubr.msk.bf16.mxu1 %vm394_vm2, %v4239_v0  ;;  %v3894_v51 = vrot.slane %v3733_v5, 6 }
 0x29b   : > { %v3598_v55 = vmax.f32 %v3470_v18, 0.0  ;;  %v13120_v30 = vpop.f32.mrb[124].mxu0  ;;  %13243 = vmatmul.mubr.msk.bf16.gmra.mrb[240].mxu1 %vm394_vm2, %v4241_v35  ;;  %v16480_v18 = vld [vmem:[#allocation2 + $0x8] sm:$0xff] }
 0x29c   : > { %v3666_v2 = vpack.c.bf16 %v3600_v49, %v3599_v25  ;;  %v14148_v4 = vadd.f32 %v13120_v30, %v16195_v12  ;;  %v3199_v43 = vpop.f32.mrb[125].mxu0  ;;  %v3895_v0 = vrot.slane %v16480_v18, 6  ;;  %v16492_v30 = vld [vmem:[#allocation2 + $0x18] sm:$0xff] }
 0x29d   : > { %v3665_v52 = vpack.c.bf16 %v3598_v55, %v3597_v26  ;;  %v14149_v56 = vadd.f32 %v3199_v43, %v16200_v8  ;;  %v13121_v13 = vpop.f32.mrb[126].mxu0  ;;  %v4075_v10 = vld [vmem:[#allocation2 + $0x250] sm:$0x7f] }
 0x29e   : > { %3730 = vst.msk [vmem:[#allocation2 + $0x268] sm:$0xff] %vm394_vm2, %v3666_v2  ;;  %v3475_v63 = vadd.f32 %v16169_v28, %v14148_v4  ;;  %v14150_v47 = vadd.f32 %v13121_v13, %v16203_v57  ;;  %v3202_v46 = vpop.f32.mrb[127].mxu0  ;;  %v16453_v61 = vld [vmem:[#allocation2 + $0x248] sm:$0xff]  ;;  %v4244_v60 = vrot.slane %v4075_v10, 7  ;;  %v3896_v49 = vsel %vm3893_vm4, %v3894_v51, %v3895_v0  ;;  %v16489_v26 = vld [vmem:[#allocation2 + $0x10] sm:$0xff] }
 0x29f   : > { %3729 = vst.msk [vmem:[#allocation2 + $0x260] sm:$0xff] %vm394_vm2, %v3665_v52  ;;  %v3473_v12 = vadd.f32 %v16169_v28, %v14149_v56  ;;  %v14151_v20 = vadd.f32 %v3202_v46, %v16208_v32  ;;  %v4242_v8 = vrot.slane %v16453_v61, 7  ;;  %v3897_v55 = vrot.slane %v16489_v26, 6  ;;  %v14849_v4 = vld [vmem:[%s17928_s3 + $0x48] sm:$0xff]   ;;  %v3737_v56 = vld [vmem:[#allocation2 + $0x20] sm:$0x3f] }
 0x2a0   : > { %v3476_v62 = vadd.f32 %v16169_v28, %v14150_v47  ;;  %v3603_v7 = vmax.f32 %v3475_v63, 0.0  ;;  %v3899_v2 = vrot.slane %v16492_v30, 6  ;;  %v3738_v13 = vld [vmem:[#allocation2 + $0x28] sm:$0xc0]  ;;  %v14850_v10 = vld [vmem:[%s17928_s3 + $0x50] sm:$0xff]   ;;  %v3901_v63 = vrot.slane %v3737_v56, 6 }
 0x2a1   : > { %v3474_v6 = vadd.f32 %v16169_v28, %v14151_v20  ;;  %v4243_v39 = vsel %vm4110_vm3, %v4240_v1, %v4242_v8  ;;  %v4245_v57 = vsel %vm4110_vm3, %v4242_v8, %v4244_v60  ;;  %v3601_v34 = vmax.f32 %v3473_v12, 0.0  ;;  %v16506_v46 = vld [vmem:[#allocation2 + $0x30] sm:$0xff]  ;;  %v16513_v20 = vld [vmem:[#allocation2 + $0x38] sm:$0xff] }
 0x2a2   : > { %v3604_v27 = vmax.f32 %v3476_v62, 0.0  ;;  %13246 = vmatprep.mubr.msk.bf16.mxu1 %vm394_vm2, %v4243_v39  ;;  %v3898_v43 = vsel %vm3893_vm4, %v3895_v0, %v3897_v55  ;;  %v3900_v52 = vsel %vm3893_vm4, %v3897_v55, %v3899_v2  ;;  %v3903_v47 = vrot.slane %v3738_v13, 6  ;;  %v16516_v62 = vld [vmem:[#allocation2 + $0x40] sm:$0xff] }
 0x2a3   : > { %v3602_v29 = vmax.f32 %v3474_v6, 0.0  ;;  %13247 = vmatmul.mubr.msk.bf16.gmra.mrb[244].mxu1 %vm394_vm2, %v4245_v57  ;;  %v3904_v60 = vrot.slane %v16506_v46, 6  ;;  %v3902_v12 = vsel %vm3893_vm4, %v3899_v2, %v3901_v63  ;;  %v3906_v8 = vrot.slane %v16513_v20, 6  ;;  %v16547_v2 = vld [vmem:[#allocation2 + $0x88] sm:$0xff]  ;;  %v3753_v63 = vld [vmem:[#allocation2 + $0xa0] sm:$0xc0] }
 0x2a4   : > { %v3668_v32 = vpack.c.bf16 %v3604_v27, %v3603_v7  ;;  %v3908_v6 = vrot.slane %v16516_v62, 6  ;;  %v3742_v7 = vld [vmem:[#allocation2 + $0x48] sm:$0x3f]  ;;  %v3743_v27 = vld [vmem:[#allocation2 + $0x50] sm:$0xc0] }
 0x2a5   : > { %v3667_v11 = vpack.c.bf16 %v3602_v29, %v3601_v34  ;;  %v16465_v54 = vld [vmem:[#allocation2 + $0x268] sm:$0xff]  ;;  %v3907_v39 = vsel %vm3893_vm4, %v3904_v60, %v3906_v8  ;;  %v3910_v38 = vrot.slane %v3742_v7, 6  ;;  %v3912_v34 = vrot.slane %v3743_v27, 6  ;;  %v16523_v29 = vld [vmem:[#allocation2 + $0x58] sm:$0xff] }
 0x2a6   : > { %3732 = vst.msk [vmem:[#allocation2 + $0x278] sm:$0xff] %vm394_vm2, %v3668_v32  ;;  %v16468_v28 = vld [vmem:[#allocation2 + $0x260] sm:$0xff]  ;;  %v4249_v36 = vrot.slane %v16465_v54, 7  ;;  %v3909_v57 = vsel %vm3893_vm4, %v3906_v8, %v3908_v6  ;;  %v3913_v32 = vrot.slane %v16523_v29, 6  ;;  %v16570_v27 = vld [vmem:[#allocation2 + $0xb8] sm:$0xff] }
 0x2a7   : > { %3731 = vst.msk [vmem:[#allocation2 + $0x270] sm:$0xff] %vm394_vm2, %v3667_v11  ;;  %v4247_v37 = vrot.slane %v16468_v28, 7  ;;  %v3911_v11 = vsel %vm3893_vm4, %v3908_v6, %v3910_v38  ;;  %v3935_v38 = vrot.slane %v16570_v27, 6 }
 0x2a9   : > { %v4248_v59 = vsel %vm4110_vm3, %v4246_v22, %v4247_v37  ;;  %v4250_v14 = vsel %vm4110_vm3, %v4247_v37, %v4249_v36  ;;  %v3914_v22 = vsel %vm3893_vm4, %v3912_v34, %v3913_v32 }
 0x2aa   : > { %13250 = vmatprep.mubr.msk.bf16.mxu1 %vm394_vm2, %v4248_v59  ;;  %v16533_v59 = vld [vmem:[#allocation2 + $0x68] sm:$0xff] }
 0x2ab   : > { %13251 = vmatmul.mubr.msk.bf16.gmra.mrb[248].mxu1 %vm394_vm2, %v4250_v14  ;;  %v3917_v14 = vrot.slane %v16533_v59, 6 }
 0x2ad   : > { %v4077_v1 = vld [vmem:[#allocation2 + $0x278] sm:$0x7f] }
 0x2ae   : > { %v16477_v21 = vld [vmem:[#allocation2 + $0x270] sm:$0xff]  ;;  %v4253_v15 = vrot.slane %v4077_v1, 7 }
 0x2af   : > { %v4251_v41 = vrot.slane %v16477_v21, 7 }
 0x2b1   : > { %v4252_v35 = vsel %vm4110_vm3, %v4249_v36, %v4251_v41  ;;  %v4254_v25 = vsel %vm4110_vm3, %v4251_v41, %v4253_v15  ;;  %v16530_v36 = vld [vmem:[#allocation2 + $0x60] sm:$0xff]  ;;  %v3747_v15 = vld [vmem:[#allocation2 + $0x70] sm:$0x3f]  ;;  %v3748_v41 = vld [vmem:[#allocation2 + $0x78] sm:$0xc0] }
 0x2b2   : > { %13254 = vmatprep.mubr.msk.bf16.mxu1 %vm394_vm2, %v4252_v35  ;;  %v3915_v37 = vrot.slane %v16530_v36, 6  ;;  %v3919_v51 = vrot.slane %v3747_v15, 6  ;;  %v3921_v0 = vrot.slane %v3748_v41, 6  ;;  %v16540_v35 = vld [vmem:[#allocation2 + $0x80] sm:$0xff] }
 0x2b3   : > { %13255 = vmatmul.mubr.msk.bf16.gmra.mrb[252].mxu1 %vm394_vm2, %v4254_v25  ;;  %v3922_v25 = vrot.slane %v16540_v35, 6 }
 0x2b4   : > { %13266 = vmatprep.mubr.msk.bf16.mxu1 %vm394_vm2, %v3896_v49  ;;  %v3916_v5 = vsel %vm3893_vm4, %v3913_v32, %v3915_v37  ;;  %v3918_v1 = vsel %vm3893_vm4, %v3915_v37, %v3917_v14  ;;  %v3920_v49 = vsel %vm3893_vm4, %v3917_v14, %v3919_v51  ;;  %v16584_v51 = vld [vmem:[#allocation2 + $0xd8] sm:$0xff] }
 0x2b5   : > { %v3923_v55 = vsel %vm3893_vm4, %v3921_v0, %v3922_v25  ;;  %v3942_v0 = vrot.slane %v16584_v51, 6 }
 0x2bb   : > { %13267 = vmatmul.mubr.msk.bf16.vlgmr.msra.gmra.mrb[128].mxu1 %vm394_vm2, %v3898_v43  ;;  %v16550_v43 = vld [vmem:[#allocation2 + $0x90] sm:$0xff] }
 0x2bc   : > { %13395 = vmatpush3.bf16.msra.mxu1 %v16216_v19  ;;  %13270 = vmatprep.mubr.msk.bf16.mxu1 %vm394_vm2, %v3900_v52  ;;  %v3905_v19 = vsel %vm3893_vm4, %v3903_v47, %v3904_v60  ;;  %v3926_v52 = vrot.slane %v16550_v43, 6  ;;  %v3930_v60 = vrot.slane %v3753_v63, 6  ;;  %v16594_v63 = vld [vmem:[#allocation2 + $0xf8] sm:$0xff] }
 0x2bd   : > { %13396 = vmatprep.subr.bf16.mxu1 %v14849_v4 }
 0x2c0   : > { %13397 = vmatpush3.bf16.msra.mxu1 %v14849_v4  ;;  %v3924_v4 = vrot.slane %v16547_v2, 6 }
 0x2c1   : > { %13398 = vmatprep.subr.bf16.mxu1 %v14850_v10 }
 0x2c2   : > { %v3925_v56 = vsel %vm3893_vm4, %v3922_v25, %v3924_v4  ;;  %v3927_v13 = vsel %vm3893_vm4, %v3924_v4, %v3926_v52  ;;  %v16587_v25 = vld [vmem:[#allocation2 + $0xe0] sm:$0xff] }
 0x2c3   : > { %13271 = vmatmul.mubr.msk.bf16.gmra.mrb[132].mxu1 %vm394_vm2, %v3902_v12  ;;  %v16557_v12 = vld [vmem:[#allocation2 + $0xa8] sm:$0xff] }
 0x2c4   : > { %13274 = vmatprep.mubr.msk.bf16.mxu1 %vm394_vm2, %v3905_v19  ;;  %13399 = vmatpush3.bf16.msra.mxu1 %v14850_v10  ;;  %v3752_v10 = vld [vmem:[#allocation2 + $0x98] sm:$0x3f]  ;;  %v3931_v19 = vrot.slane %v16557_v12, 6 }
 0x2c5   : > { %v3928_v47 = vrot.slane %v3752_v10, 6 }
 0x2c6   : > { %v3932_v6 = vsel %vm3893_vm4, %v3930_v60, %v3931_v19 }
 0x2c7   : > { %v3929_v8 = vsel %vm3893_vm4, %v3926_v52, %v3928_v47  ;;  %v3762_v52 = vld [vmem:[#allocation2 + $0xe8] sm:$0x3f]  ;;  %v3949_v47 = vrot.slane %v16594_v63, 6 }
 0x2cb   : > { %13275 = vmatmul.mubr.msk.bf16.gmra.mrb[136].mxu1 %vm394_vm2, %v3907_v39  ;;  %v14851_v39 = vld [vmem:[%s17928_s3 + $0x58] sm:$0xff]  }
 0x2cc   : > { %13278 = vmatprep.mubr.msk.bf16.mxu1 %vm394_vm2, %v3909_v57  ;;  %v16567_v57 = vld [vmem:[#allocation2 + $0xb0] sm:$0xff]  ;;  %13400 = vmatprep.subr.bf16.mxu1 %v14851_v39 }
 0x2cd   : > { %v3933_v7 = vrot.slane %v16567_v57, 6  ;;  %13401 = vmatpush3.bf16.msra.mxu1 %v14851_v39  ;;  %v16604_v39 = vld [vmem:[#allocation2 + $0x108] sm:$0xff] }
 0x2cf   : > { %v3934_v34 = vsel %vm3893_vm4, %v3931_v19, %v3933_v7  ;;  %v3936_v32 = vsel %vm3893_vm4, %v3933_v7, %v3935_v38  ;;  %v3953_v7 = vrot.slane %v16604_v39, 6 }
 0x2d3   : > { %13279 = vmatmul.mubr.msk.bf16.gmra.mrb[140].mxu1 %vm394_vm2, %v3911_v11  ;;  %v3757_v11 = vld [vmem:[#allocation2 + $0xc0] sm:$0x3f] }
 0x2d4   : > { %13282 = vmatprep.mubr.msk.bf16.mxu1 %vm394_vm2, %v3914_v22  ;;  %v3758_v22 = vld [vmem:[#allocation2 + $0xc8] sm:$0xc0]  ;;  %v3937_v37 = vrot.slane %v3757_v11, 6  ;;  %v3768_v11 = vld [vmem:[#allocation2 + $0x118] sm:$0xc0] }
 0x2d5   : > { %v3939_v14 = vrot.slane %v3758_v22, 6 }
 0x2d6   : > { %v3938_v15 = vsel %vm3893_vm4, %v3935_v38, %v3937_v37  ;;  %v3957_v37 = vrot.slane %v3768_v11, 6 }
 0x2db   : > { %13283 = vmatmul.mubr.msk.bf16.gmra.mrb[144].mxu1 %vm394_vm2, %v3916_v5  ;;  %v16577_v5 = vld [vmem:[#allocation2 + $0xd0] sm:$0xff] }
 0x2dc   : > { %13286 = vmatprep.mubr.msk.bf16.mxu1 %vm394_vm2, %v3918_v1  ;;  %v3940_v1 = vrot.slane %v16577_v5, 6 }
 0x2de   : > { %v3941_v41 = vsel %vm3893_vm4, %v3939_v14, %v3940_v1  ;;  %v16611_v14 = vld [vmem:[#allocation2 + $0x120] sm:$0xff] }
 0x2e3   : > { %13287 = vmatmul.mubr.msk.bf16.gmra.mrb[148].mxu1 %vm394_vm2, %v3920_v49  ;;  %v3944_v49 = vrot.slane %v16587_v25, 6 }
 0x2e4   : > { %13290 = vmatprep.mubr.msk.bf16.mxu1 %vm394_vm2, %v3923_v55  ;;  %v3943_v55 = vsel %vm3893_vm4, %v3940_v1, %v3942_v0  ;;  %v3958_v1 = vrot.slane %v16611_v14, 6 }
 0x2e5   : > { %v3945_v4 = vsel %vm3893_vm4, %v3942_v0, %v3944_v49  ;;  %v14852_v0 = vld [vmem:[%s17930_s5 + $0x20] sm:$0xff]  }
 0x2e6   : > { %13530 = vmatprep.subr.bf16.mxu0 %v14852_v0 }
 0x2e7   : > { %13531 = vmatpush3.bf16.msra.mxu0 %v14852_v0  ;;  %v3778_v0 = vld [vmem:[#allocation2 + $0x168] sm:$0xc0] }
 0x2eb   : > { %13291 = vmatmul.mubr.msk.bf16.gmra.mrb[152].mxu1 %vm394_vm2, %v3925_v56  ;;  %v3763_v56 = vld [vmem:[#allocation2 + $0xf0] sm:$0xc0] }
 0x2ec   : > { %13294 = vmatprep.mubr.msk.bf16.mxu1 %vm394_vm2, %v3927_v13  ;;  %v3946_v13 = vrot.slane %v3762_v52, 6  ;;  %v3948_v10 = vrot.slane %v3763_v56, 6 }
 0x2ee   : > { %v3947_v60 = vsel %vm3893_vm4, %v3944_v49, %v3946_v13  ;;  %v3950_v19 = vsel %vm3893_vm4, %v3948_v10, %v3949_v47  ;;  %v16621_v49 = vld [vmem:[#allocation2 + $0x128] sm:$0xff]  ;;  %v3772_v10 = vld [vmem:[#allocation2 + $0x138] sm:$0x3f] }
 0x2f3   : > { %13295 = vmatmul.mubr.msk.bf16.gmra.mrb[156].mxu1 %vm394_vm2, %v3929_v8  ;;  %v16601_v8 = vld [vmem:[#allocation2 + $0x100] sm:$0xff] }
 0x2f4   : > { %13298 = vmatprep.mubr.msk.bf16.mxu1 %vm394_vm2, %v3932_v6  ;;  %v3951_v6 = vrot.slane %v16601_v8, 6 }
 0x2f6   : > { %v3952_v38 = vsel %vm3893_vm4, %v3949_v47, %v3951_v6  ;;  %v3773_v47 = vld [vmem:[#allocation2 + $0x140] sm:$0xc0] }
 0x2fb   : > { %13299 = vmatmul.mubr.msk.bf16.gmra.mrb[160].mxu1 %vm394_vm2, %v3934_v34  ;;  %v3954_v34 = vsel %vm3893_vm4, %v3951_v6, %v3953_v7  ;;  %v16631_v6 = vld [vmem:[#allocation2 + $0x148] sm:$0xff] }
 0x2fc   : > { %13302 = vmatprep.mubr.msk.bf16.mxu1 %vm394_vm2, %v3936_v32  ;;  %v3767_v32 = vld [vmem:[#allocation2 + $0x110] sm:$0x3f] }
 0x2fd   : > { %v3955_v22 = vrot.slane %v3767_v32, 6  ;;  %v16638_v32 = vld [vmem:[#allocation2 + $0x150] sm:$0xff] }
 0x2fe   : > { %v3969_v11 = vrot.slane %v16638_v32, 6 }
 0x303   : > { %13303 = vmatmul.mubr.msk.bf16.gmra.mrb[164].mxu1 %vm394_vm2, %v3938_v15  ;;  %v3956_v15 = vsel %vm3893_vm4, %v3953_v7, %v3955_v22  ;;  %v3967_v7 = vrot.slane %v16631_v6, 6  ;;  %v16641_v22 = vld [vmem:[#allocation2 + $0x158] sm:$0xff] }
 0x304   : > { %13306 = vmatprep.mubr.msk.bf16.mxu1 %vm394_vm2, %v3941_v41  ;;  %v3959_v41 = vsel %vm3893_vm4, %v3957_v37, %v3958_v1  ;;  %v3971_v37 = vrot.slane %v16641_v22, 6 }
 0x30b   : > { %13307 = vmatmul.mubr.msk.bf16.gmra.mrb[168].mxu1 %vm394_vm2, %v3943_v55  ;;  %v3960_v55 = vrot.slane %v16621_v49, 6 }
 0x30c   : > { %13310 = vmatprep.mubr.msk.bf16.mxu1 %vm394_vm2, %v3945_v4  ;;  %v16624_v4 = vld [vmem:[#allocation2 + $0x130] sm:$0xff] }
 0x30d   : > { %v3962_v52 = vrot.slane %v16624_v4, 6  ;;  %v3961_v56 = vsel %vm3893_vm4, %v3958_v1, %v3960_v55  ;;  %v3970_v1 = vsel %vm3893_vm4, %v3967_v7, %v3969_v11 }
 0x30f   : > { %v3963_v13 = vsel %vm3893_vm4, %v3960_v55, %v3962_v52 }
 0x313   : > { %13311 = vmatmul.mubr.msk.bf16.gmra.mrb[172].mxu1 %vm394_vm2, %v3947_v60  ;;  %v3964_v60 = vrot.slane %v3772_v10, 6 }
 0x314   : > { %13314 = vmatprep.mubr.msk.bf16.mxu1 %vm394_vm2, %v3950_v19  ;;  %v3966_v19 = vrot.slane %v3773_v47, 6  ;;  %v16653_v47 = vld [vmem:[#allocation2 + $0x178] sm:$0xff] }
 0x31b   : > { %13315 = vmatmul.mubr.msk.bf16.gmra.mrb[176].mxu1 %vm394_vm2, %v3952_v38  ;;  %v3965_v38 = vsel %vm3893_vm4, %v3962_v52, %v3964_v60  ;;  %v3975_v52 = vrot.slane %v3778_v0, 6  ;;  %v3978_v60 = vrot.slane %v16653_v47, 6  ;;  %v3989_v0 = vrot.slane %v16305_v9, 6  ;;  %v14853_v9 = vld [vmem:[%s17930_s5 + $0x28] sm:$0xff]  }
 0x31c   : > { %13318 = vmatprep.mubr.msk.bf16.mxu1 %vm394_vm2, %v3954_v34  ;;  %v3968_v34 = vsel %vm3893_vm4, %v3966_v19, %v3967_v7  ;;  %v3980_v19 = vrot.slane %v16268_v42, 6  ;;  %13532 = vmatprep.subr.bf16.mxu0 %v14853_v9 }
 0x31d   : > { %13533 = vmatpush3.bf16.msra.mxu0 %v14853_v9 }
 0x323   : > { %13319 = vmatmul.mubr.msk.bf16.gmra.mrb[180].mxu1 %vm394_vm2, %v3956_v15  ;;  %v3972_v15 = vsel %vm3893_vm4, %v3969_v11, %v3971_v37 }
 0x324   : > { %13322 = vmatprep.mubr.msk.bf16.mxu1 %vm394_vm2, %v3959_v41  ;;  %v3777_v41 = vld [vmem:[#allocation2 + $0x160] sm:$0x3f] }
 0x325   : > { %v3973_v55 = vrot.slane %v3777_v41, 6  ;;  %v3987_v41 = vrot.slane %v16282_v58, 6 }
 0x32b   : > { %13323 = vmatmul.mubr.msk.bf16.gmra.mrb[184].mxu1 %vm394_vm2, %v3961_v56  ;;  %v3976_v56 = vrot.slane %v16251_v44, 6  ;;  %v3981_v44 = vsel %vm3893_vm4, %v3978_v60, %v3980_v19 }
 0x32c   : > { %13326 = vmatprep.mubr.msk.bf16.mxu1 %vm394_vm2, %v3963_v13  ;;  %v3974_v13 = vsel %vm3893_vm4, %v3971_v37, %v3973_v55 }
 0x32d   : > { %v3977_v10 = vsel %vm3893_vm4, %v3975_v52, %v3976_v56  ;;  %v3979_v7 = vsel %vm3893_vm4, %v3976_v56, %v3978_v60  ;;  %v3990_v52 = vsel %vm3893_vm4, %v3987_v41, %v3989_v0  ;;  %v3787_v56 = vld [vmem:[#allocation2 + $0x1b0] sm:$0x3f]  ;;  %v3994_v60 = vrot.slane %v16324_v45, 6 }
 0x333   : > { %13327 = vmatmul.mubr.msk.bf16.gmra.mrb[188].mxu1 %vm394_vm2, %v3965_v38  ;;  %v3782_v38 = vld [vmem:[#allocation2 + $0x188] sm:$0x3f] }
 0x334   : > { %13330 = vmatprep.mubr.msk.bf16.mxu1 %vm394_vm2, %v3968_v34  ;;  %v3783_v34 = vld [vmem:[#allocation2 + $0x190] sm:$0xc0]  ;;  %v3982_v11 = vrot.slane %v3782_v38, 6 }
 0x335   : > { %v3984_v37 = vrot.slane %v3783_v34, 6  ;;  %v3792_v34 = vld [vmem:[#allocation2 + $0x1d8] sm:$0x3f] }
 0x33b   : > { %13331 = vmatmul.mubr.msk.bf16.gmra.mrb[192].mxu1 %vm394_vm2, %v3970_v1  ;;  %v3985_v1 = vrot.slane %v16287_v48, 6  ;;  %v3788_v48 = vld [vmem:[#allocation2 + $0x1b8] sm:$0xc0] }
 0x33c   : > { %13334 = vmatprep.mubr.msk.bf16.mxu1 %vm394_vm2, %v3972_v15  ;;  %v3983_v15 = vsel %vm3893_vm4, %v3980_v19, %v3982_v11  ;;  %v3793_v11 = vld [vmem:[#allocation2 + $0x1e0] sm:$0xc0] }
 0x33d   : > { %v3986_v42 = vsel %vm3893_vm4, %v3984_v37, %v3985_v1  ;;  %v3988_v55 = vsel %vm3893_vm4, %v3985_v1, %v3987_v41  ;;  %v4000_v37 = vrot.slane %v3792_v34, 6  ;;  %v4002_v1 = vrot.slane %v3793_v11, 6 }
 0x33e   : > { %v4007_v41 = vrot.slane %v16379_v50, 6  ;;  %v4021_v11 = vrot.slane %v16435_v23, 6 }
 0x343   : > { %13335 = vmatmul.mubr.msk.bf16.gmra.mrb[196].mxu1 %vm394_vm2, %v3974_v13  ;;  %v3991_v13 = vrot.slane %v3787_v56, 6  ;;  %v3798_v56 = vld [vmem:[#allocation2 + $0x208] sm:$0xc0] }
 0x344   : > { %13338 = vmatprep.mubr.msk.bf16.mxu1 %vm394_vm2, %v3977_v10  ;;  %v3993_v10 = vrot.slane %v3788_v48, 6 }
 0x345   : > { %v3992_v19 = vsel %vm3893_vm4, %v3989_v0, %v3991_v13  ;;  %v4011_v13 = vrot.slane %v3798_v56, 6  ;;  %v4030_v56 = vrot.slane %v16468_v28, 6 }
 0x346   : > { %v3995_v58 = vsel %vm3893_vm4, %v3993_v10, %v3994_v60  ;;  %v4012_v10 = vrot.slane %v16398_v31, 6 }
 0x34b   : > { %13339 = vmatmul.mubr.msk.bf16.gmra.mrb[200].mxu1 %vm394_vm2, %v3979_v7  ;;  %v3996_v7 = vrot.slane %v16319_v3, 6 }
 0x34c   : > { %13342 = vmatprep.mubr.msk.bf16.mxu1 %vm394_vm2, %v3981_v44  ;;  %v3998_v44 = vrot.slane %v16342_v17, 6  ;;  %v4005_v17 = vrot.slane %v16356_v16, 6  ;;  %v4013_v16 = vsel %vm3893_vm4, %v4011_v13, %v4012_v10 }
 0x34d   : > { %v3997_v45 = vsel %vm3893_vm4, %v3994_v60, %v3996_v7 }
 0x34e   : > { %v3999_v38 = vsel %vm3893_vm4, %v3996_v7, %v3998_v44 }
 0x353   : > { %13343 = vmatmul.mubr.msk.bf16.gmra.mrb[204].mxu1 %vm394_vm2, %v3983_v15  ;;  %v4003_v15 = vrot.slane %v16361_v24, 6 }
 0x354   : > { %13346 = vmatprep.mubr.msk.bf16.mxu1 %vm394_vm2, %v3986_v42  ;;  %v4001_v42 = vsel %vm3893_vm4, %v3998_v44, %v4000_v37  ;;  %v3802_v44 = vld [vmem:[#allocation2 + $0x228] sm:$0x3f] }
 0x355   : > { %v4004_v3 = vsel %vm3893_vm4, %v4002_v1, %v4003_v15  ;;  %v4006_v0 = vsel %vm3893_vm4, %v4003_v15, %v4005_v17  ;;  %v4023_v15 = vrot.slane %v16430_v53, 6 }
 0x35b   : > { %13347 = vmatmul.mubr.msk.bf16.gmra.mrb[208].mxu1 %vm394_vm2, %v3988_v55  ;;  %v4008_v55 = vsel %vm3893_vm4, %v4005_v17, %v4007_v41 }
 0x35c   : > { %13350 = vmatprep.mubr.msk.bf16.mxu1 %vm394_vm2, %v3990_v52  ;;  %v3797_v52 = vld [vmem:[#allocation2 + $0x200] sm:$0x3f] }
 0x35d   : > { %v4009_v48 = vrot.slane %v3797_v52, 6 }
 0x35f   : > { %v4010_v60 = vsel %vm3893_vm4, %v4007_v41, %v4009_v48  ;;  %v3807_v41 = vld [vmem:[#allocation2 + $0x250] sm:$0x3f] }
 0x363   : > { %13351 = vmatmul.mubr.msk.bf16.gmra.mrb[212].mxu1 %vm394_vm2, %v3992_v19  ;;  %v4014_v19 = vrot.slane %v16393_v33, 6 }
 0x364   : > { %13354 = vmatprep.mubr.msk.bf16.mxu1 %vm394_vm2, %v3995_v58  ;;  %v4016_v58 = vrot.slane %v16416_v40, 6 }
 0x365   : > { %v4015_v9 = vsel %vm3893_vm4, %v4012_v10, %v4014_v19  ;;  %v14854_v10 = vld [vmem:[%s17930_s5 + $0x30] sm:$0xff]  }
 0x366   : > { %v4017_v7 = vsel %vm3893_vm4, %v4014_v19, %v4016_v58  ;;  %13534 = vmatprep.subr.bf16.mxu0 %v14854_v10 }
 0x367   : > { %13535 = vmatpush3.bf16.msra.mxu0 %v14854_v10 }
 0x36b   : > { %13355 = vmatmul.mubr.msk.bf16.gmra.mrb[216].mxu1 %vm394_vm2, %v3997_v45  ;;  %v3803_v45 = vld [vmem:[#allocation2 + $0x230] sm:$0xc0] }
 0x36c   : > { %13358 = vmatprep.mubr.msk.bf16.mxu1 %vm394_vm2, %v3999_v38  ;;  %v4018_v38 = vrot.slane %v3802_v44, 6  ;;  %v4020_v34 = vrot.slane %v3803_v45, 6  ;;  %v5786_v45 = vld [vmem:[#allocation2 + $0x20] sm:$0xff] }
 0x36e   : > { %v4019_v37 = vsel %vm3893_vm4, %v4016_v58, %v4018_v38  ;;  %v4022_v1 = vsel %vm3893_vm4, %v4020_v34, %v4021_v11  ;;  %v5787_v38 = vld [vmem:[#allocation2 + $0x48] sm:$0xff] }
 0x373   : > { %13359 = vmatmul.mubr.msk.bf16.gmra.mrb[220].mxu1 %vm394_vm2, %v4001_v42  ;;  %v4025_v42 = vrot.slane %v16453_v61, 6 }
 0x374   : > { %13362 = vmatprep.mubr.msk.bf16.mxu1 %vm394_vm2, %v4004_v3  ;;  %v4024_v3 = vsel %vm3893_vm4, %v4021_v11, %v4023_v15 }
 0x375   : > { %v4026_v17 = vsel %vm3893_vm4, %v4023_v15, %v4025_v42 }
 0x37b   : > { %13363 = vmatmul.mubr.msk.bf16.gmra.mrb[224].mxu1 %vm394_vm2, %v4006_v0  ;;  %v3808_v0 = vld [vmem:[#allocation2 + $0x258] sm:$0xc0] }
 0x37c   : > { %13366 = vmatprep.mubr.msk.bf16.mxu1 %vm394_vm2, %v4008_v55  ;;  %v4027_v55 = vrot.slane %v3807_v41, 6  ;;  %v4029_v52 = vrot.slane %v3808_v0, 6 }
 0x37e   : > { %v4028_v48 = vsel %vm3893_vm4, %v4025_v42, %v4027_v55  ;;  %v4031_v13 = vsel %vm3893_vm4, %v4029_v52, %v4030_v56 }
 0x383   : > { %13367 = vmatmul.mubr.msk.bf16.gmra.mrb[228].mxu1 %vm394_vm2, %v4010_v60  ;;  %v4032_v60 = vrot.slane %v16465_v54, 6 }
 0x384   : > { %13370 = vmatprep.mubr.msk.bf16.mxu1 %vm394_vm2, %v4013_v16  ;;  %v4034_v16 = vrot.slane %v16477_v21, 6 }
 0x385   : > { %v4033_v19 = vsel %vm3893_vm4, %v4030_v56, %v4032_v60 }
 0x386   : > { %v4035_v58 = vsel %vm3893_vm4, %v4032_v60, %v4034_v16 }
 0x38b   : > { %13371 = vmatmul.mubr.msk.bf16.gmra.mrb[232].mxu1 %vm394_vm2, %v4015_v9  ;;  %v3812_v9 = vld [vmem:[#allocation2 + $0x278] sm:$0x3f] }
 0x38c   : > { %13374 = vmatprep.mubr.msk.bf16.mxu1 %vm394_vm2, %v4017_v7  ;;  %v4036_v7 = vrot.slane %v3812_v9, 6 }
 0x38e   : > { %v4037_v44 = vsel %vm3893_vm4, %v4034_v16, %v4036_v7 }
 0x393   : > { %13375 = vmatmul.mubr.msk.bf16.gmra.mrb[236].mxu1 %vm394_vm2, %v4019_v37 }
 0x394   : > { %13378 = vmatprep.mubr.msk.bf16.mxu1 %vm394_vm2, %v4022_v1 }
 0x39b   : > { %13379 = vmatmul.mubr.msk.bf16.gmra.mrb[240].mxu1 %vm394_vm2, %v4024_v3 }
 0x39c   : > { %13382 = vmatprep.mubr.msk.bf16.mxu1 %vm394_vm2, %v4026_v17 }
 0x3a3   : > { %13383 = vmatmul.mubr.msk.bf16.gmra.mrb[244].mxu1 %vm394_vm2, %v4028_v48 }
 0x3a4   : > { %13386 = vmatprep.mubr.msk.bf16.mxu1 %vm394_vm2, %v4031_v13  ;;  %v7404_v13 = vld [vmem:[#allocation2] sm:$0xc0] }
 0x3a5   : > { %v7468_v9 = vrot.slane %v7404_v13, 6  ;;  %v5801_v13 = vld [vmem:[#allocation2 + $0x278] sm:$0xff] }
 0x3ab   : > { %13387 = vmatmul.mubr.msk.bf16.gmra.mrb[248].mxu1 %vm394_vm2, %v4033_v19 }
 0x3ac   : > { %13390 = vmatprep.mubr.msk.bf16.mxu1 %vm394_vm2, %v4035_v58 }
 0x3b3   : > { %13391 = vmatmul.mubr.msk.bf16.gmra.mrb[252].mxu1 %vm394_vm2, %v4037_v44 }
 0x3b4   : > { %13402 = vmatprep.mubr.msk.bf16.mxu1 %vm394_vm2, %v16480_v18  ;;  %v5788_v18 = vld [vmem:[#allocation2 + $0x70] sm:$0xff] }
 0x3bb   : > { %13403 = vmatmul.mubr.msk.bf16.vlgmr.msra.gmra.mrb[128].mxu1 %vm394_vm2, %v16489_v26  ;;  %v14855_v26 = vld [vmem:[%s17930_s5 + $0x38] sm:$0xff]  }
 0x3bc   : > { %13406 = vmatprep.mubr.msk.bf16.mxu1 %vm394_vm2, %v16492_v30  ;;  %13536 = vmatprep.subr.bf16.mxu0 %v14855_v26  ;;  %v5789_v30 = vld [vmem:[#allocation2 + $0x98] sm:$0xff] }
 0x3bd   : > { %13537 = vmatpush3.bf16.msra.mxu0 %v14855_v26 }
 0x3c3   : > { %13407 = vmatmul.mubr.msk.bf16.gmra.mrb[132].mxu1 %vm394_vm2, %v5786_v45 }
 0x3c4   : > { %13410 = vmatprep.mubr.msk.bf16.mxu1 %vm394_vm2, %v16506_v46  ;;  %v5790_v46 = vld [vmem:[#allocation2 + $0xc0] sm:$0xff] }
 0x3cb   : > { %13411 = vmatmul.mubr.msk.bf16.gmra.mrb[136].mxu1 %vm394_vm2, %v16513_v20  ;;  %v5791_v20 = vld [vmem:[#allocation2 + $0xe8] sm:$0xff] }
 0x3cc   : > { %13414 = vmatprep.mubr.msk.bf16.mxu1 %vm394_vm2, %v16516_v62  ;;  %v5792_v62 = vld [vmem:[#allocation2 + $0x110] sm:$0xff] }
 0x3d3   : > { %13415 = vmatmul.mubr.msk.bf16.gmra.mrb[140].mxu1 %vm394_vm2, %v5787_v38 }
 0x3d4   : > { %13418 = vmatprep.mubr.msk.bf16.mxu1 %vm394_vm2, %v16523_v29  ;;  %v16792_v29 = vld [vmem:[%s17930_s5] sm:$0xff]  }
 0x3d5   : > { %13666 = vmatprep.subr.bf16.mxu0 %v16792_v29 }
 0x3db   : > { %13419 = vmatmul.mubr.msk.bf16.gmra.mrb[144].mxu1 %vm394_vm2, %v16530_v36  ;;  %v5793_v36 = vld [vmem:[#allocation2 + $0x138] sm:$0xff] }
 0x3dc   : > { %13422 = vmatprep.mubr.msk.bf16.mxu1 %vm394_vm2, %v16533_v59  ;;  %v5794_v59 = vld [vmem:[#allocation2 + $0x160] sm:$0xff] }
 0x3e3   : > { %13423 = vmatmul.mubr.msk.bf16.gmra.mrb[148].mxu1 %vm394_vm2, %v5788_v18 }
 0x3e4   : > { %13426 = vmatprep.mubr.msk.bf16.mxu1 %vm394_vm2, %v16540_v35  ;;  %v14932_v35 = vld [vmem:[#allocation2 + $0x170] sm:$0xff] }
 0x3eb   : > { %13427 = vmatmul.mubr.msk.bf16.gmra.mrb[152].mxu1 %vm394_vm2, %v16547_v2  ;;  %v14933_v2 = vld [vmem:[#allocation2 + $0x180] sm:$0xff] }
 0x3ec   : > { %13430 = vmatprep.mubr.msk.bf16.mxu1 %vm394_vm2, %v16550_v43  ;;  %v5795_v43 = vld [vmem:[#allocation2 + $0x188] sm:$0xff] }
 0x3f3   : > { %13431 = vmatmul.mubr.msk.bf16.gmra.mrb[156].mxu1 %vm394_vm2, %v5789_v30 }
 0x3f4   : > { %13434 = vmatprep.mubr.msk.bf16.mxu1 %vm394_vm2, %v16557_v12  ;;  %v14934_v12 = vld [vmem:[#allocation2 + $0x198] sm:$0xff] }
 0x3fb   : > { %13435 = vmatmul.mubr.msk.bf16.gmra.mrb[160].mxu1 %vm394_vm2, %v16567_v57  ;;  %v14935_v57 = vld [vmem:[#allocation2 + $0x1a0] sm:$0xff] }
 0x3fc   : > { %13438 = vmatprep.mubr.msk.bf16.mxu1 %vm394_vm2, %v16570_v27  ;;  %v14936_v27 = vld [vmem:[#allocation2 + $0x1a8] sm:$0xff] }
 0x403   : > { %13439 = vmatmul.mubr.msk.bf16.gmra.mrb[164].mxu1 %vm394_vm2, %v5790_v46 }
 0x404   : > { %13442 = vmatprep.mubr.msk.bf16.mxu1 %vm394_vm2, %v16577_v5  ;;  %v5796_v5 = vld [vmem:[#allocation2 + $0x1b0] sm:$0xff] }
 0x40b   : > { %13443 = vmatmul.mubr.msk.bf16.gmra.mrb[168].mxu1 %vm394_vm2, %v16584_v51  ;;  %v14937_v51 = vld [vmem:[#allocation2 + $0x1c0] sm:$0xff] }
 0x40c   : > { %13446 = vmatprep.mubr.msk.bf16.mxu1 %vm394_vm2, %v16587_v25  ;;  %v14938_v25 = vld [vmem:[#allocation2 + $0x1c8] sm:$0xff] }
 0x413   : > { %13447 = vmatmul.mubr.msk.bf16.gmra.mrb[172].mxu1 %vm394_vm2, %v5791_v20 }
 0x414   : > { %13450 = vmatprep.mubr.msk.bf16.mxu1 %vm394_vm2, %v16594_v63  ;;  %v14939_v63 = vld [vmem:[#allocation2 + $0x1d0] sm:$0xff] }
 0x41b   : > { %13451 = vmatmul.mubr.msk.bf16.gmra.mrb[176].mxu1 %vm394_vm2, %v16601_v8  ;;  %v5797_v8 = vld [vmem:[#allocation2 + $0x1d8] sm:$0xff] }
 0x41c   : > { %13454 = vmatprep.mubr.msk.bf16.mxu1 %vm394_vm2, %v16604_v39  ;;  %v14940_v39 = vld [vmem:[#allocation2 + $0x1f0] sm:$0xff] }
 0x423   : > { %13455 = vmatmul.mubr.msk.bf16.gmra.mrb[180].mxu1 %vm394_vm2, %v5792_v62  ;;  %v5800_v62 = vld [vmem:[#allocation2 + $0x250] sm:$0xff] }
 0x424   : > { %13458 = vmatprep.mubr.msk.bf16.mxu1 %vm394_vm2, %v16611_v14  ;;  %v5798_v14 = vld [vmem:[#allocation2 + $0x200] sm:$0xff] }
 0x42b   : > { %13459 = vmatmul.mubr.msk.bf16.gmra.mrb[184].mxu1 %vm394_vm2, %v16621_v49 }
 0x42c   : > { %13462 = vmatprep.mubr.msk.bf16.mxu1 %vm394_vm2, %v16624_v4 }
 0x433   : > { %13463 = vmatmul.mubr.msk.bf16.gmra.mrb[188].mxu1 %vm394_vm2, %v5793_v36 }
 0x434   : > { %13466 = vmatprep.mubr.msk.bf16.mxu1 %vm394_vm2, %v16631_v6 }
 0x43b   : > { %13467 = vmatmul.mubr.msk.bf16.gmra.mrb[192].mxu1 %vm394_vm2, %v16638_v32 }
 0x43c   : > { %13470 = vmatprep.mubr.msk.bf16.mxu1 %vm394_vm2, %v16641_v22 }
 0x443   : > { %13471 = vmatmul.mubr.msk.bf16.gmra.mrb[196].mxu1 %vm394_vm2, %v5794_v59 }
 0x444   : > { %13474 = vmatprep.mubr.msk.bf16.mxu1 %vm394_vm2, %v14932_v35  ;;  %v14857_v35 = vld [vmem:[%s17930_s5 + $0x8] sm:$0xff]  }
 0x44b   : > { %13475 = vmatmul.mubr.msk.bf16.gmra.mrb[200].mxu1 %vm394_vm2, %v16653_v47  ;;  %v5799_v47 = vld [vmem:[#allocation2 + $0x228] sm:$0xff] }
 0x44c   : > { %13478 = vmatprep.mubr.msk.bf16.mxu1 %vm394_vm2, %v14933_v2 }
 0x453   : > { %13479 = vmatmul.mubr.msk.bf16.gmra.mrb[204].mxu1 %vm394_vm2, %v5795_v43 }
 0x454   : > { %13482 = vmatprep.mubr.msk.bf16.mxu1 %vm394_vm2, %v14934_v12 }
 0x45b   : > { %13483 = vmatmul.mubr.msk.bf16.gmra.mrb[208].mxu1 %vm394_vm2, %v14935_v57 }
 0x45c   : > { %13486 = vmatprep.mubr.msk.bf16.mxu1 %vm394_vm2, %v14936_v27 }
 0x463   : > { %13487 = vmatmul.mubr.msk.bf16.gmra.mrb[212].mxu1 %vm394_vm2, %v5796_v5 }
 0x464   : > { %13490 = vmatprep.mubr.msk.bf16.mxu1 %vm394_vm2, %v14937_v51 }
 0x46b   : > { %13491 = vmatmul.mubr.msk.bf16.gmra.mrb[216].mxu1 %vm394_vm2, %v14938_v25 }
 0x46c   : > { %13494 = vmatprep.mubr.msk.bf16.mxu1 %vm394_vm2, %v14939_v63 }
 0x473   : > { %13495 = vmatmul.mubr.msk.bf16.gmra.mrb[220].mxu1 %vm394_vm2, %v5797_v8 }
 0x474   : > { %13498 = vmatprep.mubr.msk.bf16.mxu1 %vm394_vm2, %v16361_v24  ;;  %v16835_v24 = vld [vmem:[%s17929_s4] ss:$0 sm:$0xff] }
 0x47b   : > { %13499 = vmatmul.mubr.msk.bf16.gmra.mrb[224].mxu1 %vm394_vm2, %v14940_v39 }
 0x47c   : > { %13502 = vmatprep.mubr.msk.bf16.mxu1 %vm394_vm2, %v16379_v50 }
 0x483   : > { %13503 = vmatmul.mubr.msk.bf16.gmra.mrb[228].mxu1 %vm394_vm2, %v5798_v14 }
 0x484   : > { %13506 = vmatprep.mubr.msk.bf16.mxu1 %vm394_vm2, %v16398_v31 }
 0x48b   : > { %13507 = vmatmul.mubr.msk.bf16.gmra.mrb[232].mxu1 %vm394_vm2, %v16393_v33 }
 0x48c   : > { %13510 = vmatprep.mubr.msk.bf16.mxu1 %vm394_vm2, %v16416_v40 }
 0x48e   : > { %v13404_v49 = vpop.f32.mrb[128].mxu1 }
 0x48f   : > { %v6709_v50 = vadd.f32 %v13404_v49, %v16835_v24  ;;  %v6061_v4 = vpop.f32.mrb[129].mxu1 }
 0x490   : > { %v6707_v6 = vadd.f32 %v16835_v24, %v6061_v4  ;;  %v13405_v32 = vpop.f32.mrb[130].mxu1 }
 0x491   : > { %v6710_v31 = vadd.f32 %v13405_v32, %v16835_v24  ;;  %v6064_v22 = vpop.f32.mrb[131].mxu1  ;;  %v6837_v34 = vmax.f32 %v6709_v50, 0.0 }
 0x492   : > { %v6708_v33 = vadd.f32 %v16835_v24, %v6064_v22  ;;  %v6835_v11 = vmax.f32 %v6707_v6, 0.0 }
 0x493   : > { %v6838_v40 = vmax.f32 %v6710_v31, 0.0  ;;  %13511 = vmatmul.mubr.msk.bf16.gmra.mrb[236].mxu1 %vm394_vm2, %v5799_v47 }
 0x494   : > { %v6836_v37 = vmax.f32 %v6708_v33, 0.0  ;;  %13514 = vmatprep.mubr.msk.bf16.mxu1 %vm394_vm2, %v16435_v23 }
 0x495   : > { %v6964_v1 = vpack.c.bf16 %v6838_v40, %v6837_v34  ;;  %v7406_v34 = vld [vmem:[#allocation2 + $0x28] sm:$0xc0] }
 0x496   : > { %v6963_v15 = vpack.c.bf16 %v6836_v37, %v6835_v11  ;;  %v13408_v42 = vpop.f32.mrb[132].mxu1 }
 0x497   : > { %7028 = vst.msk [vmem:[#allocation2 + $0x10] sm:$0xff] %vm394_vm2, %v6964_v1  ;;  %v6713_v3 = vadd.f32 %v13408_v42, %v16835_v24  ;;  %v6077_v17 = vpop.f32.mrb[133].mxu1  ;;  %v7477_v42 = vrot.slane %v7406_v34, 6 }
 0x498   : > { %7027 = vst.msk [vmem:[#allocation2 + $0x8] sm:$0xff] %vm394_vm2, %v6963_v15  ;;  %v6711_v41 = vadd.f32 %v16835_v24, %v6077_v17  ;;  %v13409_v0 = vpop.f32.mrb[134].mxu1 }
 0x499   : > { %v6714_v55 = vadd.f32 %v13409_v0, %v16835_v24  ;;  %v6080_v52 = vpop.f32.mrb[135].mxu1  ;;  %v6841_v48 = vmax.f32 %v6713_v3, 0.0 }
 0x49a   : > { %v6712_v56 = vadd.f32 %v16835_v24, %v6080_v52  ;;  %v6839_v10 = vmax.f32 %v6711_v41, 0.0 }
 0x49b   : > { %v6842_v23 = vmax.f32 %v6714_v55, 0.0  ;;  %13515 = vmatmul.mubr.msk.bf16.gmra.mrb[240].mxu1 %vm394_vm2, %v16430_v53 }
 0x49c   : > { %v6840_v60 = vmax.f32 %v6712_v56, 0.0  ;;  %13518 = vmatprep.mubr.msk.bf16.mxu1 %vm394_vm2, %v16453_v61 }
 0x49d   : > { %v6966_v16 = vpack.c.bf16 %v6842_v23, %v6841_v48 }
 0x49e   : > { %v6965_v19 = vpack.c.bf16 %v6840_v60, %v6839_v10  ;;  %v13412_v58 = vpop.f32.mrb[136].mxu1  ;;  %v7093_v7 = vld [vmem:[#allocation2 + $0x10] sm:$0xff] }
 0x49f   : > { %7030 = vst.msk [vmem:[#allocation2 + $0x20] sm:$0xff] %vm394_vm2, %v6966_v16  ;;  %v6717_v44 = vadd.f32 %v13412_v58, %v16835_v24  ;;  %v6093_v45 = vpop.f32.mrb[137].mxu1  ;;  %v7092_v38 = vld [vmem:[#allocation2 + $0x8] sm:$0xff]  ;;  %v7471_v18 = vrot.slane %v7093_v7, 6 }
 0x4a0   : > { %7029 = vst.msk [vmem:[#allocation2 + $0x18] sm:$0xff] %vm394_vm2, %v6965_v19  ;;  %v6715_v53 = vadd.f32 %v16835_v24, %v6093_v45  ;;  %v13413_v26 = vpop.f32.mrb[138].mxu1  ;;  %v7469_v30 = vrot.slane %v7092_v38, 6 }
 0x4a1   : > { %v6718_v61 = vadd.f32 %v13413_v26, %v16835_v24  ;;  %v6096_v46 = vpop.f32.mrb[139].mxu1  ;;  %v6845_v2 = vmax.f32 %v6717_v44, 0.0 }
 0x4a2   : > { %v6716_v20 = vadd.f32 %v16835_v24, %v6096_v46  ;;  %v7470_v36 = vsel %vm3893_vm4, %v7468_v9, %v7469_v30  ;;  %v7472_v59 = vsel %vm3893_vm4, %v7469_v30, %v7471_v18  ;;  %v6843_v12 = vmax.f32 %v6715_v53, 0.0 }
 0x4a3   : > { %v6846_v43 = vmax.f32 %v6718_v61, 0.0  ;;  %13519 = vmatmul.mubr.msk.bf16.gmra.mrb[244].mxu1 %vm394_vm2, %v5800_v62  ;;  %13538 = vmatprep.mubr.msk.bf16.mxu0 %vm394_vm2, %v7470_v36 }
 0x4a4   : > { %v6844_v57 = vmax.f32 %v6716_v20, 0.0  ;;  %13522 = vmatprep.mubr.msk.bf16.mxu1 %vm394_vm2, %v16468_v28  ;;  %13539 = vmatmul.mubr.msk.bf16.vlgmr.msra.gmra.mrb[128].mxu0 %vm394_vm2, %v7472_v59 }
 0x4a5   : > { %v6968_v27 = vpack.c.bf16 %v6846_v43, %v6845_v2  ;;  %13667 = vmatpush3.bf16.msra.mxu0 %v16792_v29  ;;  %v14858_v29 = vld [vmem:[%s17930_s5 + $0x10] sm:$0xff]  }
 0x4a6   : > { %v6967_v5 = vpack.c.bf16 %v6844_v57, %v6843_v12  ;;  %v13416_v51 = vpop.f32.mrb[140].mxu1  ;;  %v7405_v25 = vld [vmem:[#allocation2 + $0x20] sm:$0x3f]  ;;  %13668 = vmatprep.subr.bf16.mxu0 %v14857_v35  ;;  %v7408_v57 = vld [vmem:[#allocation2 + $0x50] sm:$0xc0] }
 0x4a7   : > { %7032 = vst.msk [vmem:[#allocation2 + $0x38] sm:$0xff] %vm394_vm2, %v6968_v27  ;;  %v6721_v63 = vadd.f32 %v13416_v51, %v16835_v24  ;;  %v6109_v8 = vpop.f32.mrb[141].mxu1  ;;  %v7094_v39 = vld [vmem:[#allocation2 + $0x18] sm:$0xff]  ;;  %v7475_v14 = vrot.slane %v7405_v25, 6 }
 0x4a8   : > { %7031 = vst.msk [vmem:[#allocation2 + $0x30] sm:$0xff] %vm394_vm2, %v6967_v5  ;;  %v6719_v28 = vadd.f32 %v16835_v24, %v6109_v8  ;;  %v13417_v49 = vpop.f32.mrb[142].mxu1  ;;  %v7473_v50 = vrot.slane %v7094_v39, 6  ;;  %v7486_v8 = vrot.slane %v7408_v57, 6 }
 0x4a9   : > { %v6722_v4 = vadd.f32 %v13417_v49, %v16835_v24  ;;  %v6112_v6 = vpop.f32.mrb[143].mxu1  ;;  %13669 = vmatpush3.bf16.msra.mxu0 %v14857_v35  ;;  %v6849_v33 = vmax.f32 %v6721_v63, 0.0 }
 0x4aa   : > { %v6720_v32 = vadd.f32 %v16835_v24, %v6112_v6  ;;  %v7474_v31 = vsel %vm3893_vm4, %v7471_v18, %v7473_v50  ;;  %v7476_v22 = vsel %vm3893_vm4, %v7473_v50, %v7475_v14  ;;  %13670 = vmatprep.subr.bf16.mxu0 %v14858_v29  ;;  %v6847_v40 = vmax.f32 %v6719_v28, 0.0 }
 0x4ab   : > { %v6850_v47 = vmax.f32 %v6722_v4, 0.0  ;;  %13523 = vmatmul.mubr.msk.bf16.gmra.mrb[248].mxu1 %vm394_vm2, %v16465_v54  ;;  %13542 = vmatprep.mubr.msk.bf16.mxu0 %vm394_vm2, %v7474_v31 }
 0x4ac   : > { %v6848_v11 = vmax.f32 %v6720_v32, 0.0  ;;  %13526 = vmatprep.mubr.msk.bf16.mxu1 %vm394_vm2, %v16477_v21  ;;  %13543 = vmatmul.mubr.msk.bf16.gmra.mrb[132].mxu0 %vm394_vm2, %v7476_v22 }
 0x4ad   : > { %v6970_v37 = vpack.c.bf16 %v6850_v47, %v6849_v33  ;;  %13671 = vmatpush3.bf16.msra.mxu0 %v14858_v29 }
 0x4ae   : > { %v6969_v1 = vpack.c.bf16 %v6848_v11, %v6847_v40  ;;  %v13420_v15 = vpop.f32.mrb[144].mxu1  ;;  %v7098_v3 = vld [vmem:[#allocation2 + $0x38] sm:$0xff] }
 0x4af   : > { %7034 = vst.msk [vmem:[#allocation2 + $0x48] sm:$0xff] %vm394_vm2, %v6970_v37  ;;  %v6725_v54 = vadd.f32 %v13420_v15, %v16835_v24  ;;  %v6125_v17 = vpop.f32.mrb[145].mxu1  ;;  %v7097_v41 = vld [vmem:[#allocation2 + $0x30] sm:$0xff]  ;;  %v7480_v0 = vrot.slane %v7098_v3, 6 }
 0x4b0   : > { %7033 = vst.msk [vmem:[#allocation2 + $0x40] sm:$0xff] %vm394_vm2, %v6969_v1  ;;  %v6723_v55 = vadd.f32 %v16835_v24, %v6125_v17  ;;  %v13421_v21 = vpop.f32.mrb[146].mxu1  ;;  %v7478_v52 = vrot.slane %v7097_v41, 6 }
 0x4b1   : > { %v6726_v56 = vadd.f32 %v13421_v21, %v16835_v24  ;;  %v6128_v48 = vpop.f32.mrb[147].mxu1  ;;  %v6853_v16 = vmax.f32 %v6725_v54, 0.0 }
 0x4b2   : > { %v6724_v23 = vadd.f32 %v16835_v24, %v6128_v48  ;;  %v7479_v10 = vsel %vm3893_vm4, %v7477_v42, %v7478_v52  ;;  %v7481_v60 = vsel %vm3893_vm4, %v7478_v52, %v7480_v0  ;;  %v6851_v58 = vmax.f32 %v6723_v55, 0.0 }
 0x4b3   : > { %v6854_v19 = vmax.f32 %v6726_v56, 0.0  ;;  %13527 = vmatmul.mubr.msk.bf16.gmra.mrb[252].mxu1 %vm394_vm2, %v5801_v13  ;;  %13546 = vmatprep.mubr.msk.bf16.mxu0 %vm394_vm2, %v7479_v10 }
 0x4b4   : > { %v6852_v9 = vmax.f32 %v6724_v23, 0.0  ;;  %13547 = vmatmul.mubr.msk.bf16.gmra.mrb[136].mxu0 %vm394_vm2, %v7481_v60 }
 0x4b5   : > { %v6972_v7 = vpack.c.bf16 %v6854_v19, %v6853_v16  ;;  %v7410_v19 = vld [vmem:[#allocation2 + $0x78] sm:$0xc0] }
 0x4b6   : > { %v6971_v44 = vpack.c.bf16 %v6852_v9, %v6851_v58  ;;  %v13424_v45 = vpop.f32.mrb[148].mxu1  ;;  %v7407_v38 = vld [vmem:[#allocation2 + $0x48] sm:$0x3f] }
 0x4b7   : > { %7036 = vst.msk [vmem:[#allocation2 + $0x60] sm:$0xff] %vm394_vm2, %v6972_v7  ;;  %v6729_v18 = vadd.f32 %v13424_v45, %v16835_v24  ;;  %v6141_v53 = vpop.f32.mrb[149].mxu1  ;;  %v7099_v26 = vld [vmem:[#allocation2 + $0x40] sm:$0xff]  ;;  %v7484_v30 = vrot.slane %v7407_v38, 6  ;;  %v7495_v38 = vrot.slane %v7410_v19, 6 }
 0x4b8   : > { %7035 = vst.msk [vmem:[#allocation2 + $0x58] sm:$0xff] %vm394_vm2, %v6971_v44  ;;  %v6727_v61 = vadd.f32 %v16835_v24, %v6141_v53  ;;  %v13425_v46 = vpop.f32.mrb[150].mxu1  ;;  %v7482_v20 = vrot.slane %v7099_v26, 6 }
 0x4b9   : > { %v6730_v62 = vadd.f32 %v13425_v46, %v16835_v24  ;;  %v6144_v36 = vpop.f32.mrb[151].mxu1  ;;  %v6857_v43 = vmax.f32 %v6729_v18, 0.0 }
 0x4ba   : > { %v6728_v59 = vadd.f32 %v16835_v24, %v6144_v36  ;;  %v7483_v35 = vsel %vm3893_vm4, %v7480_v0, %v7482_v20  ;;  %v7485_v2 = vsel %vm3893_vm4, %v7482_v20, %v7484_v30  ;;  %v6855_v27 = vmax.f32 %v6727_v61, 0.0 }
 0x4bb   : > { %v6858_v12 = vmax.f32 %v6730_v62, 0.0  ;;  %13550 = vmatprep.mubr.msk.bf16.mxu0 %vm394_vm2, %v7483_v35 }
 0x4bc   : > { %v6856_v5 = vmax.f32 %v6728_v59, 0.0  ;;  %13551 = vmatmul.mubr.msk.bf16.gmra.mrb[140].mxu0 %vm394_vm2, %v7485_v2 }
 0x4bd   : > { %v6974_v51 = vpack.c.bf16 %v6858_v12, %v6857_v43 }
 0x4be   : > { %v6973_v25 = vpack.c.bf16 %v6856_v5, %v6855_v27  ;;  %v13428_v63 = vpop.f32.mrb[152].mxu1  ;;  %v7103_v39 = vld [vmem:[#allocation2 + $0x60] sm:$0xff] }
 0x4bf   : > { %7038 = vst.msk [vmem:[#allocation2 + $0x70] sm:$0xff] %vm394_vm2, %v6974_v51  ;;  %v6733_v14 = vadd.f32 %v13428_v63, %v16835_v24  ;;  %v6157_v28 = vpop.f32.mrb[153].mxu1  ;;  %v7102_v49 = vld [vmem:[#allocation2 + $0x58] sm:$0xff]  ;;  %v7489_v50 = vrot.slane %v7103_v39, 6 }
 0x4c0   : > { %7037 = vst.msk [vmem:[#allocation2 + $0x68] sm:$0xff] %vm394_vm2, %v6973_v25  ;;  %v6731_v29 = vadd.f32 %v16835_v24, %v6157_v28  ;;  %v13429_v4 = vpop.f32.mrb[154].mxu1  ;;  %v7487_v6 = vrot.slane %v7102_v49, 6 }
 0x4c1   : > { %v6734_v32 = vadd.f32 %v13429_v4, %v16835_v24  ;;  %v6160_v31 = vpop.f32.mrb[155].mxu1  ;;  %v6861_v34 = vmax.f32 %v6733_v14, 0.0 }
 0x4c2   : > { %v6732_v22 = vadd.f32 %v16835_v24, %v6160_v31  ;;  %v7488_v33 = vsel %vm3893_vm4, %v7486_v8, %v7487_v6  ;;  %v7490_v47 = vsel %vm3893_vm4, %v7487_v6, %v7489_v50  ;;  %v6859_v11 = vmax.f32 %v6731_v29, 0.0 }
 0x4c3   : > { %v6862_v40 = vmax.f32 %v6734_v32, 0.0  ;;  %13554 = vmatprep.mubr.msk.bf16.mxu0 %vm394_vm2, %v7488_v33 }
 0x4c4   : > { %v6860_v37 = vmax.f32 %v6732_v22, 0.0  ;;  %13555 = vmatmul.mubr.msk.bf16.gmra.mrb[144].mxu0 %vm394_vm2, %v7490_v47 }
 0x4c5   : > { %v6976_v1 = vpack.c.bf16 %v6862_v40, %v6861_v34  ;;  %v7412_v40 = vld [vmem:[#allocation2 + $0xa0] sm:$0xc0] }
 0x4c6   : > { %v6975_v15 = vpack.c.bf16 %v6860_v37, %v6859_v11  ;;  %v13432_v42 = vpop.f32.mrb[156].mxu1  ;;  %v7409_v3 = vld [vmem:[#allocation2 + $0x70] sm:$0x3f] }
 0x4c7   : > { %7040 = vst.msk [vmem:[#allocation2 + $0x88] sm:$0xff] %vm394_vm2, %v6976_v1  ;;  %v6737_v54 = vadd.f32 %v13432_v42, %v16835_v24  ;;  %v6173_v17 = vpop.f32.mrb[157].mxu1  ;;  %v7104_v41 = vld [vmem:[#allocation2 + $0x68] sm:$0xff]  ;;  %v7493_v0 = vrot.slane %v7409_v3, 6  ;;  %v7504_v3 = vrot.slane %v7412_v40, 6 }
 0x4c8   : > { %7039 = vst.msk [vmem:[#allocation2 + $0x80] sm:$0xff] %vm394_vm2, %v6975_v15  ;;  %v6735_v55 = vadd.f32 %v16835_v24, %v6173_v17  ;;  %v13433_v21 = vpop.f32.mrb[158].mxu1  ;;  %v7491_v52 = vrot.slane %v7104_v41, 6 }
 0x4c9   : > { %v6738_v56 = vadd.f32 %v13433_v21, %v16835_v24  ;;  %v6176_v48 = vpop.f32.mrb[159].mxu1  ;;  %v6865_v60 = vmax.f32 %v6737_v54, 0.0 }
 0x4ca   : > { %v6736_v23 = vadd.f32 %v16835_v24, %v6176_v48  ;;  %v7492_v13 = vsel %vm3893_vm4, %v7489_v50, %v7491_v52  ;;  %v7494_v10 = vsel %vm3893_vm4, %v7491_v52, %v7493_v0  ;;  %v6863_v58 = vmax.f32 %v6735_v55, 0.0 }
 0x4cb   : > { %v6866_v16 = vmax.f32 %v6738_v56, 0.0  ;;  %13558 = vmatprep.mubr.msk.bf16.mxu0 %vm394_vm2, %v7492_v13 }
 0x4cc   : > { %v6864_v9 = vmax.f32 %v6736_v23, 0.0  ;;  %13559 = vmatmul.mubr.msk.bf16.gmra.mrb[148].mxu0 %vm394_vm2, %v7494_v10 }
 0x4cd   : > { %v6978_v7 = vpack.c.bf16 %v6866_v16, %v6865_v60 }
 0x4ce   : > { %v6977_v44 = vpack.c.bf16 %v6864_v9, %v6863_v58  ;;  %v13436_v45 = vpop.f32.mrb[160].mxu1  ;;  %v7108_v18 = vld [vmem:[#allocation2 + $0x88] sm:$0xff] }
 0x4cf   : > { %7042 = vst.msk [vmem:[#allocation2 + $0x98] sm:$0xff] %vm394_vm2, %v6978_v7  ;;  %v6741_v53 = vadd.f32 %v13436_v45, %v16835_v24  ;;  %v6189_v26 = vpop.f32.mrb[161].mxu1  ;;  %v7107_v30 = vld [vmem:[#allocation2 + $0x80] sm:$0xff]  ;;  %v7498_v61 = vrot.slane %v7108_v18, 6 }
 0x4d0   : > { %7041 = vst.msk [vmem:[#allocation2 + $0x90] sm:$0xff] %vm394_vm2, %v6977_v44  ;;  %v6739_v46 = vadd.f32 %v16835_v24, %v6189_v26  ;;  %v13437_v20 = vpop.f32.mrb[162].mxu1  ;;  %v7496_v62 = vrot.slane %v7107_v30, 6 }
 0x4d1   : > { %v6742_v36 = vadd.f32 %v13437_v20, %v16835_v24  ;;  %v6192_v59 = vpop.f32.mrb[163].mxu1  ;;  %v6869_v12 = vmax.f32 %v6741_v53, 0.0 }
 0x4d2   : > { %v6740_v35 = vadd.f32 %v16835_v24, %v6192_v59  ;;  %v7497_v2 = vsel %vm3893_vm4, %v7495_v38, %v7496_v62  ;;  %v7499_v43 = vsel %vm3893_vm4, %v7496_v62, %v7498_v61  ;;  %v6867_v27 = vmax.f32 %v6739_v46, 0.0  ;;  %v14859_v62 = vld [vmem:[%s17930_s5 + $0x18] sm:$0xff]  }
 0x4d3   : > { %v6870_v57 = vmax.f32 %v6742_v36, 0.0  ;;  %13562 = vmatprep.mubr.msk.bf16.mxu0 %vm394_vm2, %v7497_v2  ;;  %13672 = vmatprep.subr.bf16.mxu0 %v14859_v62 }
 0x4d4   : > { %v6868_v5 = vmax.f32 %v6740_v35, 0.0  ;;  %13563 = vmatmul.mubr.msk.bf16.gmra.mrb[152].mxu0 %vm394_vm2, %v7499_v43 }
 0x4d5   : > { %v6980_v51 = vpack.c.bf16 %v6870_v57, %v6869_v12  ;;  %13673 = vmatpush3.bf16.msra.mxu0 %v14859_v62 }
 0x4d6   : > { %v6979_v25 = vpack.c.bf16 %v6868_v5, %v6867_v27  ;;  %v13440_v63 = vpop.f32.mrb[164].mxu1  ;;  %v7411_v8 = vld [vmem:[#allocation2 + $0x98] sm:$0x3f]  ;;  %v7414_v27 = vld [vmem:[#allocation2 + $0xc8] sm:$0xc0] }
 0x4d7   : > { %7044 = vst.msk [vmem:[#allocation2 + $0xb0] sm:$0xff] %vm394_vm2, %v6980_v51  ;;  %v6745_v39 = vadd.f32 %v13440_v63, %v16835_v24  ;;  %v6205_v14 = vpop.f32.mrb[165].mxu1  ;;  %v7109_v28 = vld [vmem:[#allocation2 + $0x90] sm:$0xff]  ;;  %v7502_v49 = vrot.slane %v7411_v8, 6 }
 0x4d8   : > { %7043 = vst.msk [vmem:[#allocation2 + $0xa8] sm:$0xff] %vm394_vm2, %v6979_v25  ;;  %v6743_v50 = vadd.f32 %v16835_v24, %v6205_v14  ;;  %v13441_v29 = vpop.f32.mrb[166].mxu1  ;;  %v7500_v4 = vrot.slane %v7109_v28, 6 }
 0x4d9   : > { %v6746_v6 = vadd.f32 %v13441_v29, %v16835_v24  ;;  %v6208_v32 = vpop.f32.mrb[167].mxu1  ;;  %v6873_v47 = vmax.f32 %v6745_v39, 0.0  ;;  %v7513_v39 = vrot.slane %v7414_v27, 6 }
 0x4da   : > { %v6744_v31 = vadd.f32 %v16835_v24, %v6208_v32  ;;  %v7501_v22 = vsel %vm3893_vm4, %v7498_v61, %v7500_v4  ;;  %v7503_v33 = vsel %vm3893_vm4, %v7500_v4, %v7502_v49  ;;  %v6871_v11 = vmax.f32 %v6743_v50, 0.0 }
 0x4db   : > { %v6874_v34 = vmax.f32 %v6746_v6, 0.0  ;;  %13566 = vmatprep.mubr.msk.bf16.mxu0 %vm394_vm2, %v7501_v22 }
 0x4dc   : > { %v6872_v37 = vmax.f32 %v6744_v31, 0.0  ;;  %13567 = vmatmul.mubr.msk.bf16.gmra.mrb[156].mxu0 %vm394_vm2, %v7503_v33 }
 0x4dd   : > { %v6982_v1 = vpack.c.bf16 %v6874_v34, %v6873_v47 }
 0x4de   : > { %v6981_v15 = vpack.c.bf16 %v6872_v37, %v6871_v11  ;;  %v13444_v42 = vpop.f32.mrb[168].mxu1  ;;  %v7113_v54 = vld [vmem:[#allocation2 + $0xb0] sm:$0xff] }
 0x4df   : > { %7046 = vst.msk [vmem:[#allocation2 + $0xc0] sm:$0xff] %vm394_vm2, %v6982_v1  ;;  %v6749_v17 = vadd.f32 %v13444_v42, %v16835_v24  ;;  %v6221_v41 = vpop.f32.mrb[169].mxu1  ;;  %v7112_v0 = vld [vmem:[#allocation2 + $0xa8] sm:$0xff]  ;;  %v7507_v55 = vrot.slane %v7113_v54, 6 }
 0x4e0   : > { %7045 = vst.msk [vmem:[#allocation2 + $0xb8] sm:$0xff] %vm394_vm2, %v6981_v15  ;;  %v6747_v21 = vadd.f32 %v16835_v24, %v6221_v41  ;;  %v13445_v52 = vpop.f32.mrb[170].mxu1  ;;  %v7505_v56 = vrot.slane %v7112_v0, 6 }
 0x4e1   : > { %v6750_v48 = vadd.f32 %v13445_v52, %v16835_v24  ;;  %v6224_v23 = vpop.f32.mrb[171].mxu1  ;;  %v6877_v16 = vmax.f32 %v6749_v17, 0.0 }
 0x4e2   : > { %v6748_v13 = vadd.f32 %v16835_v24, %v6224_v23  ;;  %v7506_v10 = vsel %vm3893_vm4, %v7504_v3, %v7505_v56  ;;  %v7508_v60 = vsel %vm3893_vm4, %v7505_v56, %v7507_v55  ;;  %v6875_v58 = vmax.f32 %v6747_v21, 0.0 }
 0x4e3   : > { %v6878_v19 = vmax.f32 %v6750_v48, 0.0  ;;  %13570 = vmatprep.mubr.msk.bf16.mxu0 %vm394_vm2, %v7506_v10 }
 0x4e4   : > { %v6876_v9 = vmax.f32 %v6748_v13, 0.0  ;;  %13571 = vmatmul.mubr.msk.bf16.gmra.mrb[160].mxu0 %vm394_vm2, %v7508_v60 }
 0x4e5   : > { %v6984_v7 = vpack.c.bf16 %v6878_v19, %v6877_v16 }
 0x4e6   : > { %v6983_v44 = vpack.c.bf16 %v6876_v9, %v6875_v58  ;;  %v13448_v45 = vpop.f32.mrb[172].mxu1  ;;  %v7413_v38 = vld [vmem:[#allocation2 + $0xc0] sm:$0x3f]  ;;  %v7416_v58 = vld [vmem:[#allocation2 + $0xf0] sm:$0xc0] }
 0x4e7   : > { %7048 = vst.msk [vmem:[#allocation2 + $0xd8] sm:$0xff] %vm394_vm2, %v6984_v7  ;;  %v6753_v18 = vadd.f32 %v13448_v45, %v16835_v24  ;;  %v6237_v53 = vpop.f32.mrb[173].mxu1  ;;  %v7114_v26 = vld [vmem:[#allocation2 + $0xb8] sm:$0xff]  ;;  %v7511_v30 = vrot.slane %v7413_v38, 6 }
 0x4e8   : > { %7047 = vst.msk [vmem:[#allocation2 + $0xd0] sm:$0xff] %vm394_vm2, %v6983_v44  ;;  %v6751_v61 = vadd.f32 %v16835_v24, %v6237_v53  ;;  %v13449_v46 = vpop.f32.mrb[174].mxu1  ;;  %v7509_v20 = vrot.slane %v7114_v26, 6 }
 0x4e9   : > { %v6754_v36 = vadd.f32 %v13449_v46, %v16835_v24  ;;  %v6240_v59 = vpop.f32.mrb[175].mxu1  ;;  %v6881_v12 = vmax.f32 %v6753_v18, 0.0  ;;  %v7522_v18 = vrot.slane %v7416_v58, 6 }
 0x4ea   : > { %v6752_v35 = vadd.f32 %v16835_v24, %v6240_v59  ;;  %v7510_v2 = vsel %vm3893_vm4, %v7507_v55, %v7509_v20  ;;  %v7512_v43 = vsel %vm3893_vm4, %v7509_v20, %v7511_v30  ;;  %v6879_v5 = vmax.f32 %v6751_v61, 0.0 }
 0x4eb   : > { %v6882_v57 = vmax.f32 %v6754_v36, 0.0  ;;  %13574 = vmatprep.mubr.msk.bf16.mxu0 %vm394_vm2, %v7510_v2 }
 0x4ec   : > { %v6880_v51 = vmax.f32 %v6752_v35, 0.0  ;;  %13575 = vmatmul.mubr.msk.bf16.gmra.mrb[164].mxu0 %vm394_vm2, %v7512_v43 }
 0x4ed   : > { %v6986_v25 = vpack.c.bf16 %v6882_v57, %v6881_v12 }
 0x4ee   : > { %v6985_v63 = vpack.c.bf16 %v6880_v51, %v6879_v5  ;;  %v13452_v8 = vpop.f32.mrb[176].mxu1  ;;  %v7118_v14 = vld [vmem:[#allocation2 + $0xd8] sm:$0xff] }
 0x4ef   : > { %7050 = vst.msk [vmem:[#allocation2 + $0xe8] sm:$0xff] %vm394_vm2, %v6986_v25  ;;  %v6757_v28 = vadd.f32 %v13452_v8, %v16835_v24  ;;  %v6253_v49 = vpop.f32.mrb[177].mxu1  ;;  %v7117_v50 = vld [vmem:[#allocation2 + $0xd0] sm:$0xff]  ;;  %v7516_v29 = vrot.slane %v7118_v14, 6 }
 0x4f0   : > { %7049 = vst.msk [vmem:[#allocation2 + $0xe0] sm:$0xff] %vm394_vm2, %v6985_v63  ;;  %v6755_v4 = vadd.f32 %v16835_v24, %v6253_v49  ;;  %v13453_v6 = vpop.f32.mrb[178].mxu1  ;;  %v7514_v32 = vrot.slane %v7117_v50, 6 }
 0x4f1   : > { %v6758_v31 = vadd.f32 %v13453_v6, %v16835_v24  ;;  %v6256_v22 = vpop.f32.mrb[179].mxu1  ;;  %v6885_v40 = vmax.f32 %v6757_v28, 0.0 }
 0x4f2   : > { %v6756_v33 = vadd.f32 %v16835_v24, %v6256_v22  ;;  %v7515_v47 = vsel %vm3893_vm4, %v7513_v39, %v7514_v32  ;;  %v7517_v34 = vsel %vm3893_vm4, %v7514_v32, %v7516_v29  ;;  %v6883_v37 = vmax.f32 %v6755_v4, 0.0 }
 0x4f3   : > { %v6886_v11 = vmax.f32 %v6758_v31, 0.0  ;;  %13578 = vmatprep.mubr.msk.bf16.mxu0 %vm394_vm2, %v7515_v47 }
 0x4f4   : > { %v6884_v1 = vmax.f32 %v6756_v33, 0.0  ;;  %13579 = vmatmul.mubr.msk.bf16.gmra.mrb[168].mxu0 %vm394_vm2, %v7517_v34 }
 0x4f5   : > { %v6988_v15 = vpack.c.bf16 %v6886_v11, %v6885_v40  ;;  %v7418_v11 = vld [vmem:[#allocation2 + $0x118] sm:$0xc0] }
 0x4f6   : > { %v6987_v42 = vpack.c.bf16 %v6884_v1, %v6883_v37  ;;  %v13456_v3 = vpop.f32.mrb[180].mxu1  ;;  %v7415_v54 = vld [vmem:[#allocation2 + $0xe8] sm:$0x3f] }
 0x4f7   : > { %7052 = vst.msk [vmem:[#allocation2 + $0x100] sm:$0xff] %vm394_vm2, %v6988_v15  ;;  %v6761_v17 = vadd.f32 %v13456_v3, %v16835_v24  ;;  %v6269_v41 = vpop.f32.mrb[181].mxu1  ;;  %v7119_v0 = vld [vmem:[#allocation2 + $0xe0] sm:$0xff]  ;;  %v7520_v55 = vrot.slane %v7415_v54, 6  ;;  %v7531_v54 = vrot.slane %v7418_v11, 6 }
 0x4f8   : > { %7051 = vst.msk [vmem:[#allocation2 + $0xf8] sm:$0xff] %vm394_vm2, %v6987_v42  ;;  %v6759_v21 = vadd.f32 %v16835_v24, %v6269_v41  ;;  %v13457_v52 = vpop.f32.mrb[182].mxu1  ;;  %v7518_v56 = vrot.slane %v7119_v0, 6 }
 0x4f9   : > { %v6762_v48 = vadd.f32 %v13457_v52, %v16835_v24  ;;  %v6272_v23 = vpop.f32.mrb[183].mxu1  ;;  %v6889_v16 = vmax.f32 %v6761_v17, 0.0 }
 0x4fa   : > { %v6760_v13 = vadd.f32 %v16835_v24, %v6272_v23  ;;  %v7519_v10 = vsel %vm3893_vm4, %v7516_v29, %v7518_v56  ;;  %v7521_v60 = vsel %vm3893_vm4, %v7518_v56, %v7520_v55  ;;  %v6887_v9 = vmax.f32 %v6759_v21, 0.0 }
 0x4fb   : > { %v6890_v19 = vmax.f32 %v6762_v48, 0.0  ;;  %13582 = vmatprep.mubr.msk.bf16.mxu0 %vm394_vm2, %v7519_v10 }
 0x4fc   : > { %v6888_v7 = vmax.f32 %v6760_v13, 0.0  ;;  %13583 = vmatmul.mubr.msk.bf16.gmra.mrb[172].mxu0 %vm394_vm2, %v7521_v60 }
 0x4fd   : > { %v6990_v44 = vpack.c.bf16 %v6890_v19, %v6889_v16 }
 0x4fe   : > { %v6989_v45 = vpack.c.bf16 %v6888_v7, %v6887_v9  ;;  %v13460_v38 = vpop.f32.mrb[184].mxu1  ;;  %v7123_v53 = vld [vmem:[#allocation2 + $0x100] sm:$0xff] }
 0x4ff   : > { %7054 = vst.msk [vmem:[#allocation2 + $0x110] sm:$0xff] %vm394_vm2, %v6990_v44  ;;  %v6765_v26 = vadd.f32 %v13460_v38, %v16835_v24  ;;  %v6285_v30 = vpop.f32.mrb[185].mxu1  ;;  %v7122_v61 = vld [vmem:[#allocation2 + $0xf8] sm:$0xff]  ;;  %v7525_v46 = vrot.slane %v7123_v53, 6 }
 0x500   : > { %7053 = vst.msk [vmem:[#allocation2 + $0x108] sm:$0xff] %vm394_vm2, %v6989_v45  ;;  %v6763_v20 = vadd.f32 %v16835_v24, %v6285_v30  ;;  %v13461_v62 = vpop.f32.mrb[186].mxu1  ;;  %v7523_v36 = vrot.slane %v7122_v61, 6 }
 0x501   : > { %v6766_v59 = vadd.f32 %v13461_v62, %v16835_v24  ;;  %v6288_v35 = vpop.f32.mrb[187].mxu1  ;;  %v6893_v57 = vmax.f32 %v6765_v26, 0.0 }
 0x502   : > { %v6764_v2 = vadd.f32 %v16835_v24, %v6288_v35  ;;  %v7524_v43 = vsel %vm3893_vm4, %v7522_v18, %v7523_v36  ;;  %v7526_v12 = vsel %vm3893_vm4, %v7523_v36, %v7525_v46  ;;  %v6891_v5 = vmax.f32 %v6763_v20, 0.0 }
 0x503   : > { %v6894_v27 = vmax.f32 %v6766_v59, 0.0  ;;  %13586 = vmatprep.mubr.msk.bf16.mxu0 %vm394_vm2, %v7524_v43 }
 0x504   : > { %v6892_v51 = vmax.f32 %v6764_v2, 0.0  ;;  %13587 = vmatmul.mubr.msk.bf16.gmra.mrb[176].mxu0 %vm394_vm2, %v7526_v12 }
 0x505   : > { %v6992_v25 = vpack.c.bf16 %v6894_v27, %v6893_v57  ;;  %v7420_v27 = vld [vmem:[#allocation2 + $0x140] sm:$0xc0] }
 0x506   : > { %v6991_v63 = vpack.c.bf16 %v6892_v51, %v6891_v5  ;;  %v13464_v8 = vpop.f32.mrb[188].mxu1  ;;  %v7417_v39 = vld [vmem:[#allocation2 + $0x110] sm:$0x3f] }
 0x507   : > { %7056 = vst.msk [vmem:[#allocation2 + $0x128] sm:$0xff] %vm394_vm2, %v6992_v25  ;;  %v6769_v14 = vadd.f32 %v13464_v8, %v16835_v24  ;;  %v6301_v28 = vpop.f32.mrb[189].mxu1  ;;  %v7124_v49 = vld [vmem:[#allocation2 + $0x108] sm:$0xff]  ;;  %v7529_v50 = vrot.slane %v7417_v39, 6 }
 0x508   : > { %7055 = vst.msk [vmem:[#allocation2 + $0x120] sm:$0xff] %vm394_vm2, %v6991_v63  ;;  %v6767_v29 = vadd.f32 %v16835_v24, %v6301_v28  ;;  %v13465_v4 = vpop.f32.mrb[190].mxu1  ;;  %v7527_v6 = vrot.slane %v7124_v49, 6  ;;  %v17035_v63 = vld [vmem:[%s17930_s5 + $0x40] sm:$0xff]  }
 0x509   : > { %v6770_v32 = vadd.f32 %v13465_v4, %v16835_v24  ;;  %v6304_v31 = vpop.f32.mrb[191].mxu1  ;;  %v6897_v34 = vmax.f32 %v6769_v14, 0.0  ;;  %v7540_v14 = vrot.slane %v7420_v27, 6  ;;  %13802 = vmatprep.subr.bf16.mxu0 %v17035_v63 }
 0x50a   : > { %v6768_v22 = vadd.f32 %v16835_v24, %v6304_v31  ;;  %v7528_v33 = vsel %vm3893_vm4, %v7525_v46, %v7527_v6  ;;  %v7530_v47 = vsel %vm3893_vm4, %v7527_v6, %v7529_v50  ;;  %v6895_v37 = vmax.f32 %v6767_v29, 0.0 }
 0x50b   : > { %v6898_v40 = vmax.f32 %v6770_v32, 0.0  ;;  %13590 = vmatprep.mubr.msk.bf16.mxu0 %vm394_vm2, %v7528_v33 }
 0x50c   : > { %v6896_v1 = vmax.f32 %v6768_v22, 0.0  ;;  %13591 = vmatmul.mubr.msk.bf16.gmra.mrb[180].mxu0 %vm394_vm2, %v7530_v47 }
 0x50d   : > { %v6994_v15 = vpack.c.bf16 %v6898_v40, %v6897_v34 }
 0x50e   : > { %v6993_v42 = vpack.c.bf16 %v6896_v1, %v6895_v37  ;;  %v13468_v3 = vpop.f32.mrb[192].mxu1  ;;  %v7128_v17 = vld [vmem:[#allocation2 + $0x128] sm:$0xff] }
 0x50f   : > { %7058 = vst.msk [vmem:[#allocation2 + $0x138] sm:$0xff] %vm394_vm2, %v6994_v15  ;;  %v6773_v41 = vadd.f32 %v13468_v3, %v16835_v24  ;;  %v6317_v0 = vpop.f32.mrb[193].mxu1  ;;  %v7127_v55 = vld [vmem:[#allocation2 + $0x120] sm:$0xff]  ;;  %v7534_v21 = vrot.slane %v7128_v17, 6 }
 0x510   : > { %7057 = vst.msk [vmem:[#allocation2 + $0x130] sm:$0xff] %vm394_vm2, %v6993_v42  ;;  %v6771_v52 = vadd.f32 %v16835_v24, %v6317_v0  ;;  %v13469_v56 = vpop.f32.mrb[194].mxu1  ;;  %v7532_v48 = vrot.slane %v7127_v55, 6 }
 0x511   : > { %v6774_v23 = vadd.f32 %v13469_v56, %v16835_v24  ;;  %v6320_v13 = vpop.f32.mrb[195].mxu1  ;;  %v6901_v19 = vmax.f32 %v6773_v41, 0.0 }
 0x512   : > { %v6772_v10 = vadd.f32 %v16835_v24, %v6320_v13  ;;  %v7533_v60 = vsel %vm3893_vm4, %v7531_v54, %v7532_v48  ;;  %v7535_v16 = vsel %vm3893_vm4, %v7532_v48, %v7534_v21  ;;  %v6899_v9 = vmax.f32 %v6771_v52, 0.0 }
 0x513   : > { %v6902_v58 = vmax.f32 %v6774_v23, 0.0  ;;  %13594 = vmatprep.mubr.msk.bf16.mxu0 %vm394_vm2, %v7533_v60 }
 0x514   : > { %v6900_v7 = vmax.f32 %v6772_v10, 0.0  ;;  %13595 = vmatmul.mubr.msk.bf16.gmra.mrb[184].mxu0 %vm394_vm2, %v7535_v16 }
 0x515   : > { %v6996_v44 = vpack.c.bf16 %v6902_v58, %v6901_v19 }
 0x516   : > { %v6995_v45 = vpack.c.bf16 %v6900_v7, %v6899_v9  ;;  %v13472_v38 = vpop.f32.mrb[196].mxu1  ;;  %v7419_v18 = vld [vmem:[#allocation2 + $0x138] sm:$0x3f]  ;;  %v7422_v9 = vld [vmem:[#allocation2 + $0x168] sm:$0xc0] }
 0x517   : > { %7060 = vst.msk [vmem:[#allocation2 + $0x150] sm:$0xff] %vm394_vm2, %v6996_v44  ;;  %v6777_v53 = vadd.f32 %v13472_v38, %v16835_v24  ;;  %v6333_v26 = vpop.f32.mrb[197].mxu1  ;;  %v7129_v30 = vld [vmem:[#allocation2 + $0x130] sm:$0xff]  ;;  %v7538_v61 = vrot.slane %v7419_v18, 6 }
 0x518   : > { %7059 = vst.msk [vmem:[#allocation2 + $0x148] sm:$0xff] %vm394_vm2, %v6995_v45  ;;  %v6775_v46 = vadd.f32 %v16835_v24, %v6333_v26  ;;  %v13473_v20 = vpop.f32.mrb[198].mxu1  ;;  %v7536_v62 = vrot.slane %v7129_v30, 6 }
 0x519   : > { %v6778_v36 = vadd.f32 %v13473_v20, %v16835_v24  ;;  %v6336_v59 = vpop.f32.mrb[199].mxu1  ;;  %v6905_v12 = vmax.f32 %v6777_v53, 0.0  ;;  %v7549_v53 = vrot.slane %v7422_v9, 6 }
 0x51a   : > { %v6776_v35 = vadd.f32 %v16835_v24, %v6336_v59  ;;  %v7537_v2 = vsel %vm3893_vm4, %v7534_v21, %v7536_v62  ;;  %v7539_v43 = vsel %vm3893_vm4, %v7536_v62, %v7538_v61  ;;  %v6903_v5 = vmax.f32 %v6775_v46, 0.0  ;;  %v17078_v62 = vld [vmem:[%s17929_s4] ss:$0 sm:$0xff] }
 0x51b   : > { %v6906_v57 = vmax.f32 %v6778_v36, 0.0  ;;  %13598 = vmatprep.mubr.msk.bf16.mxu0 %vm394_vm2, %v7537_v2 }
 0x51c   : > { %v6904_v51 = vmax.f32 %v6776_v35, 0.0  ;;  %13599 = vmatmul.mubr.msk.bf16.gmra.mrb[188].mxu0 %vm394_vm2, %v7539_v43 }
 0x51d   : > { %v6998_v25 = vpack.c.bf16 %v6906_v57, %v6905_v12 }
 0x51e   : > { %v6997_v8 = vpack.c.bf16 %v6904_v51, %v6903_v5  ;;  %v13476_v39 = vpop.f32.mrb[200].mxu1  ;;  %v17037_v28 = vld [vmem:[#allocation2 + $0x150] sm:$0xff] }
 0x51f   : > { %7062 = vst.msk [vmem:[#allocation2 + $0x160] sm:$0xff] %vm394_vm2, %v6998_v25  ;;  %v6781_v49 = vadd.f32 %v13476_v39, %v16835_v24  ;;  %v6349_v50 = vpop.f32.mrb[201].mxu1  ;;  %v17041_v29 = vld [vmem:[#allocation2 + $0x148] sm:$0xff]  ;;  %v7543_v4 = vrot.slane %v17037_v28, 6 }
 0x520   : > { %7061 = vst.msk [vmem:[#allocation2 + $0x158] sm:$0xff] %vm394_vm2, %v6997_v8  ;;  %v6779_v6 = vadd.f32 %v16835_v24, %v6349_v50  ;;  %v13477_v32 = vpop.f32.mrb[202].mxu1  ;;  %v7541_v31 = vrot.slane %v17041_v29, 6 }
 0x521   : > { %v6782_v22 = vadd.f32 %v13477_v32, %v16835_v24  ;;  %v6352_v33 = vpop.f32.mrb[203].mxu1  ;;  %v6909_v11 = vmax.f32 %v6781_v49, 0.0 }
 0x522   : > { %v6780_v47 = vadd.f32 %v16835_v24, %v6352_v33  ;;  %v7542_v34 = vsel %vm3893_vm4, %v7540_v14, %v7541_v31  ;;  %v7544_v40 = vsel %vm3893_vm4, %v7541_v31, %v7543_v4  ;;  %v6907_v1 = vmax.f32 %v6779_v6, 0.0 }
 0x523   : > { %v6910_v37 = vmax.f32 %v6782_v22, 0.0  ;;  %13602 = vmatprep.mubr.msk.bf16.mxu0 %vm394_vm2, %v7542_v34 }
 0x524   : > { %v6908_v15 = vmax.f32 %v6780_v47, 0.0  ;;  %13603 = vmatmul.mubr.msk.bf16.gmra.mrb[192].mxu0 %vm394_vm2, %v7544_v40 }
 0x525   : > { %v7000_v42 = vpack.c.bf16 %v6910_v37, %v6909_v11 }
 0x526   : > { %v6999_v3 = vpack.c.bf16 %v6908_v15, %v6907_v1  ;;  %v13480_v54 = vpop.f32.mrb[204].mxu1  ;;  %v7421_v17 = vld [vmem:[#allocation2 + $0x160] sm:$0x3f] }
 0x527   : > { %7064 = vst.msk [vmem:[#allocation2 + $0x178] sm:$0xff] %vm394_vm2, %v7000_v42  ;;  %v6785_v41 = vadd.f32 %v13480_v54, %v16835_v24  ;;  %v6365_v0 = vpop.f32.mrb[205].mxu1  ;;  %v17056_v55 = vld [vmem:[#allocation2 + $0x158] sm:$0xff]  ;;  %v7547_v21 = vrot.slane %v7421_v17, 6  ;;  %v7424_v42 = vld [vmem:[#allocation2 + $0x190] sm:$0xc0] }
 0x528   : > { %7063 = vst.msk [vmem:[#allocation2 + $0x170] sm:$0xff] %vm394_vm2, %v6999_v3  ;;  %v6783_v52 = vadd.f32 %v16835_v24, %v6365_v0  ;;  %v13481_v56 = vpop.f32.mrb[206].mxu1  ;;  %v7545_v48 = vrot.slane %v17056_v55, 6 }
 0x529   : > { %v6786_v23 = vadd.f32 %v13481_v56, %v16835_v24  ;;  %v6368_v13 = vpop.f32.mrb[207].mxu1  ;;  %v6913_v19 = vmax.f32 %v6785_v41, 0.0 }
 0x52a   : > { %v6784_v10 = vadd.f32 %v16835_v24, %v6368_v13  ;;  %v7546_v60 = vsel %vm3893_vm4, %v7543_v4, %v7545_v48  ;;  %v7548_v16 = vsel %vm3893_vm4, %v7545_v48, %v7547_v21  ;;  %v6911_v7 = vmax.f32 %v6783_v52, 0.0 }
 0x52b   : > { %v6914_v58 = vmax.f32 %v6786_v23, 0.0  ;;  %13606 = vmatprep.mubr.msk.bf16.mxu0 %vm394_vm2, %v7546_v60  ;;  %v7558_v21 = vrot.slane %v7424_v42, 6 }
 0x52c   : > { %v6912_v44 = vmax.f32 %v6784_v10, 0.0  ;;  %13607 = vmatmul.mubr.msk.bf16.gmra.mrb[196].mxu0 %vm394_vm2, %v7548_v16 }
 0x52d   : > { %v7002_v45 = vpack.c.bf16 %v6914_v58, %v6913_v19 }
 0x52e   : > { %v7001_v38 = vpack.c.bf16 %v6912_v44, %v6911_v7  ;;  %v13484_v18 = vpop.f32.mrb[208].mxu1  ;;  %v17067_v26 = vld [vmem:[#allocation2 + $0x178] sm:$0xff] }
 0x52f   : > { %7066 = vst.msk [vmem:[#allocation2 + $0x188] sm:$0xff] %vm394_vm2, %v7002_v45  ;;  %v6789_v30 = vadd.f32 %v13484_v18, %v16835_v24  ;;  %v6381_v61 = vpop.f32.mrb[209].mxu1  ;;  %v17071_v46 = vld [vmem:[#allocation2 + $0x170] sm:$0xff]  ;;  %v7552_v20 = vrot.slane %v17067_v26, 6 }
 0x530   : > { %7065 = vst.msk [vmem:[#allocation2 + $0x180] sm:$0xff] %vm394_vm2, %v7001_v38  ;;  %v6787_v36 = vadd.f32 %v17078_v62, %v6381_v61  ;;  %v13485_v59 = vpop.f32.mrb[210].mxu1  ;;  %v7550_v35 = vrot.slane %v17071_v46, 6 }
 0x531   : > { %v6790_v2 = vadd.f32 %v17078_v62, %v13485_v59  ;;  %v6384_v24 = vpop.f32.mrb[211].mxu1  ;;  %v6917_v27 = vmax.f32 %v6789_v30, 0.0 }
 0x532   : > { %v6788_v43 = vadd.f32 %v17078_v62, %v6384_v24  ;;  %v7551_v12 = vsel %vm3893_vm4, %v7549_v53, %v7550_v35  ;;  %v7553_v57 = vsel %vm3893_vm4, %v7550_v35, %v7552_v20  ;;  %v6915_v51 = vmax.f32 %v6787_v36, 0.0 }
 0x533   : > { %v6918_v5 = vmax.f32 %v6790_v2, 0.0  ;;  %13610 = vmatprep.mubr.msk.bf16.mxu0 %vm394_vm2, %v7551_v12 }
 0x534   : > { %v6916_v25 = vmax.f32 %v6788_v43, 0.0  ;;  %13611 = vmatmul.mubr.msk.bf16.gmra.mrb[200].mxu0 %vm394_vm2, %v7553_v57 }
 0x535   : > { %v7004_v8 = vpack.c.bf16 %v6918_v5, %v6917_v27 }
 0x536   : > { %v7003_v39 = vpack.c.bf16 %v6916_v25, %v6915_v51  ;;  %v13488_v14 = vpop.f32.mrb[212].mxu1  ;;  %v7423_v49 = vld [vmem:[#allocation2 + $0x188] sm:$0x3f] }
 0x537   : > { %7068 = vst.msk [vmem:[#allocation2 + $0x1a0] sm:$0xff] %vm394_vm2, %v7004_v8  ;;  %v6793_v50 = vadd.f32 %v17078_v62, %v13488_v14  ;;  %v6397_v4 = vpop.f32.mrb[213].mxu1  ;;  %v17090_v6 = vld [vmem:[#allocation2 + $0x180] sm:$0xff]  ;;  %v7556_v32 = vrot.slane %v7423_v49, 6  ;;  %v7426_v49 = vld [vmem:[#allocation2 + $0x1b8] sm:$0xc0] }
 0x538   : > { %7067 = vst.msk [vmem:[#allocation2 + $0x198] sm:$0xff] %vm394_vm2, %v7003_v39  ;;  %v6791_v31 = vadd.f32 %v17078_v62, %v6397_v4  ;;  %v13489_v22 = vpop.f32.mrb[214].mxu1  ;;  %v7554_v33 = vrot.slane %v17090_v6, 6 }
 0x539   : > { %v6794_v47 = vadd.f32 %v17078_v62, %v13489_v22  ;;  %v6400_v34 = vpop.f32.mrb[215].mxu1  ;;  %v6921_v1 = vmax.f32 %v6793_v50, 0.0 }
 0x53a   : > { %v6792_v40 = vadd.f32 %v17078_v62, %v6400_v34  ;;  %v7555_v11 = vsel %vm3893_vm4, %v7552_v20, %v7554_v33  ;;  %v7557_v37 = vsel %vm3893_vm4, %v7554_v33, %v7556_v32  ;;  %v6919_v3 = vmax.f32 %v6791_v31, 0.0 }
 0x53b   : > { %v6922_v15 = vmax.f32 %v6794_v47, 0.0  ;;  %13614 = vmatprep.mubr.msk.bf16.mxu0 %vm394_vm2, %v7555_v11  ;;  %v7567_v33 = vrot.slane %v7426_v49, 6 }
 0x53c   : > { %v6920_v54 = vmax.f32 %v6792_v40, 0.0  ;;  %13615 = vmatmul.mubr.msk.bf16.gmra.mrb[204].mxu0 %vm394_vm2, %v7557_v37 }
 0x53d   : > { %v7006_v17 = vpack.c.bf16 %v6922_v15, %v6921_v1 }
 0x53e   : > { %v7005_v41 = vpack.c.bf16 %v6920_v54, %v6919_v3  ;;  %v13492_v0 = vpop.f32.mrb[216].mxu1  ;;  %v17101_v52 = vld [vmem:[#allocation2 + $0x1a0] sm:$0xff] }
 0x53f   : > { %7070 = vst.msk [vmem:[#allocation2 + $0x1b0] sm:$0xff] %vm394_vm2, %v7006_v17  ;;  %v6797_v56 = vadd.f32 %v17078_v62, %v13492_v0  ;;  %v6413_v48 = vpop.f32.mrb[217].mxu1  ;;  %v17105_v23 = vld [vmem:[#allocation2 + $0x198] sm:$0xff]  ;;  %v7561_v13 = vrot.slane %v17101_v52, 6 }
 0x540   : > { %7069 = vst.msk [vmem:[#allocation2 + $0x1a8] sm:$0xff] %vm394_vm2, %v7005_v41  ;;  %v6795_v10 = vadd.f32 %v17078_v62, %v6413_v48  ;;  %v13493_v60 = vpop.f32.mrb[218].mxu1  ;;  %v7559_v16 = vrot.slane %v17105_v23, 6 }
 0x541   : > { %v6798_v19 = vadd.f32 %v17078_v62, %v13493_v60  ;;  %v6416_v58 = vpop.f32.mrb[219].mxu1  ;;  %v6925_v45 = vmax.f32 %v6797_v56, 0.0 }
 0x542   : > { %v6796_v9 = vadd.f32 %v17078_v62, %v6416_v58  ;;  %v7560_v7 = vsel %vm3893_vm4, %v7558_v21, %v7559_v16  ;;  %v7562_v44 = vsel %vm3893_vm4, %v7559_v16, %v7561_v13  ;;  %v6923_v18 = vmax.f32 %v6795_v10, 0.0 }
 0x543   : > { %v6926_v38 = vmax.f32 %v6798_v19, 0.0  ;;  %13618 = vmatprep.mubr.msk.bf16.mxu0 %vm394_vm2, %v7560_v7 }
 0x544   : > { %v6924_v53 = vmax.f32 %v6796_v9, 0.0  ;;  %13619 = vmatmul.mubr.msk.bf16.gmra.mrb[208].mxu0 %vm394_vm2, %v7562_v44 }
 0x545   : > { %v7008_v30 = vpack.c.bf16 %v6926_v38, %v6925_v45 }
 0x546   : > { %v7007_v61 = vpack.c.bf16 %v6924_v53, %v6923_v18  ;;  %v13496_v20 = vpop.f32.mrb[220].mxu1  ;;  %v7425_v36 = vld [vmem:[#allocation2 + $0x1b0] sm:$0x3f] }
 0x547   : > { %7072 = vst.msk [vmem:[#allocation2 + $0x1c8] sm:$0xff] %vm394_vm2, %v7008_v30  ;;  %v6801_v59 = vadd.f32 %v17078_v62, %v13496_v20  ;;  %v6429_v35 = vpop.f32.mrb[221].mxu1  ;;  %v17119_v2 = vld [vmem:[#allocation2 + $0x1a8] sm:$0xff]  ;;  %v7565_v24 = vrot.slane %v7425_v36, 6 }
 0x548   : > { %7071 = vst.msk [vmem:[#allocation2 + $0x1c0] sm:$0xff] %vm394_vm2, %v7007_v61  ;;  %v6799_v43 = vadd.f32 %v17078_v62, %v6429_v35  ;;  %v13497_v12 = vpop.f32.mrb[222].mxu1  ;;  %v7563_v57 = vrot.slane %v17119_v2, 6 }
 0x549   : > { %v6802_v27 = vadd.f32 %v17078_v62, %v13497_v12  ;;  %v6432_v5 = vpop.f32.mrb[223].mxu1  ;;  %v6929_v39 = vmax.f32 %v6801_v59, 0.0 }
 0x54a   : > { %v6800_v51 = vadd.f32 %v17078_v62, %v6432_v5  ;;  %v7564_v25 = vsel %vm3893_vm4, %v7561_v13, %v7563_v57  ;;  %v7566_v8 = vsel %vm3893_vm4, %v7563_v57, %v7565_v24  ;;  %v6927_v50 = vmax.f32 %v6799_v43, 0.0  ;;  %v7428_v24 = vld [vmem:[#allocation2 + $0x1e0] sm:$0xc0] }
 0x54b   : > { %v6930_v14 = vmax.f32 %v6802_v27, 0.0  ;;  %13622 = vmatprep.mubr.msk.bf16.mxu0 %vm394_vm2, %v7564_v25 }
 0x54c   : > { %v6928_v4 = vmax.f32 %v6800_v51, 0.0  ;;  %13623 = vmatmul.mubr.msk.bf16.gmra.mrb[212].mxu0 %vm394_vm2, %v7566_v8  ;;  %v7576_v51 = vrot.slane %v7428_v24, 6 }
 0x54d   : > { %v7010_v32 = vpack.c.bf16 %v6930_v14, %v6929_v39 }
 0x54e   : > { %v7009_v31 = vpack.c.bf16 %v6928_v4, %v6927_v50  ;;  %v13500_v22 = vpop.f32.mrb[224].mxu1  ;;  %v17130_v47 = vld [vmem:[#allocation2 + $0x1c8] sm:$0xff] }
 0x54f   : > { %7074 = vst.msk [vmem:[#allocation2 + $0x1d8] sm:$0xff] %vm394_vm2, %v7010_v32  ;;  %v6805_v34 = vadd.f32 %v17078_v62, %v13500_v22  ;;  %v6445_v40 = vpop.f32.mrb[225].mxu1  ;;  %v17134_v11 = vld [vmem:[#allocation2 + $0x1c0] sm:$0xff]  ;;  %v7570_v37 = vrot.slane %v17130_v47, 6 }
 0x550   : > { %7073 = vst.msk [vmem:[#allocation2 + $0x1d0] sm:$0xff] %vm394_vm2, %v7009_v31  ;;  %v6803_v1 = vadd.f32 %v17078_v62, %v6445_v40  ;;  %v13501_v15 = vpop.f32.mrb[226].mxu1  ;;  %v7568_v42 = vrot.slane %v17134_v11, 6 }
 0x551   : > { %v6806_v3 = vadd.f32 %v17078_v62, %v13501_v15  ;;  %v6448_v54 = vpop.f32.mrb[227].mxu1  ;;  %v6933_v21 = vmax.f32 %v6805_v34, 0.0 }
 0x552   : > { %v6804_v17 = vadd.f32 %v17078_v62, %v6448_v54  ;;  %v7569_v41 = vsel %vm3893_vm4, %v7567_v33, %v7568_v42  ;;  %v7571_v0 = vsel %vm3893_vm4, %v7568_v42, %v7570_v37  ;;  %v6931_v48 = vmax.f32 %v6803_v1, 0.0 }
 0x553   : > { %v6934_v56 = vmax.f32 %v6806_v3, 0.0  ;;  %13626 = vmatprep.mubr.msk.bf16.mxu0 %vm394_vm2, %v7569_v41 }
 0x554   : > { %v6932_v13 = vmax.f32 %v6804_v17, 0.0  ;;  %13627 = vmatmul.mubr.msk.bf16.gmra.mrb[216].mxu0 %vm394_vm2, %v7571_v0 }
 0x555   : > { %v7012_v10 = vpack.c.bf16 %v6934_v56, %v6933_v21 }
 0x556   : > { %v7011_v60 = vpack.c.bf16 %v6932_v13, %v6931_v48  ;;  %v13504_v16 = vpop.f32.mrb[228].mxu1  ;;  %v7427_v19 = vld [vmem:[#allocation2 + $0x1d8] sm:$0x3f] }
 0x557   : > { %7076 = vst.msk [vmem:[#allocation2 + $0x1f0] sm:$0xff] %vm394_vm2, %v7012_v10  ;;  %v6809_v58 = vadd.f32 %v17078_v62, %v13504_v16  ;;  %v6461_v9 = vpop.f32.mrb[229].mxu1  ;;  %v17148_v7 = vld [vmem:[#allocation2 + $0x1d0] sm:$0xff]  ;;  %v7574_v44 = vrot.slane %v7427_v19, 6 }
 0x558   : > { %7075 = vst.msk [vmem:[#allocation2 + $0x1e8] sm:$0xff] %vm394_vm2, %v7011_v60  ;;  %v6807_v45 = vadd.f32 %v17078_v62, %v6461_v9  ;;  %v13505_v38 = vpop.f32.mrb[230].mxu1  ;;  %v7572_v18 = vrot.slane %v17148_v7, 6 }
 0x559   : > { %v6810_v53 = vadd.f32 %v17078_v62, %v13505_v38  ;;  %v6464_v30 = vpop.f32.mrb[231].mxu1  ;;  %v6937_v59 = vmax.f32 %v6809_v58, 0.0 }
 0x55a   : > { %v6808_v61 = vadd.f32 %v17078_v62, %v6464_v30  ;;  %v7573_v20 = vsel %vm3893_vm4, %v7570_v37, %v7572_v18  ;;  %v7575_v36 = vsel %vm3893_vm4, %v7572_v18, %v7574_v44  ;;  %v6935_v43 = vmax.f32 %v6807_v45, 0.0  ;;  %v7430_v18 = vld [vmem:[#allocation2 + $0x208] sm:$0xc0] }
 0x55b   : > { %v6938_v35 = vmax.f32 %v6810_v53, 0.0  ;;  %13630 = vmatprep.mubr.msk.bf16.mxu0 %vm394_vm2, %v7573_v20 }
 0x55c   : > { %v6936_v12 = vmax.f32 %v6808_v61, 0.0  ;;  %13631 = vmatmul.mubr.msk.bf16.gmra.mrb[220].mxu0 %vm394_vm2, %v7575_v36 }
 0x55d   : > { %v7014_v57 = vpack.c.bf16 %v6938_v35, %v6937_v59  ;;  %v7585_v59 = vrot.slane %v7430_v18, 6 }
 0x55e   : > { %v7013_v27 = vpack.c.bf16 %v6936_v12, %v6935_v43  ;;  %v13508_v5 = vpop.f32.mrb[232].mxu1  ;;  %v17159_v25 = vld [vmem:[#allocation2 + $0x1f0] sm:$0xff] }
 0x55f   : > { %7078 = vst.msk [vmem:[#allocation2 + $0x200] sm:$0xff] %vm394_vm2, %v7014_v57  ;;  %v6813_v8 = vadd.f32 %v17078_v62, %v13508_v5  ;;  %v6477_v39 = vpop.f32.mrb[233].mxu1  ;;  %v17163_v14 = vld [vmem:[#allocation2 + $0x1e8] sm:$0xff]  ;;  %v7579_v49 = vrot.slane %v17159_v25, 6 }
 0x560   : > { %7077 = vst.msk [vmem:[#allocation2 + $0x1f8] sm:$0xff] %vm394_vm2, %v7013_v27  ;;  %v6811_v50 = vadd.f32 %v17078_v62, %v6477_v39  ;;  %v13509_v4 = vpop.f32.mrb[234].mxu1  ;;  %v7577_v32 = vrot.slane %v17163_v14, 6 }
 0x561   : > { %v6814_v31 = vadd.f32 %v17078_v62, %v13509_v4  ;;  %v6480_v22 = vpop.f32.mrb[235].mxu1  ;;  %v6941_v37 = vmax.f32 %v6813_v8, 0.0 }
 0x562   : > { %v6812_v33 = vadd.f32 %v17078_v62, %v6480_v22  ;;  %v7578_v34 = vsel %vm3893_vm4, %v7576_v51, %v7577_v32  ;;  %v7580_v40 = vsel %vm3893_vm4, %v7577_v32, %v7579_v49  ;;  %v6939_v15 = vmax.f32 %v6811_v50, 0.0 }
 0x563   : > { %v6942_v1 = vmax.f32 %v6814_v31, 0.0  ;;  %13634 = vmatprep.mubr.msk.bf16.mxu0 %vm394_vm2, %v7578_v34 }
 0x564   : > { %v6940_v42 = vmax.f32 %v6812_v33, 0.0  ;;  %13635 = vmatmul.mubr.msk.bf16.gmra.mrb[224].mxu0 %vm394_vm2, %v7580_v40 }
 0x565   : > { %v7016_v3 = vpack.c.bf16 %v6942_v1, %v6941_v37 }
 0x566   : > { %v7015_v54 = vpack.c.bf16 %v6940_v42, %v6939_v15  ;;  %v13512_v17 = vpop.f32.mrb[236].mxu1  ;;  %v7429_v41 = vld [vmem:[#allocation2 + $0x200] sm:$0x3f] }
 0x567   : > { %7080 = vst.msk [vmem:[#allocation2 + $0x218] sm:$0xff] %vm394_vm2, %v7016_v3  ;;  %v6817_v0 = vadd.f32 %v17078_v62, %v13512_v17  ;;  %v6493_v21 = vpop.f32.mrb[237].mxu1  ;;  %v17177_v56 = vld [vmem:[#allocation2 + $0x1f8] sm:$0xff]  ;;  %v7583_v48 = vrot.slane %v7429_v41, 6 }
 0x568   : > { %7079 = vst.msk [vmem:[#allocation2 + $0x210] sm:$0xff] %vm394_vm2, %v7015_v54  ;;  %v6815_v13 = vadd.f32 %v17078_v62, %v6493_v21  ;;  %v13513_v10 = vpop.f32.mrb[238].mxu1  ;;  %v7581_v60 = vrot.slane %v17177_v56, 6 }
 0x569   : > { %v6818_v16 = vadd.f32 %v17078_v62, %v13513_v10  ;;  %v6496_v19 = vpop.f32.mrb[239].mxu1  ;;  %v6945_v45 = vmax.f32 %v6817_v0, 0.0 }
 0x56a   : > { %v6816_v58 = vadd.f32 %v17078_v62, %v6496_v19  ;;  %v7582_v9 = vsel %vm3893_vm4, %v7579_v49, %v7581_v60  ;;  %v7584_v44 = vsel %vm3893_vm4, %v7581_v60, %v7583_v48  ;;  %v6943_v53 = vmax.f32 %v6815_v13, 0.0 }
 0x56b   : > { %v6946_v38 = vmax.f32 %v6818_v16, 0.0  ;;  %13638 = vmatprep.mubr.msk.bf16.mxu0 %vm394_vm2, %v7582_v9 }
 0x56c   : > { %v6944_v30 = vmax.f32 %v6816_v58, 0.0  ;;  %13639 = vmatmul.mubr.msk.bf16.gmra.mrb[228].mxu0 %vm394_vm2, %v7584_v44  ;;  %v7432_v58 = vld [vmem:[#allocation2 + $0x230] sm:$0xc0] }
 0x56d   : > { %v7018_v61 = vpack.c.bf16 %v6946_v38, %v6945_v45 }
 0x56e   : > { %v7017_v20 = vpack.c.bf16 %v6944_v30, %v6943_v53  ;;  %v13516_v36 = vpop.f32.mrb[240].mxu1  ;;  %v17188_v35 = vld [vmem:[#allocation2 + $0x218] sm:$0xff]  ;;  %v7594_v53 = vrot.slane %v7432_v58, 6 }
 0x56f   : > { %7082 = vst.msk [vmem:[#allocation2 + $0x228] sm:$0xff] %vm394_vm2, %v7018_v61  ;;  %v6821_v24 = vadd.f32 %v17078_v62, %v13516_v36  ;;  %v6509_v43 = vpop.f32.mrb[241].mxu1  ;;  %v17192_v12 = vld [vmem:[#allocation2 + $0x210] sm:$0xff]  ;;  %v7588_v57 = vrot.slane %v17188_v35, 6 }
 0x570   : > { %7081 = vst.msk [vmem:[#allocation2 + $0x220] sm:$0xff] %vm394_vm2, %v7017_v20  ;;  %v6819_v27 = vadd.f32 %v17078_v62, %v6509_v43  ;;  %v13517_v5 = vpop.f32.mrb[242].mxu1  ;;  %v7586_v51 = vrot.slane %v17192_v12, 6 }
 0x571   : > { %v6822_v8 = vadd.f32 %v17078_v62, %v13517_v5  ;;  %v6512_v39 = vpop.f32.mrb[243].mxu1  ;;  %v6949_v32 = vmax.f32 %v6821_v24, 0.0 }
 0x572   : > { %v6820_v49 = vadd.f32 %v17078_v62, %v6512_v39  ;;  %v7587_v50 = vsel %vm3893_vm4, %v7585_v59, %v7586_v51  ;;  %v7589_v4 = vsel %vm3893_vm4, %v7586_v51, %v7588_v57  ;;  %v6947_v22 = vmax.f32 %v6819_v27, 0.0 }
 0x573   : > { %v6950_v31 = vmax.f32 %v6822_v8, 0.0  ;;  %13642 = vmatprep.mubr.msk.bf16.mxu0 %vm394_vm2, %v7587_v50 }
 0x574   : > { %v6948_v33 = vmax.f32 %v6820_v49, 0.0  ;;  %13643 = vmatmul.mubr.msk.bf16.gmra.mrb[232].mxu0 %vm394_vm2, %v7589_v4 }
 0x575   : > { %v7020_v34 = vpack.c.bf16 %v6950_v31, %v6949_v32 }
 0x576   : > { %v7019_v40 = vpack.c.bf16 %v6948_v33, %v6947_v22  ;;  %v13520_v37 = vpop.f32.mrb[244].mxu1  ;;  %v7431_v1 = vld [vmem:[#allocation2 + $0x228] sm:$0x3f] }
 0x577   : > { %7084 = vst.msk [vmem:[#allocation2 + $0x240] sm:$0xff] %vm394_vm2, %v7020_v34  ;;  %v6825_v15 = vadd.f32 %v17078_v62, %v13520_v37  ;;  %v6525_v42 = vpop.f32.mrb[245].mxu1  ;;  %v17206_v3 = vld [vmem:[#allocation2 + $0x220] sm:$0xff]  ;;  %v7592_v54 = vrot.slane %v7431_v1, 6 }
 0x578   : > { %7083 = vst.msk [vmem:[#allocation2 + $0x238] sm:$0xff] %vm394_vm2, %v7019_v40  ;;  %v6823_v17 = vadd.f32 %v17078_v62, %v6525_v42  ;;  %v13521_v41 = vpop.f32.mrb[246].mxu1  ;;  %v7590_v0 = vrot.slane %v17206_v3, 6 }
 0x579   : > { %v6826_v21 = vadd.f32 %v17078_v62, %v13521_v41  ;;  %v6528_v48 = vpop.f32.mrb[247].mxu1  ;;  %v6953_v16 = vmax.f32 %v6825_v15, 0.0 }
 0x57a   : > { %v6824_v13 = vadd.f32 %v17078_v62, %v6528_v48  ;;  %v7591_v10 = vsel %vm3893_vm4, %v7588_v57, %v7590_v0  ;;  %v7593_v60 = vsel %vm3893_vm4, %v7590_v0, %v7592_v54  ;;  %v6951_v9 = vmax.f32 %v6823_v17, 0.0 }
 0x57b   : > { %v6954_v19 = vmax.f32 %v6826_v21, 0.0  ;;  %13646 = vmatprep.mubr.msk.bf16.mxu0 %vm394_vm2, %v7591_v10 }
 0x57c   : > { %v6952_v44 = vmax.f32 %v6824_v13, 0.0  ;;  %13647 = vmatmul.mubr.msk.bf16.gmra.mrb[236].mxu0 %vm394_vm2, %v7593_v60 }
 0x57d   : > { %v7022_v45 = vpack.c.bf16 %v6954_v19, %v6953_v16  ;;  %v7434_v16 = vld [vmem:[#allocation2 + $0x258] sm:$0xc0] }
 0x57e   : > { %v7021_v38 = vpack.c.bf16 %v6952_v44, %v6951_v9  ;;  %v13524_v18 = vpop.f32.mrb[248].mxu1  ;;  %v17217_v30 = vld [vmem:[#allocation2 + $0x240] sm:$0xff] }
 0x57f   : > { %7086 = vst.msk [vmem:[#allocation2 + $0x250] sm:$0xff] %vm394_vm2, %v7022_v45  ;;  %v6829_v61 = vadd.f32 %v17078_v62, %v13524_v18  ;;  %v6541_v20 = vpop.f32.mrb[249].mxu1  ;;  %v17221_v36 = vld [vmem:[#allocation2 + $0x238] sm:$0xff]  ;;  %v7597_v59 = vrot.slane %v17217_v30, 6  ;;  %v7603_v45 = vrot.slane %v7434_v16, 6 }
 0x580   : > { %7085 = vst.msk [vmem:[#allocation2 + $0x248] sm:$0xff] %vm394_vm2, %v7021_v38  ;;  %v6827_v24 = vadd.f32 %v17078_v62, %v6541_v20  ;;  %v13525_v43 = vpop.f32.mrb[250].mxu1  ;;  %v7595_v57 = vrot.slane %v17221_v36, 6 }
 0x581   : > { %v6830_v27 = vadd.f32 %v17078_v62, %v13525_v43  ;;  %v6544_v5 = vpop.f32.mrb[251].mxu1  ;;  %v6957_v49 = vmax.f32 %v6829_v61, 0.0 }
 0x582   : > { %v6828_v51 = vadd.f32 %v17078_v62, %v6544_v5  ;;  %v7596_v8 = vsel %vm3893_vm4, %v7594_v53, %v7595_v57  ;;  %v7598_v39 = vsel %vm3893_vm4, %v7595_v57, %v7597_v59  ;;  %v6955_v4 = vmax.f32 %v6827_v24, 0.0 }
 0x583   : > { %v6958_v50 = vmax.f32 %v6830_v27, 0.0  ;;  %13650 = vmatprep.mubr.msk.bf16.mxu0 %vm394_vm2, %v7596_v8 }
 0x584   : > { %v6956_v32 = vmax.f32 %v6828_v51, 0.0  ;;  %13651 = vmatmul.mubr.msk.bf16.gmra.mrb[240].mxu0 %vm394_vm2, %v7598_v39  ;;  %v17261_v51 = vld [vmem:[#allocation2 + $0x8] sm:$0xff] }
 0x585   : > { %v7024_v31 = vpack.c.bf16 %v6958_v50, %v6957_v49  ;;  %v7253_v8 = vrot.slane %v17261_v51, 4 }
 0x586   : > { %v7023_v22 = vpack.c.bf16 %v6956_v32, %v6955_v4  ;;  %v13528_v33 = vpop.f32.mrb[252].mxu1  ;;  %v7433_v34 = vld [vmem:[#allocation2 + $0x250] sm:$0x3f] }
 0x587   : > { %7088 = vst.msk [vmem:[#allocation2 + $0x268] sm:$0xff] %vm394_vm2, %v7024_v31  ;;  %v6833_v40 = vadd.f32 %v17078_v62, %v13528_v33  ;;  %v6557_v37 = vpop.f32.mrb[253].mxu1  ;;  %v17235_v1 = vld [vmem:[#allocation2 + $0x248] sm:$0xff]  ;;  %v7601_v15 = vrot.slane %v7433_v34, 6  ;;  %v17270_v4 = vld [vmem:[#allocation2 + $0x10] sm:$0xff]  ;;  %v17273_v31 = vld [vmem:[#allocation2 + $0x18] sm:$0xff] }
 0x588   : > { %7087 = vst.msk [vmem:[#allocation2 + $0x260] sm:$0xff] %vm394_vm2, %v7023_v22  ;;  %v6831_v42 = vadd.f32 %v17078_v62, %v6557_v37  ;;  %v13529_v54 = vpop.f32.mrb[254].mxu1  ;;  %v7599_v17 = vrot.slane %v17235_v1, 6  ;;  %v7255_v32 = vrot.slane %v17270_v4, 4  ;;  %v7257_v22 = vrot.slane %v17273_v31, 4  ;;  %v14861_v33 = vld [vmem:[%s17930_s5 + $0x48] sm:$0xff]  }
 0x589   : > { %v6834_v41 = vadd.f32 %v17078_v62, %v13529_v54  ;;  %v6560_v0 = vpop.f32.mrb[255].mxu1  ;;  %v6961_v10 = vmax.f32 %v6833_v40, 0.0  ;;  %v7095_v37 = vld [vmem:[#allocation2 + $0x20] sm:$0xf] }
 0x58a   : > { %v6832_v21 = vadd.f32 %v17078_v62, %v6560_v0  ;;  %v7600_v48 = vsel %vm3893_vm4, %v7597_v59, %v7599_v17  ;;  %v7602_v13 = vsel %vm3893_vm4, %v7599_v17, %v7601_v15  ;;  %v6959_v19 = vmax.f32 %v6831_v42, 0.0  ;;  %v7091_v59 = vld [vmem:[#allocation2] sm:$0xf0]  ;;  %v7096_v15 = vld [vmem:[#allocation2 + $0x28] sm:$0xf0]  ;;  %v14862_v42 = vld [vmem:[%s17930_s5 + $0x50] sm:$0xff]  }
 0x58b   : > { %v6962_v60 = vmax.f32 %v6834_v41, 0.0  ;;  %13654 = vmatprep.mubr.msk.bf16.mxu0 %vm394_vm2, %v7600_v48  ;;  %v7252_v5 = vrot.slane %v7091_v59, 4  ;;  %v7256_v34 = vsel %vm991_vm0, %v7253_v8, %v7255_v32  ;;  %v7258_v40 = vsel %vm991_vm0, %v7255_v32, %v7257_v22  ;;  %v17287_v41 = vld [vmem:[#allocation2 + $0x30] sm:$0xff]  ;;  %v17294_v48 = vld [vmem:[#allocation2 + $0x38] sm:$0xff]  ;;  %v17311_v59 = vld [vmem:[#allocation2 + $0x60] sm:$0xff] }
 0x58c   : > { %v6960_v58 = vmax.f32 %v6832_v21, 0.0  ;;  %13655 = vmatmul.mubr.msk.bf16.gmra.mrb[244].mxu0 %vm394_vm2, %v7602_v13  ;;  %v7259_v54 = vrot.slane %v7095_v37, 4  ;;  %v7261_v17 = vrot.slane %v7096_v15, 4  ;;  %v7262_v0 = vrot.slane %v17287_v41, 4  ;;  %v17328_v37 = vld [vmem:[#allocation2 + $0x88] sm:$0xff] }
 0x58d   : > { %v7026_v9 = vpack.c.bf16 %v6962_v60, %v6961_v10  ;;  %v7254_v50 = vsel %vm991_vm0, %v7252_v5, %v7253_v8  ;;  %v7264_v13 = vrot.slane %v17294_v48, 4  ;;  %v17297_v10 = vld [vmem:[#allocation2 + $0x40] sm:$0xff]  ;;  %v7282_v15 = vrot.slane %v17328_v37, 4 }
 0x58e   : > { %v7025_v44 = vpack.c.bf16 %v6960_v58, %v6959_v19  ;;  %v17246_v38 = vld [vmem:[#allocation2 + $0x268] sm:$0xff]  ;;  %v7260_v21 = vsel %vm991_vm0, %v7257_v22, %v7259_v54  ;;  %v7266_v60 = vrot.slane %v17297_v10, 4  ;;  %v17321_v22 = vld [vmem:[#allocation2 + $0x80] sm:$0xff] }
 0x58f   : > { %7090 = vst.msk [vmem:[#allocation2 + $0x278] sm:$0xff] %vm394_vm2, %v7026_v9  ;;  %v17249_v62 = vld [vmem:[#allocation2 + $0x260] sm:$0xff]  ;;  %v7606_v18 = vrot.slane %v17246_v38, 6  ;;  %v7265_v16 = vsel %vm991_vm0, %v7262_v0, %v7264_v13  ;;  %v7100_v58 = vld [vmem:[#allocation2 + $0x48] sm:$0xf] }
 0x590   : > { %7089 = vst.msk [vmem:[#allocation2 + $0x270] sm:$0xff] %vm394_vm2, %v7025_v44  ;;  %v7604_v53 = vrot.slane %v17249_v62, 6  ;;  %v7267_v19 = vsel %vm991_vm0, %v7264_v13, %v7266_v60  ;;  %v7101_v9 = vld [vmem:[#allocation2 + $0x50] sm:$0xf0]  ;;  %v7268_v44 = vrot.slane %v7100_v58, 4 }
 0x592   : > { %v7605_v61 = vsel %vm3893_vm4, %v7603_v45, %v7604_v53  ;;  %v7607_v20 = vsel %vm3893_vm4, %v7604_v53, %v7606_v18  ;;  %v7270_v45 = vrot.slane %v7101_v9, 4 }
 0x593   : > { %13658 = vmatprep.mubr.msk.bf16.mxu0 %vm394_vm2, %v7605_v61  ;;  %v7269_v61 = vsel %vm991_vm0, %v7266_v60, %v7268_v44  ;;  %v14863_v44 = vld [vmem:[%s17930_s5 + $0x58] sm:$0xff]  }
 0x594   : > { %13659 = vmatmul.mubr.msk.bf16.gmra.mrb[248].mxu0 %vm394_vm2, %v7607_v20 }
 0x596   : > { %v7435_v24 = vld [vmem:[#allocation2 + $0x278] sm:$0x3f] }
 0x597   : > { %v17258_v43 = vld [vmem:[#allocation2 + $0x270] sm:$0xff]  ;;  %v7610_v57 = vrot.slane %v7435_v24, 6  ;;  %v7273_v24 = vrot.slane %v17311_v59, 4 }
 0x598   : > { %v7608_v27 = vrot.slane %v17258_v43, 6 }
 0x59a   : > { %v7609_v39 = vsel %vm3893_vm4, %v7606_v18, %v7608_v27  ;;  %v7611_v49 = vsel %vm3893_vm4, %v7608_v27, %v7610_v57  ;;  %v17304_v18 = vld [vmem:[#allocation2 + $0x58] sm:$0xff]  ;;  %v17314_v57 = vld [vmem:[#allocation2 + $0x68] sm:$0xff] }
 0x59b   : > { %13662 = vmatprep.mubr.msk.bf16.mxu0 %vm394_vm2, %v7609_v39  ;;  %v7271_v53 = vrot.slane %v17304_v18, 4  ;;  %v7275_v27 = vrot.slane %v17314_v57, 4  ;;  %v7105_v39 = vld [vmem:[#allocation2 + $0x70] sm:$0xf] }
 0x59c   : > { %13663 = vmatmul.mubr.msk.bf16.gmra.mrb[252].mxu0 %vm394_vm2, %v7611_v49  ;;  %v7106_v49 = vld [vmem:[#allocation2 + $0x78] sm:$0xf0] }
 0x59d   : > { %13674 = vmatprep.mubr.msk.bf16.mxu0 %vm394_vm2, %v7254_v50  ;;  %v7272_v20 = vsel %vm991_vm0, %v7270_v45, %v7271_v53  ;;  %v7274_v5 = vsel %vm991_vm0, %v7271_v53, %v7273_v24  ;;  %v7276_v8 = vsel %vm991_vm0, %v7273_v24, %v7275_v27  ;;  %v7277_v50 = vrot.slane %v7105_v39, 4  ;;  %v17348_v45 = vld [vmem:[#allocation2 + $0xb0] sm:$0xff] }
 0x59e   : > { %v7279_v32 = vrot.slane %v7106_v49, 4  ;;  %v7291_v53 = vrot.slane %v17348_v45, 4 }
 0x5a4   : > { %13675 = vmatmul.mubr.msk.bf16.vlgmr.msra.gmra.mrb[128].mxu0 %vm394_vm2, %v7256_v34  ;;  %v7278_v34 = vsel %vm991_vm0, %v7275_v27, %v7277_v50  ;;  %v17358_v50 = vld [vmem:[#allocation2 + $0xd0] sm:$0xff] }
 0x5a5   : > { %13803 = vmatpush3.bf16.msra.mxu0 %v17035_v63  ;;  %13678 = vmatprep.mubr.msk.bf16.mxu0 %vm394_vm2, %v7258_v40  ;;  %v7263_v63 = vsel %vm991_vm0, %v7261_v17, %v7262_v0 }
 0x5a6   : > { %13804 = vmatprep.subr.bf16.mxu0 %v14861_v33 }
 0x5a9   : > { %13805 = vmatpush3.bf16.msra.mxu0 %v14861_v33  ;;  %v7280_v33 = vrot.slane %v17321_v22, 4 }
 0x5aa   : > { %13806 = vmatprep.subr.bf16.mxu0 %v14862_v42 }
 0x5ab   : > { %v7281_v40 = vsel %vm991_vm0, %v7279_v32, %v7280_v33  ;;  %v7283_v17 = vsel %vm991_vm0, %v7280_v33, %v7282_v15  ;;  %v7298_v32 = vrot.slane %v17358_v50, 4 }
 0x5ac   : > { %13679 = vmatmul.mubr.msk.bf16.gmra.mrb[132].mxu0 %vm394_vm2, %v7260_v21  ;;  %v7110_v21 = vld [vmem:[#allocation2 + $0x98] sm:$0xf] }
 0x5ad   : > { %13682 = vmatprep.mubr.msk.bf16.mxu0 %vm394_vm2, %v7263_v63  ;;  %13807 = vmatpush3.bf16.msra.mxu0 %v14862_v42  ;;  %v17331_v42 = vld [vmem:[#allocation2 + $0x90] sm:$0xff]  ;;  %v7111_v63 = vld [vmem:[#allocation2 + $0xa0] sm:$0xf0]  ;;  %v7286_v13 = vrot.slane %v7110_v21, 4 }
 0x5ae   : > { %v7284_v54 = vrot.slane %v17331_v42, 4  ;;  %v7288_v60 = vrot.slane %v7111_v63, 4  ;;  %13808 = vmatprep.subr.bf16.mxu0 %v14863_v44  ;;  %v7120_v63 = vld [vmem:[#allocation2 + $0xe8] sm:$0xf] }
 0x5b0   : > { %v7285_v0 = vsel %vm991_vm0, %v7282_v15, %v7284_v54  ;;  %v7287_v58 = vsel %vm991_vm0, %v7284_v54, %v7286_v13  ;;  %v17368_v54 = vld [vmem:[#allocation2 + $0xe0] sm:$0xff]  ;;  %v7121_v13 = vld [vmem:[#allocation2 + $0xf0] sm:$0xf0] }
 0x5b1   : > { %13809 = vmatpush3.bf16.msra.mxu0 %v14863_v44 }
 0x5b4   : > { %13683 = vmatmul.mubr.msk.bf16.gmra.mrb[136].mxu0 %vm394_vm2, %v7265_v16  ;;  %v17338_v16 = vld [vmem:[#allocation2 + $0xa8] sm:$0xff] }
 0x5b5   : > { %13686 = vmatprep.mubr.msk.bf16.mxu0 %vm394_vm2, %v7267_v19  ;;  %v7289_v19 = vrot.slane %v17338_v16, 4 }
 0x5b7   : > { %v7290_v9 = vsel %vm991_vm0, %v7288_v60, %v7289_v19  ;;  %v7292_v24 = vsel %vm991_vm0, %v7289_v19, %v7291_v53  ;;  %v7304_v60 = vrot.slane %v7120_v63, 4  ;;  %v7306_v19 = vrot.slane %v7121_v13, 4  ;;  %v17399_v63 = vld [vmem:[#allocation2 + $0x128] sm:$0xff] }
 0x5b8   : > { %v7318_v13 = vrot.slane %v17399_v63, 4 }
 0x5bc   : > { %13687 = vmatmul.mubr.msk.bf16.gmra.mrb[140].mxu0 %vm394_vm2, %v7269_v61  ;;  %v17351_v61 = vld [vmem:[#allocation2 + $0xb8] sm:$0xff] }
 0x5bd   : > { %13690 = vmatprep.mubr.msk.bf16.mxu0 %vm394_vm2, %v7272_v20  ;;  %v7293_v20 = vrot.slane %v17351_v61, 4 }
 0x5bf   : > { %v7294_v27 = vsel %vm991_vm0, %v7291_v53, %v7293_v20 }
 0x5c4   : > { %13691 = vmatmul.mubr.msk.bf16.gmra.mrb[144].mxu0 %vm394_vm2, %v7274_v5  ;;  %v7115_v5 = vld [vmem:[#allocation2 + $0xc0] sm:$0xf] }
 0x5c5   : > { %13694 = vmatprep.mubr.msk.bf16.mxu0 %vm394_vm2, %v7276_v8  ;;  %v7116_v8 = vld [vmem:[#allocation2 + $0xc8] sm:$0xf0]  ;;  %v7295_v39 = vrot.slane %v7115_v5, 4 }
 0x5c6   : > { %v7297_v49 = vrot.slane %v7116_v8, 4 }
 0x5c7   : > { %v7296_v33 = vsel %vm991_vm0, %v7293_v20, %v7295_v39  ;;  %v17382_v20 = vld [vmem:[#allocation2 + $0x100] sm:$0xff] }
 0x5cc   : > { %13695 = vmatmul.mubr.msk.bf16.gmra.mrb[148].mxu0 %vm394_vm2, %v7278_v34  ;;  %v7299_v34 = vsel %vm991_vm0, %v7297_v49, %v7298_v32  ;;  %v7125_v49 = vld [vmem:[#allocation2 + $0x110] sm:$0xf] }
 0x5cd   : > { %13698 = vmatprep.mubr.msk.bf16.mxu0 %vm394_vm2, %v7281_v40  ;;  %v17365_v40 = vld [vmem:[#allocation2 + $0xd8] sm:$0xff] }
 0x5ce   : > { %v7300_v15 = vrot.slane %v17365_v40, 4 }
 0x5d4   : > { %13699 = vmatmul.mubr.msk.bf16.gmra.mrb[152].mxu0 %vm394_vm2, %v7283_v17  ;;  %v7302_v17 = vrot.slane %v17368_v54, 4 }
 0x5d5   : > { %13702 = vmatprep.mubr.msk.bf16.mxu0 %vm394_vm2, %v7285_v0  ;;  %v7301_v0 = vsel %vm991_vm0, %v7298_v32, %v7300_v15  ;;  %v7126_v32 = vld [vmem:[#allocation2 + $0x118] sm:$0xf0] }
 0x5d6   : > { %v7303_v21 = vsel %vm991_vm0, %v7300_v15, %v7302_v17  ;;  %v7305_v44 = vsel %vm991_vm0, %v7302_v17, %v7304_v60  ;;  %v17392_v15 = vld [vmem:[#allocation2 + $0x120] sm:$0xff]  ;;  %v17402_v60 = vld [vmem:[#allocation2 + $0x130] sm:$0xff] }
 0x5d7   : > { %v7316_v17 = vrot.slane %v17392_v15, 4 }
 0x5dc   : > { %13703 = vmatmul.mubr.msk.bf16.gmra.mrb[156].mxu0 %vm394_vm2, %v7287_v58  ;;  %v17375_v58 = vld [vmem:[#allocation2 + $0xf8] sm:$0xff] }
 0x5dd   : > { %13706 = vmatprep.mubr.msk.bf16.mxu0 %vm394_vm2, %v7290_v9  ;;  %v7307_v9 = vrot.slane %v17375_v58, 4 }
 0x5df   : > { %v7308_v53 = vsel %vm991_vm0, %v7306_v19, %v7307_v9  ;;  %v7320_v19 = vrot.slane %v17402_v60, 4 }
 0x5e4   : > { %13707 = vmatmul.mubr.msk.bf16.gmra.mrb[160].mxu0 %vm394_vm2, %v7292_v24  ;;  %v7309_v24 = vrot.slane %v17382_v20, 4 }
 0x5e5   : > { %13710 = vmatprep.mubr.msk.bf16.mxu0 %vm394_vm2, %v7294_v27  ;;  %v17385_v27 = vld [vmem:[#allocation2 + $0x108] sm:$0xff] }
 0x5e6   : > { %v7311_v5 = vrot.slane %v17385_v27, 4  ;;  %v7310_v8 = vsel %vm991_vm0, %v7307_v9, %v7309_v24  ;;  %v7319_v9 = vsel %vm991_vm0, %v7316_v17, %v7318_v13 }
 0x5e8   : > { %v7312_v39 = vsel %vm991_vm0, %v7309_v24, %v7311_v5  ;;  %v7131_v24 = vld [vmem:[#allocation2 + $0x140] sm:$0xf0] }
 0x5ec   : > { %13711 = vmatmul.mubr.msk.bf16.gmra.mrb[164].mxu0 %vm394_vm2, %v7296_v33  ;;  %v7313_v33 = vrot.slane %v7125_v49, 4 }
 0x5ed   : > { %13714 = vmatprep.mubr.msk.bf16.mxu0 %vm394_vm2, %v7299_v34  ;;  %v7315_v34 = vrot.slane %v7126_v32, 4 }
 0x5f4   : > { %13715 = vmatmul.mubr.msk.bf16.gmra.mrb[168].mxu0 %vm394_vm2, %v7301_v0  ;;  %v7314_v0 = vsel %vm991_vm0, %v7311_v5, %v7313_v33  ;;  %v7327_v33 = vrot.slane %v17037_v28, 4 }
 0x5f5   : > { %13718 = vmatprep.mubr.msk.bf16.mxu0 %vm394_vm2, %v7303_v21  ;;  %v7317_v21 = vsel %vm991_vm0, %v7315_v34, %v7316_v17  ;;  %v7329_v34 = vrot.slane %v17056_v55, 4  ;;  %v7336_v55 = vrot.slane %v17067_v26, 4 }
 0x5fc   : > { %13719 = vmatmul.mubr.msk.bf16.gmra.mrb[172].mxu0 %vm394_vm2, %v7305_v44  ;;  %v7321_v44 = vsel %vm991_vm0, %v7318_v13, %v7320_v19 }
 0x5fd   : > { %13722 = vmatprep.mubr.msk.bf16.mxu0 %vm394_vm2, %v7308_v53  ;;  %v7130_v53 = vld [vmem:[#allocation2 + $0x138] sm:$0xf] }
 0x5fe   : > { %v7322_v5 = vrot.slane %v7130_v53, 4  ;;  %v7338_v53 = vrot.slane %v17090_v6, 4  ;;  %v7345_v6 = vrot.slane %v17101_v52, 4 }
 0x600   : > { %v7323_v49 = vsel %vm991_vm0, %v7320_v19, %v7322_v5  ;;  %v7339_v5 = vsel %vm991_vm0, %v7336_v55, %v7338_v53 }
 0x604   : > { %13723 = vmatmul.mubr.msk.bf16.gmra.mrb[176].mxu0 %vm394_vm2, %v7310_v8  ;;  %v7324_v8 = vrot.slane %v7131_v24, 4 }
 0x605   : > { %13726 = vmatprep.mubr.msk.bf16.mxu0 %vm394_vm2, %v7312_v39  ;;  %v7325_v39 = vrot.slane %v17041_v29, 4  ;;  %v7136_v29 = vld [vmem:[#allocation2 + $0x168] sm:$0xf0] }
 0x606   : > { %v7333_v19 = vrot.slane %v7136_v29, 4 }
 0x607   : > { %v7326_v32 = vsel %vm991_vm0, %v7324_v8, %v7325_v39  ;;  %v7328_v17 = vsel %vm991_vm0, %v7325_v39, %v7327_v33  ;;  %v7140_v8 = vld [vmem:[#allocation2 + $0x188] sm:$0xf] }
 0x608   : > { %v7340_v39 = vrot.slane %v7140_v8, 4  ;;  %v7361_v8 = vrot.slane %v17163_v14, 4 }
 0x60c   : > { %13727 = vmatmul.mubr.msk.bf16.gmra.mrb[180].mxu0 %vm394_vm2, %v7314_v0  ;;  %v7330_v0 = vsel %vm991_vm0, %v7327_v33, %v7329_v34  ;;  %v7341_v33 = vsel %vm991_vm0, %v7338_v53, %v7340_v39  ;;  %v7150_v53 = vld [vmem:[#allocation2 + $0x1d8] sm:$0xf]  ;;  %v7363_v39 = vrot.slane %v17159_v25, 4 }
 0x60d   : > { %13730 = vmatprep.mubr.msk.bf16.mxu0 %vm394_vm2, %v7317_v21  ;;  %v7135_v21 = vld [vmem:[#allocation2 + $0x160] sm:$0xf] }
 0x60e   : > { %v7331_v13 = vrot.slane %v7135_v21, 4  ;;  %v7145_v21 = vld [vmem:[#allocation2 + $0x1b0] sm:$0xf] }
 0x60f   : > { %v7349_v29 = vrot.slane %v7145_v21, 4 }
 0x614   : > { %13731 = vmatmul.mubr.msk.bf16.gmra.mrb[184].mxu0 %vm394_vm2, %v7319_v9  ;;  %v7334_v9 = vrot.slane %v17071_v46, 4  ;;  %v7141_v46 = vld [vmem:[#allocation2 + $0x190] sm:$0xf0] }
 0x615   : > { %13734 = vmatprep.mubr.msk.bf16.mxu0 %vm394_vm2, %v7321_v44  ;;  %v7332_v44 = vsel %vm991_vm0, %v7329_v34, %v7331_v13  ;;  %v7347_v34 = vrot.slane %v17119_v2, 4  ;;  %v7354_v2 = vrot.slane %v17130_v47, 4 }
 0x616   : > { %v7335_v28 = vsel %vm991_vm0, %v7333_v19, %v7334_v9  ;;  %v7337_v24 = vsel %vm991_vm0, %v7334_v9, %v7336_v55  ;;  %v7352_v19 = vrot.slane %v17134_v11, 4  ;;  %v7151_v11 = vld [vmem:[#allocation2 + $0x1e0] sm:$0xf0] }
 0x617   : > { %v7350_v9 = vsel %vm991_vm0, %v7347_v34, %v7349_v29  ;;  %v7372_v29 = vrot.slane %v17188_v35, 4 }
 0x61c   : > { %13735 = vmatmul.mubr.msk.bf16.gmra.mrb[188].mxu0 %vm394_vm2, %v7323_v49  ;;  %v7342_v49 = vrot.slane %v7141_v46, 4 }
 0x61d   : > { %13738 = vmatprep.mubr.msk.bf16.mxu0 %vm394_vm2, %v7326_v32  ;;  %v7343_v32 = vrot.slane %v17105_v23, 4  ;;  %v7146_v23 = vld [vmem:[#allocation2 + $0x1b8] sm:$0xf0] }
 0x61e   : > { %v7351_v13 = vrot.slane %v7146_v23, 4 }
 0x61f   : > { %v7344_v26 = vsel %vm991_vm0, %v7342_v49, %v7343_v32  ;;  %v7365_v49 = vrot.slane %v17177_v56, 4 }
 0x620   : > { %v7353_v52 = vsel %vm991_vm0, %v7351_v13, %v7352_v19  ;;  %v7374_v13 = vrot.slane %v17206_v3, 4 }
 0x624   : > { %13739 = vmatmul.mubr.msk.bf16.gmra.mrb[192].mxu0 %vm394_vm2, %v7328_v17  ;;  %v7346_v17 = vsel %vm991_vm0, %v7343_v32, %v7345_v6  ;;  %v7364_v32 = vsel %vm991_vm0, %v7361_v8, %v7363_v39 }
 0x625   : > { %13742 = vmatprep.mubr.msk.bf16.mxu0 %vm394_vm2, %v7330_v0  ;;  %v7348_v0 = vsel %vm991_vm0, %v7345_v6, %v7347_v34  ;;  %v7156_v6 = vld [vmem:[#allocation2 + $0x208] sm:$0xf0] }
 0x62c   : > { %13743 = vmatmul.mubr.msk.bf16.gmra.mrb[196].mxu0 %vm394_vm2, %v7332_v44  ;;  %v7356_v44 = vrot.slane %v17148_v7, 4 }
 0x62d   : > { %13746 = vmatprep.mubr.msk.bf16.mxu0 %vm394_vm2, %v7335_v28  ;;  %v7355_v28 = vsel %vm991_vm0, %v7352_v19, %v7354_v2 }
 0x62e   : > { %v7357_v55 = vsel %vm991_vm0, %v7354_v2, %v7356_v44  ;;  %v7161_v2 = vld [vmem:[#allocation2 + $0x230] sm:$0xf0] }
 0x634   : > { %13747 = vmatmul.mubr.msk.bf16.gmra.mrb[200].mxu0 %vm394_vm2, %v7337_v24  ;;  %v7358_v24 = vrot.slane %v7150_v53, 4 }
 0x635   : > { %13750 = vmatprep.mubr.msk.bf16.mxu0 %vm394_vm2, %v7339_v5  ;;  %v7360_v5 = vrot.slane %v7151_v11, 4 }
 0x636   : > { %v7359_v46 = vsel %vm991_vm0, %v7356_v44, %v7358_v24  ;;  %v7381_v24 = vrot.slane %v17217_v30, 4 }
 0x637   : > { %v7362_v47 = vsel %vm991_vm0, %v7360_v5, %v7361_v8  ;;  %v7383_v5 = vrot.slane %v17235_v1, 4 }
 0x63c   : > { %13751 = vmatmul.mubr.msk.bf16.gmra.mrb[204].mxu0 %vm394_vm2, %v7341_v33  ;;  %v7366_v33 = vsel %vm991_vm0, %v7363_v39, %v7365_v49  ;;  %v7166_v39 = vld [vmem:[#allocation2 + $0x258] sm:$0xf0] }
 0x63d   : > { %13754 = vmatprep.mubr.msk.bf16.mxu0 %vm394_vm2, %v7344_v26  ;;  %v7155_v26 = vld [vmem:[#allocation2 + $0x200] sm:$0xf] }
 0x63e   : > { %v7367_v34 = vrot.slane %v7155_v26, 4 }
 0x640   : > { %v7368_v21 = vsel %vm991_vm0, %v7365_v49, %v7367_v34  ;;  %v7390_v34 = vrot.slane %v17246_v38, 4 }
 0x644   : > { %13755 = vmatmul.mubr.msk.bf16.gmra.mrb[208].mxu0 %vm394_vm2, %v7346_v17  ;;  %v7369_v17 = vrot.slane %v7156_v6, 4 }
 0x645   : > { %13758 = vmatprep.mubr.msk.bf16.mxu0 %vm394_vm2, %v7348_v0  ;;  %v7370_v0 = vrot.slane %v17192_v12, 4 }
 0x647   : > { %v7371_v23 = vsel %vm991_vm0, %v7369_v17, %v7370_v0  ;;  %v7373_v19 = vsel %vm991_vm0, %v7370_v0, %v7372_v29  ;;  %v7392_v17 = vrot.slane %v17258_v43, 4 }
 0x64c   : > { %13759 = vmatmul.mubr.msk.bf16.gmra.mrb[212].mxu0 %vm394_vm2, %v7350_v9  ;;  %v7375_v9 = vsel %vm991_vm0, %v7372_v29, %v7374_v13 }
 0x64d   : > { %13762 = vmatprep.mubr.msk.bf16.mxu0 %vm394_vm2, %v7353_v52  ;;  %v7160_v52 = vld [vmem:[#allocation2 + $0x228] sm:$0xf] }
 0x64e   : > { %v7376_v44 = vrot.slane %v7160_v52, 4  ;;  %v9154_v52 = vld [vmem:[#allocation2 + $0x1d8] sm:$0xff] }
 0x650   : > { %v7377_v53 = vsel %vm991_vm0, %v7374_v13, %v7376_v44 }
 0x654   : > { %13763 = vmatmul.mubr.msk.bf16.gmra.mrb[216].mxu0 %vm394_vm2, %v7355_v28  ;;  %v7378_v28 = vrot.slane %v7161_v2, 4  ;;  %v9155_v2 = vld [vmem:[#allocation2 + $0x200] sm:$0xff] }
 0x655   : > { %13766 = vmatprep.mubr.msk.bf16.mxu0 %vm394_vm2, %v7357_v55  ;;  %v7379_v55 = vrot.slane %v17221_v36, 4 }
 0x657   : > { %v7380_v11 = vsel %vm991_vm0, %v7378_v28, %v7379_v55  ;;  %v7382_v8 = vsel %vm991_vm0, %v7379_v55, %v7381_v24 }
 0x65c   : > { %13767 = vmatmul.mubr.msk.bf16.gmra.mrb[220].mxu0 %vm394_vm2, %v7359_v46  ;;  %v7384_v46 = vsel %vm991_vm0, %v7381_v24, %v7383_v5 }
 0x65d   : > { %13770 = vmatprep.mubr.msk.bf16.mxu0 %vm394_vm2, %v7362_v47  ;;  %v7165_v47 = vld [vmem:[#allocation2 + $0x250] sm:$0xf] }
 0x65e   : > { %v7385_v49 = vrot.slane %v7165_v47, 4 }
 0x660   : > { %v7386_v26 = vsel %vm991_vm0, %v7383_v5, %v7385_v49 }
 0x664   : > { %13771 = vmatmul.mubr.msk.bf16.gmra.mrb[224].mxu0 %vm394_vm2, %v7364_v32  ;;  %v7387_v32 = vrot.slane %v7166_v39, 4 }
 0x665   : > { %13774 = vmatprep.mubr.msk.bf16.mxu0 %vm394_vm2, %v7366_v33  ;;  %v7388_v33 = vrot.slane %v17249_v62, 4 }
 0x667   : > { %v7389_v6 = vsel %vm991_vm0, %v7387_v32, %v7388_v33  ;;  %v7391_v0 = vsel %vm991_vm0, %v7388_v33, %v7390_v34 }
 0x66c   : > { %13775 = vmatmul.mubr.msk.bf16.gmra.mrb[228].mxu0 %vm394_vm2, %v7368_v21  ;;  %v7393_v21 = vsel %vm991_vm0, %v7390_v34, %v7392_v17 }
 0x66d   : > { %13778 = vmatprep.mubr.msk.bf16.mxu0 %vm394_vm2, %v7371_v23  ;;  %v7170_v23 = vld [vmem:[#allocation2 + $0x278] sm:$0xf] }
 0x66e   : > { %v7394_v29 = vrot.slane %v7170_v23, 4 }
 0x670   : > { %v7395_v13 = vsel %vm991_vm0, %v7392_v17, %v7394_v29 }
 0x674   : > { %13779 = vmatmul.mubr.msk.bf16.gmra.mrb[232].mxu0 %vm394_vm2, %v7373_v19  ;;  %v9143_v19 = vld [vmem:[#allocation2 + $0x20] sm:$0xff] }
 0x675   : > { %13782 = vmatprep.mubr.msk.bf16.mxu0 %vm394_vm2, %v7375_v9  ;;  %v9144_v9 = vld [vmem:[#allocation2 + $0x48] sm:$0xff] }
 0x67c   : > { %13783 = vmatmul.mubr.msk.bf16.gmra.mrb[236].mxu0 %vm394_vm2, %v7377_v53  ;;  %v9156_v53 = vld [vmem:[#allocation2 + $0x228] sm:$0xff] }
 0x67d   : > { %13786 = vmatprep.mubr.msk.bf16.mxu0 %vm394_vm2, %v7380_v11 }
 0x684   : > { %13787 = vmatmul.mubr.msk.bf16.gmra.mrb[240].mxu0 %vm394_vm2, %v7382_v8 }
 0x685   : > { %13790 = vmatprep.mubr.msk.bf16.mxu0 %vm394_vm2, %v7384_v46 }
 0x68c   : > { %13791 = vmatmul.mubr.msk.bf16.gmra.mrb[244].mxu0 %vm394_vm2, %v7386_v26 }
 0x68d   : > { %13794 = vmatprep.mubr.msk.bf16.mxu0 %vm394_vm2, %v7389_v6 }
 0x694   : > { %13795 = vmatmul.mubr.msk.bf16.gmra.mrb[248].mxu0 %vm394_vm2, %v7391_v0 }
 0x695   : > { %13798 = vmatprep.mubr.msk.bf16.mxu0 %vm394_vm2, %v7393_v21 }
 0x69c   : > { %13799 = vmatmul.mubr.msk.bf16.gmra.mrb[252].mxu0 %vm394_vm2, %v7395_v13 }
 0x69d   : > { %13810 = vmatprep.mubr.msk.bf16.mxu0 %vm394_vm2, %v17261_v51  ;;  %v9145_v51 = vld [vmem:[#allocation2 + $0x70] sm:$0xff] }
 0x6a4   : > { %13811 = vmatmul.mubr.msk.bf16.vlgmr.msra.gmra.mrb[128].mxu0 %vm394_vm2, %v17270_v4  ;;  %v9146_v4 = vld [vmem:[#allocation2 + $0x98] sm:$0xff] }
 0x6a5   : > { %13814 = vmatprep.mubr.msk.bf16.mxu0 %vm394_vm2, %v17273_v31  ;;  %v14864_v31 = vld [vmem:[%s17932_s7 + $0x20] sm:$0xff]  }
 0x6a6   : > { %13938 = vmatprep.subr.bf16.mxu1 %v14864_v31 }
 0x6a7   : > { %13939 = vmatpush3.bf16.msra.mxu1 %v14864_v31 }
 0x6ac   : > { %13815 = vmatmul.mubr.msk.bf16.gmra.mrb[132].mxu0 %vm394_vm2, %v9143_v19 }
 0x6ad   : > { %13818 = vmatprep.mubr.msk.bf16.mxu0 %vm394_vm2, %v17287_v41  ;;  %v9147_v41 = vld [vmem:[#allocation2 + $0xc0] sm:$0xff] }
 0x6b4   : > { %13819 = vmatmul.mubr.msk.bf16.gmra.mrb[136].mxu0 %vm394_vm2, %v17294_v48  ;;  %v9148_v48 = vld [vmem:[#allocation2 + $0xe8] sm:$0xff] }
 0x6b5   : > { %13822 = vmatprep.mubr.msk.bf16.mxu0 %vm394_vm2, %v17297_v10  ;;  %v9149_v10 = vld [vmem:[#allocation2 + $0x110] sm:$0xff] }
 0x6bc   : > { %13823 = vmatmul.mubr.msk.bf16.gmra.mrb[140].mxu0 %vm394_vm2, %v9144_v9 }
 0x6bd   : > { %13826 = vmatprep.mubr.msk.bf16.mxu0 %vm394_vm2, %v17304_v18  ;;  %v9150_v18 = vld [vmem:[#allocation2 + $0x138] sm:$0xff] }
 0x6c4   : > { %13827 = vmatmul.mubr.msk.bf16.gmra.mrb[144].mxu0 %vm394_vm2, %v17311_v59  ;;  %v14966_v59 = vld [vmem:[#allocation2 + $0x148] sm:$0xff] }
 0x6c5   : > { %13830 = vmatprep.mubr.msk.bf16.mxu0 %vm394_vm2, %v17314_v57  ;;  %v14967_v57 = vld [vmem:[#allocation2 + $0x150] sm:$0xff] }
 0x6cc   : > { %13831 = vmatmul.mubr.msk.bf16.gmra.mrb[148].mxu0 %vm394_vm2, %v9145_v51 }
 0x6cd   : > { %13834 = vmatprep.mubr.msk.bf16.mxu0 %vm394_vm2, %v17321_v22  ;;  %v14968_v22 = vld [vmem:[#allocation2 + $0x158] sm:$0xff] }
 0x6d4   : > { %13835 = vmatmul.mubr.msk.bf16.gmra.mrb[152].mxu0 %vm394_vm2, %v17328_v37  ;;  %v9151_v37 = vld [vmem:[#allocation2 + $0x160] sm:$0xff] }
 0x6d5   : > { %13838 = vmatprep.mubr.msk.bf16.mxu0 %vm394_vm2, %v17331_v42  ;;  %v14969_v42 = vld [vmem:[#allocation2 + $0x170] sm:$0xff] }
 0x6dc   : > { %13839 = vmatmul.mubr.msk.bf16.gmra.mrb[156].mxu0 %vm394_vm2, %v9146_v4 }
 0x6dd   : > { %13842 = vmatprep.mubr.msk.bf16.mxu0 %vm394_vm2, %v17338_v16  ;;  %v14866_v16 = vld [vmem:[%s17932_s7 + $0x28] sm:$0xff]  }
 0x6de   : > { %13940 = vmatprep.subr.bf16.mxu1 %v14866_v16 }
 0x6df   : > { %13941 = vmatpush3.bf16.msra.mxu1 %v14866_v16 }
 0x6e4   : > { %13843 = vmatmul.mubr.msk.bf16.gmra.mrb[160].mxu0 %vm394_vm2, %v17348_v45  ;;  %v14970_v45 = vld [vmem:[#allocation2 + $0x178] sm:$0xff] }
 0x6e5   : > { %13846 = vmatprep.mubr.msk.bf16.mxu0 %vm394_vm2, %v17351_v61  ;;  %v14971_v61 = vld [vmem:[#allocation2 + $0x180] sm:$0xff] }
 0x6ec   : > { %13847 = vmatmul.mubr.msk.bf16.gmra.mrb[164].mxu0 %vm394_vm2, %v9147_v41 }
 0x6ed   : > { %13850 = vmatprep.mubr.msk.bf16.mxu0 %vm394_vm2, %v17358_v50  ;;  %v14867_v50 = vld [vmem:[%s17932_s7 + $0x30] sm:$0xff]  }
 0x6ee   : > { %13942 = vmatprep.subr.bf16.mxu1 %v14867_v50 }
 0x6ef   : > { %13943 = vmatpush3.bf16.msra.mxu1 %v14867_v50 }
 0x6f4   : > { %13851 = vmatmul.mubr.msk.bf16.gmra.mrb[168].mxu0 %vm394_vm2, %v17365_v40  ;;  %v9152_v40 = vld [vmem:[#allocation2 + $0x188] sm:$0xff] }
 0x6f5   : > { %13854 = vmatprep.mubr.msk.bf16.mxu0 %vm394_vm2, %v17368_v54  ;;  %v14972_v54 = vld [vmem:[#allocation2 + $0x198] sm:$0xff] }
 0x6fc   : > { %13855 = vmatmul.mubr.msk.bf16.gmra.mrb[172].mxu0 %vm394_vm2, %v9148_v48  ;;  %v9157_v48 = vld [vmem:[#allocation2 + $0x250] sm:$0xff] }
 0x6fd   : > { %13858 = vmatprep.mubr.msk.bf16.mxu0 %vm394_vm2, %v17375_v58  ;;  %v14868_v58 = vld [vmem:[%s17932_s7 + $0x38] sm:$0xff]  }
 0x6fe   : > { %13944 = vmatprep.subr.bf16.mxu1 %v14868_v58 }
 0x6ff   : > { %13945 = vmatpush3.bf16.msra.mxu1 %v14868_v58 }
 0x704   : > { %13859 = vmatmul.mubr.msk.bf16.gmra.mrb[176].mxu0 %vm394_vm2, %v17382_v20  ;;  %v14973_v20 = vld [vmem:[#allocation2 + $0x1a0] sm:$0xff] }
 0x705   : > { %13862 = vmatprep.mubr.msk.bf16.mxu0 %vm394_vm2, %v17385_v27  ;;  %v14974_v27 = vld [vmem:[#allocation2 + $0x1a8] sm:$0xff] }
 0x70c   : > { %13863 = vmatmul.mubr.msk.bf16.gmra.mrb[180].mxu0 %vm394_vm2, %v9149_v10 }
 0x70d   : > { %13866 = vmatprep.mubr.msk.bf16.mxu0 %vm394_vm2, %v17392_v15  ;;  %v9153_v15 = vld [vmem:[#allocation2 + $0x1b0] sm:$0xff] }
 0x714   : > { %13867 = vmatmul.mubr.msk.bf16.gmra.mrb[184].mxu0 %vm394_vm2, %v17399_v63  ;;  %v14975_v63 = vld [vmem:[#allocation2 + $0x1c0] sm:$0xff] }
 0x715   : > { %13870 = vmatprep.mubr.msk.bf16.mxu0 %vm394_vm2, %v17402_v60  ;;  %v14976_v60 = vld [vmem:[#allocation2 + $0x1c8] sm:$0xff] }
 0x71c   : > { %13871 = vmatmul.mubr.msk.bf16.gmra.mrb[188].mxu0 %vm394_vm2, %v9150_v18 }
 0x71d   : > { %13874 = vmatprep.mubr.msk.bf16.mxu0 %vm394_vm2, %v14966_v59 }
 0x724   : > { %13875 = vmatmul.mubr.msk.bf16.gmra.mrb[192].mxu0 %vm394_vm2, %v14967_v57 }
 0x725   : > { %13878 = vmatprep.mubr.msk.bf16.mxu0 %vm394_vm2, %v14968_v22 }
 0x72c   : > { %13879 = vmatmul.mubr.msk.bf16.gmra.mrb[196].mxu0 %vm394_vm2, %v9151_v37 }
 0x72d   : > { %13882 = vmatprep.mubr.msk.bf16.mxu0 %vm394_vm2, %v14969_v42 }
 0x734   : > { %13883 = vmatmul.mubr.msk.bf16.gmra.mrb[200].mxu0 %vm394_vm2, %v14970_v45 }
 0x735   : > { %13886 = vmatprep.mubr.msk.bf16.mxu0 %vm394_vm2, %v14971_v61 }
 0x73c   : > { %13887 = vmatmul.mubr.msk.bf16.gmra.mrb[204].mxu0 %vm394_vm2, %v9152_v40 }
 0x73d   : > { %13890 = vmatprep.mubr.msk.bf16.mxu0 %vm394_vm2, %v14972_v54 }
 0x744   : > { %13891 = vmatmul.mubr.msk.bf16.gmra.mrb[208].mxu0 %vm394_vm2, %v14973_v20 }
 0x745   : > { %13894 = vmatprep.mubr.msk.bf16.mxu0 %vm394_vm2, %v14974_v27 }
 0x74c   : > { %13895 = vmatmul.mubr.msk.bf16.gmra.mrb[212].mxu0 %vm394_vm2, %v9153_v15 }
 0x74d   : > { %13898 = vmatprep.mubr.msk.bf16.mxu0 %vm394_vm2, %v14975_v63 }
 0x754   : > { %13899 = vmatmul.mubr.msk.bf16.gmra.mrb[216].mxu0 %vm394_vm2, %v14976_v60 }
 0x755   : > { %13902 = vmatprep.mubr.msk.bf16.mxu0 %vm394_vm2, %v17148_v7  ;;  %v17600_v7 = vld [vmem:[%s17931_s6] ss:$0 sm:$0xff] }
 0x75c   : > { %13903 = vmatmul.mubr.msk.bf16.gmra.mrb[220].mxu0 %vm394_vm2, %v9154_v52 }
 0x75d   : > { %13906 = vmatprep.mubr.msk.bf16.mxu0 %vm394_vm2, %v17163_v14 }
 0x764   : > { %13907 = vmatmul.mubr.msk.bf16.gmra.mrb[224].mxu0 %vm394_vm2, %v17159_v25 }
 0x765   : > { %13910 = vmatprep.mubr.msk.bf16.mxu0 %vm394_vm2, %v17177_v56 }
 0x76c   : > { %13911 = vmatmul.mubr.msk.bf16.gmra.mrb[228].mxu0 %vm394_vm2, %v9155_v2 }
 0x76d   : > { %13914 = vmatprep.mubr.msk.bf16.mxu0 %vm394_vm2, %v17192_v12 }
 0x774   : > { %13915 = vmatmul.mubr.msk.bf16.gmra.mrb[232].mxu0 %vm394_vm2, %v17188_v35 }
 0x775   : > { %13918 = vmatprep.mubr.msk.bf16.mxu0 %vm394_vm2, %v17206_v3 }
 0x777   : > { %v13812_v25 = vpop.f32.mrb[128].mxu0 }
 0x778   : > { %v10066_v14 = vadd.f32 %v13812_v25, %v17600_v7  ;;  %v9418_v56 = vpop.f32.mrb[129].mxu0 }
 0x779   : > { %v10064_v44 = vadd.f32 %v17600_v7, %v9418_v56  ;;  %v13813_v28 = vpop.f32.mrb[130].mxu0 }
 0x77a   : > { %v10067_v12 = vadd.f32 %v13813_v28, %v17600_v7  ;;  %v9421_v55 = vpop.f32.mrb[131].mxu0  ;;  %v10194_v11 = vmax.f32 %v10066_v14, 0.0  ;;  %v9158_v28 = vld [vmem:[#allocation2 + $0x278] sm:$0xff] }
 0x77b   : > { %v10065_v35 = vadd.f32 %v17600_v7, %v9421_v55  ;;  %v10192_v24 = vmax.f32 %v10064_v44, 0.0 }
 0x77c   : > { %v10195_v3 = vmax.f32 %v10067_v12, 0.0  ;;  %13919 = vmatmul.mubr.msk.bf16.gmra.mrb[236].mxu0 %vm394_vm2, %v9156_v53 }
 0x77d   : > { %v10193_v5 = vmax.f32 %v10065_v35, 0.0  ;;  %13922 = vmatprep.mubr.msk.bf16.mxu0 %vm394_vm2, %v17221_v36 }
 0x77e   : > { %v10321_v8 = vpack.c.bf16 %v10195_v3, %v10194_v11 }
 0x77f   : > { %v10320_v46 = vpack.c.bf16 %v10193_v5, %v10192_v24  ;;  %v13816_v47 = vpop.f32.mrb[132].mxu0 }
 0x780   : > { %10385 = vst.msk [vmem:[#allocation2 + $0x10] sm:$0xff] %vm394_vm2, %v10321_v8  ;;  %v10070_v39 = vadd.f32 %v13816_v47, %v17600_v7  ;;  %v9434_v49 = vpop.f32.mrb[133].mxu0 }
 0x781   : > { %10384 = vst.msk [vmem:[#allocation2 + $0x8] sm:$0xff] %vm394_vm2, %v10320_v46  ;;  %v10068_v32 = vadd.f32 %v17600_v7, %v9434_v49  ;;  %v13817_v33 = vpop.f32.mrb[134].mxu0 }
 0x782   : > { %v10071_v26 = vadd.f32 %v13817_v33, %v17600_v7  ;;  %v9437_v6 = vpop.f32.mrb[135].mxu0  ;;  %v10198_v17 = vmax.f32 %v10070_v39, 0.0 }
 0x783   : > { %v10069_v34 = vadd.f32 %v17600_v7, %v9437_v6  ;;  %v10196_v0 = vmax.f32 %v10068_v32, 0.0 }
 0x784   : > { %v10199_v36 = vmax.f32 %v10071_v26, 0.0  ;;  %13923 = vmatmul.mubr.msk.bf16.gmra.mrb[240].mxu0 %vm394_vm2, %v17217_v30 }
 0x785   : > { %v10197_v21 = vmax.f32 %v10069_v34, 0.0  ;;  %13926 = vmatprep.mubr.msk.bf16.mxu0 %vm394_vm2, %v17235_v1 }
 0x786   : > { %v10323_v23 = vpack.c.bf16 %v10199_v36, %v10198_v17 }
 0x787   : > { %v10322_v29 = vpack.c.bf16 %v10197_v21, %v10196_v0  ;;  %v13820_v13 = vpop.f32.mrb[136].mxu0 }
 0x788   : > { %10387 = vst.msk [vmem:[#allocation2 + $0x20] sm:$0xff] %vm394_vm2, %v10323_v23  ;;  %v10074_v19 = vadd.f32 %v13820_v13, %v17600_v7  ;;  %v9450_v9 = vpop.f32.mrb[137].mxu0 }
 0x789   : > { %10386 = vst.msk [vmem:[#allocation2 + $0x18] sm:$0xff] %vm394_vm2, %v10322_v29  ;;  %v10072_v51 = vadd.f32 %v17600_v7, %v9450_v9  ;;  %v13821_v4 = vpop.f32.mrb[138].mxu0 }
 0x78a   : > { %v10075_v30 = vadd.f32 %v13821_v4, %v17600_v7  ;;  %v9453_v31 = vpop.f32.mrb[139].mxu0  ;;  %v10202_v1 = vmax.f32 %v10074_v19, 0.0 }
 0x78b   : > { %v10073_v41 = vadd.f32 %v17600_v7, %v9453_v31  ;;  %v10200_v18 = vmax.f32 %v10072_v51, 0.0 }
 0x78c   : > { %v10203_v10 = vmax.f32 %v10075_v30, 0.0  ;;  %13927 = vmatmul.mubr.msk.bf16.gmra.mrb[244].mxu0 %vm394_vm2, %v9157_v48 }
 0x78d   : > { %v10201_v59 = vmax.f32 %v10073_v41, 0.0  ;;  %13930 = vmatprep.mubr.msk.bf16.mxu0 %vm394_vm2, %v17249_v62 }
 0x78e   : > { %v10325_v57 = vpack.c.bf16 %v10203_v10, %v10202_v1 }
 0x78f   : > { %v10324_v22 = vpack.c.bf16 %v10201_v59, %v10200_v18  ;;  %v13824_v37 = vpop.f32.mrb[140].mxu0 }
 0x790   : > { %10389 = vst.msk [vmem:[#allocation2 + $0x38] sm:$0xff] %vm394_vm2, %v10325_v57  ;;  %v10078_v42 = vadd.f32 %v13824_v37, %v17600_v7  ;;  %v9466_v16 = vpop.f32.mrb[141].mxu0 }
 0x791   : > { %10388 = vst.msk [vmem:[#allocation2 + $0x30] sm:$0xff] %vm394_vm2, %v10324_v22  ;;  %v10076_v45 = vadd.f32 %v17600_v7, %v9466_v16  ;;  %v13825_v61 = vpop.f32.mrb[142].mxu0 }
 0x792   : > { %v10079_v50 = vadd.f32 %v13825_v61, %v17600_v7  ;;  %v9469_v40 = vpop.f32.mrb[143].mxu0  ;;  %v10206_v58 = vmax.f32 %v10078_v42, 0.0 }
 0x793   : > { %v10077_v54 = vadd.f32 %v17600_v7, %v9469_v40  ;;  %v10204_v20 = vmax.f32 %v10076_v45, 0.0 }
 0x794   : > { %v10207_v62 = vmax.f32 %v10079_v50, 0.0  ;;  %13931 = vmatmul.mubr.msk.bf16.gmra.mrb[248].mxu0 %vm394_vm2, %v17246_v38 }
 0x795   : > { %v10205_v27 = vmax.f32 %v10077_v54, 0.0  ;;  %13934 = vmatprep.mubr.msk.bf16.mxu0 %vm394_vm2, %v17258_v43 }
 0x796   : > { %v10327_v15 = vpack.c.bf16 %v10207_v62, %v10206_v58 }
 0x797   : > { %v10326_v63 = vpack.c.bf16 %v10205_v27, %v10204_v20  ;;  %v13828_v60 = vpop.f32.mrb[144].mxu0 }
 0x798   : > { %10391 = vst.msk [vmem:[#allocation2 + $0x48] sm:$0xff] %vm394_vm2, %v10327_v15  ;;  %v10082_v52 = vadd.f32 %v13828_v60, %v17600_v7  ;;  %v9482_v2 = vpop.f32.mrb[145].mxu0 }
 0x799   : > { %10390 = vst.msk [vmem:[#allocation2 + $0x40] sm:$0xff] %vm394_vm2, %v10326_v63  ;;  %v10080_v25 = vadd.f32 %v17600_v7, %v9482_v2  ;;  %v13829_v14 = vpop.f32.mrb[146].mxu0 }
 0x79a   : > { %v10083_v38 = vadd.f32 %v13829_v14, %v17600_v7  ;;  %v9485_v56 = vpop.f32.mrb[147].mxu0  ;;  %v10210_v43 = vmax.f32 %v10082_v52, 0.0 }
 0x79b   : > { %v10081_v44 = vadd.f32 %v17600_v7, %v9485_v56  ;;  %v10208_v55 = vmax.f32 %v10080_v25, 0.0 }
 0x79c   : > { %v10211_v12 = vmax.f32 %v10083_v38, 0.0  ;;  %13935 = vmatmul.mubr.msk.bf16.gmra.mrb[252].mxu0 %vm394_vm2, %v9158_v28 }
 0x79d   : > { %v10209_v35 = vmax.f32 %v10081_v44, 0.0 }
 0x79e   : > { %v10329_v53 = vpack.c.bf16 %v10211_v12, %v10210_v43 }
 0x79f   : > { %v10328_v11 = vpack.c.bf16 %v10209_v35, %v10208_v55  ;;  %v13832_v3 = vpop.f32.mrb[148].mxu0  ;;  %v14865_v24 = vld [vmem:[#allocation2 + $0x20] ss:$40 sps:$4 sm:$0xff]  }
 0x7a0   : > { %10393 = vst.msk [vmem:[#allocation2 + $0x60] sm:$0xff] %vm394_vm2, %v10329_v53  ;;  %v10086_v5 = vadd.f32 %v13832_v3, %v17600_v7  ;;  %v9498_v8 = vpop.f32.mrb[149].mxu0  ;;  %13946 = vmatprep.mubr.msk.bf16.mxu1 %vm394_vm2, %v14865_v24 }
 0x7a1   : > { %10392 = vst.msk [vmem:[#allocation2 + $0x58] sm:$0xff] %vm394_vm2, %v10328_v11  ;;  %v10084_v46 = vadd.f32 %v17600_v7, %v9498_v8  ;;  %v13833_v47 = vpop.f32.mrb[150].mxu0 }
 0x7a2   : > { %v10087_v39 = vadd.f32 %v13833_v47, %v17600_v7  ;;  %v9501_v49 = vpop.f32.mrb[151].mxu0  ;;  %v10214_v33 = vmax.f32 %v10086_v5, 0.0 }
 0x7a3   : > { %v10085_v32 = vadd.f32 %v17600_v7, %v9501_v49  ;;  %v10212_v6 = vmax.f32 %v10084_v46, 0.0 }
 0x7a4   : > { %v10215_v26 = vmax.f32 %v10087_v39, 0.0 }
 0x7a5   : > { %v10213_v34 = vmax.f32 %v10085_v32, 0.0 }
 0x7a6   : > { %v10331_v17 = vpack.c.bf16 %v10215_v26, %v10214_v33 }
 0x7a7   : > { %v10330_v36 = vpack.c.bf16 %v10213_v34, %v10212_v6  ;;  %v13836_v0 = vpop.f32.mrb[152].mxu0 }
 0x7a8   : > { %10395 = vst.msk [vmem:[#allocation2 + $0x70] sm:$0xff] %vm394_vm2, %v10331_v17  ;;  %v10090_v21 = vadd.f32 %v13836_v0, %v17600_v7  ;;  %v9514_v23 = vpop.f32.mrb[153].mxu0 }
 0x7a9   : > { %10394 = vst.msk [vmem:[#allocation2 + $0x68] sm:$0xff] %vm394_vm2, %v10330_v36  ;;  %v10088_v29 = vadd.f32 %v17600_v7, %v9514_v23  ;;  %v13837_v13 = vpop.f32.mrb[154].mxu0 }
 0x7aa   : > { %v10091_v19 = vadd.f32 %v13837_v13, %v17600_v7  ;;  %v9517_v9 = vpop.f32.mrb[155].mxu0  ;;  %v10218_v4 = vmax.f32 %v10090_v21, 0.0 }
 0x7ab   : > { %v10089_v51 = vadd.f32 %v17600_v7, %v9517_v9  ;;  %v10216_v31 = vmax.f32 %v10088_v29, 0.0 }
 0x7ac   : > { %v10219_v30 = vmax.f32 %v10091_v19, 0.0 }
 0x7ad   : > { %v10217_v41 = vmax.f32 %v10089_v51, 0.0 }
 0x7ae   : > { %v10333_v48 = vpack.c.bf16 %v10219_v30, %v10218_v4 }
 0x7af   : > { %v10332_v1 = vpack.c.bf16 %v10217_v41, %v10216_v31  ;;  %v13840_v10 = vpop.f32.mrb[156].mxu0 }
 0x7b0   : > { %10397 = vst.msk [vmem:[#allocation2 + $0x88] sm:$0xff] %vm394_vm2, %v10333_v48  ;;  %v10094_v18 = vadd.f32 %v13840_v10, %v17600_v7  ;;  %v9530_v59 = vpop.f32.mrb[157].mxu0 }
 0x7b1   : > { %10396 = vst.msk [vmem:[#allocation2 + $0x80] sm:$0xff] %vm394_vm2, %v10332_v1  ;;  %v10092_v57 = vadd.f32 %v17600_v7, %v9530_v59  ;;  %v13841_v22 = vpop.f32.mrb[158].mxu0 }
 0x7b2   : > { %v10095_v37 = vadd.f32 %v13841_v22, %v17600_v7  ;;  %v9533_v42 = vpop.f32.mrb[159].mxu0  ;;  %v10222_v45 = vmax.f32 %v10094_v18, 0.0 }
 0x7b3   : > { %v10093_v16 = vadd.f32 %v17600_v7, %v9533_v42  ;;  %v10220_v50 = vmax.f32 %v10092_v57, 0.0 }
 0x7b4   : > { %v10223_v61 = vmax.f32 %v10095_v37, 0.0 }
 0x7b5   : > { %v10221_v40 = vmax.f32 %v10093_v16, 0.0 }
 0x7b6   : > { %v10335_v54 = vpack.c.bf16 %v10223_v61, %v10222_v45 }
 0x7b7   : > { %v10334_v58 = vpack.c.bf16 %v10221_v40, %v10220_v50  ;;  %v13844_v62 = vpop.f32.mrb[160].mxu0 }
 0x7b8   : > { %10399 = vst.msk [vmem:[#allocation2 + $0x98] sm:$0xff] %vm394_vm2, %v10335_v54  ;;  %v10098_v20 = vadd.f32 %v13844_v62, %v17600_v7  ;;  %v9546_v27 = vpop.f32.mrb[161].mxu0 }
 0x7b9   : > { %10398 = vst.msk [vmem:[#allocation2 + $0x90] sm:$0xff] %vm394_vm2, %v10334_v58  ;;  %v10096_v15 = vadd.f32 %v17600_v7, %v9546_v27  ;;  %v13845_v63 = vpop.f32.mrb[162].mxu0 }
 0x7ba   : > { %v10099_v60 = vadd.f32 %v13845_v63, %v17600_v7  ;;  %v9549_v52 = vpop.f32.mrb[163].mxu0  ;;  %v10226_v25 = vmax.f32 %v10098_v20, 0.0 }
 0x7bb   : > { %v10097_v2 = vadd.f32 %v17600_v7, %v9549_v52  ;;  %v10224_v38 = vmax.f32 %v10096_v15, 0.0 }
 0x7bc   : > { %v10227_v14 = vmax.f32 %v10099_v60, 0.0 }
 0x7bd   : > { %v10225_v56 = vmax.f32 %v10097_v2, 0.0 }
 0x7be   : > { %v10337_v44 = vpack.c.bf16 %v10227_v14, %v10226_v25 }
 0x7bf   : > { %v10336_v28 = vpack.c.bf16 %v10225_v56, %v10224_v38  ;;  %v13848_v43 = vpop.f32.mrb[164].mxu0  ;;  %v14869_v12 = vld [vmem:[#allocation2 + $0x70] ss:$40 sps:$4 sm:$0xff]  }
 0x7c0   : > { %10401 = vst.msk [vmem:[#allocation2 + $0xb0] sm:$0xff] %vm394_vm2, %v10337_v44  ;;  %v10102_v55 = vadd.f32 %v13848_v43, %v17600_v7  ;;  %v9562_v35 = vpop.f32.mrb[165].mxu0  ;;  %13947 = vmatmul.mubr.msk.bf16.vlgmr.msra.gmra.mrb[0].mxu1 %vm394_vm2, %v14869_v12 }
 0x7c1   : > { %10400 = vst.msk [vmem:[#allocation2 + $0xa8] sm:$0xff] %vm394_vm2, %v10336_v28  ;;  %v10100_v53 = vadd.f32 %v17600_v7, %v9562_v35  ;;  %v13849_v11 = vpop.f32.mrb[166].mxu0 }
 0x7c2   : > { %v10103_v3 = vadd.f32 %v13849_v11, %v17600_v7  ;;  %v9565_v24 = vpop.f32.mrb[167].mxu0  ;;  %v10230_v8 = vmax.f32 %v10102_v55, 0.0 }
 0x7c3   : > { %v10101_v5 = vadd.f32 %v17600_v7, %v9565_v24  ;;  %v10228_v47 = vmax.f32 %v10100_v53, 0.0 }
 0x7c4   : > { %v10231_v46 = vmax.f32 %v10103_v3, 0.0 }
 0x7c5   : > { %v10229_v39 = vmax.f32 %v10101_v5, 0.0 }
 0x7c6   : > { %v10339_v49 = vpack.c.bf16 %v10231_v46, %v10230_v8 }
 0x7c7   : > { %v10338_v32 = vpack.c.bf16 %v10229_v39, %v10228_v47  ;;  %v13852_v33 = vpop.f32.mrb[168].mxu0 }
 0x7c8   : > { %10403 = vst.msk [vmem:[#allocation2 + $0xc0] sm:$0xff] %vm394_vm2, %v10339_v49  ;;  %v10106_v26 = vadd.f32 %v13852_v33, %v17600_v7  ;;  %v9578_v6 = vpop.f32.mrb[169].mxu0 }
 0x7c9   : > { %10402 = vst.msk [vmem:[#allocation2 + $0xb8] sm:$0xff] %vm394_vm2, %v10338_v32  ;;  %v10104_v34 = vadd.f32 %v17600_v7, %v9578_v6  ;;  %v13853_v17 = vpop.f32.mrb[170].mxu0 }
 0x7ca   : > { %v10107_v36 = vadd.f32 %v13853_v17, %v17600_v7  ;;  %v9581_v0 = vpop.f32.mrb[171].mxu0  ;;  %v10234_v23 = vmax.f32 %v10106_v26, 0.0 }
 0x7cb   : > { %v10105_v21 = vadd.f32 %v17600_v7, %v9581_v0  ;;  %v10232_v13 = vmax.f32 %v10104_v34, 0.0 }
 0x7cc   : > { %v10235_v29 = vmax.f32 %v10107_v36, 0.0 }
 0x7cd   : > { %v10233_v19 = vmax.f32 %v10105_v21, 0.0 }
 0x7ce   : > { %v10341_v9 = vpack.c.bf16 %v10235_v29, %v10234_v23 }
 0x7cf   : > { %v10340_v51 = vpack.c.bf16 %v10233_v19, %v10232_v13  ;;  %v13856_v4 = vpop.f32.mrb[172].mxu0  ;;  %v14875_v19 = vld [vmem:[%s17932_s7] sm:$0xff]  }
 0x7d0   : > { %10405 = vst.msk [vmem:[#allocation2 + $0xd8] sm:$0xff] %vm394_vm2, %v10341_v9  ;;  %v10110_v30 = vadd.f32 %v13856_v4, %v17600_v7  ;;  %v9594_v31 = vpop.f32.mrb[173].mxu0  ;;  %13962 = vmatprep.subr.bf16.mxu1 %v14875_v19 }
 0x7d1   : > { %10404 = vst.msk [vmem:[#allocation2 + $0xd0] sm:$0xff] %vm394_vm2, %v10340_v51  ;;  %v10108_v41 = vadd.f32 %v17600_v7, %v9594_v31  ;;  %v13857_v48 = vpop.f32.mrb[174].mxu0  ;;  %13963 = vmatpush3.bf16.msra.mxu1 %v14875_v19 }
 0x7d2   : > { %v10111_v1 = vadd.f32 %v13857_v48, %v17600_v7  ;;  %v9597_v10 = vpop.f32.mrb[175].mxu0  ;;  %v10238_v59 = vmax.f32 %v10110_v30, 0.0 }
 0x7d3   : > { %v10109_v18 = vadd.f32 %v17600_v7, %v9597_v10  ;;  %v10236_v22 = vmax.f32 %v10108_v41, 0.0 }
 0x7d4   : > { %v10239_v57 = vmax.f32 %v10111_v1, 0.0 }
 0x7d5   : > { %v10237_v37 = vmax.f32 %v10109_v18, 0.0 }
 0x7d6   : > { %v10343_v42 = vpack.c.bf16 %v10239_v57, %v10238_v59 }
 0x7d7   : > { %v10342_v16 = vpack.c.bf16 %v10237_v37, %v10236_v22  ;;  %v13860_v45 = vpop.f32.mrb[176].mxu0 }
 0x7d8   : > { %10407 = vst.msk [vmem:[#allocation2 + $0xe8] sm:$0xff] %vm394_vm2, %v10343_v42  ;;  %v10114_v61 = vadd.f32 %v13860_v45, %v17600_v7  ;;  %v9610_v50 = vpop.f32.mrb[177].mxu0  ;;  %v14876_v42 = vld [vmem:[%s17932_s7 + $0x8] sm:$0xff]  }
 0x7d9   : > { %10406 = vst.msk [vmem:[#allocation2 + $0xe0] sm:$0xff] %vm394_vm2, %v10342_v16  ;;  %v10112_v40 = vadd.f32 %v17600_v7, %v9610_v50  ;;  %v13861_v54 = vpop.f32.mrb[178].mxu0  ;;  %13964 = vmatprep.subr.bf16.mxu1 %v14876_v42 }
 0x7da   : > { %v10115_v58 = vadd.f32 %v13861_v54, %v17600_v7  ;;  %v9613_v62 = vpop.f32.mrb[179].mxu0  ;;  %v10242_v27 = vmax.f32 %v10114_v61, 0.0  ;;  %v14877_v61 = vld [vmem:[%s17932_s7 + $0x10] sm:$0xff]   ;;  %13965 = vmatpush3.bf16.msra.mxu1 %v14876_v42 }
 0x7db   : > { %v10113_v20 = vadd.f32 %v17600_v7, %v9613_v62  ;;  %v10240_v63 = vmax.f32 %v10112_v40, 0.0  ;;  %13966 = vmatprep.subr.bf16.mxu1 %v14877_v61 }
 0x7dc   : > { %v10243_v15 = vmax.f32 %v10115_v58, 0.0 }
 0x7dd   : > { %v10241_v60 = vmax.f32 %v10113_v20, 0.0  ;;  %v14878_v20 = vld [vmem:[%s17932_s7 + $0x18] sm:$0xff]  }
 0x7de   : > { %v10345_v52 = vpack.c.bf16 %v10243_v15, %v10242_v27  ;;  %13967 = vmatpush3.bf16.msra.mxu1 %v14877_v61 }
 0x7df   : > { %v10344_v2 = vpack.c.bf16 %v10241_v60, %v10240_v63  ;;  %v13864_v25 = vpop.f32.mrb[180].mxu0  ;;  %v14870_v14 = vld [vmem:[#allocation2 + $0xc0] ss:$40 sps:$4 sm:$0xff]   ;;  %13968 = vmatprep.subr.bf16.mxu1 %v14878_v20 }
 0x7e0   : > { %10409 = vst.msk [vmem:[#allocation2 + $0x100] sm:$0xff] %vm394_vm2, %v10345_v52  ;;  %v10118_v38 = vadd.f32 %v13864_v25, %v17600_v7  ;;  %v9626_v56 = vpop.f32.mrb[181].mxu0  ;;  %13950 = vmatprep.mubr.msk.bf16.mxu1 %vm394_vm2, %v14870_v14 }
 0x7e1   : > { %10408 = vst.msk [vmem:[#allocation2 + $0xf8] sm:$0xff] %vm394_vm2, %v10344_v2  ;;  %v10116_v44 = vadd.f32 %v17600_v7, %v9626_v56  ;;  %v13865_v28 = vpop.f32.mrb[182].mxu0 }
 0x7e2   : > { %v10119_v43 = vadd.f32 %v13865_v28, %v17600_v7  ;;  %v9629_v12 = vpop.f32.mrb[183].mxu0  ;;  %v10246_v35 = vmax.f32 %v10118_v38, 0.0  ;;  %13969 = vmatpush3.bf16.msra.mxu1 %v14878_v20 }
 0x7e3   : > { %v10117_v55 = vadd.f32 %v17600_v7, %v9629_v12  ;;  %v10244_v11 = vmax.f32 %v10116_v44, 0.0 }
 0x7e4   : > { %v10247_v53 = vmax.f32 %v10119_v43, 0.0  ;;  %v17741_v43 = vld [vmem:[%s17932_s7 + $0x40] sm:$0xff]  }
 0x7e5   : > { %v10245_v3 = vmax.f32 %v10117_v55, 0.0  ;;  %13986 = vmatprep.subr.bf16.mxu1 %v17741_v43 }
 0x7e6   : > { %v10347_v24 = vpack.c.bf16 %v10247_v53, %v10246_v35 }
 0x7e7   : > { %v10346_v5 = vpack.c.bf16 %v10245_v3, %v10244_v11  ;;  %v13868_v8 = vpop.f32.mrb[184].mxu0 }
 0x7e8   : > { %10411 = vst.msk [vmem:[#allocation2 + $0x110] sm:$0xff] %vm394_vm2, %v10347_v24  ;;  %v10122_v46 = vadd.f32 %v13868_v8, %v17600_v7  ;;  %v9642_v47 = vpop.f32.mrb[185].mxu0 }
 0x7e9   : > { %10410 = vst.msk [vmem:[#allocation2 + $0x108] sm:$0xff] %vm394_vm2, %v10346_v5  ;;  %v10120_v39 = vadd.f32 %v17600_v7, %v9642_v47  ;;  %v13869_v49 = vpop.f32.mrb[186].mxu0 }
 0x7ea   : > { %v10123_v32 = vadd.f32 %v13869_v49, %v17600_v7  ;;  %v9645_v33 = vpop.f32.mrb[187].mxu0  ;;  %v10250_v6 = vmax.f32 %v10122_v46, 0.0 }
 0x7eb   : > { %v10121_v26 = vadd.f32 %v17600_v7, %v9645_v33  ;;  %v10248_v17 = vmax.f32 %v10120_v39, 0.0 }
 0x7ec   : > { %v10251_v34 = vmax.f32 %v10123_v32, 0.0 }
 0x7ed   : > { %v10249_v36 = vmax.f32 %v10121_v26, 0.0 }
 0x7ee   : > { %v10349_v0 = vpack.c.bf16 %v10251_v34, %v10250_v6 }
 0x7ef   : > { %v10348_v21 = vpack.c.bf16 %v10249_v36, %v10248_v17  ;;  %v13872_v23 = vpop.f32.mrb[188].mxu0 }
 0x7f0   : > { %10413 = vst.msk [vmem:[#allocation2 + $0x128] sm:$0xff] %vm394_vm2, %v10349_v0  ;;  %v10126_v29 = vadd.f32 %v13872_v23, %v17600_v7  ;;  %v9658_v13 = vpop.f32.mrb[189].mxu0 }
 0x7f1   : > { %10412 = vst.msk [vmem:[#allocation2 + $0x120] sm:$0xff] %vm394_vm2, %v10348_v21  ;;  %v10124_v9 = vadd.f32 %v17600_v7, %v9658_v13  ;;  %v13873_v51 = vpop.f32.mrb[190].mxu0 }
 0x7f2   : > { %v10127_v4 = vadd.f32 %v13873_v51, %v17600_v7  ;;  %v9661_v30 = vpop.f32.mrb[191].mxu0  ;;  %v10254_v41 = vmax.f32 %v10126_v29, 0.0 }
 0x7f3   : > { %v10125_v31 = vadd.f32 %v17600_v7, %v9661_v30  ;;  %v10252_v1 = vmax.f32 %v10124_v9, 0.0 }
 0x7f4   : > { %v10255_v48 = vmax.f32 %v10127_v4, 0.0 }
 0x7f5   : > { %v10253_v10 = vmax.f32 %v10125_v31, 0.0 }
 0x7f6   : > { %v10351_v18 = vpack.c.bf16 %v10255_v48, %v10254_v41 }
 0x7f7   : > { %v10350_v59 = vpack.c.bf16 %v10253_v10, %v10252_v1  ;;  %v13876_v57 = vpop.f32.mrb[192].mxu0 }
 0x7f8   : > { %10415 = vst.msk [vmem:[#allocation2 + $0x138] sm:$0xff] %vm394_vm2, %v10351_v18  ;;  %v10130_v22 = vadd.f32 %v13876_v57, %v17600_v7  ;;  %v9674_v37 = vpop.f32.mrb[193].mxu0 }
 0x7f9   : > { %10414 = vst.msk [vmem:[#allocation2 + $0x130] sm:$0xff] %vm394_vm2, %v10350_v59  ;;  %v10128_v16 = vadd.f32 %v17600_v7, %v9674_v37  ;;  %v13877_v45 = vpop.f32.mrb[194].mxu0 }
 0x7fa   : > { %v10131_v50 = vadd.f32 %v13877_v45, %v17600_v7  ;;  %v9677_v40 = vpop.f32.mrb[195].mxu0  ;;  %v10258_v58 = vmax.f32 %v10130_v22, 0.0 }
 0x7fb   : > { %v10129_v54 = vadd.f32 %v17600_v7, %v9677_v40  ;;  %v10256_v27 = vmax.f32 %v10128_v16, 0.0 }
 0x7fc   : > { %v10259_v62 = vmax.f32 %v10131_v50, 0.0 }
 0x7fd   : > { %v10257_v15 = vmax.f32 %v10129_v54, 0.0 }
 0x7fe   : > { %v10353_v63 = vpack.c.bf16 %v10259_v62, %v10258_v58 }
 0x7ff   : > { %v10352_v60 = vpack.c.bf16 %v10257_v15, %v10256_v27  ;;  %v13880_v52 = vpop.f32.mrb[196].mxu0  ;;  %v14871_v2 = vld [vmem:[#allocation2 + $0x110] ss:$40 sps:$4 sm:$0xff]  }
 0x800   : > { %10417 = vst.msk [vmem:[#allocation2 + $0x150] sm:$0xff] %vm394_vm2, %v10353_v63  ;;  %v10134_v25 = vadd.f32 %v13880_v52, %v17600_v7  ;;  %v9690_v14 = vpop.f32.mrb[197].mxu0  ;;  %13951 = vmatmul.mubr.msk.bf16.gmra.mrb[4].mxu1 %vm394_vm2, %v14871_v2 }
 0x801   : > { %10416 = vst.msk [vmem:[#allocation2 + $0x148] sm:$0xff] %vm394_vm2, %v10352_v60  ;;  %v10132_v38 = vadd.f32 %v17600_v7, %v9690_v14  ;;  %v13881_v56 = vpop.f32.mrb[198].mxu0 }
 0x802   : > { %v10135_v44 = vadd.f32 %v13881_v56, %v17600_v7  ;;  %v9693_v28 = vpop.f32.mrb[199].mxu0  ;;  %v10262_v55 = vmax.f32 %v10134_v25, 0.0 }
 0x803   : > { %v10133_v12 = vadd.f32 %v17600_v7, %v9693_v28  ;;  %v10260_v53 = vmax.f32 %v10132_v38, 0.0 }
 0x804   : > { %v10263_v35 = vmax.f32 %v10135_v44, 0.0 }
 0x805   : > { %v10261_v11 = vmax.f32 %v10133_v12, 0.0 }
 0x806   : > { %v10355_v3 = vpack.c.bf16 %v10263_v35, %v10262_v55 }
 0x807   : > { %v10354_v24 = vpack.c.bf16 %v10261_v11, %v10260_v53  ;;  %v13884_v5 = vpop.f32.mrb[200].mxu0 }
 0x808   : > { %10419 = vst.msk [vmem:[#allocation2 + $0x160] sm:$0xff] %vm394_vm2, %v10355_v3  ;;  %v10138_v8 = vadd.f32 %v13884_v5, %v17600_v7  ;;  %v9706_v46 = vpop.f32.mrb[201].mxu0 }
 0x809   : > { %10418 = vst.msk [vmem:[#allocation2 + $0x158] sm:$0xff] %vm394_vm2, %v10354_v24  ;;  %v10136_v47 = vadd.f32 %v17600_v7, %v9706_v46  ;;  %v13885_v39 = vpop.f32.mrb[202].mxu0 }
 0x80a   : > { %v10139_v49 = vadd.f32 %v13885_v39, %v17600_v7  ;;  %v9709_v32 = vpop.f32.mrb[203].mxu0  ;;  %v10266_v26 = vmax.f32 %v10138_v8, 0.0 }
 0x80b   : > { %v10137_v33 = vadd.f32 %v17600_v7, %v9709_v32  ;;  %v10264_v34 = vmax.f32 %v10136_v47, 0.0 }
 0x80c   : > { %v10267_v6 = vmax.f32 %v10139_v49, 0.0 }
 0x80d   : > { %v10265_v17 = vmax.f32 %v10137_v33, 0.0 }
 0x80e   : > { %v10357_v36 = vpack.c.bf16 %v10267_v6, %v10266_v26 }
 0x80f   : > { %v10356_v0 = vpack.c.bf16 %v10265_v17, %v10264_v34  ;;  %v13888_v21 = vpop.f32.mrb[204].mxu0 }
 0x810   : > { %10421 = vst.msk [vmem:[#allocation2 + $0x178] sm:$0xff] %vm394_vm2, %v10357_v36  ;;  %v10142_v23 = vadd.f32 %v13888_v21, %v17600_v7  ;;  %v9722_v29 = vpop.f32.mrb[205].mxu0 }
 0x811   : > { %10420 = vst.msk [vmem:[#allocation2 + $0x170] sm:$0xff] %vm394_vm2, %v10356_v0  ;;  %v10140_v13 = vadd.f32 %v17600_v7, %v9722_v29  ;;  %v13889_v19 = vpop.f32.mrb[206].mxu0 }
 0x812   : > { %v10143_v9 = vadd.f32 %v13889_v19, %v17600_v7  ;;  %v9725_v51 = vpop.f32.mrb[207].mxu0  ;;  %v10270_v30 = vmax.f32 %v10142_v23, 0.0 }
 0x813   : > { %v10141_v4 = vadd.f32 %v17600_v7, %v9725_v51  ;;  %v10268_v41 = vmax.f32 %v10140_v13, 0.0 }
 0x814   : > { %v10271_v31 = vmax.f32 %v10143_v9, 0.0 }
 0x815   : > { %v10269_v48 = vmax.f32 %v10141_v4, 0.0 }
 0x816   : > { %v10359_v1 = vpack.c.bf16 %v10271_v31, %v10270_v30 }
 0x817   : > { %v10358_v10 = vpack.c.bf16 %v10269_v48, %v10268_v41  ;;  %v13892_v18 = vpop.f32.mrb[208].mxu0 }
 0x818   : > { %10423 = vst.msk [vmem:[#allocation2 + $0x188] sm:$0xff] %vm394_vm2, %v10359_v1  ;;  %v10146_v59 = vadd.f32 %v13892_v18, %v17600_v7  ;;  %v9738_v57 = vpop.f32.mrb[209].mxu0 }
 0x819   : > { %10422 = vst.msk [vmem:[#allocation2 + $0x180] sm:$0xff] %vm394_vm2, %v10358_v10  ;;  %v10144_v22 = vadd.f32 %v17600_v7, %v9738_v57  ;;  %v13893_v37 = vpop.f32.mrb[210].mxu0 }
 0x81a   : > { %v10147_v42 = vadd.f32 %v13893_v37, %v17600_v7  ;;  %v9741_v16 = vpop.f32.mrb[211].mxu0  ;;  %v10274_v61 = vmax.f32 %v10146_v59, 0.0 }
 0x81b   : > { %v10145_v45 = vadd.f32 %v17600_v7, %v9741_v16  ;;  %v10272_v40 = vmax.f32 %v10144_v22, 0.0 }
 0x81c   : > { %v10275_v50 = vmax.f32 %v10147_v42, 0.0 }
 0x81d   : > { %v10273_v54 = vmax.f32 %v10145_v45, 0.0 }
 0x81e   : > { %v10361_v58 = vpack.c.bf16 %v10275_v50, %v10274_v61 }
 0x81f   : > { %v10360_v62 = vpack.c.bf16 %v10273_v54, %v10272_v40  ;;  %v13896_v20 = vpop.f32.mrb[212].mxu0  ;;  %v14872_v27 = vld [vmem:[#allocation2 + $0x160] ss:$40 sps:$4 sm:$0xff]  }
 0x820   : > { %10425 = vst.msk [vmem:[#allocation2 + $0x1a0] sm:$0xff] %vm394_vm2, %v10361_v58  ;;  %v10150_v15 = vadd.f32 %v13896_v20, %v17600_v7  ;;  %v9754_v63 = vpop.f32.mrb[213].mxu0  ;;  %13954 = vmatprep.mubr.msk.bf16.mxu1 %vm394_vm2, %v14872_v27 }
 0x821   : > { %10424 = vst.msk [vmem:[#allocation2 + $0x198] sm:$0xff] %vm394_vm2, %v10360_v62  ;;  %v10148_v60 = vadd.f32 %v17600_v7, %v9754_v63  ;;  %v13897_v52 = vpop.f32.mrb[214].mxu0 }
 0x822   : > { %v10151_v2 = vadd.f32 %v13897_v52, %v17600_v7  ;;  %v9757_v25 = vpop.f32.mrb[215].mxu0  ;;  %v10278_v38 = vmax.f32 %v10150_v15, 0.0 }
 0x823   : > { %v10149_v14 = vadd.f32 %v17600_v7, %v9757_v25  ;;  %v10276_v44 = vmax.f32 %v10148_v60, 0.0 }
 0x824   : > { %v10279_v56 = vmax.f32 %v10151_v2, 0.0 }
 0x825   : > { %v10277_v28 = vmax.f32 %v10149_v14, 0.0 }
 0x826   : > { %v10363_v12 = vpack.c.bf16 %v10279_v56, %v10278_v38 }
 0x827   : > { %v10362_v55 = vpack.c.bf16 %v10277_v28, %v10276_v44  ;;  %v13900_v35 = vpop.f32.mrb[216].mxu0 }
 0x828   : > { %10427 = vst.msk [vmem:[#allocation2 + $0x1b0] sm:$0xff] %vm394_vm2, %v10363_v12  ;;  %v10154_v53 = vadd.f32 %v13900_v35, %v17600_v7  ;;  %v9770_v11 = vpop.f32.mrb[217].mxu0 }
 0x829   : > { %10426 = vst.msk [vmem:[#allocation2 + $0x1a8] sm:$0xff] %vm394_vm2, %v10362_v55  ;;  %v10152_v3 = vadd.f32 %v17600_v7, %v9770_v11  ;;  %v13901_v24 = vpop.f32.mrb[218].mxu0 }
 0x82a   : > { %v10155_v5 = vadd.f32 %v13901_v24, %v17600_v7  ;;  %v9773_v8 = vpop.f32.mrb[219].mxu0  ;;  %v10282_v47 = vmax.f32 %v10154_v53, 0.0 }
 0x82b   : > { %v10153_v46 = vadd.f32 %v17600_v7, %v9773_v8  ;;  %v10280_v49 = vmax.f32 %v10152_v3, 0.0 }
 0x82c   : > { %v10283_v39 = vmax.f32 %v10155_v5, 0.0 }
 0x82d   : > { %v10281_v32 = vmax.f32 %v10153_v46, 0.0 }
 0x82e   : > { %v10365_v33 = vpack.c.bf16 %v10283_v39, %v10282_v47 }
 0x82f   : > { %v10364_v26 = vpack.c.bf16 %v10281_v32, %v10280_v49  ;;  %v13904_v6 = vpop.f32.mrb[220].mxu0 }
 0x830   : > { %10429 = vst.msk [vmem:[#allocation2 + $0x1c8] sm:$0xff] %vm394_vm2, %v10365_v33  ;;  %v10158_v34 = vadd.f32 %v13904_v6, %v17600_v7  ;;  %v9786_v17 = vpop.f32.mrb[221].mxu0  ;;  %v17808_v6 = vld [vmem:[%s17931_s6] ss:$0 sm:$0xff] }
 0x831   : > { %10428 = vst.msk [vmem:[#allocation2 + $0x1c0] sm:$0xff] %vm394_vm2, %v10364_v26  ;;  %v10156_v36 = vadd.f32 %v17600_v7, %v9786_v17  ;;  %v13905_v0 = vpop.f32.mrb[222].mxu0 }
 0x832   : > { %v10159_v21 = vadd.f32 %v13905_v0, %v17600_v7  ;;  %v9789_v23 = vpop.f32.mrb[223].mxu0  ;;  %v10286_v13 = vmax.f32 %v10158_v34, 0.0 }
 0x833   : > { %v10157_v29 = vadd.f32 %v17600_v7, %v9789_v23  ;;  %v10284_v9 = vmax.f32 %v10156_v36, 0.0 }
 0x834   : > { %v10287_v19 = vmax.f32 %v10159_v21, 0.0 }
 0x835   : > { %v10285_v51 = vmax.f32 %v10157_v29, 0.0 }
 0x836   : > { %v10367_v4 = vpack.c.bf16 %v10287_v19, %v10286_v13 }
 0x837   : > { %v10366_v30 = vpack.c.bf16 %v10285_v51, %v10284_v9  ;;  %v13908_v31 = vpop.f32.mrb[224].mxu0 }
 0x838   : > { %10431 = vst.msk [vmem:[#allocation2 + $0x1d8] sm:$0xff] %vm394_vm2, %v10367_v4  ;;  %v10162_v41 = vadd.f32 %v13908_v31, %v17600_v7  ;;  %v9802_v48 = vpop.f32.mrb[225].mxu0 }
 0x839   : > { %10430 = vst.msk [vmem:[#allocation2 + $0x1d0] sm:$0xff] %vm394_vm2, %v10366_v30  ;;  %v10160_v1 = vadd.f32 %v17600_v7, %v9802_v48  ;;  %v13909_v10 = vpop.f32.mrb[226].mxu0 }
 0x83a   : > { %v10163_v18 = vadd.f32 %v13909_v10, %v17600_v7  ;;  %v9805_v59 = vpop.f32.mrb[227].mxu0  ;;  %v10290_v22 = vmax.f32 %v10162_v41, 0.0 }
 0x83b   : > { %v10161_v57 = vadd.f32 %v17600_v7, %v9805_v59  ;;  %v10288_v42 = vmax.f32 %v10160_v1, 0.0 }
 0x83c   : > { %v10291_v37 = vmax.f32 %v10163_v18, 0.0 }
 0x83d   : > { %v10289_v16 = vmax.f32 %v10161_v57, 0.0 }
 0x83e   : > { %v10369_v45 = vpack.c.bf16 %v10291_v37, %v10290_v22 }
 0x83f   : > { %v10368_v61 = vpack.c.bf16 %v10289_v16, %v10288_v42  ;;  %v13912_v50 = vpop.f32.mrb[228].mxu0  ;;  %v14873_v40 = vld [vmem:[#allocation2 + $0x1b0] ss:$40 sps:$4 sm:$0xff]  }
 0x840   : > { %10433 = vst.msk [vmem:[#allocation2 + $0x1f0] sm:$0xff] %vm394_vm2, %v10369_v45  ;;  %v10166_v54 = vadd.f32 %v13912_v50, %v17600_v7  ;;  %v9818_v58 = vpop.f32.mrb[229].mxu0  ;;  %13955 = vmatmul.mubr.msk.bf16.gmra.mrb[8].mxu1 %vm394_vm2, %v14873_v40 }
 0x841   : > { %10432 = vst.msk [vmem:[#allocation2 + $0x1e8] sm:$0xff] %vm394_vm2, %v10368_v61  ;;  %v10164_v62 = vadd.f32 %v17600_v7, %v9818_v58  ;;  %v13913_v20 = vpop.f32.mrb[230].mxu0 }
 0x842   : > { %v10167_v27 = vadd.f32 %v13913_v20, %v17600_v7  ;;  %v9821_v15 = vpop.f32.mrb[231].mxu0  ;;  %v10294_v60 = vmax.f32 %v10166_v54, 0.0 }
 0x843   : > { %v10165_v63 = vadd.f32 %v17600_v7, %v9821_v15  ;;  %v10292_v2 = vmax.f32 %v10164_v62, 0.0 }
 0x844   : > { %v10295_v52 = vmax.f32 %v10167_v27, 0.0 }
 0x845   : > { %v10293_v25 = vmax.f32 %v10165_v63, 0.0 }
 0x846   : > { %v10371_v14 = vpack.c.bf16 %v10295_v52, %v10294_v60 }
 0x847   : > { %v10370_v38 = vpack.c.bf16 %v10293_v25, %v10292_v2  ;;  %v13916_v56 = vpop.f32.mrb[232].mxu0 }
 0x848   : > { %10435 = vst.msk [vmem:[#allocation2 + $0x200] sm:$0xff] %vm394_vm2, %v10371_v14  ;;  %v10170_v44 = vadd.f32 %v13916_v56, %v17600_v7  ;;  %v9834_v28 = vpop.f32.mrb[233].mxu0 }
 0x849   : > { %10434 = vst.msk [vmem:[#allocation2 + $0x1f8] sm:$0xff] %vm394_vm2, %v10370_v38  ;;  %v10168_v12 = vadd.f32 %v17600_v7, %v9834_v28  ;;  %v13917_v55 = vpop.f32.mrb[234].mxu0 }
 0x84a   : > { %v10171_v35 = vadd.f32 %v13917_v55, %v17600_v7  ;;  %v9837_v53 = vpop.f32.mrb[235].mxu0  ;;  %v10298_v3 = vmax.f32 %v10170_v44, 0.0 }
 0x84b   : > { %v10169_v11 = vadd.f32 %v17600_v7, %v9837_v53  ;;  %v10296_v5 = vmax.f32 %v10168_v12, 0.0 }
 0x84c   : > { %v10299_v24 = vmax.f32 %v10171_v35, 0.0 }
 0x84d   : > { %v10297_v8 = vmax.f32 %v10169_v11, 0.0 }
 0x84e   : > { %v10373_v46 = vpack.c.bf16 %v10299_v24, %v10298_v3 }
 0x84f   : > { %v10372_v47 = vpack.c.bf16 %v10297_v8, %v10296_v5  ;;  %v13920_v39 = vpop.f32.mrb[236].mxu0 }
 0x850   : > { %10437 = vst.msk [vmem:[#allocation2 + $0x218] sm:$0xff] %vm394_vm2, %v10373_v46  ;;  %v10174_v49 = vadd.f32 %v13920_v39, %v17600_v7  ;;  %v9850_v32 = vpop.f32.mrb[237].mxu0 }
 0x851   : > { %10436 = vst.msk [vmem:[#allocation2 + $0x210] sm:$0xff] %vm394_vm2, %v10372_v47  ;;  %v10172_v33 = vadd.f32 %v17600_v7, %v9850_v32  ;;  %v13921_v26 = vpop.f32.mrb[238].mxu0 }
 0x852   : > { %v10175_v34 = vadd.f32 %v17808_v6, %v13921_v26  ;;  %v9853_v17 = vpop.f32.mrb[239].mxu0  ;;  %v10302_v0 = vmax.f32 %v10174_v49, 0.0 }
 0x853   : > { %v10173_v36 = vadd.f32 %v17808_v6, %v9853_v17  ;;  %v10300_v23 = vmax.f32 %v10172_v33, 0.0 }
 0x854   : > { %v10303_v21 = vmax.f32 %v10175_v34, 0.0 }
 0x855   : > { %v10301_v29 = vmax.f32 %v10173_v36, 0.0 }
 0x856   : > { %v10375_v13 = vpack.c.bf16 %v10303_v21, %v10302_v0 }
 0x857   : > { %v10374_v19 = vpack.c.bf16 %v10301_v29, %v10300_v23  ;;  %v13924_v9 = vpop.f32.mrb[240].mxu0  ;;  %v14880_v23 = vld [vmem:[#allocation2 + $0x1c] ss:$40 sps:$4 sm:$0xff]   ;;  %v10451_v29 = vld [vmem:[#allocation2 + $0x90] sm:$0xf0] }
 0x858   : > { %10439 = vst.msk [vmem:[#allocation2 + $0x228] sm:$0xff] %vm394_vm2, %v10375_v13  ;;  %v10178_v7 = vadd.f32 %v17808_v6, %v13924_v9  ;;  %v9866_v51 = vpop.f32.mrb[241].mxu0  ;;  %v10450_v13 = vld [vmem:[#allocation2 + $0x68] sm:$0xf0]  ;;  %v14882_v9 = vld [vmem:[#allocation2 + $0xbc] ss:$40 sps:$4 sm:$0xff]  }
 0x859   : > { %10438 = vst.msk [vmem:[#allocation2 + $0x220] sm:$0xff] %vm394_vm2, %v10374_v19  ;;  %v10176_v4 = vadd.f32 %v17808_v6, %v9866_v51  ;;  %v13925_v30 = vpop.f32.mrb[242].mxu0  ;;  %v12032_v19 = vcombine.high %v10450_v13, %v10451_v29  ;;  %v14884_v51 = vld [vmem:[#allocation2 + $0x10c] ss:$40 sps:$4 sm:$0xff]  }
 0x85a   : > { %v10179_v31 = vadd.f32 %v17808_v6, %v13925_v30  ;;  %v9869_v41 = vpop.f32.mrb[243].mxu0  ;;  %v10306_v1 = vmax.f32 %v10178_v7, 0.0  ;;  %v14886_v7 = vld [vmem:[%s17932_s7 + $0x50] sm:$0xff]   ;;  %v14885_v30 = vld [vmem:[#allocation2 + $0x15c] ss:$40 sps:$4 sm:$0xff]  }
 0x85b   : > { %v10177_v48 = vadd.f32 %v17808_v6, %v9869_v41  ;;  %v10304_v18 = vmax.f32 %v10176_v4, 0.0  ;;  %v14889_v4 = vld [vmem:[%s17932_s7 + $0x58] sm:$0xff]  }
 0x85c   : > { %v10307_v10 = vmax.f32 %v10179_v31, 0.0 }
 0x85d   : > { %v10305_v59 = vmax.f32 %v10177_v48, 0.0  ;;  %v14891_v48 = vld [vmem:[#allocation2 + $0x24] ss:$40 sps:$4 sm:$0xff]  }
 0x85e   : > { %v10377_v57 = vpack.c.bf16 %v10307_v10, %v10306_v1  ;;  %v14892_v1 = vld [vmem:[#allocation2 + $0x74] ss:$40 sps:$4 sm:$0xff]   ;;  %v14893_v10 = vld [vmem:[#allocation2 + $0xc4] ss:$40 sps:$4 sm:$0xff]  }
 0x85f   : > { %v10376_v22 = vpack.c.bf16 %v10305_v59, %v10304_v18  ;;  %v13928_v37 = vpop.f32.mrb[244].mxu0  ;;  %v14874_v42 = vld [vmem:[#allocation2 + $0x200] ss:$40 sps:$4 sm:$0xff]   ;;  %v14894_v18 = vld [vmem:[#allocation2 + $0x114] ss:$40 sps:$4 sm:$0xff]  }
 0x860   : > { %10441 = vst.msk [vmem:[#allocation2 + $0x240] sm:$0xff] %vm394_vm2, %v10377_v57  ;;  %v10182_v16 = vadd.f32 %v17808_v6, %v13928_v37  ;;  %v9882_v45 = vpop.f32.mrb[245].mxu0  ;;  %13958 = vmatprep.mubr.msk.bf16.mxu1 %vm394_vm2, %v14874_v42  ;;  %v14888_v31 = vld [vmem:[#allocation2 + $0x1fc] ss:$40 sps:$4 sm:$0xff]   ;;  %v14987_v42 = vmov 0.0  }
 0x861   : > { %10440 = vst.msk [vmem:[#allocation2 + $0x238] sm:$0xff] %vm394_vm2, %v10376_v22  ;;  %v10180_v61 = vadd.f32 %v17808_v6, %v9882_v45  ;;  %v13929_v50 = vpop.f32.mrb[246].mxu0  ;;  %v14895_v59 = vld [vmem:[#allocation2 + $0x164] ss:$40 sps:$4 sm:$0xff]   ;;  %v14896_v57 = vld [vmem:[#allocation2 + $0x1b4] ss:$40 sps:$4 sm:$0xff]  }
 0x862   : > { %v10183_v40 = vadd.f32 %v17808_v6, %v13929_v50  ;;  %v9885_v54 = vpop.f32.mrb[247].mxu0  ;;  %v10310_v62 = vmax.f32 %v10182_v16, 0.0  ;;  %v14897_v22 = vld [vmem:[#allocation2 + $0x204] ss:$40 sps:$4 sm:$0xff]   ;;  %v14902_v50 = vld [vmem:[%s17934_s9 + $0x18] sm:$0xff]  }
 0x863   : > { %v10181_v58 = vadd.f32 %v17808_v6, %v9885_v54  ;;  %v10308_v27 = vmax.f32 %v10180_v61, 0.0  ;;  %v14899_v16 = vld [vmem:[%s17934_s9] sm:$0xff]   ;;  %v14900_v45 = vld [vmem:[%s17934_s9 + $0x8] sm:$0xff]   ;;  %v14901_v61 = vld [vmem:[%s17934_s9 + $0x10] sm:$0xff]  }
 0x864   : > { %v10311_v20 = vmax.f32 %v10183_v40, 0.0  ;;  %v17881_v40 = vld [vmem:[%s17933_s8] ss:$0 sm:$0xff] }
 0x865   : > { %v10309_v15 = vmax.f32 %v10181_v58, 0.0 }
 0x866   : > { %v10379_v63 = vpack.c.bf16 %v10311_v20, %v10310_v62 }
 0x867   : > { %v10378_v60 = vpack.c.bf16 %v10309_v15, %v10308_v27  ;;  %v13932_v52 = vpop.f32.mrb[248].mxu0 }
 0x868   : > { %10443 = vst.msk [vmem:[#allocation2 + $0x250] sm:$0xff] %vm394_vm2, %v10379_v63  ;;  %v10186_v2 = vadd.f32 %v17808_v6, %v13932_v52  ;;  %v9898_v25 = vpop.f32.mrb[249].mxu0 }
 0x869   : > { %10442 = vst.msk [vmem:[#allocation2 + $0x248] sm:$0xff] %vm394_vm2, %v10378_v60  ;;  %v10184_v14 = vadd.f32 %v17808_v6, %v9898_v25  ;;  %v13933_v38 = vpop.f32.mrb[250].mxu0 }
 0x86a   : > { %v10187_v56 = vadd.f32 %v17808_v6, %v13933_v38  ;;  %v9901_v44 = vpop.f32.mrb[251].mxu0  ;;  %v10314_v12 = vmax.f32 %v10186_v2, 0.0 }
 0x86b   : > { %v10185_v28 = vadd.f32 %v17808_v6, %v9901_v44  ;;  %v10312_v35 = vmax.f32 %v10184_v14, 0.0 }
 0x86c   : > { %v10315_v55 = vmax.f32 %v10187_v56, 0.0 }
 0x86d   : > { %v10313_v53 = vmax.f32 %v10185_v28, 0.0 }
 0x86e   : > { %v10381_v11 = vpack.c.bf16 %v10315_v55, %v10314_v12 }
 0x86f   : > { %v10380_v3 = vpack.c.bf16 %v10313_v53, %v10312_v35  ;;  %v13936_v24 = vpop.f32.mrb[252].mxu0 }
 0x870   : > { %10445 = vst.msk [vmem:[#allocation2 + $0x268] sm:$0xff] %vm394_vm2, %v10381_v11  ;;  %v10190_v5 = vadd.f32 %v17808_v6, %v13936_v24  ;;  %v9914_v8 = vpop.f32.mrb[253].mxu0 }
 0x871   : > { %10444 = vst.msk [vmem:[#allocation2 + $0x260] sm:$0xff] %vm394_vm2, %v10380_v3  ;;  %v10188_v46 = vadd.f32 %v17808_v6, %v9914_v8  ;;  %v13937_v47 = vpop.f32.mrb[254].mxu0 }
 0x872   : > { %v10191_v39 = vadd.f32 %v17808_v6, %v13937_v47  ;;  %v9917_v49 = vpop.f32.mrb[255].mxu0  ;;  %v10318_v33 = vmax.f32 %v10190_v5, 0.0 }
 0x873   : > { %v10189_v32 = vadd.f32 %v17808_v6, %v9917_v49  ;;  %v10316_v34 = vmax.f32 %v10188_v46, 0.0  ;;  %v14883_v6 = vld [vmem:[%s17932_s7 + $0x48] sm:$0xff]  }
 0x874   : > { %v10319_v26 = vmax.f32 %v10191_v39, 0.0 }
 0x875   : > { %v10317_v17 = vmax.f32 %v10189_v32, 0.0 }
 0x876   : > { %v10383_v36 = vpack.c.bf16 %v10319_v26, %v10318_v33 }
 0x877   : > { %v10382_v0 = vpack.c.bf16 %v10317_v17, %v10316_v34 }
 0x878   : > { %10447 = vst.msk [vmem:[#allocation2 + $0x278] sm:$0xff] %vm394_vm2, %v10383_v36 }
 0x879   : > { %10446 = vst.msk [vmem:[#allocation2 + $0x270] sm:$0xff] %vm394_vm2, %v10382_v0 }
 0x87f   : > { %v14879_v21 = vld [vmem:[#allocation2 + $0x250] ss:$40 sps:$4 sm:$0xff]   ;;  %v14898_v37 = vld [vmem:[#allocation2 + $0x254] ss:$40 sps:$4 sm:$0xff]  }
 0x880   : > { %13959 = vmatmul.mubr.msk.bf16.gmra.mrb[12].mxu1 %vm394_vm2, %v14879_v21  ;;  %v14890_v41 = vld [vmem:[#allocation2 + $0x24c] ss:$40 sps:$4 sm:$0xff]  }
 0x881   : > { %13970 = vmatprep.mubr.msk.bf16.mxu1 %vm394_vm2, %v14880_v23 }
 0x888   : > { %13971 = vmatmul.mubr.msk.bf16.vlgmr.msra.gmra.mrb[0].mxu1 %vm394_vm2, %v12032_v19 }
 0x889   : > { %13987 = vmatpush3.bf16.msra.mxu1 %v17741_v43  ;;  %13974 = vmatprep.mubr.msk.bf16.mxu1 %vm394_vm2, %v14882_v9  ;;  %v14887_v43 = vld [vmem:[#allocation2 + $0x1ac] ss:$40 sps:$4 sm:$0xff]  }
 0x88a   : > { %13988 = vmatprep.subr.bf16.mxu1 %v14883_v6 }
 0x88d   : > { %13989 = vmatpush3.bf16.msra.mxu1 %v14883_v6 }
 0x88e   : > { %13990 = vmatprep.subr.bf16.mxu1 %v14886_v7 }
 0x890   : > { %13975 = vmatmul.mubr.msk.bf16.gmra.mrb[4].mxu1 %vm394_vm2, %v14884_v51 }
 0x891   : > { %13978 = vmatprep.mubr.msk.bf16.mxu1 %vm394_vm2, %v14885_v30  ;;  %13991 = vmatpush3.bf16.msra.mxu1 %v14886_v7 }
 0x892   : > { %13992 = vmatprep.subr.bf16.mxu1 %v14889_v4 }
 0x895   : > { %13993 = vmatpush3.bf16.msra.mxu1 %v14889_v4 }
 0x896   : > { %14010 = vmatprep.subr.bf16.mxu1 %v14987_v42 }
 0x898   : > { %13979 = vmatmul.mubr.msk.bf16.gmra.mrb[8].mxu1 %vm394_vm2, %v14887_v43 }
 0x899   : > { %13982 = vmatprep.mubr.msk.bf16.mxu1 %vm394_vm2, %v14888_v31 }
 0x8a0   : > { %13983 = vmatmul.mubr.msk.bf16.gmra.mrb[12].mxu1 %vm394_vm2, %v14890_v41 }
 0x8a1   : > { %13994 = vmatprep.mubr.msk.bf16.mxu1 %vm394_vm2, %v14891_v48 }
 0x8a8   : > { %13995 = vmatmul.mubr.msk.bf16.vlgmr.msra.gmra.mrb[0].mxu1 %vm394_vm2, %v14892_v1 }
 0x8a9   : > { %13998 = vmatprep.mubr.msk.bf16.mxu1 %vm394_vm2, %v14893_v10  ;;  %14011 = vmatpush3.bf16.msra.mxu1 %v14899_v16 }
 0x8aa   : > { %14012 = vmatprep.subr.bf16.mxu1 %v14987_v42 }
 0x8ad   : > { %14013 = vmatpush3.bf16.msra.mxu1 %v14900_v45 }
 0x8ae   : > { %14014 = vmatprep.subr.bf16.mxu1 %v14987_v42 }
 0x8b0   : > { %13999 = vmatmul.mubr.msk.bf16.gmra.mrb[4].mxu1 %vm394_vm2, %v14894_v18 }
 0x8b1   : > { %14002 = vmatprep.mubr.msk.bf16.mxu1 %vm394_vm2, %v14895_v59  ;;  %14015 = vmatpush3.bf16.msra.mxu1 %v14901_v61 }
 0x8b2   : > { %14016 = vmatprep.subr.bf16.mxu1 %v14987_v42 }
 0x8b5   : > { %14017 = vmatpush3.bf16.msra.mxu1 %v14902_v50 }
 0x8b8   : > { %14003 = vmatmul.mubr.msk.bf16.gmra.mrb[8].mxu1 %vm394_vm2, %v14896_v57 }
 0x8b9   : > { %14006 = vmatprep.mubr.msk.bf16.mxu1 %vm394_vm2, %v14897_v22 }
 0x8c0   : > { %14007 = vmatmul.mubr.msk.bf16.gmra.mrb[12].mxu1 %vm394_vm2, %v14898_v37 }
 0x8c1   : > { %14018 = vmatprep.mubr.msk.bf16.mxu1 %vm14988_vm5, %v14987_v42 }
 0x97b   : > { %v13996_v54 = vpop.f32.mrb[0].mxu1 }
 0x97c   : > { %v11102_v58 = vadd.f32 %v13996_v54, %v17881_v40  ;;  %v11014_v62 = vpop.f32.mrb[1].mxu1 }
 0x97d   : > { %v11100_v20 = vadd.f32 %v17881_v40, %v11014_v62  ;;  %v13997_v27 = vpop.f32.mrb[2].mxu1 }
 0x97e   : > { %v11118_v15 = vmax.f32 %v11102_v58, 0.0  ;;  %v11103_v63 = vadd.f32 %v13997_v27, %v17881_v40  ;;  %v11017_v60 = vpop.f32.mrb[3].mxu1 }
 0x97f   : > { %v11116_v52 = vmax.f32 %v11100_v20, 0.0  ;;  %v11101_v2 = vadd.f32 %v17881_v40, %v11017_v60 }
 0x980   : > { %v11134_v25 = vpack.c.bf16 %v11118_v15, %v11118_v15  ;;  %v11119_v14 = vmax.f32 %v11103_v63, 0.0 }
 0x981   : > { %v11132_v38 = vpack.c.bf16 %v11116_v52, %v11116_v52  ;;  %v11117_v56 = vmax.f32 %v11101_v2, 0.0 }
 0x982   : > { %v11135_v44 = vpack.c.bf16 %v11119_v14, %v11119_v14  ;;  %v11181_v35 = vunpack.c.l.b16 %v11134_v25 }
 0x983   : > { %v11179_v28 = vunpack.c.l.b16 %v11132_v38  ;;  %v11133_v12 = vpack.c.bf16 %v11117_v56, %v11117_v56  ;;  %v14000_v55 = vpop.f32.mrb[4].mxu1 }
 0x984   : > { %v11182_v53 = vunpack.c.l.b16 %v11135_v44  ;;  %v11106_v11 = vadd.f32 %v14000_v55, %v17881_v40  ;;  %v11030_v3 = vpop.f32.mrb[5].mxu1  ;;  %v11199_v34 = vrot.slane %v11181_v35, 5 }
 0x985   : > { %v11180_v24 = vunpack.c.l.b16 %v11133_v12  ;;  %v11104_v5 = vadd.f32 %v17881_v40, %v11030_v3  ;;  %v14001_v8 = vpop.f32.mrb[6].mxu1  ;;  %v11195_v49 = vrot.slane %v11179_v28, 7 }
 0x986   : > { %v11122_v46 = vmax.f32 %v11106_v11, 0.0  ;;  %v11107_v47 = vadd.f32 %v14001_v8, %v17881_v40  ;;  %v11033_v39 = vpop.f32.mrb[7].mxu1  ;;  %v11202_v17 = vrot.slane %v11182_v53, 4 }
 0x987   : > { %v11196_v32 = vrot.slane %v11180_v24, 6  ;;  %v11120_v33 = vmax.f32 %v11104_v5, 0.0  ;;  %v11105_v26 = vadd.f32 %v17881_v40, %v11033_v39 }
 0x988   : > { %v11138_v36 = vpack.c.bf16 %v11122_v46, %v11122_v46  ;;  %v11123_v23 = vmax.f32 %v11107_v47, 0.0 }
 0x989   : > { %v11198_v0 = vsel %vm11197_vm6, %v11196_v32, %v11195_v49  ;;  %v11136_v21 = vpack.c.bf16 %v11120_v33, %v11120_v33  ;;  %v11121_v29 = vmax.f32 %v11105_v26, 0.0 }
 0x98a   : > { %v11201_v13 = vsel %vm11200_vm7, %v11199_v34, %v11198_v0  ;;  %v11185_v51 = vunpack.c.l.b16 %v11138_v36  ;;  %v11139_v31 = vpack.c.bf16 %v11123_v23, %v11123_v23 }
 0x98b   : > { %v11183_v19 = vunpack.c.l.b16 %v11136_v21  ;;  %v11204_v6 = vsel %vm11203_vm8, %v11202_v17, %v11201_v13  ;;  %v11137_v9 = vpack.c.bf16 %v11121_v29, %v11121_v29  ;;  %v14004_v7 = vpop.f32.mrb[8].mxu1 }
 0x98c   : > { %v11110_v4 = vadd.f32 %v14004_v7, %v17881_v40  ;;  %v11046_v30 = vpop.f32.mrb[9].mxu1  ;;  %v11211_v16 = vrot.slane %v11185_v51, 1  ;;  %v11186_v50 = vunpack.c.l.b16 %v11139_v31 }
 0x98d   : > { %v11205_v43 = vrot.slane %v11183_v19, 3  ;;  %v11184_v41 = vunpack.c.l.b16 %v11137_v9  ;;  %v11108_v48 = vadd.f32 %v17881_v40, %v11046_v30  ;;  %v14005_v1 = vpop.f32.mrb[10].mxu1 }
 0x98e   : > { %v11126_v10 = vmax.f32 %v11110_v4, 0.0  ;;  %v11111_v18 = vadd.f32 %v14005_v1, %v17881_v40  ;;  %v11049_v59 = vpop.f32.mrb[11].mxu1  ;;  %v12080_v4 = vld [vmem:[%s17935_s10] ss:$0 sm:$0xff] }
 0x98f   : > { %v11207_v57 = vsel %vm11206_vm9, %v11205_v43, %v11204_v6  ;;  %v11208_v22 = vrot.slane %v11184_v41, 2  ;;  %v11124_v37 = vmax.f32 %v11108_v48, 0.0  ;;  %v11109_v42 = vadd.f32 %v17881_v40, %v11049_v59 }
 0x990   : > { %v11142_v45 = vpack.c.bf16 %v11126_v10, %v11126_v10  ;;  %v11127_v61 = vmax.f32 %v11111_v18, 0.0 }
 0x991   : > { %v11210_v54 = vsel %vm11209_vm10, %v11208_v22, %v11207_v57  ;;  %v11140_v58 = vpack.c.bf16 %v11124_v37, %v11124_v37  ;;  %v11125_v62 = vmax.f32 %v11109_v42, 0.0 }
 0x992   : > { %v11213_v20 = vsel %vm11212_vm11, %v11211_v16, %v11210_v54  ;;  %v11143_v27 = vpack.c.bf16 %v11127_v61, %v11127_v61  ;;  %v11189_v2 = vunpack.c.l.b16 %v11142_v45 }
 0x993   : > { %v11215_v15 = vsel %vm11214_vm12, %v11186_v50, %v11213_v20  ;;  %v11187_v63 = vunpack.c.l.b16 %v11140_v58  ;;  %v11141_v60 = vpack.c.bf16 %v11125_v62, %v11125_v62  ;;  %v14008_v52 = vpop.f32.mrb[12].mxu1 }
 0x994   : > { %v11190_v25 = vunpack.c.l.b16 %v11143_v27  ;;  %v11114_v14 = vadd.f32 %v14008_v52, %v17881_v40  ;;  %v11062_v38 = vpop.f32.mrb[13].mxu1  ;;  %v11219_v5 = vrot.slane %v11189_v2, 5 }
 0x995   : > { %v11188_v56 = vunpack.c.l.b16 %v11141_v60  ;;  %v11112_v44 = vadd.f32 %v17881_v40, %v11062_v38  ;;  %v14009_v28 = vpop.f32.mrb[14].mxu1  ;;  %v11216_v53 = vrot.slane %v11187_v63, 7 }
 0x996   : > { %v11130_v12 = vmax.f32 %v11114_v14, 0.0  ;;  %v11115_v55 = vadd.f32 %v14009_v28, %v17881_v40  ;;  %v11065_v35 = vpop.f32.mrb[15].mxu1  ;;  %v11221_v8 = vrot.slane %v11190_v25, 4 }
 0x997   : > { %v11217_v11 = vrot.slane %v11188_v56, 6  ;;  %v11128_v3 = vmax.f32 %v11112_v44, 0.0  ;;  %v11113_v24 = vadd.f32 %v17881_v40, %v11065_v35 }
 0x998   : > { %v11146_v46 = vpack.c.bf16 %v11130_v12, %v11130_v12  ;;  %v11131_v49 = vmax.f32 %v11115_v55, 0.0 }
 0x999   : > { %v11218_v47 = vsel %vm11197_vm6, %v11217_v11, %v11216_v53  ;;  %v11144_v39 = vpack.c.bf16 %v11128_v3, %v11128_v3  ;;  %v11129_v32 = vmax.f32 %v11113_v24, 0.0 }
 0x99a   : > { %v11220_v33 = vsel %vm11200_vm7, %v11219_v5, %v11218_v47  ;;  %v11193_v36 = vunpack.c.l.b16 %v11146_v46  ;;  %v11147_v21 = vpack.c.bf16 %v11131_v49, %v11131_v49 }
 0x99b   : > { %v11191_v26 = vunpack.c.l.b16 %v11144_v39  ;;  %v11222_v34 = vsel %vm11203_vm8, %v11221_v8, %v11220_v33  ;;  %v11145_v17 = vpack.c.bf16 %v11129_v32, %v11129_v32 }
 0x99c   : > { %v11227_v13 = vrot.slane %v11193_v36, 1  ;;  %v11194_v19 = vunpack.c.l.b16 %v11147_v21 }
 0x99d   : > { %v11223_v0 = vrot.slane %v11191_v26, 3  ;;  %v11192_v23 = vunpack.c.l.b16 %v11145_v17 }
 0x99f   : > { %v11224_v40 = vsel %vm11206_vm9, %v11223_v0, %v11222_v34  ;;  %v11225_v29 = vrot.slane %v11192_v23, 2 }
 0x9a1   : > { %v11226_v6 = vsel %vm11209_vm10, %v11225_v29, %v11224_v40 }
 0x9a2   : > { %v11228_v9 = vsel %vm11212_vm11, %v11227_v13, %v11226_v6 }
 0x9a3   : > { %v11229_v7 = vsel %vm11214_vm12, %v11194_v19, %v11228_v9 }
 0x9a4   : > { %v11230_v51 = vpack.c.b16 %v11229_v7, %v11215_v15 }
 0x9a6   : > { %14019 = vmatmul.mubr.msk.bf16.vlgmr.msra.gmra.mrb[16].mxu1 %vm394_vm2, %v11230_v51 }
 0xa79   : > { %v11292_v30 = vpop.f32.mrb[16].mxu1 }
 0xa7a   : > { %v11293_v43 = vadd.f32 %v12080_v4, %v11292_v30  ;;  %v14020_v31 = vpop.f32.mrb[17].mxu1 }
 0xa7b   : > { %v11295_v41 = vpop.f32.mrb[18].mxu1 }
 0xa7c   : > { %11299 = vst [vmem:[%s391_s28] sm:$0xff] %v11293_v43  ;;  %v11296_v48 = vadd.f32 %v12080_v4, %v11295_v41  ;;  %v14021_v1 = vpop.f32.mrb[19].mxu1 }
 0xa7e   : > { %11300 = vst [vmem:[%s391_s28 + $0x8] sm:$0xff] %v11296_v48 }
 0xa7f PF: > { %s21_s17 = sadd.s32 1, %s14984_s17  }
 0xa80   : > { %p18_p5 = scmp.ge.s32.totalorder %s21_s17, 4  }
 0xa82   :  { %20 = sbr.rel (!%p18_p5) target bundleno = 1 (0x1), region = 102 }

</bundles_post_ra>
